<compile_context>
chip_gen: v6e
topology: v6e:2x2x1
jax: 0.10.0
libtpu: 0.0.40
codegen_flags: <defaults>
</compile_context>

<pallas_src>
import functools

import jax
import jax.numpy as jnp
from jax.experimental import pallas as pl
from jax.experimental.pallas import tpu as pltpu


# ------------------------------ helpers --------------------------------------

def _round_up(x, m):
    return (x + m - 1) // m * m


def _cdiv(a, b):
    return -(-a // b)


def _pick_tm(m, tm_req):
    """M-tile: multiple of 16 (bf16 packing), and <= ~ceil(M/2) so the grid has
    at least 2 steps whenever M allows (v7x megacore sharding)."""
    half = _round_up(_cdiv(m, 2), 16)
    return max(16, min(tm_req, half))


def _vmem_limit_bytes():
    # 75% of per-generation capacity: ~96 MiB on v5e/v6e (128 MiB), ~48 MiB on
    # v7x (64 MiB).  Leaves headroom for compiler scratch / double buffers.
    try:
        cap = int(pltpu.get_tpu_info().vmem_capacity_bytes)
    except Exception:
        cap = 64 << 20  # conservative fallback: assume the smallest generation
    return int(cap * 3 // 4)


_COMPILER_PARAMS = pltpu.CompilerParams(
    dimension_semantics=("parallel",), vmem_limit_bytes=_vmem_limit_bytes())


# ----------------------------- Pallas kernels --------------------------------

def _linear_kernel(x_ref, w_ref, b_ref, o_ref, *, apply_relu):
    acc = jnp.dot(x_ref[...], w_ref[...], preferred_element_type=jnp.float32)
    acc = acc + b_ref[...]                       # (1, N) f32 bias broadcasts over M
    if apply_relu:
        acc = jnp.maximum(acc, 0.0)
    o_ref[...] = acc.astype(o_ref.dtype)


def pallas_linear(x, w, b2d, *, relu, out_dtype=jnp.bfloat16, tm=512):
    """y = relu?(x @ w + b).  x:(M,K) bf16, w:(K,N) bf16, b2d:(1,N) f32.

    M-tiled ("parallel") grid; ragged final block handled by Pallas (no pad)."""
    M, K = x.shape
    K2, N = w.shape
    assert K == K2, (K, K2)
    tm = _pick_tm(M, tm)
    kernel = functools.partial(_linear_kernel, apply_relu=relu)
    return pl.pallas_call(
        kernel,
        out_shape=jax.ShapeDtypeStruct((M, N), out_dtype),
        grid=(_cdiv(M, tm),),
        in_specs=[
            pl.BlockSpec((tm, K), lambda i: (i, 0)),
            pl.BlockSpec((K, N), lambda i: (0, 0)),
            pl.BlockSpec((1, N), lambda i: (0, 0)),
        ],
        out_specs=pl.BlockSpec((tm, N), lambda i: (i, 0)),
        compiler_params=_COMPILER_PARAMS,
    )(x, w, b2d)


def _head_kernel(x_ref, fcw_ref, fcb_ref, w1_ref, b1_ref, w2_ref, b2_ref, o_ref):
    # h = relu(x @ fc_w + fc_b)  -- keep the live intermediate in bf16.
    h = jnp.dot(x_ref[...], fcw_ref[...], preferred_element_type=jnp.float32)
    h = jnp.maximum(h + fcb_ref[...], 0.0).astype(jnp.bfloat16)
    # [p1 | v1] = relu(h @ [p1_w | v1_w] + [p1_b | v1_b])
    pv = jnp.dot(h, w1_ref[...], preferred_element_type=jnp.float32)
    pv = jnp.maximum(pv + b1_ref[...], 0.0).astype(jnp.bfloat16)
    # [logits | value | 0-pad] = pv @ blockdiag(p2_w, v2_w)   (lane-dense 128 cols)
    out = jnp.dot(pv, w2_ref[...], preferred_element_type=jnp.float32)
    o_ref[...] = (out + b2_ref[...]).astype(o_ref.dtype)


def pallas_a3c_head(x_flat, fc_w, fc_b, w1, b1, w2, b2, *, tm=128):
    """Fused fc + policy + value heads.  Returns an (M, 128) f32 output slab."""
    M, K = x_flat.shape
    H1 = fc_w.shape[1]        # 512
    H2 = w1.shape[1]          # 512
    NPAD = w2.shape[1]        # 128
    tm = _pick_tm(M, tm)
    return pl.pallas_call(
        _head_kernel,
        out_shape=jax.ShapeDtypeStruct((M, NPAD), jnp.float32),
        grid=(_cdiv(M, tm),),
        in_specs=[
            pl.BlockSpec((tm, K), lambda i: (i, 0)),
            pl.BlockSpec((K, H1), lambda i: (0, 0)),
            pl.BlockSpec((1, H1), lambda i: (0, 0)),
            pl.BlockSpec((H1, H2), lambda i: (0, 0)),
            pl.BlockSpec((1, H2), lambda i: (0, 0)),
            pl.BlockSpec((H2, NPAD), lambda i: (0, 0)),
            pl.BlockSpec((1, NPAD), lambda i: (0, 0)),
        ],
        out_specs=pl.BlockSpec((tm, NPAD), lambda i: (i, 0)),
        compiler_params=_COMPILER_PARAMS,
    )(x_flat, fc_w, fc_b, w1, b1, w2, b2)


# ------------------------------ JAX glue --------------------------------------

def im2col_nhwc(x, kh, kw, stride):
    """x: (B, H, W, C) -> (B*oh*ow, kh*kw*C) with (kh, kw, C) contraction order."""
    B, H, W, C = x.shape
    oh = (H - kh) // stride + 1
    ow = (W - kw) // stride + 1
    cols = []
    for i in range(kh):
        for j in range(kw):
            cols.append(x[:, i:i + stride * oh:stride, j:j + stride * ow:stride, :])
    p = jnp.concatenate(cols, axis=-1)              # (B, oh, ow, kh*kw*C)
    return p.reshape(B * oh * ow, kh * kw * C), oh, ow


def conv2d_relu_nhwc(x, w_mat, b2d, kh, kw, stride, *, tm=512):
    """Conv2d (valid) + ReLU on NHWC activations; w_mat is prepacked (kh*kw*C, OC) bf16."""
    B = x.shape[0]
    patches, oh, ow = im2col_nhwc(x, kh, kw, stride)
    y = pallas_linear(patches, w_mat, b2d, relu=True, out_dtype=jnp.bfloat16, tm=tm)
    return y.reshape(B, oh, ow, w_mat.shape[1])     # stays NHWC


# ------------------------------ A3C model -------------------------------------

def init_params(key, input_size=4, n_actions=4):
    def dense(k, fan_in, shape):
        return (jax.random.normal(k, shape, jnp.float32) / jnp.sqrt(fan_in)).astype(jnp.float32)

    ks = jax.random.split(key, 16)
    p = {}
    # conv stack (PyTorch weight layout (OC, C, KH, KW))
    p["c1_w"] = dense(ks[0], input_size * 8 * 8, (32, input_size, 8, 8))
    p["c1_b"] = dense(ks[1], input_size * 8 * 8, (32,))
    p["c2_w"] = dense(ks[2], 32 * 4 * 4, (64, 32, 4, 4))
    p["c2_b"] = dense(ks[3], 32 * 4 * 4, (64,))
    p["c3_w"] = dense(ks[4], 64 * 3 * 3, (64, 64, 3, 3))
    p["c3_b"] = dense(ks[5], 64 * 3 * 3, (64,))
    # final_layer: Linear(3136 -> 512)   (stored as (in, out))
    p["fc_w"] = dense(ks[6], 3136, (3136, 512))
    p["fc_b"] = dense(ks[7], 3136, (512,))
    # policy head: 512 -> 256 -> n_actions
    p["p1_w"] = dense(ks[8], 512, (512, 256))
    p["p1_b"] = dense(ks[9], 512, (256,))
    p["p2_w"] = dense(ks[10], 256, (256, n_actions))
    p["p2_b"] = dense(ks[11], 256, (n_actions,))
    # value head: 512 -> 256 -> 1
    p["v1_w"] = dense(ks[12], 512, (512, 256))
    p["v1_b"] = dense(ks[13], 512, (256,))
    p["v2_w"] = dense(ks[14], 256, (256, 1))
    p["v2_b"] = dense(ks[15], 256, (1,))
    return p


def prepare_params(p):
    """One-time weight packing (runs once, outside the jitted forward)."""
    bf = jnp.bfloat16
    n_actions = p["p2_w"].shape[1]
    NPAD = 128
    assert n_actions + 1 <= NPAD

    def conv_w(w):  # (OC, C, KH, KW) -> (KH*KW*C, OC), matching im2col's (kh, kw, c) order
        OC, C, KH, KW = w.shape
        return w.transpose(2, 3, 1, 0).reshape(KH * KW * C, OC).astype(bf)

    def bias(b):
        return b.reshape(1, -1).astype(jnp.float32)

    packed = {
        "c1_w": conv_w(p["c1_w"]), "c1_b": bias(p["c1_b"]),
        "c2_w": conv_w(p["c2_w"]), "c2_b": bias(p["c2_b"]),
        "c3_w": conv_w(p["c3_w"]), "c3_b": bias(p["c3_b"]),
    }

    # Fold PyTorch's NCHW-order flatten into fc_w as a one-time row permutation
    # of the (3136, 512) weight (the forward flattens NHWC activations directly).
    OC, OH, OW = 64, 7, 7
    perm = jnp.arange(OC * OH * OW).reshape(OC, OH, OW).transpose(1, 2, 0).reshape(-1)
    packed["fc_w"] = p["fc_w"][perm, :].astype(bf)          # (3136, 512)
    packed["fc_b"] = bias(p["fc_b"])
    # TODO(synk): optionally pad K 3136->3200 here (zero rows) for a full MXU K-loop.

    # Concatenate policy/value hidden layers -> one 512-wide matmul.
    packed["w1"] = jnp.concatenate([p["p1_w"], p["v1_w"]], axis=1).astype(bf)   # (512, 512)
    packed["b1"] = bias(jnp.concatenate([p["p1_b"], p["v1_b"]], axis=0))

    # Block-diagonal output layer padded to a lane-dense 128-wide slab:
    #   cols [0, n_actions) <- policy logits, col n_actions <- value.
    w2 = jnp.zeros((512, NPAD), jnp.float32)
    w2 = w2.at[:256, :n_actions].set(p["p2_w"])
    w2 = w2.at[256:, n_actions].set(p["v2_w"][:, 0])
    b2 = jnp.zeros((NPAD,), jnp.float32)
    b2 = b2.at[:n_actions].set(p["p2_b"]).at[n_actions].set(p["v2_b"][0])
    packed["w2"] = w2.astype(bf)
    packed["b2"] = b2.reshape(1, NPAD)
    return packed


def a3c_forward(packed, x, *, n_actions):
    """x: (B, C, H, W) NCHW f32 -> (logits (B, n_actions), values (B, 1))."""
    bf = jnp.bfloat16
    x = jnp.transpose(x, (0, 2, 3, 1)).astype(bf)                               # NCHW -> NHWC once
    x = conv2d_relu_nhwc(x, packed["c1_w"], packed["c1_b"], 8, 8, 4, tm=512)    # (B, 20, 20, 32)
    x = conv2d_relu_nhwc(x, packed["c2_w"], packed["c2_b"], 4, 4, 2, tm=512)    # (B,  9,  9, 64)
    x = conv2d_relu_nhwc(x, packed["c3_w"], packed["c3_b"], 3, 3, 1, tm=512)    # (B,  7,  7, 64)

    B = x.shape[0]
    x_flat = x.reshape(B, -1)        # NHWC flatten (bf16); NCHW order lives in fc_w rows

    out = pallas_a3c_head(x_flat, packed["fc_w"], packed["fc_b"],
                          packed["w1"], packed["b1"],
                          packed["w2"], packed["b2"], tm=128)                   # (B, 128) f32
    logits = out[:, :n_actions]
    values = out[:, n_actions:n_actions + 1]
    return logits, values


# ------------------ pure-f32 jnp reference (PyTorch semantics) -----------------

def _ref_im2col_nchw(x, kh, kw, stride):
    B, C, H, W = x.shape
    oh = (H - kh) // stride + 1
    ow = (W - kw) // stride + 1
    cols = []
    for i in range(kh):
        for j in range(kw):
            cols.append(x[:, :, i:i + stride * oh:stride, j:j + stride * ow:stride])
    p = jnp.stack(cols, axis=0).reshape(kh, kw, B, C, oh, ow)
    p = p.transpose(2, 4, 5, 3, 0, 1).reshape(B * oh * ow, C * kh * kw)
    return p, oh, ow


def _ref_conv(x, w, b, stride):
    B = x.shape[0]
    OC = w.shape[0]
    patches, oh, ow = _ref_im2col_nchw(x, w.shape[2], w.shape[3], stride)
    y = jnp.maximum(patches @ w.reshape(OC, -1).T + b, 0.0)
    return y.reshape(B, oh, ow, OC).transpose(0, 3, 1, 2)


def _ref_forward(p, x):
    x = _ref_conv(x, p["c1_w"], p["c1_b"], 4)
    x = _ref_conv(x, p["c2_w"], p["c2_b"], 2)
    x = _ref_conv(x, p["c3_w"], p["c3_b"], 1)
    x = x.reshape(x.shape[0], -1)
    h = jnp.maximum(x @ p["fc_w"] + p["fc_b"], 0.0)
    logits = jnp.maximum(h @ p["p1_w"] + p["p1_b"], 0.0) @ p["p2_w"] + p["p2_b"]
    values = jnp.maximum(h @ p["v1_w"] + p["v1_b"], 0.0) @ p["v2_w"] + p["v2_b"]
    return logits, values


if __name__ == "__main__":
    key = jax.random.PRNGKey(0)
    k_param, k_x = jax.random.split(key)
    n_actions = 4
    params = init_params(k_param, input_size=4, n_actions=n_actions)
    packed = prepare_params(params)          # one-time weight packing (not per call)

    # Spatial size 84 is forced by the 7*7*64 flatten in the module; batch kept small.
    x = jax.random.normal(k_x, (2, 4, 84, 84), jnp.float32)

    fwd = jax.jit(a3c_forward, static_argnames=("n_actions",))
    logits, values = fwd(packed, x, n_actions=n_actions)
    jax.block_until_ready((logits, values))

    assert logits.shape == (2, n_actions) and values.shape == (2, 1)

    ref_logits, ref_values = _ref_forward(params, x)
    # bf16 matmul inputs (f32 accumulation) vs. the f32 reference: allow bf16-level noise.
    assert jnp.allclose(logits, ref_logits, atol=5e-2, rtol=5e-2), (
        float(jnp.max(jnp.abs(logits - ref_logits))))
    assert jnp.allclose(values, ref_values, atol=5e-2, rtol=5e-2), (
        float(jnp.max(jnp.abs(values - ref_values))))

    print("KERNEL_OK")
</pallas_src>

<mosaic_0001>
module attributes {stable_mosaic.version = 11 : i64} {
  func.func @_linear_kernel(%arg0: i32, %arg1: memref<400x256xbf16, #tpu.memory_space<vmem>>, %arg2: memref<256x32xbf16, #tpu.memory_space<vmem>>, %arg3: memref<1x32xf32, #tpu.memory_space<vmem>>, %arg4: memref<400x32xbf16, #tpu.memory_space<vmem>>) attributes {dimension_semantics = [#tpu.dimension_semantics<parallel>], iteration_bounds = array<i64: 2>, scalar_prefetch = 0 : i64, scratch_operands = 0 : i64, tpu.core_type = #tpu.core_type<tc>, window_params = [{transform_indices = @transform_0, window_bounds = array<i64: 400, 256>}, {pipeline_mode = #tpu.pipeline_mode<synchronous>, transform_indices = @transform_1, window_bounds = array<i64: 256, 32>}, {pipeline_mode = #tpu.pipeline_mode<synchronous>, transform_indices = @transform_2, window_bounds = array<i64: 1, 32>}, {transform_indices = @transform_3, window_bounds = array<i64: 400, 32>}]} {
    %c0 = arith.constant 0 : index
    %c0_0 = arith.constant 0 : index
    %0 = vector.load %arg1[%c0, %c0_0] : memref<400x256xbf16, #tpu.memory_space<vmem>>, vector<400x256xbf16>
    %c0_1 = arith.constant 0 : index
    %c0_2 = arith.constant 0 : index
    %1 = vector.load %arg2[%c0_1, %c0_2] : memref<256x32xbf16, #tpu.memory_space<vmem>>, vector<256x32xbf16>
    %cst = arith.constant dense<0.000000e+00> : vector<400x32xf32>
    %2 = tpu.matmul %0, %1, %cst {dimension_numbers = #tpu.dot_dimension_numbers<[1], [0], [0], [1], [0, 0, 1, 1], [], []>} : vector<400x256xbf16>, vector<256x32xbf16>, vector<400x32xf32> -> vector<400x32xf32>
    %c0_3 = arith.constant 0 : index
    %c0_4 = arith.constant 0 : index
    %3 = vector.load %arg3[%c0_3, %c0_4] : memref<1x32xf32, #tpu.memory_space<vmem>>, vector<1x32xf32>
    %4 = vector.broadcast %3 : vector<1x32xf32> to vector<400x32xf32>
    %5 = arith.addf %2, %4 : vector<400x32xf32>
    %cst_5 = arith.constant 0.000000e+00 : f32
    %6 = vector.broadcast %cst_5 : f32 to vector<400x32xf32>
    %7 = arith.maximumf %5, %6 : vector<400x32xf32>
    %8 = arith.truncf %7 : vector<400x32xf32> to vector<400x32xbf16>
    %c0_6 = arith.constant 0 : index
    %c0_7 = arith.constant 0 : index
    %9 = vector.load %arg4[%c0_6, %c0_7] : memref<400x32xbf16, #tpu.memory_space<vmem>>, vector<400x32xbf16>
    tpu.vector_store %arg4[%c0_6, %c0_7], %8 {strides = array<i32>} : memref<400x32xbf16, #tpu.memory_space<vmem>>, vector<400x32xbf16>,
    return
  }
  func.func @transform_0(%arg0: i32) -> (i32, i32) {
    %c0_i32 = arith.constant 0 : i32
    %c0_i32_0 = arith.constant 0 : i32
    return %arg0, %c0_i32 : i32, i32
  }
  func.func @transform_1(%arg0: i32) -> (i32, i32) {
    %c0_i32 = arith.constant 0 : i32
    %c0_i32_0 = arith.constant 0 : i32
    %c0_i32_1 = arith.constant 0 : i32
    return %c0_i32, %c0_i32_0 : i32, i32
  }
  func.func @transform_2(%arg0: i32) -> (i32, i32) {
    %c0_i32 = arith.constant 0 : i32
    %c0_i32_0 = arith.constant 0 : i32
    %c0_i32_1 = arith.constant 0 : i32
    return %c0_i32, %c0_i32_0 : i32, i32
  }
  func.func @transform_3(%arg0: i32) -> (i32, i32) {
    %c0_i32 = arith.constant 0 : i32
    %c0_i32_0 = arith.constant 0 : i32
    return %arg0, %c0_i32 : i32, i32
  }
}

module attributes {stable_mosaic.version = 11 : i64} {
  func.func @_linear_kernel(%arg0: i32, %arg1: memref<96x512xbf16, #tpu.memory_space<vmem>>, %arg2: memref<512x64xbf16, #tpu.memory_space<vmem>>, %arg3: memref<1x64xf32, #tpu.memory_space<vmem>>, %arg4: memref<96x64xbf16, #tpu.memory_space<vmem>>) attributes {dimension_semantics = [#tpu.dimension_semantics<parallel>], iteration_bounds = array<i64: 2>, scalar_prefetch = 0 : i64, scratch_operands = 0 : i64, tpu.core_type = #tpu.core_type<tc>, window_params = [{transform_indices = @transform_0, window_bounds = array<i64: 96, 512>}, {pipeline_mode = #tpu.pipeline_mode<synchronous>, transform_indices = @transform_1, window_bounds = array<i64: 512, 64>}, {pipeline_mode = #tpu.pipeline_mode<synchronous>, transform_indices = @transform_2, window_bounds = array<i64: 1, 64>}, {transform_indices = @transform_3, window_bounds = array<i64: 96, 64>}]} {
    %c0 = arith.constant 0 : index
    %c0_0 = arith.constant 0 : index
    %0 = vector.load %arg1[%c0, %c0_0] : memref<96x512xbf16, #tpu.memory_space<vmem>>, vector<96x512xbf16>
    %c0_1 = arith.constant 0 : index
    %c0_2 = arith.constant 0 : index
    %1 = vector.load %arg2[%c0_1, %c0_2] : memref<512x64xbf16, #tpu.memory_space<vmem>>, vector<512x64xbf16>
    %cst = arith.constant dense<0.000000e+00> : vector<96x64xf32>
    %2 = tpu.matmul %0, %1, %cst {dimension_numbers = #tpu.dot_dimension_numbers<[1], [0], [0], [1], [0, 0, 1, 1], [], []>} : vector<96x512xbf16>, vector<512x64xbf16>, vector<96x64xf32> -> vector<96x64xf32>
    %c0_3 = arith.constant 0 : index
    %c0_4 = arith.constant 0 : index
    %3 = vector.load %arg3[%c0_3, %c0_4] : memref<1x64xf32, #tpu.memory_space<vmem>>, vector<1x64xf32>
    %4 = vector.broadcast %3 : vector<1x64xf32> to vector<96x64xf32>
    %5 = arith.addf %2, %4 : vector<96x64xf32>
    %cst_5 = arith.constant 0.000000e+00 : f32
    %6 = vector.broadcast %cst_5 : f32 to vector<96x64xf32>
    %7 = arith.maximumf %5, %6 : vector<96x64xf32>
    %8 = arith.truncf %7 : vector<96x64xf32> to vector<96x64xbf16>
    %c0_6 = arith.constant 0 : index
    %c0_7 = arith.constant 0 : index
    %9 = vector.load %arg4[%c0_6, %c0_7] : memref<96x64xbf16, #tpu.memory_space<vmem>>, vector<96x64xbf16>
    tpu.vector_store %arg4[%c0_6, %c0_7], %8 {strides = array<i32>} : memref<96x64xbf16, #tpu.memory_space<vmem>>, vector<96x64xbf16>,
    return
  }
  func.func @transform_0(%arg0: i32) -> (i32, i32) {
    %c0_i32 = arith.constant 0 : i32
    %c0_i32_0 = arith.constant 0 : i32
    return %arg0, %c0_i32 : i32, i32
  }
  func.func @transform_1(%arg0: i32) -> (i32, i32) {
    %c0_i32 = arith.constant 0 : i32
    %c0_i32_0 = arith.constant 0 : i32
    %c0_i32_1 = arith.constant 0 : i32
    return %c0_i32, %c0_i32_0 : i32, i32
  }
  func.func @transform_2(%arg0: i32) -> (i32, i32) {
    %c0_i32 = arith.constant 0 : i32
    %c0_i32_0 = arith.constant 0 : i32
    %c0_i32_1 = arith.constant 0 : i32
    return %c0_i32, %c0_i32_0 : i32, i32
  }
  func.func @transform_3(%arg0: i32) -> (i32, i32) {
    %c0_i32 = arith.constant 0 : i32
    %c0_i32_0 = arith.constant 0 : i32
    return %arg0, %c0_i32 : i32, i32
  }
}

module attributes {stable_mosaic.version = 11 : i64} {
  func.func @_linear_kernel(%arg0: i32, %arg1: memref<64x576xbf16, #tpu.memory_space<vmem>>, %arg2: memref<576x64xbf16, #tpu.memory_space<vmem>>, %arg3: memref<1x64xf32, #tpu.memory_space<vmem>>, %arg4: memref<64x64xbf16, #tpu.memory_space<vmem>>) attributes {dimension_semantics = [#tpu.dimension_semantics<parallel>], iteration_bounds = array<i64: 2>, scalar_prefetch = 0 : i64, scratch_operands = 0 : i64, tpu.core_type = #tpu.core_type<tc>, window_params = [{transform_indices = @transform_0, window_bounds = array<i64: 64, 576>}, {pipeline_mode = #tpu.pipeline_mode<synchronous>, transform_indices = @transform_1, window_bounds = array<i64: 576, 64>}, {pipeline_mode = #tpu.pipeline_mode<synchronous>, transform_indices = @transform_2, window_bounds = array<i64: 1, 64>}, {transform_indices = @transform_3, window_bounds = array<i64: 64, 64>}]} {
    %c0 = arith.constant 0 : index
    %c0_0 = arith.constant 0 : index
    %0 = vector.load %arg1[%c0, %c0_0] : memref<64x576xbf16, #tpu.memory_space<vmem>>, vector<64x576xbf16>
    %c0_1 = arith.constant 0 : index
    %c0_2 = arith.constant 0 : index
    %1 = vector.load %arg2[%c0_1, %c0_2] : memref<576x64xbf16, #tpu.memory_space<vmem>>, vector<576x64xbf16>
    %cst = arith.constant dense<0.000000e+00> : vector<64x64xf32>
    %2 = tpu.matmul %0, %1, %cst {dimension_numbers = #tpu.dot_dimension_numbers<[1], [0], [0], [1], [0, 0, 1, 1], [], []>} : vector<64x576xbf16>, vector<576x64xbf16>, vector<64x64xf32> -> vector<64x64xf32>
    %c0_3 = arith.constant 0 : index
    %c0_4 = arith.constant 0 : index
    %3 = vector.load %arg3[%c0_3, %c0_4] : memref<1x64xf32, #tpu.memory_space<vmem>>, vector<1x64xf32>
    %4 = vector.broadcast %3 : vector<1x64xf32> to vector<64x64xf32>
    %5 = arith.addf %2, %4 : vector<64x64xf32>
    %cst_5 = arith.constant 0.000000e+00 : f32
    %6 = vector.broadcast %cst_5 : f32 to vector<64x64xf32>
    %7 = arith.maximumf %5, %6 : vector<64x64xf32>
    %8 = arith.truncf %7 : vector<64x64xf32> to vector<64x64xbf16>
    %c0_6 = arith.constant 0 : index
    %c0_7 = arith.constant 0 : index
    %9 = vector.load %arg4[%c0_6, %c0_7] : memref<64x64xbf16, #tpu.memory_space<vmem>>, vector<64x64xbf16>
    tpu.vector_store %arg4[%c0_6, %c0_7], %8 {strides = array<i32>} : memref<64x64xbf16, #tpu.memory_space<vmem>>, vector<64x64xbf16>,
    return
  }
  func.func @transform_0(%arg0: i32) -> (i32, i32) {
    %c0_i32 = arith.constant 0 : i32
    %c0_i32_0 = arith.constant 0 : i32
    return %arg0, %c0_i32 : i32, i32
  }
  func.func @transform_1(%arg0: i32) -> (i32, i32) {
    %c0_i32 = arith.constant 0 : i32
    %c0_i32_0 = arith.constant 0 : i32
    %c0_i32_1 = arith.constant 0 : i32
    return %c0_i32, %c0_i32_0 : i32, i32
  }
  func.func @transform_2(%arg0: i32) -> (i32, i32) {
    %c0_i32 = arith.constant 0 : i32
    %c0_i32_0 = arith.constant 0 : i32
    %c0_i32_1 = arith.constant 0 : i32
    return %c0_i32, %c0_i32_0 : i32, i32
  }
  func.func @transform_3(%arg0: i32) -> (i32, i32) {
    %c0_i32 = arith.constant 0 : i32
    %c0_i32_0 = arith.constant 0 : i32
    return %arg0, %c0_i32 : i32, i32
  }
}

module attributes {stable_mosaic.version = 11 : i64} {
  func.func @_head_kernel(%arg0: i32, %arg1: memref<16x3136xbf16, #tpu.memory_space<vmem>>, %arg2: memref<3136x512xbf16, #tpu.memory_space<vmem>>, %arg3: memref<1x512xf32, #tpu.memory_space<vmem>>, %arg4: memref<512x512xbf16, #tpu.memory_space<vmem>>, %arg5: memref<1x512xf32, #tpu.memory_space<vmem>>, %arg6: memref<512x128xbf16, #tpu.memory_space<vmem>>, %arg7: memref<1x128xf32, #tpu.memory_space<vmem>>, %arg8: memref<16x128xf32, #tpu.memory_space<vmem>>) attributes {dimension_semantics = [#tpu.dimension_semantics<parallel>], iteration_bounds = array<i64: 1>, scalar_prefetch = 0 : i64, scratch_operands = 0 : i64, tpu.core_type = #tpu.core_type<tc>, window_params = [{transform_indices = @transform_0, window_bounds = array<i64: 16, 3136>}, {pipeline_mode = #tpu.pipeline_mode<synchronous>, transform_indices = @transform_1, window_bounds = array<i64: 3136, 512>}, {pipeline_mode = #tpu.pipeline_mode<synchronous>, transform_indices = @transform_2, window_bounds = array<i64: 1, 512>}, {pipeline_mode = #tpu.pipeline_mode<synchronous>, transform_indices = @transform_3, window_bounds = array<i64: 512, 512>}, {pipeline_mode = #tpu.pipeline_mode<synchronous>, transform_indices = @transform_4, window_bounds = array<i64: 1, 512>}, {pipeline_mode = #tpu.pipeline_mode<synchronous>, transform_indices = @transform_5, window_bounds = array<i64: 512, 128>}, {pipeline_mode = #tpu.pipeline_mode<synchronous>, transform_indices = @transform_6, window_bounds = array<i64: 1, 128>}, {transform_indices = @transform_7, window_bounds = array<i64: 16, 128>}]} {
    %c0 = arith.constant 0 : index
    %c0_0 = arith.constant 0 : index
    %0 = vector.load %arg1[%c0, %c0_0] : memref<16x3136xbf16, #tpu.memory_space<vmem>>, vector<16x3136xbf16>
    %c0_1 = arith.constant 0 : index
    %c0_2 = arith.constant 0 : index
    %1 = vector.load %arg2[%c0_1, %c0_2] : memref<3136x512xbf16, #tpu.memory_space<vmem>>, vector<3136x512xbf16>
    %cst = arith.constant dense<0.000000e+00> : vector<16x512xf32>
    %2 = tpu.matmul %0, %1, %cst {dimension_numbers = #tpu.dot_dimension_numbers<[1], [0], [0], [1], [0, 0, 1, 1], [], []>} : vector<16x3136xbf16>, vector<3136x512xbf16>, vector<16x512xf32> -> vector<16x512xf32>
    %c0_3 = arith.constant 0 : index
    %c0_4 = arith.constant 0 : index
    %3 = vector.load %arg3[%c0_3, %c0_4] : memref<1x512xf32, #tpu.memory_space<vmem>>, vector<1x512xf32>
    %4 = vector.broadcast %3 : vector<1x512xf32> to vector<16x512xf32>
    %5 = arith.addf %2, %4 : vector<16x512xf32>
    %cst_5 = arith.constant 0.000000e+00 : f32
    %6 = vector.broadcast %cst_5 : f32 to vector<16x512xf32>
    %7 = arith.maximumf %5, %6 : vector<16x512xf32>
    %8 = arith.truncf %7 : vector<16x512xf32> to vector<16x512xbf16>
    %c0_6 = arith.constant 0 : index
    %c0_7 = arith.constant 0 : index
    %9 = vector.load %arg4[%c0_6, %c0_7] : memref<512x512xbf16, #tpu.memory_space<vmem>>, vector<512x512xbf16>
    %cst_8 = arith.constant dense<0.000000e+00> : vector<16x512xf32>
    %10 = tpu.matmul %8, %9, %cst_8 {dimension_numbers = #tpu.dot_dimension_numbers<[1], [0], [0], [1], [0, 0, 1, 1], [], []>} : vector<16x512xbf16>, vector<512x512xbf16>, vector<16x512xf32> -> vector<16x512xf32>
    %c0_9 = arith.constant 0 : index
    %c0_10 = arith.constant 0 : index
    %11 = vector.load %arg5[%c0_9, %c0_10] : memref<1x512xf32, #tpu.memory_space<vmem>>, vector<1x512xf32>
    %12 = vector.broadcast %11 : vector<1x512xf32> to vector<16x512xf32>
    %13 = arith.addf %10, %12 : vector<16x512xf32>
    %cst_11 = arith.constant 0.000000e+00 : f32
    %14 = vector.broadcast %cst_11 : f32 to vector<16x512xf32>
    %15 = arith.maximumf %13, %14 : vector<16x512xf32>
    %16 = arith.truncf %15 : vector<16x512xf32> to vector<16x512xbf16>
    %c0_12 = arith.constant 0 : index
    %c0_13 = arith.constant 0 : index
    %17 = vector.load %arg6[%c0_12, %c0_13] : memref<512x128xbf16, #tpu.memory_space<vmem>>, vector<512x128xbf16>
    %cst_14 = arith.constant dense<0.000000e+00> : vector<16x128xf32>
    %18 = tpu.matmul %16, %17, %cst_14 {dimension_numbers = #tpu.dot_dimension_numbers<[1], [0], [0], [1], [0, 0, 1, 1], [], []>} : vector<16x512xbf16>, vector<512x128xbf16>, vector<16x128xf32> -> vector<16x128xf32>
    %c0_15 = arith.constant 0 : index
    %c0_16 = arith.constant 0 : index
    %19 = vector.load %arg7[%c0_15, %c0_16] : memref<1x128xf32, #tpu.memory_space<vmem>>, vector<1x128xf32>
    %20 = vector.broadcast %19 : vector<1x128xf32> to vector<16x128xf32>
    %21 = arith.addf %18, %20 : vector<16x128xf32>
    %c0_17 = arith.constant 0 : index
    %c0_18 = arith.constant 0 : index
    %22 = vector.load %arg8[%c0_17, %c0_18] : memref<16x128xf32, #tpu.memory_space<vmem>>, vector<16x128xf32>
    tpu.vector_store %arg8[%c0_17, %c0_18], %21 {strides = array<i32>} : memref<16x128xf32, #tpu.memory_space<vmem>>, vector<16x128xf32>,
    return
  }
  func.func @transform_0(%arg0: i32) -> (i32, i32) {
    %c0_i32 = arith.constant 0 : i32
    %c0_i32_0 = arith.constant 0 : i32
    return %arg0, %c0_i32 : i32, i32
  }
  func.func @transform_1(%arg0: i32) -> (i32, i32) {
    %c0_i32 = arith.constant 0 : i32
    %c0_i32_0 = arith.constant 0 : i32
    %c0_i32_1 = arith.constant 0 : i32
    return %c0_i32, %c0_i32_0 : i32, i32
  }
  func.func @transform_2(%arg0: i32) -> (i32, i32) {
    %c0_i32 = arith.constant 0 : i32
    %c0_i32_0 = arith.constant 0 : i32
    %c0_i32_1 = arith.constant 0 : i32
    return %c0_i32, %c0_i32_0 : i32, i32
  }
  func.func @transform_3(%arg0: i32) -> (i32, i32) {
    %c0_i32 = arith.constant 0 : i32
    %c0_i32_0 = arith.constant 0 : i32
    %c0_i32_1 = arith.constant 0 : i32
    return %c0_i32, %c0_i32_0 : i32, i32
  }
  func.func @transform_4(%arg0: i32) -> (i32, i32) {
    %c0_i32 = arith.constant 0 : i32
    %c0_i32_0 = arith.constant 0 : i32
    %c0_i32_1 = arith.constant 0 : i32
    return %c0_i32, %c0_i32_0 : i32, i32
  }
  func.func @transform_5(%arg0: i32) -> (i32, i32) {
    %c0_i32 = arith.constant 0 : i32
    %c0_i32_0 = arith.constant 0 : i32
    %c0_i32_1 = arith.constant 0 : i32
    return %c0_i32, %c0_i32_0 : i32, i32
  }
  func.func @transform_6(%arg0: i32) -> (i32, i32) {
    %c0_i32 = arith.constant 0 : i32
    %c0_i32_0 = arith.constant 0 : i32
    %c0_i32_1 = arith.constant 0 : i32
    return %c0_i32, %c0_i32_0 : i32, i32
  }
  func.func @transform_7(%arg0: i32) -> (i32, i32) {
    %c0_i32 = arith.constant 0 : i32
    %c0_i32_0 = arith.constant 0 : i32
    return %arg0, %c0_i32 : i32, i32
  }
}

</mosaic_0001>

<bundles_post_ra>
// kernel: a3c_forward.4
= control target key start
LH: loop header
LB: loop body
LE: loop exit
PB: predicated region body
PF: predicated region fallthrough
CT: control target
= control target key end

     0   :  { %s1542_s12 = smov 0   ;;  %s1852_s0 = inlined_call_operand.vmem [shape: bf16[800,256], index: 0, kind: input, shape index: {}]   ;;  %s1853_s1 = inlined_call_operand.vmem [shape: bf16[256,32], index: 1, kind: input, shape index: {}]   ;;  %s1854_s2 = inlined_call_operand.vmem [shape: f32[1,32], index: 2, kind: input, shape index: {}]   ;;  %s1855_s3 = inlined_call_operand.vmem [shape: bf16[800,32], index: 3, kind: output, shape index: {}]  }
   0x1 LB: > { %s1203_s13 = sadd.s32 4294967295, %s1519_s12   ;;  %p1207_p0 = scmp.ge.s32.totalorder %s1519_s12, 1  ;;  %s1519_s12 = sphi %s1542_s12, %s13_s12  }
   0x2   : > { %p139_p1 = scmp.lt.s32.totalorder %s1519_s12, 3 }
   0x4   : > { %p140_p2 = pnand %p1207_p0, %p139_p1 }
   0x5   : > { %s164_s16 = smul.u32 (!%p140_p2), 50, %s1203_s13 }
   0x6   : > { %143 = sbr.rel (%p140_p2) target bundleno = 376 (0x178), region = 32 }
   0x7   : > { %p165_p3 = scmp.lt.s32.totalorder (!%p140_p2), %s164_s16, 99 }
   0xb   : > { %v1422_v0 = vld [vmem:[%s1853_s1 + $0x38] sm:$0xff]   ;;  %v1521_v1 = vmov 0   ;;  %v1423_v2 = vld [vmem:[%s1853_s1 + $0x30] sm:$0xff]   ;;  %v1424_v3 = vld [vmem:[%s1853_s1 + $0x28] sm:$0xff]   ;;  %s1857_s16 = smov (!%p165_p3, %s164_s16), 99  ;;  %vm1096_vm0 = vcmask 257024  }
   0xc   : > { %613 = vmatprep.subr.bf16.mxu0 %v1521_v1  ;;  %1381 = vmatprep.subr.bf16.mxu1 %v1521_v1  ;;  %v1425_v4 = vld [vmem:[%s1853_s1 + $0x20] sm:$0xff]   ;;  %s1330_s23 = sshll.u32 %s1857_s16, 3  ;;  %v1426_v5 = vld [vmem:[%s1853_s1 + $0x18] sm:$0xff]   ;;  %v1427_v7 = vld [vmem:[%s1853_s1 + $0x10] sm:$0xff]   ;;  %s1210_s29 = sshll.u32 %s1857_s16, 2 }
   0xd   : > { %614 = vmatpush1.bf16.msra.mxu0 %v1422_v0  ;;  %1397 = vmatpush1.bf16.msra.mxu1 %v1422_v0  ;;  %s1579_s28 = scalar_lea.vmem %s1852_s0, %s1330_s23  ;;  %v1428_v9 = vld [vmem:[%s1853_s1 + $0x8] sm:$0xff]   ;;  %v1429_v10 = vld [vmem:[%s1853_s1] sm:$0xff]   ;;  %v1430_v11 = vld [vmem:[%s1853_s1 + $0x78] sm:$0xff]  }
   0xe   : > { %615 = vmatprep.subr.bf16.mxu0 %v1521_v1  ;;  %1382 = vmatprep.subr.bf16.mxu1 %v1521_v1  ;;  %v1440_v6 = vld [vmem:[%s1579_s28 + $0x4] ss:$8 sps:$4 sm:$0xff]   ;;  %v1443_v8 = vld [vmem:[%s1579_s28 + $0xd4] ss:$8 sps:$4 sm:$0xff]   ;;  %v1438_v19 = vld [vmem:[%s1579_s28] ss:$8 sps:$4 sm:$0xff]  }
   0xf   : > { %645 = vmatprep.mubr.bf16.mxu0 %v1440_v6  ;;  %749 = vmatprep.mubr.bf16.mxu1 %v1443_v8  ;;  %v1431_v12 = vld [vmem:[%s1853_s1 + $0x70] sm:$0xff]   ;;  %v1432_v13 = vld [vmem:[%s1853_s1 + $0x68] sm:$0xff]   ;;  %v1433_v14 = vld [vmem:[%s1853_s1 + $0x60] sm:$0xff]  }
  0x10   : > { %v1434_v15 = vld [vmem:[%s1853_s1 + $0x58] sm:$0xff]   ;;  %v1435_v16 = vld [vmem:[%s1853_s1 + $0x50] sm:$0xff]   ;;  %v1436_v17 = vld [vmem:[%s1853_s1 + $0x48] sm:$0xff]  }
  0x11   : > { %616 = vmatpush1.bf16.msra.mxu0 %v1423_v2  ;;  %1398 = vmatpush1.bf16.msra.mxu1 %v1423_v2  ;;  %v1437_v18 = vld [vmem:[%s1853_s1 + $0x40] sm:$0xff]   ;;  %v1441_v20 = vld [vmem:[%s1579_s28 + $0xd0] ss:$8 sps:$4 sm:$0xff]   ;;  %v1444_v21 = vld [vmem:[%s1579_s28 + $0x14] ss:$8 sps:$4 sm:$0xff]  }
  0x12   : > { %617 = vmatprep.subr.bf16.mxu0 %v1521_v1  ;;  %1383 = vmatprep.subr.bf16.mxu1 %v1521_v1  ;;  %v1447_v22 = vld [vmem:[%s1579_s28 + $0xe4] ss:$8 sps:$4 sm:$0xff]   ;;  %v1446_v23 = vld [vmem:[%s1579_s28 + $0x10] ss:$8 sps:$4 sm:$0xff]   ;;  %v1449_v24 = vld [vmem:[%s1579_s28 + $0xe0] ss:$8 sps:$4 sm:$0xff]  }
  0x13   : > { %v1450_v25 = vld [vmem:[%s1579_s28 + $0x24] ss:$8 sps:$4 sm:$0xff]   ;;  %v1453_v26 = vld [vmem:[%s1579_s28 + $0xf4] ss:$8 sps:$4 sm:$0xff]   ;;  %v1452_v27 = vld [vmem:[%s1579_s28 + $0x20] ss:$8 sps:$4 sm:$0xff]  }
  0x14   : > { %v1455_v28 = vld [vmem:[%s1579_s28 + $0xf0] ss:$8 sps:$4 sm:$0xff]   ;;  %v1456_v29 = vld [vmem:[%s1579_s28 + $0x34] ss:$8 sps:$4 sm:$0xff]   ;;  %v1459_v30 = vld [vmem:[%s1579_s28 + $0x104] ss:$8 sps:$4 sm:$0xff]  }
  0x15   : > { %618 = vmatpush1.bf16.msra.mxu0 %v1424_v3  ;;  %1399 = vmatpush1.bf16.msra.mxu1 %v1424_v3  ;;  %v1458_v31 = vld [vmem:[%s1579_s28 + $0x30] ss:$8 sps:$4 sm:$0xff]   ;;  %v1461_v32 = vld [vmem:[%s1579_s28 + $0x100] ss:$8 sps:$4 sm:$0xff]   ;;  %v1462_v33 = vld [vmem:[%s1579_s28 + $0x44] ss:$8 sps:$4 sm:$0xff]  }
  0x16   : > { %619 = vmatprep.subr.bf16.mxu0 %v1521_v1  ;;  %1384 = vmatprep.subr.bf16.mxu1 %v1521_v1  ;;  %v1465_v34 = vld [vmem:[%s1579_s28 + $0x114] ss:$8 sps:$4 sm:$0xff]   ;;  %v1464_v35 = vld [vmem:[%s1579_s28 + $0x40] ss:$8 sps:$4 sm:$0xff]   ;;  %v1467_v36 = vld [vmem:[%s1579_s28 + $0x110] ss:$8 sps:$4 sm:$0xff]  }
  0x17   : > { %v1468_v37 = vld [vmem:[%s1579_s28 + $0x54] ss:$8 sps:$4 sm:$0xff]   ;;  %v1471_v38 = vld [vmem:[%s1579_s28 + $0x124] ss:$8 sps:$4 sm:$0xff]   ;;  %v1470_v39 = vld [vmem:[%s1579_s28 + $0x50] ss:$8 sps:$4 sm:$0xff]  }
  0x18   : > { %v1473_v40 = vld [vmem:[%s1579_s28 + $0x120] ss:$8 sps:$4 sm:$0xff]   ;;  %v1474_v41 = vld [vmem:[%s1579_s28 + $0x64] ss:$8 sps:$4 sm:$0xff]   ;;  %v1477_v42 = vld [vmem:[%s1579_s28 + $0x134] ss:$8 sps:$4 sm:$0xff]  }
  0x19   : > { %620 = vmatpush1.bf16.msra.mxu0 %v1425_v4  ;;  %1400 = vmatpush1.bf16.msra.mxu1 %v1425_v4  ;;  %v1476_v43 = vld [vmem:[%s1579_s28 + $0x60] ss:$8 sps:$4 sm:$0xff]   ;;  %v1479_v44 = vld [vmem:[%s1579_s28 + $0x130] ss:$8 sps:$4 sm:$0xff]   ;;  %v1480_v45 = vld [vmem:[%s1579_s28 + $0x74] ss:$8 sps:$4 sm:$0xff]  }
  0x1a   : > { %621 = vmatprep.subr.bf16.mxu0 %v1521_v1  ;;  %1385 = vmatprep.subr.bf16.mxu1 %v1521_v1  ;;  %v1483_v46 = vld [vmem:[%s1579_s28 + $0x144] ss:$8 sps:$4 sm:$0xff]   ;;  %v1482_v47 = vld [vmem:[%s1579_s28 + $0x70] ss:$8 sps:$4 sm:$0xff]   ;;  %v1485_v48 = vld [vmem:[%s1579_s28 + $0x140] ss:$8 sps:$4 sm:$0xff]  }
  0x1b   : > { %v1486_v49 = vld [vmem:[%s1579_s28 + $0x84] ss:$8 sps:$4 sm:$0xff]   ;;  %v1489_v50 = vld [vmem:[%s1579_s28 + $0x154] ss:$8 sps:$4 sm:$0xff]   ;;  %v1488_v51 = vld [vmem:[%s1579_s28 + $0x80] ss:$8 sps:$4 sm:$0xff]  }
  0x1c   : > { %v1491_v52 = vld [vmem:[%s1579_s28 + $0x150] ss:$8 sps:$4 sm:$0xff]   ;;  %v1492_v53 = vld [vmem:[%s1579_s28 + $0x94] ss:$8 sps:$4 sm:$0xff]   ;;  %v1495_v54 = vld [vmem:[%s1579_s28 + $0x164] ss:$8 sps:$4 sm:$0xff]  }
  0x1d   : > { %622 = vmatpush1.bf16.msra.mxu0 %v1426_v5  ;;  %1401 = vmatpush1.bf16.msra.mxu1 %v1426_v5  ;;  %v1494_v55 = vld [vmem:[%s1579_s28 + $0x90] ss:$8 sps:$4 sm:$0xff]   ;;  %v1497_v56 = vld [vmem:[%s1579_s28 + $0x160] ss:$8 sps:$4 sm:$0xff]   ;;  %v1498_v57 = vld [vmem:[%s1579_s28 + $0xa4] ss:$8 sps:$4 sm:$0xff]  }
  0x1e   : > { %623 = vmatprep.subr.bf16.mxu0 %v1521_v1  ;;  %1386 = vmatprep.subr.bf16.mxu1 %v1521_v1  ;;  %v1501_v58 = vld [vmem:[%s1579_s28 + $0x174] ss:$8 sps:$4 sm:$0xff]   ;;  %v1500_v59 = vld [vmem:[%s1579_s28 + $0xa0] ss:$8 sps:$4 sm:$0xff]   ;;  %v1503_v60 = vld [vmem:[%s1579_s28 + $0x170] ss:$8 sps:$4 sm:$0xff]  }
  0x1f   : > { %v1504_v61 = vld [vmem:[%s1579_s28 + $0xb4] ss:$8 sps:$4 sm:$0xff]   ;;  %v1507_v62 = vld [vmem:[%s1579_s28 + $0x184] ss:$8 sps:$4 sm:$0xff]   ;;  %v1506_v63 = vld [vmem:[%s1579_s28 + $0xb0] ss:$8 sps:$4 sm:$0xff]  }
  0x20   : > { %v1509_v0 = vld [vmem:[%s1579_s28 + $0x180] ss:$8 sps:$4 sm:$0xff]  }
  0x21   : > { %624 = vmatpush1.bf16.msra.mxu0 %v1427_v7  ;;  %1402 = vmatpush1.bf16.msra.mxu1 %v1427_v7  ;;  %v1512_v2 = vld [vmem:[%s1579_s28 + $0xc0] ss:$8 sps:$4 sm:$0xff]  }
  0x22   : > { %625 = vmatprep.subr.bf16.mxu0 %v1521_v1  ;;  %1387 = vmatprep.subr.bf16.mxu1 %v1521_v1  ;;  %v1691_v3 = vld [vmem:[%s1854_s2] ss:$0 sm:$0xff] }
  0x25   : > { %626 = vmatpush1.bf16.msra.mxu0 %v1428_v9  ;;  %1403 = vmatpush1.bf16.msra.mxu1 %v1428_v9 }
  0x26   : > { %627 = vmatprep.subr.bf16.mxu0 %v1521_v1  ;;  %1388 = vmatprep.subr.bf16.mxu1 %v1521_v1 }
  0x29   : > { %628 = vmatpush1.bf16.msra.mxu0 %v1429_v10  ;;  %1404 = vmatpush1.bf16.msra.mxu1 %v1429_v10 }
  0x2a   : > { %629 = vmatprep.subr.bf16.mxu0 %v1521_v1  ;;  %1389 = vmatprep.subr.bf16.mxu1 %v1521_v1 }
  0x2d   : > { %630 = vmatpush2.bf16.msra.mxu0 %v1430_v11  ;;  %1405 = vmatpush2.bf16.msra.mxu1 %v1430_v11 }
  0x2e   : > { %631 = vmatprep.subr.bf16.mxu0 %v1521_v1  ;;  %1390 = vmatprep.subr.bf16.mxu1 %v1521_v1 }
  0x31   : > { %632 = vmatpush2.bf16.msra.mxu0 %v1431_v12  ;;  %1406 = vmatpush2.bf16.msra.mxu1 %v1431_v12 }
  0x32   : > { %633 = vmatprep.subr.bf16.mxu0 %v1521_v1  ;;  %1391 = vmatprep.subr.bf16.mxu1 %v1521_v1 }
  0x35   : > { %634 = vmatpush2.bf16.msra.mxu0 %v1432_v13  ;;  %1407 = vmatpush2.bf16.msra.mxu1 %v1432_v13 }
  0x36   : > { %635 = vmatprep.subr.bf16.mxu0 %v1521_v1  ;;  %1392 = vmatprep.subr.bf16.mxu1 %v1521_v1 }
  0x39   : > { %636 = vmatpush2.bf16.msra.mxu0 %v1433_v14  ;;  %1408 = vmatpush2.bf16.msra.mxu1 %v1433_v14 }
  0x3a   : > { %637 = vmatprep.subr.bf16.mxu0 %v1521_v1  ;;  %1393 = vmatprep.subr.bf16.mxu1 %v1521_v1 }
  0x3d   : > { %638 = vmatpush2.bf16.msra.mxu0 %v1434_v15  ;;  %1409 = vmatpush2.bf16.msra.mxu1 %v1434_v15 }
  0x3e   : > { %639 = vmatprep.subr.bf16.mxu0 %v1521_v1  ;;  %1394 = vmatprep.subr.bf16.mxu1 %v1521_v1 }
  0x41   : > { %640 = vmatpush2.bf16.msra.mxu0 %v1435_v16  ;;  %1410 = vmatpush2.bf16.msra.mxu1 %v1435_v16 }
  0x42   : > { %641 = vmatprep.subr.bf16.mxu0 %v1521_v1  ;;  %1395 = vmatprep.subr.bf16.mxu1 %v1521_v1 }
  0x45   : > { %642 = vmatpush2.bf16.msra.mxu0 %v1436_v17  ;;  %1411 = vmatpush2.bf16.msra.mxu1 %v1436_v17 }
  0x46   : > { %643 = vmatprep.subr.bf16.mxu0 %v1521_v1  ;;  %1396 = vmatprep.subr.bf16.mxu1 %v1521_v1  ;;  %v1510_v1 = vld [vmem:[%s1579_s28 + $0xc4] ss:$8 sps:$4 sm:$0xff]   ;;  %s1699_s28 = scalar_lea.vmem %s1855_s3, %s1210_s29 }
  0x49   : > { %644 = vmatpush2.bf16.msra.mxu0 %v1437_v18  ;;  %1412 = vmatpush2.bf16.msra.mxu1 %v1437_v18 }
  0x4c   : > { %646 = vmatmul.mubr.bf16.vlgmr.msra.gmra.mxu0 %v1438_v19  ;;  %750 = vmatmul.mubr.bf16.vlgmr.msra.gmra.mxu1 %v1441_v20 }
  0x4d   : > { %653 = vmatprep.mubr.bf16.mxu0 %v1444_v21  ;;  %757 = vmatprep.mubr.bf16.mxu1 %v1447_v22 }
  0x54   : > { %654 = vmatmul.mubr.bf16.gmra.mxu0 %v1446_v23  ;;  %758 = vmatmul.mubr.bf16.gmra.mxu1 %v1449_v24 }
  0x55   : > { %661 = vmatprep.mubr.bf16.mxu0 %v1450_v25  ;;  %765 = vmatprep.mubr.bf16.mxu1 %v1453_v26 }
  0x5c   : > { %662 = vmatmul.mubr.bf16.gmra.mxu0 %v1452_v27  ;;  %766 = vmatmul.mubr.bf16.gmra.mxu1 %v1455_v28 }
  0x5d   : > { %669 = vmatprep.mubr.bf16.mxu0 %v1456_v29  ;;  %773 = vmatprep.mubr.bf16.mxu1 %v1459_v30 }
  0x64   : > { %670 = vmatmul.mubr.bf16.gmra.mxu0 %v1458_v31  ;;  %774 = vmatmul.mubr.bf16.gmra.mxu1 %v1461_v32 }
  0x65   : > { %677 = vmatprep.mubr.bf16.mxu0 %v1462_v33  ;;  %781 = vmatprep.mubr.bf16.mxu1 %v1465_v34 }
  0x6c   : > { %678 = vmatmul.mubr.bf16.gmra.mxu0 %v1464_v35  ;;  %782 = vmatmul.mubr.bf16.gmra.mxu1 %v1467_v36 }
  0x6d   : > { %685 = vmatprep.mubr.bf16.mxu0 %v1468_v37  ;;  %789 = vmatprep.mubr.bf16.mxu1 %v1471_v38 }
  0x74   : > { %686 = vmatmul.mubr.bf16.gmra.mxu0 %v1470_v39  ;;  %790 = vmatmul.mubr.bf16.gmra.mxu1 %v1473_v40 }
  0x75   : > { %693 = vmatprep.mubr.bf16.mxu0 %v1474_v41  ;;  %797 = vmatprep.mubr.bf16.mxu1 %v1477_v42 }
  0x7c   : > { %694 = vmatmul.mubr.bf16.gmra.mxu0 %v1476_v43  ;;  %798 = vmatmul.mubr.bf16.gmra.mxu1 %v1479_v44 }
  0x7d   : > { %701 = vmatprep.mubr.bf16.mxu0 %v1480_v45  ;;  %805 = vmatprep.mubr.bf16.mxu1 %v1483_v46 }
  0x84   : > { %702 = vmatmul.mubr.bf16.gmra.mxu0 %v1482_v47  ;;  %806 = vmatmul.mubr.bf16.gmra.mxu1 %v1485_v48 }
  0x85   : > { %709 = vmatprep.mubr.bf16.mxu0 %v1486_v49  ;;  %813 = vmatprep.mubr.bf16.mxu1 %v1489_v50 }
  0x8c   : > { %710 = vmatmul.mubr.bf16.gmra.mxu0 %v1488_v51  ;;  %814 = vmatmul.mubr.bf16.gmra.mxu1 %v1491_v52 }
  0x8d   : > { %717 = vmatprep.mubr.bf16.mxu0 %v1492_v53  ;;  %821 = vmatprep.mubr.bf16.mxu1 %v1495_v54 }
  0x94   : > { %718 = vmatmul.mubr.bf16.gmra.mxu0 %v1494_v55  ;;  %822 = vmatmul.mubr.bf16.gmra.mxu1 %v1497_v56 }
  0x95   : > { %725 = vmatprep.mubr.bf16.mxu0 %v1498_v57  ;;  %829 = vmatprep.mubr.bf16.mxu1 %v1501_v58 }
  0x9c   : > { %726 = vmatmul.mubr.bf16.gmra.mxu0 %v1500_v59  ;;  %830 = vmatmul.mubr.bf16.gmra.mxu1 %v1503_v60 }
  0x9d   : > { %733 = vmatprep.mubr.bf16.mxu0 %v1504_v61  ;;  %837 = vmatprep.mubr.bf16.mxu1 %v1507_v62 }
  0xa4   : > { %734 = vmatmul.mubr.bf16.gmra.mxu0 %v1506_v63  ;;  %838 = vmatmul.mubr.bf16.gmra.mxu1 %v1509_v0 }
  0xa5   : > { %741 = vmatprep.mubr.bf16.mxu0 %v1510_v1 }
  0xac   : > { %742 = vmatmul.mubr.bf16.gmra.mxu0 %v1512_v2 }
 0x10c   : > { %v647_v4 = vpop.f32.mrf.mxu0  ;;  %v751_v5 = vpop.f32.mrf.mxu1 }
 0x10d   : > { %v648_v6 = vadd.f32 %v1691_v3, %v647_v4  ;;  %v752_v7 = vadd.f32 %v1691_v3, %v751_v5 }
 0x10e   : > { %v649_v8 = vpop.f32.mrf.mxu0  ;;  %v753_v9 = vpop.f32.mrf.mxu1 }
 0x10f   : > { %v846_v10 = vmax.f32 %v648_v6, 0.0  ;;  %v872_v11 = vmax.f32 %v752_v7, 0.0 }
 0x110   : > { %v650_v12 = vpop.f32.mrf.mxu0  ;;  %v754_v13 = vpop.f32.mrf.mxu1 }
 0x111   : > { %v1331_v14 = vpack.c.bf16 %v846_v10, %v846_v10  ;;  %v1357_v15 = vpack.c.bf16 %v872_v11, %v872_v11  ;;  %v651_v16 = vadd.f32 %v1691_v3, %v650_v12  ;;  %v755_v17 = vadd.f32 %v1691_v3, %v754_v13 }
 0x112   : > { %v652_v18 = vpop.f32.mrf.mxu0  ;;  %v756_v19 = vpop.f32.mrf.mxu1 }
 0x113   : > { %1097 = vst.msk [vmem:[%s1699_s28] sm:$0xf] %vm1096_vm0, %v1331_v14  ;;  %1123 = vst.msk [vmem:[%s1699_s28 + $0x68] sm:$0xf] %vm1096_vm0, %v1357_v15  ;;  %v847_v20 = vmax.f32 %v651_v16, 0.0  ;;  %v873_v21 = vmax.f32 %v755_v17, 0.0 }
 0x114   : > { %v655_v22 = vpop.f32.mrf.mxu0  ;;  %v759_v23 = vpop.f32.mrf.mxu1 }
 0x115   : > { %v1332_v24 = vpack.c.bf16 %v847_v20, %v847_v20  ;;  %v1358_v25 = vpack.c.bf16 %v873_v21, %v873_v21  ;;  %v656_v26 = vadd.f32 %v1691_v3, %v655_v22  ;;  %v760_v27 = vadd.f32 %v1691_v3, %v759_v23 }
 0x116   : > { %v657_v28 = vpop.f32.mrf.mxu0  ;;  %v761_v29 = vpop.f32.mrf.mxu1 }
 0x117   : > { %1098 = vst.msk [vmem:[%s1699_s28 + $0x4] sm:$0xf] %vm1096_vm0, %v1332_v24  ;;  %1124 = vst.msk [vmem:[%s1699_s28 + $0x6c] sm:$0xf] %vm1096_vm0, %v1358_v25  ;;  %v848_v30 = vmax.f32 %v656_v26, 0.0  ;;  %v874_v31 = vmax.f32 %v760_v27, 0.0 }
 0x118   : > { %v658_v32 = vpop.f32.mrf.mxu0  ;;  %v762_v33 = vpop.f32.mrf.mxu1 }
 0x119   : > { %v1333_v34 = vpack.c.bf16 %v848_v30, %v848_v30  ;;  %v1359_v35 = vpack.c.bf16 %v874_v31, %v874_v31  ;;  %v659_v36 = vadd.f32 %v1691_v3, %v658_v32  ;;  %v763_v37 = vadd.f32 %v1691_v3, %v762_v33 }
 0x11a   : > { %v660_v38 = vpop.f32.mrf.mxu0  ;;  %v764_v39 = vpop.f32.mrf.mxu1 }
 0x11b   : > { %1099 = vst.msk [vmem:[%s1699_s28 + $0x8] sm:$0xf] %vm1096_vm0, %v1333_v34  ;;  %1125 = vst.msk [vmem:[%s1699_s28 + $0x70] sm:$0xf] %vm1096_vm0, %v1359_v35  ;;  %v849_v40 = vmax.f32 %v659_v36, 0.0  ;;  %v875_v41 = vmax.f32 %v763_v37, 0.0 }
 0x11c   : > { %v663_v42 = vpop.f32.mrf.mxu0  ;;  %v767_v43 = vpop.f32.mrf.mxu1 }
 0x11d   : > { %v1334_v44 = vpack.c.bf16 %v849_v40, %v849_v40  ;;  %v1360_v45 = vpack.c.bf16 %v875_v41, %v875_v41  ;;  %v664_v46 = vadd.f32 %v1691_v3, %v663_v42  ;;  %v768_v47 = vadd.f32 %v1691_v3, %v767_v43 }
 0x11e   : > { %v665_v48 = vpop.f32.mrf.mxu0  ;;  %v769_v49 = vpop.f32.mrf.mxu1 }
 0x11f   : > { %1100 = vst.msk [vmem:[%s1699_s28 + $0xc] sm:$0xf] %vm1096_vm0, %v1334_v44  ;;  %1126 = vst.msk [vmem:[%s1699_s28 + $0x74] sm:$0xf] %vm1096_vm0, %v1360_v45  ;;  %v850_v50 = vmax.f32 %v664_v46, 0.0  ;;  %v876_v51 = vmax.f32 %v768_v47, 0.0 }
 0x120   : > { %v666_v52 = vpop.f32.mrf.mxu0  ;;  %v770_v53 = vpop.f32.mrf.mxu1 }
 0x121   : > { %v1335_v54 = vpack.c.bf16 %v850_v50, %v850_v50  ;;  %v1361_v55 = vpack.c.bf16 %v876_v51, %v876_v51  ;;  %v667_v56 = vadd.f32 %v1691_v3, %v666_v52  ;;  %v771_v57 = vadd.f32 %v1691_v3, %v770_v53 }
 0x122   : > { %v668_v58 = vpop.f32.mrf.mxu0  ;;  %v772_v59 = vpop.f32.mrf.mxu1 }
 0x123   : > { %1101 = vst.msk [vmem:[%s1699_s28 + $0x10] sm:$0xf] %vm1096_vm0, %v1335_v54  ;;  %1127 = vst.msk [vmem:[%s1699_s28 + $0x78] sm:$0xf] %vm1096_vm0, %v1361_v55  ;;  %v851_v60 = vmax.f32 %v667_v56, 0.0  ;;  %v877_v61 = vmax.f32 %v771_v57, 0.0 }
 0x124   : > { %v671_v62 = vpop.f32.mrf.mxu0  ;;  %v775_v63 = vpop.f32.mrf.mxu1 }
 0x125   : > { %v1336_v0 = vpack.c.bf16 %v851_v60, %v851_v60  ;;  %v1362_v1 = vpack.c.bf16 %v877_v61, %v877_v61  ;;  %v672_v2 = vadd.f32 %v1691_v3, %v671_v62  ;;  %v776_v4 = vadd.f32 %v1691_v3, %v775_v63 }
 0x126   : > { %v673_v5 = vpop.f32.mrf.mxu0  ;;  %v777_v6 = vpop.f32.mrf.mxu1 }
 0x127   : > { %1102 = vst.msk [vmem:[%s1699_s28 + $0x14] sm:$0xf] %vm1096_vm0, %v1336_v0  ;;  %1128 = vst.msk [vmem:[%s1699_s28 + $0x7c] sm:$0xf] %vm1096_vm0, %v1362_v1  ;;  %v852_v7 = vmax.f32 %v672_v2, 0.0  ;;  %v878_v8 = vmax.f32 %v776_v4, 0.0 }
 0x128   : > { %v674_v9 = vpop.f32.mrf.mxu0  ;;  %v778_v10 = vpop.f32.mrf.mxu1 }
 0x129   : > { %v1337_v11 = vpack.c.bf16 %v852_v7, %v852_v7  ;;  %v1363_v12 = vpack.c.bf16 %v878_v8, %v878_v8  ;;  %v675_v13 = vadd.f32 %v1691_v3, %v674_v9  ;;  %v779_v14 = vadd.f32 %v1691_v3, %v778_v10 }
 0x12a   : > { %v676_v15 = vpop.f32.mrf.mxu0  ;;  %v780_v16 = vpop.f32.mrf.mxu1 }
 0x12b   : > { %1103 = vst.msk [vmem:[%s1699_s28 + $0x18] sm:$0xf] %vm1096_vm0, %v1337_v11  ;;  %1129 = vst.msk [vmem:[%s1699_s28 + $0x80] sm:$0xf] %vm1096_vm0, %v1363_v12  ;;  %v853_v17 = vmax.f32 %v675_v13, 0.0  ;;  %v879_v18 = vmax.f32 %v779_v14, 0.0 }
 0x12c   : > { %v679_v19 = vpop.f32.mrf.mxu0  ;;  %v783_v20 = vpop.f32.mrf.mxu1 }
 0x12d   : > { %v1338_v21 = vpack.c.bf16 %v853_v17, %v853_v17  ;;  %v1364_v22 = vpack.c.bf16 %v879_v18, %v879_v18  ;;  %v680_v23 = vadd.f32 %v1691_v3, %v679_v19  ;;  %v784_v24 = vadd.f32 %v1691_v3, %v783_v20 }
 0x12e   : > { %v681_v25 = vpop.f32.mrf.mxu0  ;;  %v785_v26 = vpop.f32.mrf.mxu1 }
 0x12f   : > { %1104 = vst.msk [vmem:[%s1699_s28 + $0x1c] sm:$0xf] %vm1096_vm0, %v1338_v21  ;;  %1130 = vst.msk [vmem:[%s1699_s28 + $0x84] sm:$0xf] %vm1096_vm0, %v1364_v22  ;;  %v854_v27 = vmax.f32 %v680_v23, 0.0  ;;  %v880_v28 = vmax.f32 %v784_v24, 0.0 }
 0x130   : > { %v682_v29 = vpop.f32.mrf.mxu0  ;;  %v786_v30 = vpop.f32.mrf.mxu1 }
 0x131   : > { %v1339_v31 = vpack.c.bf16 %v854_v27, %v854_v27  ;;  %v1365_v32 = vpack.c.bf16 %v880_v28, %v880_v28  ;;  %v683_v33 = vadd.f32 %v1691_v3, %v682_v29  ;;  %v787_v34 = vadd.f32 %v1691_v3, %v786_v30 }
 0x132   : > { %v684_v35 = vpop.f32.mrf.mxu0  ;;  %v788_v36 = vpop.f32.mrf.mxu1 }
 0x133   : > { %1105 = vst.msk [vmem:[%s1699_s28 + $0x20] sm:$0xf] %vm1096_vm0, %v1339_v31  ;;  %1131 = vst.msk [vmem:[%s1699_s28 + $0x88] sm:$0xf] %vm1096_vm0, %v1365_v32  ;;  %v855_v37 = vmax.f32 %v683_v33, 0.0  ;;  %v881_v38 = vmax.f32 %v787_v34, 0.0 }
 0x134   : > { %v687_v39 = vpop.f32.mrf.mxu0  ;;  %v791_v40 = vpop.f32.mrf.mxu1 }
 0x135   : > { %v1340_v41 = vpack.c.bf16 %v855_v37, %v855_v37  ;;  %v1366_v42 = vpack.c.bf16 %v881_v38, %v881_v38  ;;  %v688_v43 = vadd.f32 %v1691_v3, %v687_v39  ;;  %v792_v44 = vadd.f32 %v1691_v3, %v791_v40 }
 0x136   : > { %v689_v45 = vpop.f32.mrf.mxu0  ;;  %v793_v46 = vpop.f32.mrf.mxu1 }
 0x137   : > { %1106 = vst.msk [vmem:[%s1699_s28 + $0x24] sm:$0xf] %vm1096_vm0, %v1340_v41  ;;  %1132 = vst.msk [vmem:[%s1699_s28 + $0x8c] sm:$0xf] %vm1096_vm0, %v1366_v42  ;;  %v856_v47 = vmax.f32 %v688_v43, 0.0  ;;  %v882_v48 = vmax.f32 %v792_v44, 0.0 }
 0x138   : > { %v690_v49 = vpop.f32.mrf.mxu0  ;;  %v794_v50 = vpop.f32.mrf.mxu1 }
 0x139   : > { %v1341_v51 = vpack.c.bf16 %v856_v47, %v856_v47  ;;  %v1367_v52 = vpack.c.bf16 %v882_v48, %v882_v48  ;;  %v691_v53 = vadd.f32 %v1691_v3, %v690_v49  ;;  %v795_v54 = vadd.f32 %v1691_v3, %v794_v50 }
 0x13a   : > { %v692_v55 = vpop.f32.mrf.mxu0  ;;  %v796_v56 = vpop.f32.mrf.mxu1 }
 0x13b   : > { %1107 = vst.msk [vmem:[%s1699_s28 + $0x28] sm:$0xf] %vm1096_vm0, %v1341_v51  ;;  %1133 = vst.msk [vmem:[%s1699_s28 + $0x90] sm:$0xf] %vm1096_vm0, %v1367_v52  ;;  %v857_v57 = vmax.f32 %v691_v53, 0.0  ;;  %v883_v58 = vmax.f32 %v795_v54, 0.0 }
 0x13c   : > { %v695_v59 = vpop.f32.mrf.mxu0  ;;  %v799_v60 = vpop.f32.mrf.mxu1 }
 0x13d   : > { %v1342_v61 = vpack.c.bf16 %v857_v57, %v857_v57  ;;  %v1368_v62 = vpack.c.bf16 %v883_v58, %v883_v58  ;;  %v696_v63 = vadd.f32 %v1691_v3, %v695_v59  ;;  %v800_v0 = vadd.f32 %v1691_v3, %v799_v60 }
 0x13e   : > { %v697_v1 = vpop.f32.mrf.mxu0  ;;  %v801_v2 = vpop.f32.mrf.mxu1 }
 0x13f   : > { %1108 = vst.msk [vmem:[%s1699_s28 + $0x2c] sm:$0xf] %vm1096_vm0, %v1342_v61  ;;  %1134 = vst.msk [vmem:[%s1699_s28 + $0x94] sm:$0xf] %vm1096_vm0, %v1368_v62  ;;  %v858_v4 = vmax.f32 %v696_v63, 0.0  ;;  %v884_v5 = vmax.f32 %v800_v0, 0.0 }
 0x140   : > { %v698_v6 = vpop.f32.mrf.mxu0  ;;  %v802_v7 = vpop.f32.mrf.mxu1 }
 0x141   : > { %v1343_v8 = vpack.c.bf16 %v858_v4, %v858_v4  ;;  %v1369_v9 = vpack.c.bf16 %v884_v5, %v884_v5  ;;  %v699_v10 = vadd.f32 %v1691_v3, %v698_v6  ;;  %v803_v11 = vadd.f32 %v1691_v3, %v802_v7 }
 0x142   : > { %v700_v12 = vpop.f32.mrf.mxu0  ;;  %v804_v13 = vpop.f32.mrf.mxu1 }
 0x143   : > { %1109 = vst.msk [vmem:[%s1699_s28 + $0x30] sm:$0xf] %vm1096_vm0, %v1343_v8  ;;  %1135 = vst.msk [vmem:[%s1699_s28 + $0x98] sm:$0xf] %vm1096_vm0, %v1369_v9  ;;  %v859_v14 = vmax.f32 %v699_v10, 0.0  ;;  %v885_v15 = vmax.f32 %v803_v11, 0.0 }
 0x144   : > { %v703_v16 = vpop.f32.mrf.mxu0  ;;  %v807_v17 = vpop.f32.mrf.mxu1 }
 0x145   : > { %v1344_v18 = vpack.c.bf16 %v859_v14, %v859_v14  ;;  %v1370_v19 = vpack.c.bf16 %v885_v15, %v885_v15  ;;  %v704_v20 = vadd.f32 %v1691_v3, %v703_v16  ;;  %v808_v21 = vadd.f32 %v1691_v3, %v807_v17 }
 0x146   : > { %v705_v22 = vpop.f32.mrf.mxu0  ;;  %v809_v23 = vpop.f32.mrf.mxu1 }
 0x147   : > { %1110 = vst.msk [vmem:[%s1699_s28 + $0x34] sm:$0xf] %vm1096_vm0, %v1344_v18  ;;  %1136 = vst.msk [vmem:[%s1699_s28 + $0x9c] sm:$0xf] %vm1096_vm0, %v1370_v19  ;;  %v860_v24 = vmax.f32 %v704_v20, 0.0  ;;  %v886_v25 = vmax.f32 %v808_v21, 0.0 }
 0x148   : > { %v706_v26 = vpop.f32.mrf.mxu0  ;;  %v810_v27 = vpop.f32.mrf.mxu1 }
 0x149   : > { %v1345_v28 = vpack.c.bf16 %v860_v24, %v860_v24  ;;  %v1371_v29 = vpack.c.bf16 %v886_v25, %v886_v25  ;;  %v707_v30 = vadd.f32 %v1691_v3, %v706_v26  ;;  %v811_v31 = vadd.f32 %v1691_v3, %v810_v27 }
 0x14a   : > { %v708_v32 = vpop.f32.mrf.mxu0  ;;  %v812_v33 = vpop.f32.mrf.mxu1 }
 0x14b   : > { %1111 = vst.msk [vmem:[%s1699_s28 + $0x38] sm:$0xf] %vm1096_vm0, %v1345_v28  ;;  %1137 = vst.msk [vmem:[%s1699_s28 + $0xa0] sm:$0xf] %vm1096_vm0, %v1371_v29  ;;  %v861_v34 = vmax.f32 %v707_v30, 0.0  ;;  %v887_v35 = vmax.f32 %v811_v31, 0.0 }
 0x14c   : > { %v711_v36 = vpop.f32.mrf.mxu0  ;;  %v815_v37 = vpop.f32.mrf.mxu1 }
 0x14d   : > { %v1346_v38 = vpack.c.bf16 %v861_v34, %v861_v34  ;;  %v1372_v39 = vpack.c.bf16 %v887_v35, %v887_v35  ;;  %v712_v40 = vadd.f32 %v1691_v3, %v711_v36  ;;  %v816_v41 = vadd.f32 %v1691_v3, %v815_v37 }
 0x14e   : > { %v713_v42 = vpop.f32.mrf.mxu0  ;;  %v817_v43 = vpop.f32.mrf.mxu1 }
 0x14f   : > { %1112 = vst.msk [vmem:[%s1699_s28 + $0x3c] sm:$0xf] %vm1096_vm0, %v1346_v38  ;;  %1138 = vst.msk [vmem:[%s1699_s28 + $0xa4] sm:$0xf] %vm1096_vm0, %v1372_v39  ;;  %v862_v44 = vmax.f32 %v712_v40, 0.0  ;;  %v888_v45 = vmax.f32 %v816_v41, 0.0 }
 0x150   : > { %v714_v46 = vpop.f32.mrf.mxu0  ;;  %v818_v47 = vpop.f32.mrf.mxu1 }
 0x151   : > { %v1347_v48 = vpack.c.bf16 %v862_v44, %v862_v44  ;;  %v1373_v49 = vpack.c.bf16 %v888_v45, %v888_v45  ;;  %v715_v50 = vadd.f32 %v1691_v3, %v714_v46  ;;  %v819_v51 = vadd.f32 %v1691_v3, %v818_v47 }
 0x152   : > { %v716_v52 = vpop.f32.mrf.mxu0  ;;  %v820_v53 = vpop.f32.mrf.mxu1 }
 0x153   : > { %1113 = vst.msk [vmem:[%s1699_s28 + $0x40] sm:$0xf] %vm1096_vm0, %v1347_v48  ;;  %1139 = vst.msk [vmem:[%s1699_s28 + $0xa8] sm:$0xf] %vm1096_vm0, %v1373_v49  ;;  %v863_v54 = vmax.f32 %v715_v50, 0.0  ;;  %v889_v55 = vmax.f32 %v819_v51, 0.0 }
 0x154   : > { %v719_v56 = vpop.f32.mrf.mxu0  ;;  %v823_v57 = vpop.f32.mrf.mxu1 }
 0x155   : > { %v1348_v58 = vpack.c.bf16 %v863_v54, %v863_v54  ;;  %v1374_v59 = vpack.c.bf16 %v889_v55, %v889_v55  ;;  %v720_v60 = vadd.f32 %v1691_v3, %v719_v56  ;;  %v824_v61 = vadd.f32 %v1691_v3, %v823_v57 }
 0x156   : > { %v721_v62 = vpop.f32.mrf.mxu0  ;;  %v825_v63 = vpop.f32.mrf.mxu1 }
 0x157   : > { %1114 = vst.msk [vmem:[%s1699_s28 + $0x44] sm:$0xf] %vm1096_vm0, %v1348_v58  ;;  %1140 = vst.msk [vmem:[%s1699_s28 + $0xac] sm:$0xf] %vm1096_vm0, %v1374_v59  ;;  %v864_v0 = vmax.f32 %v720_v60, 0.0  ;;  %v890_v1 = vmax.f32 %v824_v61, 0.0 }
 0x158   : > { %v722_v2 = vpop.f32.mrf.mxu0  ;;  %v826_v4 = vpop.f32.mrf.mxu1 }
 0x159   : > { %v1349_v5 = vpack.c.bf16 %v864_v0, %v864_v0  ;;  %v1375_v6 = vpack.c.bf16 %v890_v1, %v890_v1  ;;  %v723_v7 = vadd.f32 %v1691_v3, %v722_v2  ;;  %v827_v8 = vadd.f32 %v1691_v3, %v826_v4 }
 0x15a   : > { %v724_v9 = vpop.f32.mrf.mxu0  ;;  %v828_v10 = vpop.f32.mrf.mxu1 }
 0x15b   : > { %1115 = vst.msk [vmem:[%s1699_s28 + $0x48] sm:$0xf] %vm1096_vm0, %v1349_v5  ;;  %1141 = vst.msk [vmem:[%s1699_s28 + $0xb0] sm:$0xf] %vm1096_vm0, %v1375_v6  ;;  %v865_v11 = vmax.f32 %v723_v7, 0.0  ;;  %v891_v12 = vmax.f32 %v827_v8, 0.0 }
 0x15c   : > { %v727_v13 = vpop.f32.mrf.mxu0  ;;  %v831_v14 = vpop.f32.mrf.mxu1 }
 0x15d   : > { %v1350_v15 = vpack.c.bf16 %v865_v11, %v865_v11  ;;  %v1376_v16 = vpack.c.bf16 %v891_v12, %v891_v12  ;;  %v728_v17 = vadd.f32 %v1691_v3, %v727_v13  ;;  %v832_v18 = vadd.f32 %v1691_v3, %v831_v14 }
 0x15e   : > { %v729_v19 = vpop.f32.mrf.mxu0  ;;  %v833_v20 = vpop.f32.mrf.mxu1 }
 0x15f   : > { %1116 = vst.msk [vmem:[%s1699_s28 + $0x4c] sm:$0xf] %vm1096_vm0, %v1350_v15  ;;  %1142 = vst.msk [vmem:[%s1699_s28 + $0xb4] sm:$0xf] %vm1096_vm0, %v1376_v16  ;;  %v866_v21 = vmax.f32 %v728_v17, 0.0  ;;  %v892_v22 = vmax.f32 %v832_v18, 0.0 }
 0x160   : > { %v730_v23 = vpop.f32.mrf.mxu0  ;;  %v834_v24 = vpop.f32.mrf.mxu1 }
 0x161   : > { %v1351_v25 = vpack.c.bf16 %v866_v21, %v866_v21  ;;  %v1377_v26 = vpack.c.bf16 %v892_v22, %v892_v22  ;;  %v731_v27 = vadd.f32 %v1691_v3, %v730_v23  ;;  %v835_v28 = vadd.f32 %v1691_v3, %v834_v24 }
 0x162   : > { %v732_v29 = vpop.f32.mrf.mxu0  ;;  %v836_v30 = vpop.f32.mrf.mxu1 }
 0x163   : > { %1117 = vst.msk [vmem:[%s1699_s28 + $0x50] sm:$0xf] %vm1096_vm0, %v1351_v25  ;;  %1143 = vst.msk [vmem:[%s1699_s28 + $0xb8] sm:$0xf] %vm1096_vm0, %v1377_v26  ;;  %v867_v31 = vmax.f32 %v731_v27, 0.0  ;;  %v893_v32 = vmax.f32 %v835_v28, 0.0 }
 0x164   : > { %v735_v33 = vpop.f32.mrf.mxu0  ;;  %v839_v34 = vpop.f32.mrf.mxu1 }
 0x165   : > { %v1352_v35 = vpack.c.bf16 %v867_v31, %v867_v31  ;;  %v1378_v36 = vpack.c.bf16 %v893_v32, %v893_v32  ;;  %v736_v37 = vadd.f32 %v1691_v3, %v735_v33  ;;  %v840_v38 = vadd.f32 %v1691_v3, %v839_v34 }
 0x166   : > { %v737_v39 = vpop.f32.mrf.mxu0  ;;  %v841_v40 = vpop.f32.mrf.mxu1 }
 0x167   : > { %1118 = vst.msk [vmem:[%s1699_s28 + $0x54] sm:$0xf] %vm1096_vm0, %v1352_v35  ;;  %1144 = vst.msk [vmem:[%s1699_s28 + $0xbc] sm:$0xf] %vm1096_vm0, %v1378_v36  ;;  %v868_v41 = vmax.f32 %v736_v37, 0.0  ;;  %v894_v42 = vmax.f32 %v840_v38, 0.0 }
 0x168   : > { %v738_v43 = vpop.f32.mrf.mxu0  ;;  %v842_v44 = vpop.f32.mrf.mxu1 }
 0x169   : > { %v1353_v45 = vpack.c.bf16 %v868_v41, %v868_v41  ;;  %v1379_v46 = vpack.c.bf16 %v894_v42, %v894_v42  ;;  %v739_v47 = vadd.f32 %v1691_v3, %v738_v43  ;;  %v843_v48 = vadd.f32 %v1691_v3, %v842_v44 }
 0x16a   : > { %v740_v49 = vpop.f32.mrf.mxu0  ;;  %v844_v50 = vpop.f32.mrf.mxu1 }
 0x16b   : > { %1119 = vst.msk [vmem:[%s1699_s28 + $0x58] sm:$0xf] %vm1096_vm0, %v1353_v45  ;;  %1145 = vst.msk [vmem:[%s1699_s28 + $0xc0] sm:$0xf] %vm1096_vm0, %v1379_v46  ;;  %v869_v51 = vmax.f32 %v739_v47, 0.0  ;;  %v895_v52 = vmax.f32 %v843_v48, 0.0 }
 0x16c   : > { %v743_v53 = vpop.f32.mrf.mxu0 }
 0x16d   : > { %v1354_v54 = vpack.c.bf16 %v869_v51, %v869_v51  ;;  %v1380_v55 = vpack.c.bf16 %v895_v52, %v895_v52  ;;  %v744_v56 = vadd.f32 %v1691_v3, %v743_v53 }
 0x16e   : > { %v745_v57 = vpop.f32.mrf.mxu0 }
 0x16f   : > { %1120 = vst.msk [vmem:[%s1699_s28 + $0x5c] sm:$0xf] %vm1096_vm0, %v1354_v54  ;;  %1146 = vst.msk [vmem:[%s1699_s28 + $0xc4] sm:$0xf] %vm1096_vm0, %v1380_v55  ;;  %v870_v58 = vmax.f32 %v744_v56, 0.0 }
 0x170   : > { %v746_v59 = vpop.f32.mrf.mxu0 }
 0x171   : > { %v1355_v60 = vpack.c.bf16 %v870_v58, %v870_v58  ;;  %v747_v61 = vadd.f32 %v1691_v3, %v746_v59 }
 0x172   : > { %v748_v62 = vpop.f32.mrf.mxu0 }
 0x173   : > { %1121 = vst.msk [vmem:[%s1699_s28 + $0x60] sm:$0xf] %vm1096_vm0, %v1355_v60  ;;  %v871_v63 = vmax.f32 %v747_v61, 0.0 }
 0x175   : > { %v1356_v0 = vpack.c.bf16 %v871_v63, %v871_v63 }
 0x177   : > { %1122 = vst.msk [vmem:[%s1699_s28 + $0x64] sm:$0xf] %vm1096_vm0, %v1356_v0 }
 0x178 PF: > { %s13_s12 = sadd.s32 1, %s1519_s12  }
 0x179   : > { %p10_p4 = scmp.ge.s32.totalorder %s13_s12, 4  }
 0x17b   :  { %12 = sbr.rel (!%p10_p4) target bundleno = 1 (0x1), region = 62 }

// kernel: a3c_forward.5
= control target key start
LH: loop header
LB: loop body
LE: loop exit
PB: predicated region body
PF: predicated region fallthrough
CT: control target
= control target key end

     0   :  { %s1580_s12 = smov 0   ;;  %s1582_s13 = smov 0   ;;  %s1842_s0 = inlined_call_operand.vmem [shape: bf16[162,512], index: 0, kind: input, shape index: {}]   ;;  %s1843_s1 = inlined_call_operand.vmem [shape: bf16[512,64], index: 1, kind: input, shape index: {}]   ;;  %s1844_s2 = inlined_call_operand.vmem [shape: f32[1,64], index: 2, kind: input, shape index: {}]   ;;  %s1845_s3 = inlined_call_operand.vmem [shape: bf16[162,64], index: 3, kind: output, shape index: {}]  }
   0x1   :  { %s1584_s14 = smov 0  }
   0x2 LB: > { %s1593_s15 = sadd.s32 4294967295, %s1526_s14   ;;  %s1595_s16 = sadd.s32 1, %s1526_s14   ;;  %s1526_s14 = sphi %s1584_s14, %s1852_s14   ;;  %s1522_s13 = sphi %s1582_s13, %s1851_s13   ;;  %s1518_s12 = sphi %s1580_s12, %s1850_s12  }
   0x3   : > { %s85_s17 = ssub.s32 %s1526_s14, %s1595_s16  ;;  %s88_s18 = sadd.s32 1, %s1522_s13 }
   0x4   : > { %p86_p0 = scmp.eq.s32.totalorder %s85_s17, 0  ;;  %p98_p1 = scmp.ne.s32.totalorder %s1522_s13, %s1518_s12 }
   0x5   : > { %p99_p2 = scmp.eq.s32.totalorder %s1593_s15, 1  ;;  %p1108_p3 = scmp.ge.s32.totalorder %s1526_s14, 1 }
   0x6   : > { %s1603_s19 = scalar_select %p86_p0, %s1522_s13, %s88_s18  }
   0x7   : > { %p1605_p4 = por %p99_p2, %p98_p1  ;;  %p149_p5 = scmp.lt.s32.totalorder %s1526_s14, 3 }
   0x9   : > { %p150_p6 = pnand %p1108_p3, %p149_p5 }
   0xa   : > { %s1655_s30 = smul.u32 (!%p150_p6), 12, %s1593_s15  ;;  %s175_s5 = sand.u32 (!%p150_p6), 1, %s1518_s12  }
   0xb   : > { %153 = sbr.rel (%p150_p6) target bundleno = 361 (0x169), region = 32 }
   0xc   : > { %p184_p7 = scmp.lt.s32.totalorder (!%p150_p6), %s1655_s30, 20  ;;  %s1310_s6 = smul.u32 (!%p150_p6), 48, %s175_s5 }
   0xe   : > { %s1747_s12 = scalar_lea.vmem (!%p150_p6), [#allocation2], %s1310_s6  }
  0x10   : > { %v1400_v0 = vld [vmem:[%s1843_s1 + $0x78] sm:$0xff]   ;;  %v1404_v4 = vld [vmem:[%s1843_s1 + $0x70] sm:$0xff]   ;;  %v1408_v8 = vld [vmem:[%s1843_s1 + $0x68] sm:$0xff]   ;;  %s185_s26 = scalar_select %p184_p7, %s1655_s30, 20  ;;  %vm830_vm0 = vcmask 519168  }
  0x11   : > { %v1401_v1 = vld [vmem:[%s1843_s1 + $0xf8] sm:$0xff]   ;;  %1206 = vmatprep.subr.bf16.mxu0 %v1400_v0  ;;  %v1405_v5 = vld [vmem:[%s1843_s1 + $0xf0] sm:$0xff]   ;;  %v1409_v9 = vld [vmem:[%s1843_s1 + $0xe8] sm:$0xff]   ;;  %s851_s7 = ssub.s32 (%p1605_p4), 21, %s1655_s30  ;;  %s1205_s8 = smul.u32 (%p1605_p4), 48, %s1593_s15 }
  0x12   : > { %v1402_v2 = vld [vmem:[%s1843_s1 + $0x38] sm:$0xff]   ;;  %1258 = vmatprep.subr.bf16.mxu1 %v1401_v1  ;;  %v1406_v6 = vld [vmem:[%s1843_s1 + $0x30] sm:$0xff]   ;;  %v1410_v10 = vld [vmem:[%s1843_s1 + $0x28] sm:$0xff]   ;;  %s1192_s9 = sshll.u32 %s185_s26, 4  ;;  %p852_p8 = scmp.lt.s32.totalorder (%p1605_p4), %s851_s7, 12 }
  0x13   : > { %v1403_v3 = vld [vmem:[%s1843_s1 + $0xb8] sm:$0xff]   ;;  %1207 = vmatpush3.bf16.msra.mxu0 %v1402_v2  ;;  %v1407_v7 = vld [vmem:[%s1843_s1 + $0xb0] sm:$0xff]   ;;  %v1411_v11 = vld [vmem:[%s1843_s1 + $0xa8] sm:$0xff]   ;;  %s1707_s24 = scalar_lea.vmem %s1842_s0, %s1192_s9  ;;  %s1790_s11 = scalar_lea.vmem (%p1605_p4), %s1845_s3, %s1205_s8  }
  0x14   : > { %1259 = vmatpush3.bf16.msra.mxu1 %v1403_v3  ;;  %1208 = vmatprep.subr.bf16.mxu0 %v1404_v4  ;;  %v1412_v12 = vld [vmem:[%s1843_s1 + $0x60] sm:$0xff]   ;;  %v1416_v16 = vld [vmem:[%s1843_s1 + $0x58] sm:$0xff]   ;;  %v1420_v20 = vld [vmem:[%s1843_s1 + $0x50] sm:$0xff]  }
  0x15   : > { %1260 = vmatprep.subr.bf16.mxu1 %v1405_v5  ;;  %v1413_v13 = vld [vmem:[%s1843_s1 + $0xe0] sm:$0xff]   ;;  %v1417_v17 = vld [vmem:[%s1843_s1 + $0xd8] sm:$0xff]   ;;  %v1421_v21 = vld [vmem:[%s1843_s1 + $0xd0] sm:$0xff]  }
  0x16   : > { %v1414_v14 = vld [vmem:[%s1843_s1 + $0x20] sm:$0xff]   ;;  %v1418_v18 = vld [vmem:[%s1843_s1 + $0x18] sm:$0xff]   ;;  %v1422_v22 = vld [vmem:[%s1843_s1 + $0x10] sm:$0xff]  }
  0x17   : > { %1209 = vmatpush3.bf16.msra.mxu0 %v1406_v6  ;;  %v1415_v15 = vld [vmem:[%s1843_s1 + $0xa0] sm:$0xff]   ;;  %v1419_v19 = vld [vmem:[%s1843_s1 + $0x98] sm:$0xff]   ;;  %v1423_v23 = vld [vmem:[%s1843_s1 + $0x90] sm:$0xff]  }
  0x18   : > { %1261 = vmatpush3.bf16.msra.mxu1 %v1407_v7  ;;  %1210 = vmatprep.subr.bf16.mxu0 %v1408_v8  ;;  %v1424_v24 = vld [vmem:[%s1843_s1 + $0x48] sm:$0xff]   ;;  %v1428_v28 = vld [vmem:[%s1843_s1 + $0x40] sm:$0xff]  }
  0x19   : > { %1262 = vmatprep.subr.bf16.mxu1 %v1409_v9  ;;  %v1425_v25 = vld [vmem:[%s1843_s1 + $0xc8] sm:$0xff]   ;;  %v1429_v29 = vld [vmem:[%s1843_s1 + $0xc0] sm:$0xff]  }
  0x1a   : > { %v1426_v26 = vld [vmem:[%s1843_s1 + $0x8] sm:$0xff]   ;;  %v1430_v30 = vld [vmem:[%s1843_s1] sm:$0xff]  }
  0x1b   : > { %1211 = vmatpush3.bf16.msra.mxu0 %v1410_v10  ;;  %v1427_v27 = vld [vmem:[%s1843_s1 + $0x88] sm:$0xff]   ;;  %v1431_v31 = vld [vmem:[%s1843_s1 + $0x80] sm:$0xff]  }
  0x1c   : > { %1263 = vmatpush3.bf16.msra.mxu1 %v1411_v11  ;;  %1212 = vmatprep.subr.bf16.mxu0 %v1412_v12  ;;  %v1432_v32 = vld [vmem:[%s1707_s24] ss:$16 sps:$4 sm:$0xff]   ;;  %v1434_v33 = vld [vmem:[%s1707_s24 + $0x4] ss:$16 sps:$4 sm:$0xff]   ;;  %v1435_v34 = vld [vmem:[%s1707_s24 + $0x8] ss:$16 sps:$4 sm:$0xff]  }
  0x1d   : > { %1264 = vmatprep.subr.bf16.mxu1 %v1413_v13  ;;  %v1437_v35 = vld [vmem:[%s1707_s24 + $0xc] ss:$16 sps:$4 sm:$0xff]   ;;  %640 = vmatprep.mubr.bf16.mxu0 %v1434_v33  ;;  %v1438_v36 = vld [vmem:[%s1707_s24 + $0x24] ss:$16 sps:$4 sm:$0xff]   ;;  %v1442_v38 = vld [vmem:[%s1707_s24 + $0x20] ss:$16 sps:$4 sm:$0xff]  }
  0x1e   : > { %721 = vmatprep.mubr.bf16.mxu1 %v1437_v35  ;;  %v1440_v37 = vld [vmem:[%s1707_s24 + $0x2c] ss:$16 sps:$4 sm:$0xff]   ;;  %v1443_v39 = vld [vmem:[%s1707_s24 + $0x28] ss:$16 sps:$4 sm:$0xff]   ;;  %v1444_v40 = vld [vmem:[%s1707_s24 + $0x44] ss:$16 sps:$4 sm:$0xff]  }
  0x1f   : > { %1213 = vmatpush3.bf16.msra.mxu0 %v1414_v14  ;;  %v1446_v41 = vld [vmem:[%s1707_s24 + $0x4c] ss:$16 sps:$4 sm:$0xff]   ;;  %v1448_v42 = vld [vmem:[%s1707_s24 + $0x40] ss:$16 sps:$4 sm:$0xff]   ;;  %v1449_v43 = vld [vmem:[%s1707_s24 + $0x48] ss:$16 sps:$4 sm:$0xff]  }
  0x20   : > { %1265 = vmatpush3.bf16.msra.mxu1 %v1415_v15  ;;  %1214 = vmatprep.subr.bf16.mxu0 %v1416_v16  ;;  %v1450_v44 = vld [vmem:[%s1707_s24 + $0x64] ss:$16 sps:$4 sm:$0xff]   ;;  %v1452_v45 = vld [vmem:[%s1707_s24 + $0x6c] ss:$16 sps:$4 sm:$0xff]   ;;  %v1454_v46 = vld [vmem:[%s1707_s24 + $0x60] ss:$16 sps:$4 sm:$0xff]  }
  0x21   : > { %1266 = vmatprep.subr.bf16.mxu1 %v1417_v17  ;;  %v1455_v47 = vld [vmem:[%s1707_s24 + $0x68] ss:$16 sps:$4 sm:$0xff]   ;;  %v1456_v48 = vld [vmem:[%s1707_s24 + $0x84] ss:$16 sps:$4 sm:$0xff]   ;;  %v1458_v49 = vld [vmem:[%s1707_s24 + $0x8c] ss:$16 sps:$4 sm:$0xff]  }
  0x22   : > { %v1460_v50 = vld [vmem:[%s1707_s24 + $0x80] ss:$16 sps:$4 sm:$0xff]   ;;  %v1461_v51 = vld [vmem:[%s1707_s24 + $0x88] ss:$16 sps:$4 sm:$0xff]   ;;  %v1462_v52 = vld [vmem:[%s1707_s24 + $0xa4] ss:$16 sps:$4 sm:$0xff]  }
  0x23   : > { %1215 = vmatpush3.bf16.msra.mxu0 %v1418_v18  ;;  %v1464_v53 = vld [vmem:[%s1707_s24 + $0xac] ss:$16 sps:$4 sm:$0xff]   ;;  %v1466_v54 = vld [vmem:[%s1707_s24 + $0xa0] ss:$16 sps:$4 sm:$0xff]   ;;  %v1467_v55 = vld [vmem:[%s1707_s24 + $0xa8] ss:$16 sps:$4 sm:$0xff]  }
  0x24   : > { %1267 = vmatpush3.bf16.msra.mxu1 %v1419_v19  ;;  %1216 = vmatprep.subr.bf16.mxu0 %v1420_v20  ;;  %v1742_v58 = vld [vmem:[%s1844_s2] ss:$0 sm:$0xff] }
  0x25   : > { %1268 = vmatprep.subr.bf16.mxu1 %v1421_v21 }
  0x27   : > { %1217 = vmatpush3.bf16.msra.mxu0 %v1422_v22 }
  0x28   : > { %1269 = vmatpush3.bf16.msra.mxu1 %v1423_v23  ;;  %1218 = vmatprep.subr.bf16.mxu0 %v1424_v24 }
  0x29   : > { %1270 = vmatprep.subr.bf16.mxu1 %v1425_v25 }
  0x2b   : > { %1219 = vmatpush3.bf16.msra.mxu0 %v1426_v26 }
  0x2c   : > { %1271 = vmatpush3.bf16.msra.mxu1 %v1427_v27  ;;  %1220 = vmatprep.subr.bf16.mxu0 %v1428_v28 }
  0x2d   : > { %1272 = vmatprep.subr.bf16.mxu1 %v1429_v29 }
  0x2f   : > { %1221 = vmatpush3.bf16.msra.mxu0 %v1430_v30 }
  0x30   : > { %1273 = vmatpush3.bf16.msra.mxu1 %v1431_v31 }
  0x32   : > { %641 = vmatmul.mubr.bf16.vlgmr.msra.gmra.mxu0 %v1432_v32 }
  0x33   : > { %722 = vmatmul.mubr.bf16.vlgmr.msra.gmra.mxu1 %v1435_v34  ;;  %648 = vmatprep.mubr.bf16.mxu0 %v1438_v36 }
  0x34   : > { %729 = vmatprep.mubr.bf16.mxu1 %v1440_v37 }
  0x3a   : > { %649 = vmatmul.mubr.bf16.gmra.mxu0 %v1442_v38 }
  0x3b   : > { %730 = vmatmul.mubr.bf16.gmra.mxu1 %v1443_v39  ;;  %656 = vmatprep.mubr.bf16.mxu0 %v1444_v40 }
  0x3c   : > { %737 = vmatprep.mubr.bf16.mxu1 %v1446_v41 }
  0x42   : > { %657 = vmatmul.mubr.bf16.gmra.mxu0 %v1448_v42 }
  0x43   : > { %738 = vmatmul.mubr.bf16.gmra.mxu1 %v1449_v43  ;;  %664 = vmatprep.mubr.bf16.mxu0 %v1450_v44 }
  0x44   : > { %745 = vmatprep.mubr.bf16.mxu1 %v1452_v45 }
  0x4a   : > { %665 = vmatmul.mubr.bf16.gmra.mxu0 %v1454_v46 }
  0x4b   : > { %746 = vmatmul.mubr.bf16.gmra.mxu1 %v1455_v47  ;;  %672 = vmatprep.mubr.bf16.mxu0 %v1456_v48 }
  0x4c   : > { %753 = vmatprep.mubr.bf16.mxu1 %v1458_v49 }
  0x52   : > { %673 = vmatmul.mubr.bf16.gmra.mxu0 %v1460_v50 }
  0x53   : > { %754 = vmatmul.mubr.bf16.gmra.mxu1 %v1461_v51  ;;  %680 = vmatprep.mubr.bf16.mxu0 %v1462_v52 }
  0x54   : > { %761 = vmatprep.mubr.bf16.mxu1 %v1464_v53 }
  0x5a   : > { %681 = vmatmul.mubr.bf16.gmra.mxu0 %v1466_v54 }
  0x5b   : > { %762 = vmatmul.mubr.bf16.gmra.mxu1 %v1467_v55 }
  0xf2   : > { %v1222_v56 = vpop.f32.mrf.mxu0 }
  0xf3   : > { %v1274_v57 = vpop.f32.mrf.mxu1 }
  0xf4   : > { %v1223_v59 = vpop.f32.mrf.mxu0 }
  0xf5   : > { %v1224_v60 = vadd.f32 %v1223_v59, %v1222_v56  ;;  %v1275_v61 = vpop.f32.mrf.mxu1 }
  0xf6   : > { %v1225_v62 = vpop.f32.mrf.mxu0  ;;  %v1276_v0 = vadd.f32 %v1275_v61, %v1274_v57 }
  0xf7   : > { %v643_v63 = vadd.f32 %v1224_v60, %v1742_v58  ;;  %v1277_v1 = vpop.f32.mrf.mxu1 }
  0xf8   : > { %v1226_v2 = vpop.f32.mrf.mxu0 }
  0xf9   : > { %v724_v3 = vadd.f32 %v1276_v0, %v643_v63  ;;  %v1227_v4 = vadd.f32 %v1226_v2, %v1225_v62  ;;  %v1278_v5 = vpop.f32.mrf.mxu1 }
  0xfa   : > { %v1228_v6 = vpop.f32.mrf.mxu0  ;;  %v1279_v9 = vadd.f32 %v1278_v5, %v1277_v1 }
  0xfb   : > { %v770_v7 = vmax.f32 %v724_v3, 0.0  ;;  %v646_v8 = vadd.f32 %v1227_v4, %v1742_v58  ;;  %v1280_v10 = vpop.f32.mrf.mxu1 }
  0xfc   : > { %v1229_v11 = vpop.f32.mrf.mxu0 }
  0xfd   : > { %v1193_v12 = vpack.c.bf16 %v770_v7, %v770_v7  ;;  %v727_v13 = vadd.f32 %v1279_v9, %v646_v8  ;;  %v1230_v14 = vadd.f32 %v1229_v11, %v1228_v6  ;;  %v1281_v15 = vpop.f32.mrf.mxu1 }
  0xfe   : > { %v1231_v16 = vpop.f32.mrf.mxu0  ;;  %v1282_v19 = vadd.f32 %v1281_v15, %v1280_v10 }
  0xff   : > { %831 = vst.msk [vmem:[%s1747_s12] sm:$0xf] %vm830_vm0, %v1193_v12  ;;  %v771_v17 = vmax.f32 %v727_v13, 0.0  ;;  %v651_v18 = vadd.f32 %v1230_v14, %v1742_v58  ;;  %v1283_v20 = vpop.f32.mrf.mxu1 }
 0x100   : > { %v1232_v21 = vpop.f32.mrf.mxu0 }
 0x101   : > { %v1194_v22 = vpack.c.bf16 %v771_v17, %v771_v17  ;;  %v732_v23 = vadd.f32 %v1282_v19, %v651_v18  ;;  %v1233_v24 = vadd.f32 %v1232_v21, %v1231_v16  ;;  %v1284_v25 = vpop.f32.mrf.mxu1 }
 0x102   : > { %v1234_v26 = vpop.f32.mrf.mxu0  ;;  %v1285_v29 = vadd.f32 %v1284_v25, %v1283_v20 }
 0x103   : > { %832 = vst.msk [vmem:[%s1747_s12 + $0x4] sm:$0xf] %vm830_vm0, %v1194_v22  ;;  %v772_v27 = vmax.f32 %v732_v23, 0.0  ;;  %v654_v28 = vadd.f32 %v1233_v24, %v1742_v58  ;;  %v1286_v30 = vpop.f32.mrf.mxu1 }
 0x104   : > { %v1235_v31 = vpop.f32.mrf.mxu0 }
 0x105   : > { %v1195_v32 = vpack.c.bf16 %v772_v27, %v772_v27  ;;  %v735_v33 = vadd.f32 %v1285_v29, %v654_v28  ;;  %v1236_v34 = vadd.f32 %v1235_v31, %v1234_v26  ;;  %v1287_v35 = vpop.f32.mrf.mxu1 }
 0x106   : > { %v1237_v36 = vpop.f32.mrf.mxu0  ;;  %v1288_v39 = vadd.f32 %v1287_v35, %v1286_v30 }
 0x107   : > { %833 = vst.msk [vmem:[%s1747_s12 + $0x8] sm:$0xf] %vm830_vm0, %v1195_v32  ;;  %v773_v37 = vmax.f32 %v735_v33, 0.0  ;;  %v659_v38 = vadd.f32 %v1236_v34, %v1742_v58  ;;  %v1289_v40 = vpop.f32.mrf.mxu1 }
 0x108   : > { %v1238_v41 = vpop.f32.mrf.mxu0 }
 0x109   : > { %v1196_v42 = vpack.c.bf16 %v773_v37, %v773_v37  ;;  %v740_v43 = vadd.f32 %v1288_v39, %v659_v38  ;;  %v1239_v44 = vadd.f32 %v1238_v41, %v1237_v36  ;;  %v1290_v45 = vpop.f32.mrf.mxu1 }
 0x10a   : > { %v1240_v46 = vpop.f32.mrf.mxu0  ;;  %v1291_v49 = vadd.f32 %v1290_v45, %v1289_v40 }
 0x10b   : > { %834 = vst.msk [vmem:[%s1747_s12 + $0xc] sm:$0xf] %vm830_vm0, %v1196_v42  ;;  %v774_v47 = vmax.f32 %v740_v43, 0.0  ;;  %v662_v48 = vadd.f32 %v1239_v44, %v1742_v58  ;;  %v1292_v50 = vpop.f32.mrf.mxu1 }
 0x10c   : > { %v1241_v51 = vpop.f32.mrf.mxu0 }
 0x10d   : > { %v1197_v52 = vpack.c.bf16 %v774_v47, %v774_v47  ;;  %v743_v53 = vadd.f32 %v1291_v49, %v662_v48  ;;  %v1242_v54 = vadd.f32 %v1241_v51, %v1240_v46  ;;  %v1293_v55 = vpop.f32.mrf.mxu1 }
 0x10e   : > { %v1243_v56 = vpop.f32.mrf.mxu0  ;;  %v1294_v60 = vadd.f32 %v1293_v55, %v1292_v50 }
 0x10f   : > { %835 = vst.msk [vmem:[%s1747_s12 + $0x10] sm:$0xf] %vm830_vm0, %v1197_v52  ;;  %v775_v57 = vmax.f32 %v743_v53, 0.0  ;;  %v667_v59 = vadd.f32 %v1242_v54, %v1742_v58  ;;  %v1295_v61 = vpop.f32.mrf.mxu1 }
 0x110   : > { %v1244_v62 = vpop.f32.mrf.mxu0 }
 0x111   : > { %v1198_v63 = vpack.c.bf16 %v775_v57, %v775_v57  ;;  %v748_v0 = vadd.f32 %v1294_v60, %v667_v59  ;;  %v1245_v1 = vadd.f32 %v1244_v62, %v1243_v56  ;;  %v1296_v2 = vpop.f32.mrf.mxu1 }
 0x112   : > { %v1246_v3 = vpop.f32.mrf.mxu0  ;;  %v1297_v6 = vadd.f32 %v1296_v2, %v1295_v61 }
 0x113   : > { %836 = vst.msk [vmem:[%s1747_s12 + $0x14] sm:$0xf] %vm830_vm0, %v1198_v63  ;;  %v776_v4 = vmax.f32 %v748_v0, 0.0  ;;  %v670_v5 = vadd.f32 %v1245_v1, %v1742_v58  ;;  %v1298_v7 = vpop.f32.mrf.mxu1 }
 0x114   : > { %v1247_v8 = vpop.f32.mrf.mxu0 }
 0x115   : > { %v1199_v9 = vpack.c.bf16 %v776_v4, %v776_v4  ;;  %v751_v10 = vadd.f32 %v1297_v6, %v670_v5  ;;  %v1248_v11 = vadd.f32 %v1247_v8, %v1246_v3  ;;  %v1299_v12 = vpop.f32.mrf.mxu1 }
 0x116   : > { %v1249_v13 = vpop.f32.mrf.mxu0  ;;  %v1300_v16 = vadd.f32 %v1299_v12, %v1298_v7 }
 0x117   : > { %837 = vst.msk [vmem:[%s1747_s12 + $0x18] sm:$0xf] %vm830_vm0, %v1199_v9  ;;  %v777_v14 = vmax.f32 %v751_v10, 0.0  ;;  %v675_v15 = vadd.f32 %v1248_v11, %v1742_v58  ;;  %v1301_v17 = vpop.f32.mrf.mxu1 }
 0x118   : > { %v1250_v18 = vpop.f32.mrf.mxu0 }
 0x119   : > { %v1200_v19 = vpack.c.bf16 %v777_v14, %v777_v14  ;;  %v756_v20 = vadd.f32 %v1300_v16, %v675_v15  ;;  %v1251_v21 = vadd.f32 %v1250_v18, %v1249_v13  ;;  %v1302_v22 = vpop.f32.mrf.mxu1 }
 0x11a   : > { %v1252_v23 = vpop.f32.mrf.mxu0  ;;  %v1303_v26 = vadd.f32 %v1302_v22, %v1301_v17 }
 0x11b   : > { %838 = vst.msk [vmem:[%s1747_s12 + $0x1c] sm:$0xf] %vm830_vm0, %v1200_v19  ;;  %v778_v24 = vmax.f32 %v756_v20, 0.0  ;;  %v678_v25 = vadd.f32 %v1251_v21, %v1742_v58  ;;  %v1304_v27 = vpop.f32.mrf.mxu1 }
 0x11c   : > { %v1253_v28 = vpop.f32.mrf.mxu0 }
 0x11d   : > { %v1201_v29 = vpack.c.bf16 %v778_v24, %v778_v24  ;;  %v759_v30 = vadd.f32 %v1303_v26, %v678_v25  ;;  %v1254_v31 = vadd.f32 %v1253_v28, %v1252_v23  ;;  %v1305_v32 = vpop.f32.mrf.mxu1 }
 0x11e   : > { %v1255_v33 = vpop.f32.mrf.mxu0  ;;  %v1306_v36 = vadd.f32 %v1305_v32, %v1304_v27 }
 0x11f   : > { %839 = vst.msk [vmem:[%s1747_s12 + $0x20] sm:$0xf] %vm830_vm0, %v1201_v29  ;;  %v779_v34 = vmax.f32 %v759_v30, 0.0  ;;  %v683_v35 = vadd.f32 %v1254_v31, %v1742_v58  ;;  %v1307_v37 = vpop.f32.mrf.mxu1 }
 0x120   : > { %v1256_v38 = vpop.f32.mrf.mxu0 }
 0x121   : > { %v1202_v39 = vpack.c.bf16 %v779_v34, %v779_v34  ;;  %v764_v40 = vadd.f32 %v1306_v36, %v683_v35  ;;  %v1257_v41 = vadd.f32 %v1256_v38, %v1255_v33  ;;  %v1308_v42 = vpop.f32.mrf.mxu1 }
 0x122   : > { %v1309_v45 = vadd.f32 %v1308_v42, %v1307_v37 }
 0x123   : > { %840 = vst.msk [vmem:[%s1747_s12 + $0x24] sm:$0xf] %vm830_vm0, %v1202_v39  ;;  %v780_v43 = vmax.f32 %v764_v40, 0.0  ;;  %v686_v44 = vadd.f32 %v1257_v41, %v1742_v58 }
 0x125   : > { %v1203_v46 = vpack.c.bf16 %v780_v43, %v780_v43  ;;  %v767_v47 = vadd.f32 %v1309_v45, %v686_v44 }
 0x127   : > { %841 = vst.msk [vmem:[%s1747_s12 + $0x28] sm:$0xf] %vm830_vm0, %v1203_v46  ;;  %v781_v48 = vmax.f32 %v767_v47, 0.0  ;;  %849 = sbr.rel (!%p1605_p4) target bundleno = 361 (0x169), region = 36 }
 0x129   : > { %v1204_v49 = vpack.c.bf16 %v781_v48, %v781_v48 }
 0x12b   : > { %842 = vst.msk [vmem:[%s1747_s12 + $0x2c] sm:$0xf] %vm830_vm0, %v1204_v49 }
 0x12c   : > { %s1854_s7 = smov (!%p852_p8, %s851_s7), 12 }
 0x12d   : > { %s1180_s14 = sshll.u32 %s1854_s7, 6 }
 0x12e   : > { %p1183_p9 = scmp.eq.s32.totalorder %s1180_s14, 0 }
 0x12f   : > { %1468 = sdivrem.u32 (!%p1183_p9), %s1854_s7, 12 }
 0x130   : > { %860 = sbr.rel (%p1183_p9) target bundleno = 361 (0x169), region = 40 }
 0x138   : > { %s1796_s20 = spop.drf %1468 }
 0x139   : > { %p1184_p10 = scmp.le.s32.totalorder %s1796_s20, 0 }
 0x13a   : > { %s1847_s15 = smov (!%p1184_p10), %s1790_s11  ;;  %s1848_s30 = smov (!%p1184_p10), %s1747_s12 }
 0x13b   : > { %1061 = sbr.rel (%p1184_p10) target bundleno = 336 (0x150), region = 112  ;;  %s1805_s17 = smov (!%p1184_p10), 0  }
 0x13c   : > { %s1807_s18 = smov (!%p1184_p10), 0  }
 0x140 LB: >> { %v878_v58 = vld [vmem:[%s1534_s30] sm:$0xf]  ;;  %v880_v50 = vld [vmem:[%s1534_s30 + $0x4] sm:$0xf]  ;;  %v882_v51 = vld [vmem:[%s1534_s30 + $0x8] sm:$0xf]  ;;  %s1542_s18 = sphi %s1807_s18, %s872_s18   ;;  %s1538_s17 = sphi %s1805_s17, %s1849_s17   ;;  %s1534_s30 = sphi %s1848_s30, %s907_s30   ;;  %s1530_s15 = sphi %s1847_s15, %s908_s15  }
 0x141   : >> { %879 = vst [vmem:[%s1530_s15] sm:$0xf] %v878_v58  ;;  %881 = vst [vmem:[%s1530_s15 + $0x4] sm:$0xf] %v880_v50  ;;  %v884_v52 = vld [vmem:[%s1534_s30 + $0xc] sm:$0xf]  ;;  %s902_s21 = sadd.s32 1, %s1538_s17 }
 0x142   : >> { %883 = vst [vmem:[%s1530_s15 + $0x8] sm:$0xf] %v882_v51  ;;  %v886_v53 = vld [vmem:[%s1534_s30 + $0x10] sm:$0xf]  ;;  %v888_v54 = vld [vmem:[%s1534_s30 + $0x14] sm:$0xf]  ;;  %p903_p11 = scmp.ge.s32.totalorder %s902_s21, %s1796_s20 }
 0x143   : >> { %885 = vst [vmem:[%s1530_s15 + $0xc] sm:$0xf] %v884_v52  ;;  %887 = vst [vmem:[%s1530_s15 + $0x10] sm:$0xf] %v886_v53  ;;  %v890_v55 = vld [vmem:[%s1534_s30 + $0x18] sm:$0xf] }
 0x144   : >> { %889 = vst [vmem:[%s1530_s15 + $0x14] sm:$0xf] %v888_v54  ;;  %v892_v56 = vld [vmem:[%s1534_s30 + $0x1c] sm:$0xf]  ;;  %v894_v57 = vld [vmem:[%s1534_s30 + $0x20] sm:$0xf] }
 0x145   : >> { %891 = vst [vmem:[%s1530_s15 + $0x18] sm:$0xf] %v890_v55  ;;  %893 = vst [vmem:[%s1530_s15 + $0x1c] sm:$0xf] %v892_v56  ;;  %v896_v59 = vld [vmem:[%s1534_s30 + $0x24] sm:$0xf] }
 0x146   : >> { %895 = vst [vmem:[%s1530_s15 + $0x20] sm:$0xf] %v894_v57  ;;  %v898_v60 = vld [vmem:[%s1534_s30 + $0x28] sm:$0xf]  ;;  %v900_v61 = vld [vmem:[%s1534_s30 + $0x2c] sm:$0xf] }
 0x147   : >> { %897 = vst [vmem:[%s1530_s15 + $0x24] sm:$0xf] %v896_v59  ;;  %899 = vst [vmem:[%s1530_s15 + $0x28] sm:$0xf] %v898_v60  ;;  %s1856_s21 = smov (%p903_p11, %s902_s21), 0  ;;  %s872_s18 = sadd.s32 1, %s1542_s18  }
 0x148   : >> { %901 = vst [vmem:[%s1530_s15 + $0x2c] sm:$0xf] %v900_v61  ;;  %s905_s22 = smul.u32 48, %s1856_s21  ;;  %p871_p12 = scmp.ge.s32.totalorder %s872_s18, %s1796_s20 }
 0x149   : >> { %s1849_s17 = smov %s1856_s21 }
 0x14a   : >> { %s907_s30 = scalar_lea.vmem %s1747_s12, %s905_s22 [#allocation2]   ;;  %s908_s15 = scalar_lea.vmem %s1790_s11, %s905_s22  }
 0x14b   : > { %874 = sbr.rel (!%p871_p12) target bundleno = 320 (0x140), region = 118 }
 0x150 PF: > { %1470 = sdivrem.u32 %s1854_s7, 12 }
 0x151   : > { %s1185_s23 = smul.u32 48, %s1796_s20 }
 0x153   : > { %s913_s24 = scalar_lea.vmem %s1747_s12, %s1185_s23 [#allocation2]   ;;  %s915_s25 = scalar_lea.vmem %s1790_s11, %s1185_s23  }
 0x159   : > { %s1471_s26 = spop.drf %1470 }
 0x15a   : > { %p1187_p13 = scmp.le.s32.totalorder %s1471_s26, 0 }
 0x15b   : > { %s1544_s27 = smov (!%p1187_p13), %s915_s25   ;;  %s1548_s28 = smov (!%p1187_p13), %s913_s24  }
 0x15c   : > { %1075 = sbr.rel (%p1187_p13) target bundleno = 361 (0x169), region = 123  ;;  %s1552_s29 = smov (!%p1187_p13), 0  }
 0x15d   : > { %s1556_s4 = smov (!%p1187_p13), 0  }
 0x161 LB: >> { %v925_v62 = vld [vmem:[%s1550_s28] sm:$0xf]  ;;  %s927_s5 = sadd.s32 1, %s1554_s29  ;;  %s919_s4 = sadd.s32 1, %s1558_s4   ;;  %s1558_s4 = sphi %s1556_s4, %s919_s4   ;;  %s1554_s29 = sphi %s1552_s29, %s1553_s29   ;;  %s1550_s28 = sphi %s1548_s28, %s932_s28   ;;  %s1546_s27 = sphi %s1544_s27, %s933_s27  }
 0x162   : >> { %926 = vst [vmem:[%s1546_s27] sm:$0xf] %v925_v62  ;;  %p928_p0 = scmp.ge.s32.totalorder %s927_s5, %s1471_s26  ;;  %p918_p1 = scmp.ge.s32.totalorder %s919_s4, %s1471_s26 }
 0x164   : >> { %s1858_s5 = smov (%p928_p0, %s927_s5), 0  ;;  %921 = sbr.rel (!%p918_p1) target bundleno = 353 (0x161), region = 129 }
 0x165   : >> { %s1188_s6 = sshll.u32 %s1858_s5, 2  ;;  %s1553_s29 = smov %s1858_s5  }
 0x166   : >> { %s932_s28 = scalar_lea.vmem %s913_s24, %s1188_s6 [#allocation2]   ;;  %s933_s27 = scalar_lea.vmem %s915_s25, %s1188_s6  }
 0x169 PF: > { %p10_p2 = scmp.ge.s32.totalorder %s1595_s16, 4   ;;  %s1850_s12 = smov %s1522_s13 }
 0x16a   : > { %s1851_s13 = smov %s1603_s19  ;;  %s1852_s14 = smov %s1595_s16 }
 0x16b   :  { %12 = sbr.rel (!%p10_p2) target bundleno = 2 (0x2), region = 140 }

// kernel: a3c_forward.6
= control target key start
LH: loop header
LB: loop body
LE: loop exit
PB: predicated region body
PF: predicated region fallthrough
CT: control target
= control target key end

     0   :  { %s1598_s12 = smov 0   ;;  %s1600_s13 = smov 0   ;;  %s1848_s0 = inlined_call_operand.vmem [shape: bf16[98,576], index: 0, kind: input, shape index: {}]   ;;  %s1849_s1 = inlined_call_operand.vmem [shape: bf16[576,64], index: 1, kind: input, shape index: {}]   ;;  %s1850_s2 = inlined_call_operand.vmem [shape: f32[1,64], index: 2, kind: input, shape index: {}]   ;;  %s1851_s3 = inlined_call_operand.vmem [shape: bf16[98,64], index: 3, kind: output, shape index: {}]  }
   0x1   :  { %s1602_s14 = smov 0  }
   0x2 LB: > { %s1611_s15 = sadd.s32 4294967295, %s1544_s14   ;;  %s1613_s16 = sadd.s32 1, %s1544_s14   ;;  %s1544_s14 = sphi %s1602_s14, %s1858_s14   ;;  %s1540_s13 = sphi %s1600_s13, %s1857_s13   ;;  %s1536_s12 = sphi %s1598_s12, %s1856_s12  }
   0x3   : > { %s85_s17 = ssub.s32 %s1544_s14, %s1613_s16  ;;  %s88_s18 = sadd.s32 1, %s1540_s13 }
   0x4   : > { %p86_p0 = scmp.eq.s32.totalorder %s85_s17, 0  ;;  %p98_p1 = scmp.ne.s32.totalorder %s1540_s13, %s1536_s12 }
   0x5   : > { %p99_p2 = scmp.eq.s32.totalorder %s1611_s15, 1  ;;  %p1124_p3 = scmp.ge.s32.totalorder %s1544_s14, 1 }
   0x6   : > { %s1621_s19 = scalar_select %p86_p0, %s1540_s13, %s88_s18  }
   0x7   : > { %p1623_p4 = por %p99_p2, %p98_p1  ;;  %p149_p5 = scmp.lt.s32.totalorder %s1544_s14, 3 }
   0x9   : > { %p150_p6 = pnand %p1124_p3, %p149_p5 }
   0xa   : > { %s1673_s30 = sshll.u32 (!%p150_p6), %s1611_s15, 3  ;;  %s175_s17 = sand.u32 (!%p150_p6), 1, %s1536_s12  }
   0xb   : > { %153 = sbr.rel (%p150_p6) target bundleno = 333 (0x14d), region = 32  ;;  %p184_p7 = scmp.lt.s32.totalorder (!%p150_p6), %s1673_s30, 12 }
   0xc   : > { %s1125_s18 = sshll.u32 (!%p150_p6), %s175_s17, 5 }
   0xd   : > { %s1769_s12 = scalar_lea.vmem (!%p150_p6), [#allocation2], %s1125_s18  }
  0x10   : > { %v1426_v0 = vld [vmem:[%s1849_s1 + $0x78] sm:$0xff]   ;;  %v1430_v4 = vld [vmem:[%s1849_s1 + $0x70] sm:$0xff]   ;;  %v1434_v8 = vld [vmem:[%s1849_s1 + $0x68] sm:$0xff]   ;;  %s185_s24 = scalar_select %p184_p7, %s1673_s30, 12  ;;  %vm620_vm0 = vcmask 523264   ;;  %vm868_vm1 = vcmask 519168  }
  0x11   : > { %v1427_v1 = vld [vmem:[%s1849_s1 + $0xf8] sm:$0xff]   ;;  %1225 = vmatprep.subr.bf16.mxu0 %v1426_v0  ;;  %v1431_v5 = vld [vmem:[%s1849_s1 + $0xf0] sm:$0xff]   ;;  %v1435_v9 = vld [vmem:[%s1849_s1 + $0xe8] sm:$0xff]   ;;  %s885_s21 = ssub.s32 (%p1623_p4), 13, %s1673_s30  ;;  %s1222_s22 = sshll.u32 (%p1623_p4), %s1611_s15, 5 }
  0x12   : > { %v1428_v2 = vld [vmem:[%s1849_s1 + $0x38] sm:$0xff]   ;;  %1265 = vmatprep.subr.bf16.mxu1 %v1427_v1  ;;  %v1432_v6 = vld [vmem:[%s1849_s1 + $0x30] sm:$0xff]   ;;  %v1436_v10 = vld [vmem:[%s1849_s1 + $0x28] sm:$0xff]   ;;  %s1337_s7 = smul.u32 20, %s185_s24  ;;  %p886_p8 = scmp.lt.s32.totalorder (%p1623_p4), %s885_s21, 8 }
  0x13   : > { %v1429_v3 = vld [vmem:[%s1849_s1 + $0xb8] sm:$0xff]   ;;  %1226 = vmatpush3.bf16.msra.mxu0 %v1428_v2  ;;  %v1433_v7 = vld [vmem:[%s1849_s1 + $0xb0] sm:$0xff]   ;;  %v1437_v11 = vld [vmem:[%s1849_s1 + $0xa8] sm:$0xff]   ;;  %s1794_s25 = scalar_lea.vmem (%p1623_p4), %s1851_s3, %s1222_s22  }
  0x14   : > { %1266 = vmatpush3.bf16.msra.mxu1 %v1429_v3  ;;  %1227 = vmatprep.subr.bf16.mxu0 %v1430_v4  ;;  %v1438_v12 = vld [vmem:[%s1849_s1 + $0x60] sm:$0xff]   ;;  %v1442_v16 = vld [vmem:[%s1849_s1 + $0x58] sm:$0xff]   ;;  %v1446_v20 = vld [vmem:[%s1849_s1 + $0x50] sm:$0xff]   ;;  %s1725_s24 = scalar_lea.vmem %s1848_s0, %s1337_s7 }
  0x15   : > { %1267 = vmatprep.subr.bf16.mxu1 %v1431_v5  ;;  %v1439_v13 = vld [vmem:[%s1849_s1 + $0xe0] sm:$0xff]   ;;  %v1443_v17 = vld [vmem:[%s1849_s1 + $0xd8] sm:$0xff]   ;;  %v1447_v21 = vld [vmem:[%s1849_s1 + $0xd0] sm:$0xff]  }
  0x16   : > { %v1440_v14 = vld [vmem:[%s1849_s1 + $0x20] sm:$0xff]   ;;  %v1444_v18 = vld [vmem:[%s1849_s1 + $0x18] sm:$0xff]   ;;  %v1448_v22 = vld [vmem:[%s1849_s1 + $0x10] sm:$0xff]  }
  0x17   : > { %1228 = vmatpush3.bf16.msra.mxu0 %v1432_v6  ;;  %v1441_v15 = vld [vmem:[%s1849_s1 + $0xa0] sm:$0xff]   ;;  %v1445_v19 = vld [vmem:[%s1849_s1 + $0x98] sm:$0xff]   ;;  %v1449_v23 = vld [vmem:[%s1849_s1 + $0x90] sm:$0xff]  }
  0x18   : > { %1268 = vmatpush3.bf16.msra.mxu1 %v1433_v7  ;;  %1229 = vmatprep.subr.bf16.mxu0 %v1434_v8  ;;  %v1450_v24 = vld [vmem:[%s1849_s1 + $0x48] sm:$0xff]   ;;  %v1454_v28 = vld [vmem:[%s1849_s1 + $0x40] sm:$0xff]   ;;  %v1464_v36 = vld [vmem:[%s1849_s1 + $0x118] sm:$0xff]  }
  0x19   : > { %1269 = vmatprep.subr.bf16.mxu1 %v1435_v9  ;;  %v1451_v25 = vld [vmem:[%s1849_s1 + $0xc8] sm:$0xff]   ;;  %v1455_v29 = vld [vmem:[%s1849_s1 + $0xc0] sm:$0xff]   ;;  %v1471_v39 = vld [vmem:[%s1849_s1 + $0x110] sm:$0xff]  }
  0x1a   : > { %v1452_v26 = vld [vmem:[%s1849_s1 + $0x8] sm:$0xff]   ;;  %v1456_v30 = vld [vmem:[%s1849_s1] sm:$0xff]   ;;  %v1474_v43 = vld [vmem:[%s1725_s24 + $0x5c] ss:$20 sps:$4 sm:$0xff]  }
  0x1b   : > { %1230 = vmatpush3.bf16.msra.mxu0 %v1436_v10  ;;  %v1453_v27 = vld [vmem:[%s1849_s1 + $0x88] sm:$0xff]   ;;  %v1457_v31 = vld [vmem:[%s1849_s1 + $0x80] sm:$0xff]   ;;  %v1479_v48 = vld [vmem:[%s1725_s24 + $0x7c] ss:$20 sps:$4 sm:$0xff]  }
  0x1c   : > { %1270 = vmatpush3.bf16.msra.mxu1 %v1437_v11  ;;  %1231 = vmatprep.subr.bf16.mxu0 %v1438_v12  ;;  %v1458_v32 = vld [vmem:[%s1725_s24] ss:$20 sps:$4 sm:$0xff]   ;;  %v1460_v33 = vld [vmem:[%s1725_s24 + $0x4] ss:$20 sps:$4 sm:$0xff]   ;;  %v1461_v34 = vld [vmem:[%s1725_s24 + $0x8] ss:$20 sps:$4 sm:$0xff]  }
  0x1d   : > { %1271 = vmatprep.subr.bf16.mxu1 %v1439_v13  ;;  %v1463_v35 = vld [vmem:[%s1725_s24 + $0xc] ss:$20 sps:$4 sm:$0xff]   ;;  %665 = vmatprep.mubr.bf16.mxu0 %v1460_v33  ;;  %v1467_v38 = vld [vmem:[%s1725_s24 + $0x34] ss:$20 sps:$4 sm:$0xff]   ;;  %v1470_v41 = vld [vmem:[%s1725_s24 + $0x30] ss:$20 sps:$4 sm:$0xff]  }
  0x1e   : > { %730 = vmatprep.mubr.bf16.mxu1 %v1463_v35  ;;  %v1465_v37 = vld [vmem:[%s1725_s24 + $0x2c] ss:$20 sps:$4 sm:$0xff]   ;;  %v1469_v40 = vld [vmem:[%s1725_s24 + $0x28] ss:$20 sps:$4 sm:$0xff]   ;;  %v1476_v46 = vld [vmem:[%s1725_s24 + $0x50] ss:$20 sps:$4 sm:$0xff]  }
  0x1f   : > { %1232 = vmatpush3.bf16.msra.mxu0 %v1440_v14  ;;  %v1472_v42 = vld [vmem:[%s1725_s24 + $0x54] ss:$20 sps:$4 sm:$0xff]   ;;  %v1485_v45 = vld [vmem:[%s1849_s1 + $0x100] sm:$0xff]   ;;  %v1477_v47 = vld [vmem:[%s1725_s24 + $0x58] ss:$20 sps:$4 sm:$0xff]  }
  0x20   : > { %1272 = vmatpush3.bf16.msra.mxu1 %v1441_v15  ;;  %1233 = vmatprep.subr.bf16.mxu0 %v1442_v16  ;;  %v1478_v44 = vld [vmem:[%s1849_s1 + $0x108] sm:$0xff]   ;;  %v1481_v49 = vld [vmem:[%s1725_s24 + $0x84] ss:$20 sps:$4 sm:$0xff]   ;;  %v1484_v51 = vld [vmem:[%s1725_s24 + $0x80] ss:$20 sps:$4 sm:$0xff]  }
  0x21   : > { %1273 = vmatprep.subr.bf16.mxu1 %v1443_v17  ;;  %v1483_v50 = vld [vmem:[%s1725_s24 + $0x78] ss:$20 sps:$4 sm:$0xff]   ;;  %v1486_v52 = vld [vmem:[%s1725_s24 + $0x10] ss:$20 sps:$4 sm:$0xff]   ;;  %v1487_v53 = vld [vmem:[%s1725_s24 + $0x60] ss:$20 sps:$4 sm:$0xff]  }
  0x22   : > { %v1488_v54 = vld [vmem:[%s1725_s24 + $0x38] ss:$20 sps:$4 sm:$0xff]   ;;  %v1489_v55 = vld [vmem:[%s1725_s24 + $0x88] ss:$20 sps:$4 sm:$0xff]  }
  0x23   : > { %1234 = vmatpush3.bf16.msra.mxu0 %v1444_v18 }
  0x24   : > { %1274 = vmatpush3.bf16.msra.mxu1 %v1445_v19  ;;  %1235 = vmatprep.subr.bf16.mxu0 %v1446_v20  ;;  %v1128_v19 = vld [vmem:[%s1850_s2] ss:$0 sm:$0xff] }
  0x25   : > { %1275 = vmatprep.subr.bf16.mxu1 %v1447_v21 }
  0x27   : > { %1236 = vmatpush3.bf16.msra.mxu0 %v1448_v22 }
  0x28   : > { %1276 = vmatpush3.bf16.msra.mxu1 %v1449_v23  ;;  %1237 = vmatprep.subr.bf16.mxu0 %v1450_v24 }
  0x29   : > { %1277 = vmatprep.subr.bf16.mxu1 %v1451_v25 }
  0x2b   : > { %1238 = vmatpush3.bf16.msra.mxu0 %v1452_v26 }
  0x2c   : > { %1278 = vmatpush3.bf16.msra.mxu1 %v1453_v27  ;;  %1239 = vmatprep.subr.bf16.mxu0 %v1454_v28 }
  0x2d   : > { %1279 = vmatprep.subr.bf16.mxu1 %v1455_v29 }
  0x2f   : > { %1240 = vmatpush3.bf16.msra.mxu0 %v1456_v30 }
  0x30   : > { %1280 = vmatpush3.bf16.msra.mxu1 %v1457_v31  ;;  %1313 = vmatprep.subr.bf16.mxu0 %v1464_v36 }
  0x31   : > { %1329 = vmatprep.subr.bf16.mxu1 %v1464_v36 }
  0x32   : > { %666 = vmatmul.mubr.bf16.vlgmr.msra.gmra.mxu0 %v1458_v32 }
  0x33   : > { %731 = vmatmul.mubr.bf16.vlgmr.msra.gmra.mxu1 %v1461_v34  ;;  %1314 = vmatpush3.bf16.msra.mxu0 %v1464_v36 }
  0x34   : > { %1333 = vmatpush3.bf16.msra.mxu1 %v1464_v36  ;;  %673 = vmatprep.mubr.bf16.mxu0 %v1465_v37 }
  0x35   : > { %738 = vmatprep.mubr.bf16.mxu1 %v1467_v38  ;;  %1315 = vmatprep.subr.bf16.mxu0 %v1471_v39 }
  0x36   : > { %1330 = vmatprep.subr.bf16.mxu1 %v1471_v39 }
  0x37   : > { %1316 = vmatpush3.bf16.msra.mxu0 %v1471_v39 }
  0x38   : > { %1334 = vmatpush3.bf16.msra.mxu1 %v1471_v39  ;;  %1317 = vmatprep.subr.bf16.mxu0 %v1478_v44 }
  0x39   : > { %1331 = vmatprep.subr.bf16.mxu1 %v1478_v44 }
  0x3a   : > { %674 = vmatmul.mubr.bf16.gmra.mxu0 %v1469_v40 }
  0x3b   : > { %739 = vmatmul.mubr.bf16.gmra.mxu1 %v1470_v41  ;;  %681 = vmatprep.mubr.bf16.mxu0 %v1472_v42 }
  0x3c   : > { %746 = vmatprep.mubr.bf16.mxu1 %v1474_v43  ;;  %1318 = vmatpush3.bf16.msra.mxu0 %v1478_v44 }
  0x3d   : > { %1335 = vmatpush3.bf16.msra.mxu1 %v1478_v44  ;;  %1319 = vmatprep.subr.bf16.mxu0 %v1485_v45 }
  0x3e   : > { %1332 = vmatprep.subr.bf16.mxu1 %v1485_v45 }
  0x40   : > { %1320 = vmatpush3.bf16.msra.mxu0 %v1485_v45 }
  0x41   : > { %1336 = vmatpush3.bf16.msra.mxu1 %v1485_v45 }
  0x42   : > { %682 = vmatmul.mubr.bf16.gmra.mxu0 %v1476_v46 }
  0x43   : > { %747 = vmatmul.mubr.bf16.gmra.mxu1 %v1477_v47  ;;  %689 = vmatprep.mubr.bf16.mxu0 %v1479_v48 }
  0x44   : > { %754 = vmatprep.mubr.bf16.mxu1 %v1481_v49 }
  0x4a   : > { %690 = vmatmul.mubr.bf16.gmra.mxu0 %v1483_v50 }
  0x4b   : > { %755 = vmatmul.mubr.bf16.gmra.mxu1 %v1484_v51  ;;  %1321 = vmatprep.mubr.msk.bf16.mxu0 %vm620_vm0, %v1486_v52 }
  0x4c   : > { %1325 = vmatprep.mubr.msk.bf16.mxu1 %vm620_vm0, %v1487_v53 }
  0x52   : > { %1322 = vmatmul.mubr.msk.bf16.vlgmr.msra.gmra.mxu0 %vm620_vm0, %v1488_v54 }
  0x53   : > { %1326 = vmatmul.mubr.msk.bf16.vlgmr.msra.gmra.mxu1 %vm620_vm0, %v1489_v55 }
  0xf2   : > { %v1241_v56 = vpop.f32.mrf.mxu0 }
  0xf3   : > { %v1281_v57 = vpop.f32.mrf.mxu1 }
  0xf4   : > { %v1242_v58 = vpop.f32.mrf.mxu0 }
  0xf5   : > { %v1282_v59 = vpop.f32.mrf.mxu1  ;;  %v1243_v17 = vadd.f32 %v1242_v58, %v1241_v56 }
  0xf6   : > { %v1244_v60 = vpop.f32.mrf.mxu0  ;;  %v1283_v34 = vadd.f32 %v1282_v59, %v1281_v57 }
  0xf7   : > { %v1284_v61 = vpop.f32.mrf.mxu1  ;;  %v668_v27 = vadd.f32 %v1243_v17, %v1128_v19 }
  0xf8   : > { %v1245_v62 = vpop.f32.mrf.mxu0 }
  0xf9   : > { %v1285_v63 = vpop.f32.mrf.mxu1  ;;  %v1246_v28 = vadd.f32 %v1245_v62, %v1244_v60  ;;  %v733_v46 = vadd.f32 %v1283_v34, %v668_v27 }
  0xfa   : > { %v1247_v0 = vpop.f32.mrf.mxu0  ;;  %v1286_v52 = vadd.f32 %v1285_v63, %v1284_v61 }
  0xfb   : > { %v1287_v1 = vpop.f32.mrf.mxu1  ;;  %v671_v43 = vadd.f32 %v1246_v28, %v1128_v19 }
  0xfc   : > { %v1248_v2 = vpop.f32.mrf.mxu0 }
  0xfd   : > { %v1288_v3 = vpop.f32.mrf.mxu1  ;;  %v1249_v15 = vadd.f32 %v1248_v2, %v1247_v0 }
  0xfe   : > { %v1250_v4 = vpop.f32.mrf.mxu0  ;;  %v1289_v30 = vadd.f32 %v1288_v3, %v1287_v1 }
  0xff   : > { %v1290_v5 = vpop.f32.mrf.mxu1  ;;  %v676_v23 = vadd.f32 %v1249_v15, %v1128_v19 }
 0x100   : > { %v1251_v6 = vpop.f32.mrf.mxu0 }
 0x101   : > { %v1291_v7 = vpop.f32.mrf.mxu1  ;;  %v1252_v24 = vadd.f32 %v1251_v6, %v1250_v4  ;;  %v741_v41 = vadd.f32 %v1289_v30, %v676_v23 }
 0x102   : > { %v1253_v8 = vpop.f32.mrf.mxu0  ;;  %v1292_v47 = vadd.f32 %v1291_v7, %v1290_v5 }
 0x103   : > { %v1293_v9 = vpop.f32.mrf.mxu1  ;;  %v679_v38 = vadd.f32 %v1252_v24, %v1128_v19 }
 0x104   : > { %v1254_v10 = vpop.f32.mrf.mxu0 }
 0x105   : > { %v1294_v11 = vpop.f32.mrf.mxu1  ;;  %v1255_v21 = vadd.f32 %v1254_v10, %v1253_v8  ;;  %v744_v60 = vadd.f32 %v1292_v47, %v679_v38  ;;  %v736_v8 = vadd.f32 %v1286_v52, %v671_v43 }
 0x106   : > { %v1256_v12 = vpop.f32.mrf.mxu0  ;;  %v1295_v44 = vadd.f32 %v1294_v11, %v1293_v9 }
 0x107   : > { %v1296_v13 = vpop.f32.mrf.mxu1  ;;  %v684_v35 = vadd.f32 %v1255_v21, %v1128_v19 }
 0x108   : > { %v1257_v14 = vpop.f32.mrf.mxu0 }
 0x109   : > { %v1297_v16 = vpop.f32.mrf.mxu1  ;;  %v1258_v36 = vadd.f32 %v1257_v14, %v1256_v12  ;;  %v749_v56 = vadd.f32 %v1295_v44, %v684_v35 }
 0x10a   : > { %v1259_v18 = vpop.f32.mrf.mxu0  ;;  %v1298_v0 = vadd.f32 %v1297_v16, %v1296_v13 }
 0x10b   : > { %v1299_v20 = vpop.f32.mrf.mxu1  ;;  %v687_v53 = vadd.f32 %v1258_v36, %v1128_v19 }
 0x10c   : > { %v1260_v22 = vpop.f32.mrf.mxu0 }
 0x10d   : > { %v1261_v25 = vadd.f32 %v1260_v22, %v1259_v18  ;;  %v1300_v26 = vpop.f32.mrf.mxu1  ;;  %v752_v11 = vadd.f32 %v1298_v0, %v687_v53 }
 0x10e   : > { %v1262_v29 = vpop.f32.mrf.mxu0  ;;  %v1301_v32 = vadd.f32 %v1300_v26, %v1299_v20 }
 0x10f   : > { %v692_v31 = vadd.f32 %v1261_v25, %v1128_v19  ;;  %v1302_v33 = vpop.f32.mrf.mxu1 }
 0x110   : > { %v1263_v37 = vpop.f32.mrf.mxu0 }
 0x111   : > { %v1264_v39 = vadd.f32 %v1263_v37, %v1262_v29  ;;  %v1303_v40 = vpop.f32.mrf.mxu1  ;;  %v757_v42 = vadd.f32 %v1301_v32, %v692_v31 }
 0x112   : > { %v1323_v45 = vpop.f32.mrf.mxu0  ;;  %v1304_v49 = vadd.f32 %v1303_v40, %v1302_v33 }
 0x113   : > { %v695_v48 = vadd.f32 %v1264_v39, %v1128_v19  ;;  %v806_v50 = vadd.f32 %v1323_v45, %v741_v41  ;;  %v1327_v51 = vpop.f32.mrf.mxu1 }
 0x114   : > { %v822_v54 = vadd.f32 %v1327_v51, %v757_v42  ;;  %v797_v55 = vpop.f32.mrf.mxu0 }
 0x115   : > { %v830_v57 = vmax.f32 %v806_v50, 0.0  ;;  %v798_v58 = vadd.f32 %v797_v55, %v733_v46  ;;  %v813_v59 = vpop.f32.mrf.mxu1  ;;  %v760_v62 = vadd.f32 %v1304_v49, %v695_v48 }
 0x116   : > { %v834_v1 = vmax.f32 %v822_v54, 0.0  ;;  %v814_v2 = vadd.f32 %v813_v59, %v749_v56  ;;  %v1324_v3 = vpop.f32.mrf.mxu0 }
 0x117   : > { %v1216_v4 = vpack.c.bf16 %v830_v57, %v830_v57  ;;  %v828_v5 = vmax.f32 %v798_v58, 0.0  ;;  %v809_v6 = vadd.f32 %v1324_v3, %v744_v60  ;;  %v1328_v7 = vpop.f32.mrf.mxu1 }
 0x118   : > { %v1220_v61 = vpack.c.bf16 %v834_v1, %v834_v1  ;;  %v832_v63 = vmax.f32 %v814_v2, 0.0  ;;  %v825_v9 = vadd.f32 %v1328_v7, %v760_v62  ;;  %v800_v10 = vpop.f32.mrf.mxu0 }
 0x119   : > { %871 = vst.msk [vmem:[%s1769_s12 + $0x8] sm:$0xf] %vm868_vm1, %v1216_v4  ;;  %v1214_v12 = vpack.c.bf16 %v828_v5, %v828_v5  ;;  %v831_v13 = vmax.f32 %v809_v6, 0.0  ;;  %v801_v14 = vadd.f32 %v800_v10, %v736_v8  ;;  %v816_v15 = vpop.f32.mrf.mxu1 }
 0x11a   : > { %875 = vst.msk [vmem:[%s1769_s12 + $0x18] sm:$0xf] %vm868_vm1, %v1220_v61  ;;  %v1218_v16 = vpack.c.bf16 %v832_v63, %v832_v63  ;;  %v835_v17 = vmax.f32 %v825_v9, 0.0  ;;  %v817_v18 = vadd.f32 %v816_v15, %v752_v11 }
 0x11b   : > { %869 = vst.msk [vmem:[%s1769_s12] sm:$0xf] %vm868_vm1, %v1214_v12  ;;  %v1217_v19 = vpack.c.bf16 %v831_v13, %v831_v13  ;;  %v829_v20 = vmax.f32 %v801_v14, 0.0 }
 0x11c   : > { %873 = vst.msk [vmem:[%s1769_s12 + $0x10] sm:$0xf] %vm868_vm1, %v1218_v16  ;;  %v1221_v21 = vpack.c.bf16 %v835_v17, %v835_v17  ;;  %v833_v22 = vmax.f32 %v817_v18, 0.0  ;;  %883 = sbr.rel (!%p1623_p4) target bundleno = 333 (0x14d), region = 36 }
 0x11d   : > { %872 = vst.msk [vmem:[%s1769_s12 + $0xc] sm:$0xf] %vm868_vm1, %v1217_v19  ;;  %v1215_v23 = vpack.c.bf16 %v829_v20, %v829_v20 }
 0x11e   : > { %876 = vst.msk [vmem:[%s1769_s12 + $0x1c] sm:$0xf] %vm868_vm1, %v1221_v21  ;;  %v1219_v24 = vpack.c.bf16 %v833_v22, %v833_v22 }
 0x11f   : > { %870 = vst.msk [vmem:[%s1769_s12 + $0x4] sm:$0xf] %vm868_vm1, %v1215_v23 }
 0x120   : > { %874 = vst.msk [vmem:[%s1769_s12 + $0x14] sm:$0xf] %vm868_vm1, %v1219_v24 }
 0x121   : > { %s1860_s21 = smov (!%p886_p8, %s885_s21), 8 }
 0x122   : > { %s1199_s26 = sshll.u32 %s1860_s21, 6 }
 0x123   : > { %p1202_p9 = scmp.eq.s32.totalorder %s1199_s26, 0 }
 0x124   : > { %s1800_s27 = sshrl.u32 (!%p1202_p9), %s1860_s21, 3 }
 0x125   : > { %894 = sbr.rel (%p1202_p9) target bundleno = 333 (0x14d), region = 40  ;;  %p1203_p10 = scmp.le.s32.totalorder (!%p1202_p9), %s1800_s27, 0 }
 0x12a   : > { %1077 = sbr.rel (%p1203_p10) target bundleno = 316 (0x13c), region = 112  ;;  %s1853_s15 = smov (!%p1203_p10), %s1794_s25 }
 0x12b   : > { %s1854_s20 = smov (!%p1203_p10), %s1769_s12  ;;  %s1809_s30 = smov (!%p1203_p10), 0  }
 0x12c   : > { %s1811_s28 = smov (!%p1203_p10), 0  }
 0x12f LB: >> { %v911_v25 = vld [vmem:[%s1552_s20] sm:$0xf]  ;;  %v913_v26 = vld [vmem:[%s1552_s20 + $0x4] sm:$0xf]  ;;  %v915_v27 = vld [vmem:[%s1552_s20 + $0x8] sm:$0xf]  ;;  %s1560_s28 = sphi %s1811_s28, %s905_s28   ;;  %s1556_s30 = sphi %s1809_s30, %s1855_s30   ;;  %s1552_s20 = sphi %s1854_s20, %s932_s20   ;;  %s1548_s15 = sphi %s1853_s15, %s933_s15  }
 0x130   : >> { %912 = vst [vmem:[%s1548_s15] sm:$0xf] %v911_v25  ;;  %914 = vst [vmem:[%s1548_s15 + $0x4] sm:$0xf] %v913_v26  ;;  %v917_v28 = vld [vmem:[%s1552_s20 + $0xc] sm:$0xf]  ;;  %s927_s29 = sadd.s32 1, %s1556_s30 }
 0x131   : >> { %916 = vst [vmem:[%s1548_s15 + $0x8] sm:$0xf] %v915_v27  ;;  %v919_v29 = vld [vmem:[%s1552_s20 + $0x10] sm:$0xf]  ;;  %v921_v30 = vld [vmem:[%s1552_s20 + $0x14] sm:$0xf]  ;;  %p928_p11 = scmp.ge.s32.totalorder %s927_s29, %s1800_s27 }
 0x132   : >> { %918 = vst [vmem:[%s1548_s15 + $0xc] sm:$0xf] %v917_v28  ;;  %920 = vst [vmem:[%s1548_s15 + $0x10] sm:$0xf] %v919_v29  ;;  %v923_v31 = vld [vmem:[%s1552_s20 + $0x18] sm:$0xf] }
 0x133   : >> { %922 = vst [vmem:[%s1548_s15 + $0x14] sm:$0xf] %v921_v30  ;;  %v925_v32 = vld [vmem:[%s1552_s20 + $0x1c] sm:$0xf]  ;;  %924 = vst [vmem:[%s1548_s15 + $0x18] sm:$0xf] %v923_v31 }
 0x134   : >> { %926 = vst [vmem:[%s1548_s15 + $0x1c] sm:$0xf] %v925_v32  ;;  %s1862_s29 = smov (%p928_p11, %s927_s29), 0  ;;  %s905_s28 = sadd.s32 1, %s1560_s28  }
 0x135   : >> { %s1204_s4 = sshll.u32 %s1862_s29, 5  ;;  %p904_p12 = scmp.ge.s32.totalorder %s905_s28, %s1800_s27 }
 0x136   : >> { %s932_s20 = scalar_lea.vmem %s1769_s12, %s1204_s4 [#allocation2]   ;;  %s933_s15 = scalar_lea.vmem %s1794_s25, %s1204_s4  }
 0x137   : >> { %s1855_s30 = smov %s1862_s29  ;;  %907 = sbr.rel (!%p904_p12) target bundleno = 303 (0x12f), region = 118 }
 0x13c PF: > { %s1830_s5 = sand.u32 7, %s1860_s21   ;;  %s1223_s6 = sshll.u32 %s1800_s27, 5 }
 0x13d   : > { %s938_s7 = scalar_lea.vmem %s1769_s12, %s1223_s6 [#allocation2]   ;;  %s940_s8 = scalar_lea.vmem %s1794_s25, %s1223_s6  }
 0x13e   : > { %p1209_p13 = scmp.le.s32.totalorder %s1830_s5, 0 }
 0x13f   : > { %s1562_s9 = smov (!%p1209_p13), %s940_s8   ;;  %s1566_s10 = smov (!%p1209_p13), %s938_s7  }
 0x140   : > { %1091 = sbr.rel (%p1209_p13) target bundleno = 333 (0x14d), region = 123  ;;  %s1570_s11 = smov (!%p1209_p13), 0  }
 0x141   : > { %s1574_s14 = smov (!%p1209_p13), 0  }
 0x145 LB: >> { %v950_v33 = vld [vmem:[%s1568_s10] sm:$0xf]  ;;  %s952_s17 = sadd.s32 1, %s1572_s11  ;;  %s944_s14 = sadd.s32 1, %s1576_s14   ;;  %s1576_s14 = sphi %s1574_s14, %s944_s14   ;;  %s1572_s11 = sphi %s1570_s11, %s1571_s11   ;;  %s1568_s10 = sphi %s1566_s10, %s957_s10   ;;  %s1564_s9 = sphi %s1562_s9, %s958_s9  }
 0x146   : >> { %951 = vst [vmem:[%s1564_s9] sm:$0xf] %v950_v33  ;;  %p953_p0 = scmp.ge.s32.totalorder %s952_s17, %s1830_s5  ;;  %p943_p1 = scmp.ge.s32.totalorder %s944_s14, %s1830_s5 }
 0x148   : >> { %s1864_s17 = smov (%p953_p0, %s952_s17), 0  ;;  %946 = sbr.rel (!%p943_p1) target bundleno = 325 (0x145), region = 129 }
 0x149   : >> { %s1210_s18 = sshll.u32 %s1864_s17, 2  ;;  %s1571_s11 = smov %s1864_s17  }
 0x14a   : >> { %s957_s10 = scalar_lea.vmem %s938_s7, %s1210_s18 [#allocation2]   ;;  %s958_s9 = scalar_lea.vmem %s940_s8, %s1210_s18  }
 0x14d PF: > { %p10_p2 = scmp.ge.s32.totalorder %s1613_s16, 4   ;;  %s1856_s12 = smov %s1540_s13 }
 0x14e   : > { %s1857_s13 = smov %s1621_s19  ;;  %s1858_s14 = smov %s1613_s16 }
 0x14f   :  { %12 = sbr.rel (!%p10_p2) target bundleno = 2 (0x2), region = 140 }

// kernel: a3c_forward.7
= control target key start
LH: loop header
LB: loop body
LE: loop exit
PB: predicated region body
PF: predicated region fallthrough
CT: control target
= control target key end

     0   :  { %v845_v39 = vlaneseq  ;;  %v10228_v40 = vmov 1966171168   ;;  %vm5298_vm0 = vcmask 523264   ;;  %s13583_s0 = inlined_call_operand.vmem [shape: bf16[2,3136], index: 0, kind: input, shape index: {}]   ;;  %s13584_s1 = inlined_call_operand.vmem [shape: bf16[3136,512], index: 1, kind: input, shape index: {}]   ;;  %s13585_s2 = inlined_call_operand.vmem [shape: f32[1,512], index: 2, kind: input, shape index: {}]   ;;  %s13586_s3 = inlined_call_operand.vmem [shape: bf16[512,512], index: 3, kind: input, shape index: {}]   ;;  %s13587_s4 = inlined_call_operand.vmem [shape: f32[1,512], index: 4, kind: input, shape index: {}]   ;;  %s13588_s5 = inlined_call_operand.vmem [shape: bf16[512,128], index: 5, kind: input, shape index: {}]   ;;  %s13589_s6 = inlined_call_operand.vmem [shape: f32[1,128], index: 6, kind: input, shape index: {}]   ;;  %s13590_s7 = inlined_call_operand.vmem [shape: f32[2,128], index: 7, kind: output, shape index: {}]  }
   0x1   :  { %v8787_v0 = vld [vmem:[%s13584_s1 + $0xe4] ss:$16 sps:$4 sm:$0xff]   ;;  %v8791_v2 = vld [vmem:[%s13584_s1 + $0xe0] ss:$16 sps:$4 sm:$0xff]   ;;  %v906_v41 = vunpack.c.l.s4 %v10228_v40 }
   0x2   :  { %v8789_v1 = vld [vmem:[%s13584_s1 + $0x2e4] ss:$16 sps:$4 sm:$0xff]   ;;  %5302 = vmatprep.subr.bf16.mxu0 %v8787_v0  ;;  %v8792_v3 = vld [vmem:[%s13584_s1 + $0x2e0] ss:$16 sps:$4 sm:$0xff]   ;;  %v10402_v47 = vshrl.u32 %v845_v39, 7 }
   0x3   :  { %5345 = vmatprep.subr.bf16.mxu1 %v8789_v1  ;;  %v8793_v4 = vld [vmem:[%s13584_s1 + $0xc4] ss:$16 sps:$4 sm:$0xff]   ;;  %5303 = vmatpush1.bf16.msra.mxu0 %v8791_v2  ;;  %v8797_v6 = vld [vmem:[%s13584_s1 + $0xc0] ss:$16 sps:$4 sm:$0xff]   ;;  %v907_v48 = vunpack.c.0.s8 %v906_v41 }
   0x4   :  { %5346 = vmatpush1.bf16.msra.mxu1 %v8792_v3  ;;  %v8795_v5 = vld [vmem:[%s13584_s1 + $0x2c4] ss:$16 sps:$4 sm:$0xff]   ;;  %5304 = vmatprep.subr.bf16.mxu0 %v8793_v4  ;;  %v8798_v7 = vld [vmem:[%s13584_s1 + $0x2c0] ss:$16 sps:$4 sm:$0xff]  }
   0x5   :  { %5347 = vmatprep.subr.bf16.mxu1 %v8795_v5  ;;  %v8799_v8 = vld [vmem:[%s13584_s1 + $0xa4] ss:$16 sps:$4 sm:$0xff]   ;;  %v8803_v10 = vld [vmem:[%s13584_s1 + $0xa0] ss:$16 sps:$4 sm:$0xff]   ;;  %v10420_v54 = vsub.s32 %v907_v48, %v10402_v47 }
   0x6   :  { %v8801_v9 = vld [vmem:[%s13584_s1 + $0x2a4] ss:$16 sps:$4 sm:$0xff]   ;;  %v8804_v11 = vld [vmem:[%s13584_s1 + $0x2a0] ss:$16 sps:$4 sm:$0xff]  }
   0x7   :  { %5305 = vmatpush1.bf16.msra.mxu0 %v8797_v6  ;;  %v8805_v12 = vld [vmem:[%s13584_s1 + $0x84] ss:$16 sps:$4 sm:$0xff]   ;;  %v8809_v14 = vld [vmem:[%s13584_s1 + $0x80] ss:$16 sps:$4 sm:$0xff]  }
   0x8   :  { %5348 = vmatpush1.bf16.msra.mxu1 %v8798_v7  ;;  %5306 = vmatprep.subr.bf16.mxu0 %v8799_v8  ;;  %v8807_v13 = vld [vmem:[%s13584_s1 + $0x284] ss:$16 sps:$4 sm:$0xff]   ;;  %v8810_v15 = vld [vmem:[%s13584_s1 + $0x280] ss:$16 sps:$4 sm:$0xff]  }
   0x9   :  { %5349 = vmatprep.subr.bf16.mxu1 %v8801_v9  ;;  %v8811_v16 = vld [vmem:[%s13584_s1 + $0x64] ss:$16 sps:$4 sm:$0xff]   ;;  %v8815_v18 = vld [vmem:[%s13584_s1 + $0x60] ss:$16 sps:$4 sm:$0xff]  }
   0xa   :  { %v8813_v17 = vld [vmem:[%s13584_s1 + $0x264] ss:$16 sps:$4 sm:$0xff]   ;;  %v8816_v19 = vld [vmem:[%s13584_s1 + $0x260] ss:$16 sps:$4 sm:$0xff]  }
   0xb   :  { %5307 = vmatpush1.bf16.msra.mxu0 %v8803_v10  ;;  %v8817_v20 = vld [vmem:[%s13584_s1 + $0x44] ss:$16 sps:$4 sm:$0xff]   ;;  %v8821_v22 = vld [vmem:[%s13584_s1 + $0x40] ss:$16 sps:$4 sm:$0xff]  }
   0xc   :  { %5350 = vmatpush1.bf16.msra.mxu1 %v8804_v11  ;;  %5308 = vmatprep.subr.bf16.mxu0 %v8805_v12  ;;  %v8819_v21 = vld [vmem:[%s13584_s1 + $0x244] ss:$16 sps:$4 sm:$0xff]   ;;  %v8822_v23 = vld [vmem:[%s13584_s1 + $0x240] ss:$16 sps:$4 sm:$0xff]  }
   0xd   :  { %5351 = vmatprep.subr.bf16.mxu1 %v8807_v13  ;;  %v8823_v24 = vld [vmem:[%s13584_s1 + $0x24] ss:$16 sps:$4 sm:$0xff]   ;;  %v8827_v26 = vld [vmem:[%s13584_s1 + $0x20] ss:$16 sps:$4 sm:$0xff]  }
   0xe   :  { %v8825_v25 = vld [vmem:[%s13584_s1 + $0x224] ss:$16 sps:$4 sm:$0xff]   ;;  %v8828_v27 = vld [vmem:[%s13584_s1 + $0x220] ss:$16 sps:$4 sm:$0xff]  }
   0xf   :  { %5309 = vmatpush1.bf16.msra.mxu0 %v8809_v14  ;;  %v8829_v28 = vld [vmem:[%s13584_s1 + $0x4] ss:$16 sps:$4 sm:$0xff]   ;;  %v8833_v30 = vld [vmem:[%s13584_s1] ss:$16 sps:$4 sm:$0xff]  }
  0x10   :  { %5352 = vmatpush1.bf16.msra.mxu1 %v8810_v15  ;;  %5310 = vmatprep.subr.bf16.mxu0 %v8811_v16  ;;  %v8831_v29 = vld [vmem:[%s13584_s1 + $0x204] ss:$16 sps:$4 sm:$0xff]   ;;  %v8834_v31 = vld [vmem:[%s13584_s1 + $0x200] ss:$16 sps:$4 sm:$0xff]  }
  0x11   :  { %5353 = vmatprep.subr.bf16.mxu1 %v8813_v17  ;;  %v8835_v32 = vld [vmem:[%s13584_s1 + $0x1e4] ss:$16 sps:$4 sm:$0xff]   ;;  %v8839_v34 = vld [vmem:[%s13584_s1 + $0x1e0] ss:$16 sps:$4 sm:$0xff]  }
  0x12   :  { %v8837_v33 = vld [vmem:[%s13584_s1 + $0x3e4] ss:$16 sps:$4 sm:$0xff]   ;;  %v8840_v35 = vld [vmem:[%s13584_s1 + $0x3e0] ss:$16 sps:$4 sm:$0xff]  }
  0x13   :  { %5311 = vmatpush1.bf16.msra.mxu0 %v8815_v18  ;;  %v8841_v36 = vld [vmem:[%s13584_s1 + $0x1c4] ss:$16 sps:$4 sm:$0xff]   ;;  %v8845_v38 = vld [vmem:[%s13584_s1 + $0x1c0] ss:$16 sps:$4 sm:$0xff]  }
  0x14   :  { %5354 = vmatpush1.bf16.msra.mxu1 %v8816_v19  ;;  %5312 = vmatprep.subr.bf16.mxu0 %v8817_v20  ;;  %v8843_v37 = vld [vmem:[%s13584_s1 + $0x3c4] ss:$16 sps:$4 sm:$0xff]   ;;  %v8846_v42 = vld [vmem:[%s13584_s1 + $0x3c0] ss:$16 sps:$4 sm:$0xff]  }
  0x15   :  { %5355 = vmatprep.subr.bf16.mxu1 %v8819_v21  ;;  %v8847_v43 = vld [vmem:[%s13584_s1 + $0x1a4] ss:$16 sps:$4 sm:$0xff]   ;;  %v8851_v45 = vld [vmem:[%s13584_s1 + $0x1a0] ss:$16 sps:$4 sm:$0xff]  }
  0x16   :  { %v8849_v44 = vld [vmem:[%s13584_s1 + $0x3a4] ss:$16 sps:$4 sm:$0xff]   ;;  %v8852_v46 = vld [vmem:[%s13584_s1 + $0x3a0] ss:$16 sps:$4 sm:$0xff]  }
  0x17   :  { %5313 = vmatpush1.bf16.msra.mxu0 %v8821_v22  ;;  %v8853_v49 = vld [vmem:[%s13584_s1 + $0x184] ss:$16 sps:$4 sm:$0xff]   ;;  %v8857_v51 = vld [vmem:[%s13584_s1 + $0x180] ss:$16 sps:$4 sm:$0xff]  }
  0x18   :  { %5356 = vmatpush1.bf16.msra.mxu1 %v8822_v23  ;;  %5314 = vmatprep.subr.bf16.mxu0 %v8823_v24  ;;  %v8855_v50 = vld [vmem:[%s13584_s1 + $0x384] ss:$16 sps:$4 sm:$0xff]   ;;  %v8858_v52 = vld [vmem:[%s13584_s1 + $0x380] ss:$16 sps:$4 sm:$0xff]  }
  0x19   :  { %5357 = vmatprep.subr.bf16.mxu1 %v8825_v25  ;;  %v8859_v53 = vld [vmem:[%s13584_s1 + $0x164] ss:$16 sps:$4 sm:$0xff]   ;;  %v8883_v56 = vld [vmem:[%s13583_s0] ss:$25 sps:$4 sm:$0xff]  }
  0x1a   :  { %v8861_v55 = vld [vmem:[%s13584_s1 + $0x364] ss:$16 sps:$4 sm:$0xff]   ;;  %v8863_v57 = vld [vmem:[%s13584_s1 + $0x160] ss:$16 sps:$4 sm:$0xff]   ;;  %v911_v0 = vrot.slane %v8883_v56, %v10420_v54 }
  0x1b   :  { %5315 = vmatpush1.bf16.msra.mxu0 %v8827_v26  ;;  %v8864_v58 = vld [vmem:[%s13584_s1 + $0x360] ss:$16 sps:$4 sm:$0xff]   ;;  %v8865_v61 = vld [vmem:[%s13584_s1 + $0x144] ss:$16 sps:$4 sm:$0xff]  }
  0x1c   :  { %5358 = vmatpush1.bf16.msra.mxu1 %v8828_v27  ;;  %5316 = vmatprep.subr.bf16.mxu0 %v8829_v28  ;;  %v8886_v59 = vld [vmem:[%s13583_s0 + $0x32] ss:$25 sps:$4 sm:$0xff]   ;;  %v8889_v60 = vld [vmem:[%s13583_s0 + $0x64] ss:$25 sps:$4 sm:$0xff]  }
  0x1d   :  { %5359 = vmatprep.subr.bf16.mxu1 %v8831_v29  ;;  %v8867_v62 = vld [vmem:[%s13584_s1 + $0x344] ss:$16 sps:$4 sm:$0xff]   ;;  %v925_v2 = vrot.slane %v8886_v59, %v10420_v54  ;;  %v939_v3 = vrot.slane %v8889_v60, %v10420_v54  ;;  %v8869_v9 = vld [vmem:[%s13584_s1 + $0x140] ss:$16 sps:$4 sm:$0xff]  }
  0x1e   :  { %v8892_v63 = vld [vmem:[%s13583_s0 + $0x96] ss:$25 sps:$4 sm:$0xff]   ;;  %v8885_v1 = vld [vmem:[%s13583_s0 + $0x4] ss:$25 sps:$4 sm:$0xff]  }
  0x1f   :  { %5317 = vmatpush1.bf16.msra.mxu0 %v8833_v30  ;;  %v8888_v4 = vld [vmem:[%s13583_s0 + $0x36] ss:$25 sps:$4 sm:$0xff]   ;;  %v953_v5 = vrot.slane %v8892_v63, %v10420_v54  ;;  %v8891_v6 = vld [vmem:[%s13583_s0 + $0x68] ss:$25 sps:$4 sm:$0xff]   ;;  %v962_v8 = vcombine.high %v911_v0, %v925_v2  ;;  %v10480_v16 = vrot.slane %v8885_v1, %v10420_v54  ;;  %v961_v24 = vcombine.low %v911_v0, %v925_v2 }
  0x20   :  { %5360 = vmatpush1.bf16.msra.mxu1 %v8834_v31  ;;  %5318 = vmatprep.subr.bf16.mxu0 %v8835_v32  ;;  %v8894_v7 = vld [vmem:[%s13583_s0 + $0x9a] ss:$25 sps:$4 sm:$0xff]   ;;  %v10483_v17 = vrot.slane %v8888_v4, %v10420_v54  ;;  %v10486_v18 = vrot.slane %v8891_v6, %v10420_v54 }
  0x21   :  { %5361 = vmatprep.subr.bf16.mxu1 %v8837_v33  ;;  %v8870_v10 = vld [vmem:[%s13584_s1 + $0x340] ss:$16 sps:$4 sm:$0xff]   ;;  %v966_v11 = vcombine.high %v939_v3, %v953_v5  ;;  %v8871_v12 = vld [vmem:[%s13584_s1 + $0x124] ss:$16 sps:$4 sm:$0xff]   ;;  %v989_v13 = vrot.slane %v962_v8, %v10420_v54  ;;  %v10489_v19 = vrot.slane %v8894_v7, %v10420_v54  ;;  %v965_v25 = vcombine.low %v939_v3, %v953_v5 }
  0x22   :  { %v8873_v14 = vld [vmem:[%s13584_s1 + $0x324] ss:$16 sps:$4 sm:$0xff]   ;;  %v8875_v20 = vld [vmem:[%s13584_s1 + $0x120] ss:$16 sps:$4 sm:$0xff]   ;;  %v964_v28 = vcombine.high %v10480_v16, %v10483_v17  ;;  %v975_v32 = vrot.slane %v961_v24, %v10420_v54 }
  0x23   :  { %5319 = vmatpush2.bf16.msra.mxu0 %v8839_v34  ;;  %v1017_v15 = vrot.slane %v966_v11, %v10420_v54  ;;  %v8876_v21 = vld [vmem:[%s13584_s1 + $0x320] ss:$16 sps:$4 sm:$0xff]   ;;  %v8877_v26 = vld [vmem:[%s13584_s1 + $0x104] ss:$16 sps:$4 sm:$0xff]   ;;  %v968_v29 = vcombine.high %v10486_v18, %v10489_v19  ;;  %v1003_v33 = vrot.slane %v965_v25, %v10420_v54 }
  0x24   :  { %5362 = vmatpush2.bf16.msra.mxu1 %v8840_v35  ;;  %5320 = vmatprep.subr.bf16.mxu0 %v8841_v36  ;;  %v8879_v27 = vld [vmem:[%s13584_s1 + $0x304] ss:$16 sps:$4 sm:$0xff]   ;;  %v8881_v30 = vld [vmem:[%s13584_s1 + $0x100] ss:$16 sps:$4 sm:$0xff]   ;;  %v996_v36 = vrot.slane %v964_v28, %v10420_v54 }
  0x25   :  { %5363 = vmatprep.subr.bf16.mxu1 %v8843_v37  ;;  %v10497_v22 = vcombine.low %v989_v13, %v1017_v15  ;;  %v10499_v23 = vcombine.high %v989_v13, %v1017_v15  ;;  %v8882_v31 = vld [vmem:[%s13584_s1 + $0x300] ss:$16 sps:$4 sm:$0xff]   ;;  %v8897_v34 = vld [vmem:[%s13584_s1 + $0x4e4] ss:$16 sps:$4 sm:$0xff]   ;;  %v1024_v37 = vrot.slane %v968_v29, %v10420_v54  ;;  %v10531_v39 = vcombine.high %v975_v32, %v1003_v33 }
  0x26   :  { %v8900_v35 = vld [vmem:[%s13584_s1 + $0x6e4] ss:$16 sps:$4 sm:$0xff]   ;;  %v8895_v40 = vld [vmem:[%s13584_s1 + $0x4e0] ss:$16 sps:$4 sm:$0xff]  }
  0x27   :  { %5321 = vmatpush2.bf16.msra.mxu0 %v8845_v38  ;;  %5334 = vmatprep.mubr.bf16.mxu0 %v10497_v22  ;;  %v10529_v38 = vcombine.low %v975_v32, %v1003_v33  ;;  %v8898_v41 = vld [vmem:[%s13584_s1 + $0x6e0] ss:$16 sps:$4 sm:$0xff]   ;;  %v8924_v59 = vld [vmem:[%s13584_s1 + $0x664] ss:$16 sps:$4 sm:$0xff]  }
  0x28   :  { %5364 = vmatpush2.bf16.msra.mxu1 %v8846_v42  ;;  %5322 = vmatprep.subr.bf16.mxu0 %v8847_v43  ;;  %v8903_v42 = vld [vmem:[%s13584_s1 + $0x4c4] ss:$16 sps:$4 sm:$0xff]   ;;  %v8904_v48 = vld [vmem:[%s13584_s1 + $0x6c0] ss:$16 sps:$4 sm:$0xff]  }
  0x29   :  { %5365 = vmatprep.subr.bf16.mxu1 %v8849_v44  ;;  %5377 = vmatprep.mubr.bf16.mxu1 %v10499_v23  ;;  %v8906_v43 = vld [vmem:[%s13584_s1 + $0x6c4] ss:$16 sps:$4 sm:$0xff]   ;;  %v10545_v44 = vcombine.low %v996_v36, %v1024_v37  ;;  %v8913_v56 = vld [vmem:[%s13584_s1 + $0x480] ss:$16 sps:$4 sm:$0xff]  }
  0x2a   :  { %v8919_v60 = vld [vmem:[%s13584_s1 + $0x460] ss:$16 sps:$4 sm:$0xff]   ;;  %v8930_v63 = vld [vmem:[%s13584_s1 + $0x644] ss:$16 sps:$4 sm:$0xff]  }
  0x2b   :  { %5323 = vmatpush2.bf16.msra.mxu0 %v8851_v45  ;;  %v10547_v45 = vcombine.high %v996_v36, %v1024_v37  ;;  %v8925_v0 = vld [vmem:[%s13584_s1 + $0x440] ss:$16 sps:$4 sm:$0xff]   ;;  %v8933_v2 = vld [vmem:[%s13584_s1 + $0x424] ss:$16 sps:$4 sm:$0xff]  }
  0x2c   :  { %5366 = vmatpush2.bf16.msra.mxu1 %v8852_v46  ;;  %5324 = vmatprep.subr.bf16.mxu0 %v8853_v49  ;;  %v8901_v46 = vld [vmem:[%s13584_s1 + $0x4c0] ss:$16 sps:$4 sm:$0xff]   ;;  %v8909_v49 = vld [vmem:[%s13584_s1 + $0x4a4] ss:$16 sps:$4 sm:$0xff]  }
  0x2d   :  { %5367 = vmatprep.subr.bf16.mxu1 %v8855_v50  ;;  %v8912_v50 = vld [vmem:[%s13584_s1 + $0x6a4] ss:$16 sps:$4 sm:$0xff]   ;;  %v8928_v1 = vld [vmem:[%s13584_s1 + $0x640] ss:$16 sps:$4 sm:$0xff]  }
  0x2e   :  { %v8936_v3 = vld [vmem:[%s13584_s1 + $0x624] ss:$16 sps:$4 sm:$0xff]   ;;  %v8931_v4 = vld [vmem:[%s13584_s1 + $0x420] ss:$16 sps:$4 sm:$0xff]  }
  0x2f   :  { %5325 = vmatpush2.bf16.msra.mxu0 %v8857_v51  ;;  %v8907_v51 = vld [vmem:[%s13584_s1 + $0x4a0] ss:$16 sps:$4 sm:$0xff]   ;;  %v8939_v6 = vld [vmem:[%s13584_s1 + $0x404] ss:$16 sps:$4 sm:$0xff]  }
  0x30   :  { %5368 = vmatpush2.bf16.msra.mxu1 %v8858_v52  ;;  %5326 = vmatprep.subr.bf16.mxu0 %v8859_v53  ;;  %v8910_v52 = vld [vmem:[%s13584_s1 + $0x6a0] ss:$16 sps:$4 sm:$0xff]   ;;  %v8915_v53 = vld [vmem:[%s13584_s1 + $0x484] ss:$16 sps:$4 sm:$0xff]  }
  0x31   :  { %5369 = vmatprep.subr.bf16.mxu1 %v8861_v55  ;;  %v8918_v55 = vld [vmem:[%s13584_s1 + $0x684] ss:$16 sps:$4 sm:$0xff]   ;;  %v8934_v5 = vld [vmem:[%s13584_s1 + $0x620] ss:$16 sps:$4 sm:$0xff]  }
  0x32   :  { %v8942_v7 = vld [vmem:[%s13584_s1 + $0x604] ss:$16 sps:$4 sm:$0xff]   ;;  %v8937_v8 = vld [vmem:[%s13584_s1 + $0x400] ss:$16 sps:$4 sm:$0xff]  }
  0x33   :  { %5327 = vmatpush2.bf16.msra.mxu0 %v8863_v57  ;;  %v8916_v57 = vld [vmem:[%s13584_s1 + $0x680] ss:$16 sps:$4 sm:$0xff]   ;;  %v8948_v11 = vld [vmem:[%s13584_s1 + $0x7e4] ss:$16 sps:$4 sm:$0xff]  }
  0x34   :  { %5370 = vmatpush2.bf16.msra.mxu1 %v8864_v58  ;;  %5328 = vmatprep.subr.bf16.mxu0 %v8865_v61  ;;  %v8921_v58 = vld [vmem:[%s13584_s1 + $0x464] ss:$16 sps:$4 sm:$0xff]   ;;  %v8922_v61 = vld [vmem:[%s13584_s1 + $0x660] ss:$16 sps:$4 sm:$0xff]  }
  0x35   :  { %5371 = vmatprep.subr.bf16.mxu1 %v8867_v62  ;;  %v8927_v62 = vld [vmem:[%s13584_s1 + $0x444] ss:$16 sps:$4 sm:$0xff]   ;;  %v8946_v13 = vld [vmem:[%s13584_s1 + $0x7e0] ss:$16 sps:$4 sm:$0xff]  }
  0x36   :  { %v8954_v15 = vld [vmem:[%s13584_s1 + $0x7c4] ss:$16 sps:$4 sm:$0xff]  }
  0x37   :  { %5329 = vmatpush2.bf16.msra.mxu0 %v8869_v9  ;;  %v8940_v9 = vld [vmem:[%s13584_s1 + $0x600] ss:$16 sps:$4 sm:$0xff]   ;;  %v8957_v24 = vld [vmem:[%s13584_s1 + $0x5a4] ss:$16 sps:$4 sm:$0xff]  }
  0x38   :  { %5372 = vmatpush2.bf16.msra.mxu1 %v8870_v10  ;;  %5330 = vmatprep.subr.bf16.mxu0 %v8871_v12  ;;  %v8945_v10 = vld [vmem:[%s13584_s1 + $0x5e4] ss:$16 sps:$4 sm:$0xff]   ;;  %v8943_v12 = vld [vmem:[%s13584_s1 + $0x5e0] ss:$16 sps:$4 sm:$0xff]  }
  0x39   :  { %5373 = vmatprep.subr.bf16.mxu1 %v8873_v14  ;;  %v8951_v14 = vld [vmem:[%s13584_s1 + $0x5c4] ss:$16 sps:$4 sm:$0xff]  }
  0x3a   :  { %v8960_v25 = vld [vmem:[%s13584_s1 + $0x7a4] ss:$16 sps:$4 sm:$0xff]  }
  0x3b   :  { %5331 = vmatpush2.bf16.msra.mxu0 %v8875_v20  ;;  %v8949_v20 = vld [vmem:[%s13584_s1 + $0x5c0] ss:$16 sps:$4 sm:$0xff]   ;;  %v8963_v28 = vld [vmem:[%s13584_s1 + $0x584] ss:$16 sps:$4 sm:$0xff]  }
  0x3c   :  { %5374 = vmatpush2.bf16.msra.mxu1 %v8876_v21  ;;  %5332 = vmatprep.subr.bf16.mxu0 %v8877_v26  ;;  %v8952_v21 = vld [vmem:[%s13584_s1 + $0x7c0] ss:$16 sps:$4 sm:$0xff]   ;;  %v8966_v29 = vld [vmem:[%s13584_s1 + $0x784] ss:$16 sps:$4 sm:$0xff]  }
  0x3d   :  { %5375 = vmatprep.subr.bf16.mxu1 %v8879_v27  ;;  %v8955_v26 = vld [vmem:[%s13584_s1 + $0x5a0] ss:$16 sps:$4 sm:$0xff]   ;;  %v8969_v32 = vld [vmem:[%s13584_s1 + $0x564] ss:$16 sps:$4 sm:$0xff]  }
  0x3e   :  { %v8958_v27 = vld [vmem:[%s13584_s1 + $0x7a0] ss:$16 sps:$4 sm:$0xff]   ;;  %v8972_v33 = vld [vmem:[%s13584_s1 + $0x764] ss:$16 sps:$4 sm:$0xff]  }
  0x3f   :  { %5333 = vmatpush2.bf16.msra.mxu0 %v8881_v30  ;;  %v8961_v30 = vld [vmem:[%s13584_s1 + $0x580] ss:$16 sps:$4 sm:$0xff]   ;;  %v8975_v36 = vld [vmem:[%s13584_s1 + $0x544] ss:$16 sps:$4 sm:$0xff]  }
  0x40   :  { %5376 = vmatpush2.bf16.msra.mxu1 %v8882_v31  ;;  %5388 = vmatprep.subr.bf16.mxu0 %v8897_v34  ;;  %v8964_v31 = vld [vmem:[%s13584_s1 + $0x780] ss:$16 sps:$4 sm:$0xff]   ;;  %v8978_v37 = vld [vmem:[%s13584_s1 + $0x744] ss:$16 sps:$4 sm:$0xff]  }
  0x41   :  { %5431 = vmatprep.subr.bf16.mxu1 %v8900_v35  ;;  %v8967_v34 = vld [vmem:[%s13584_s1 + $0x560] ss:$16 sps:$4 sm:$0xff]  }
  0x42   :  { %5335 = vmatmul.mubr.bf16.vlgmr.msra.gmra.mxu0 %v10529_v38  ;;  %v8970_v35 = vld [vmem:[%s13584_s1 + $0x760] ss:$16 sps:$4 sm:$0xff]  }
  0x43   :  { %5378 = vmatmul.mubr.bf16.vlgmr.msra.gmra.mxu1 %v10531_v39  ;;  %5389 = vmatpush1.bf16.msra.mxu0 %v8895_v40  ;;  %v8973_v40 = vld [vmem:[%s13584_s1 + $0x540] ss:$16 sps:$4 sm:$0xff]  }
  0x44   :  { %5432 = vmatpush1.bf16.msra.mxu1 %v8898_v41  ;;  %5390 = vmatprep.subr.bf16.mxu0 %v8903_v42  ;;  %v8976_v41 = vld [vmem:[%s13584_s1 + $0x740] ss:$16 sps:$4 sm:$0xff]   ;;  %v8981_v42 = vld [vmem:[%s13584_s1 + $0x524] ss:$16 sps:$4 sm:$0xff]  }
  0x45   :  { %5433 = vmatprep.subr.bf16.mxu1 %v8906_v43  ;;  %5420 = vmatprep.mubr.bf16.mxu0 %v10545_v44  ;;  %v8984_v43 = vld [vmem:[%s13584_s1 + $0x724] ss:$16 sps:$4 sm:$0xff]  }
  0x46   :  { %5463 = vmatprep.mubr.bf16.mxu1 %v10547_v45 }
  0x47   :  { %5391 = vmatpush1.bf16.msra.mxu0 %v8901_v46  ;;  %v8979_v46 = vld [vmem:[%s13584_s1 + $0x520] ss:$16 sps:$4 sm:$0xff]  }
  0x48   :  { %5434 = vmatpush1.bf16.msra.mxu1 %v8904_v48  ;;  %5392 = vmatprep.subr.bf16.mxu0 %v8909_v49  ;;  %v8982_v48 = vld [vmem:[%s13584_s1 + $0x720] ss:$16 sps:$4 sm:$0xff]   ;;  %v963_v49 = vcombine.low %v10480_v16, %v10483_v17 }
  0x49   :  { %5435 = vmatprep.subr.bf16.mxu1 %v8912_v50  ;;  %v967_v50 = vcombine.low %v10486_v18, %v10489_v19  ;;  %v8988_v16 = vld [vmem:[%s13584_s1 + $0x700] ss:$16 sps:$4 sm:$0xff]   ;;  %v8993_v19 = vld [vmem:[%s13584_s1 + $0x8e4] ss:$16 sps:$4 sm:$0xff]  }
  0x4a   :  { %v982_v17 = vrot.slane %v963_v49, %v10420_v54  ;;  %v9041_v49 = vld [vmem:[%s13584_s1 + $0x9e4] ss:$16 sps:$4 sm:$0xff]  }
  0x4b   :  { %5393 = vmatpush1.bf16.msra.mxu0 %v8907_v51  ;;  %v8987_v51 = vld [vmem:[%s13584_s1 + $0x504] ss:$16 sps:$4 sm:$0xff]   ;;  %v1010_v18 = vrot.slane %v967_v50, %v10420_v54 }
  0x4c   :  { %5436 = vmatpush1.bf16.msra.mxu1 %v8910_v52  ;;  %5394 = vmatprep.subr.bf16.mxu0 %v8915_v53  ;;  %v8990_v52 = vld [vmem:[%s13584_s1 + $0x704] ss:$16 sps:$4 sm:$0xff]   ;;  %v8985_v53 = vld [vmem:[%s13584_s1 + $0x500] ss:$16 sps:$4 sm:$0xff]  }
  0x4d   :  { %5437 = vmatprep.subr.bf16.mxu1 %v8918_v55  ;;  %v8996_v55 = vld [vmem:[%s13584_s1 + $0xae4] ss:$16 sps:$4 sm:$0xff]  }
  0x4e   :  { %v9044_v50 = vld [vmem:[%s13584_s1 + $0xbe4] ss:$16 sps:$4 sm:$0xff]  }
  0x4f   :  { %5395 = vmatpush1.bf16.msra.mxu0 %v8913_v56  ;;  %v10739_v56 = vcombine.low %v982_v17, %v1010_v18 }
  0x50   :  { %5438 = vmatpush1.bf16.msra.mxu1 %v8916_v57  ;;  %5396 = vmatprep.subr.bf16.mxu0 %v8921_v58  ;;  %v10741_v57 = vcombine.high %v982_v17, %v1010_v18  ;;  %v8991_v58 = vld [vmem:[%s13584_s1 + $0x8e0] ss:$16 sps:$4 sm:$0xff]  }
  0x51   :  { %5439 = vmatprep.subr.bf16.mxu1 %v8924_v59  ;;  %v8994_v59 = vld [vmem:[%s13584_s1 + $0xae0] ss:$16 sps:$4 sm:$0xff]  }
  0x52   :  { %v9045_v17 = vld [vmem:[%s13584_s1 + $0x9c0] ss:$16 sps:$4 sm:$0xff]  }
  0x53   :  { %5397 = vmatpush1.bf16.msra.mxu0 %v8919_v60  ;;  %v8999_v60 = vld [vmem:[%s13584_s1 + $0x8c4] ss:$16 sps:$4 sm:$0xff]   ;;  %v9048_v18 = vld [vmem:[%s13584_s1 + $0xbc0] ss:$16 sps:$4 sm:$0xff]  }
  0x54   :  { %5440 = vmatpush1.bf16.msra.mxu1 %v8922_v61  ;;  %5398 = vmatprep.subr.bf16.mxu0 %v8927_v62  ;;  %v9002_v61 = vld [vmem:[%s13584_s1 + $0xac4] ss:$16 sps:$4 sm:$0xff]   ;;  %v8997_v62 = vld [vmem:[%s13584_s1 + $0x8c0] ss:$16 sps:$4 sm:$0xff]  }
  0x55   :  { %5441 = vmatprep.subr.bf16.mxu1 %v8930_v63  ;;  %v9000_v63 = vld [vmem:[%s13584_s1 + $0xac0] ss:$16 sps:$4 sm:$0xff]  }
  0x57   :  { %5399 = vmatpush1.bf16.msra.mxu0 %v8925_v0  ;;  %v9005_v0 = vld [vmem:[%s13584_s1 + $0x8a4] ss:$16 sps:$4 sm:$0xff]  }
  0x58   :  { %5442 = vmatpush1.bf16.msra.mxu1 %v8928_v1  ;;  %5400 = vmatprep.subr.bf16.mxu0 %v8933_v2  ;;  %v9008_v1 = vld [vmem:[%s13584_s1 + $0xaa4] ss:$16 sps:$4 sm:$0xff]   ;;  %v9003_v2 = vld [vmem:[%s13584_s1 + $0x8a0] ss:$16 sps:$4 sm:$0xff]  }
  0x59   :  { %5443 = vmatprep.subr.bf16.mxu1 %v8936_v3  ;;  %v9006_v3 = vld [vmem:[%s13584_s1 + $0xaa0] ss:$16 sps:$4 sm:$0xff]  }
  0x5b   :  { %5401 = vmatpush1.bf16.msra.mxu0 %v8931_v4  ;;  %v9011_v4 = vld [vmem:[%s13584_s1 + $0x884] ss:$16 sps:$4 sm:$0xff]  }
  0x5c   :  { %5444 = vmatpush1.bf16.msra.mxu1 %v8934_v5  ;;  %5402 = vmatprep.subr.bf16.mxu0 %v8939_v6  ;;  %v9014_v5 = vld [vmem:[%s13584_s1 + $0xa84] ss:$16 sps:$4 sm:$0xff]  }
  0x5d   :  { %5445 = vmatprep.subr.bf16.mxu1 %v8942_v7  ;;  %v9087_v6 = vld [vmem:[%s13583_s0 + $0x8] ss:$25 sps:$4 sm:$0xff]   ;;  %v9089_v7 = vld [vmem:[%s13583_s0 + $0x3a] ss:$25 sps:$4 sm:$0xff]  }
  0x5f   :  { %5403 = vmatpush1.bf16.msra.mxu0 %v8937_v8  ;;  %v9091_v8 = vld [vmem:[%s13583_s0 + $0x6c] ss:$25 sps:$4 sm:$0xff]  }
  0x60   :  { %5446 = vmatpush1.bf16.msra.mxu1 %v8940_v9  ;;  %5404 = vmatprep.subr.bf16.mxu0 %v8945_v10  ;;  %v9093_v9 = vld [vmem:[%s13583_s0 + $0x9e] ss:$25 sps:$4 sm:$0xff]   ;;  %v10794_v10 = vrot.slane %v9087_v6, %v10420_v54 }
  0x61   :  { %5447 = vmatprep.subr.bf16.mxu1 %v8948_v11  ;;  %v10797_v11 = vrot.slane %v9089_v7, %v10420_v54  ;;  %v9069_v6 = vld [vmem:[%s13584_s1 + $0x940] ss:$16 sps:$4 sm:$0xff]  }
  0x62   :  { %v9072_v7 = vld [vmem:[%s13584_s1 + $0xb40] ss:$16 sps:$4 sm:$0xff]  }
  0x63   :  { %5405 = vmatpush2.bf16.msra.mxu0 %v8943_v12  ;;  %v10800_v12 = vrot.slane %v9091_v8, %v10420_v54  ;;  %v9077_v8 = vld [vmem:[%s13584_s1 + $0x924] ss:$16 sps:$4 sm:$0xff]  }
  0x64   :  { %5448 = vmatpush2.bf16.msra.mxu1 %v8946_v13  ;;  %5406 = vmatprep.subr.bf16.mxu0 %v8951_v14  ;;  %v9009_v13 = vld [vmem:[%s13584_s1 + $0x880] ss:$16 sps:$4 sm:$0xff]  }
  0x65   :  { %5449 = vmatprep.subr.bf16.mxu1 %v8954_v15  ;;  %v9012_v14 = vld [vmem:[%s13584_s1 + $0xa80] ss:$16 sps:$4 sm:$0xff]   ;;  %v10809_v15 = vrot.slane %v9093_v9, %v10420_v54  ;;  %v9191_v9 = vld [vmem:[%s13583_s0 + $0xc] ss:$25 sps:$4 sm:$0xff]  }
  0x67   :  { %5407 = vmatpush2.bf16.msra.mxu0 %v8949_v20  ;;  %v9017_v20 = vld [vmem:[%s13584_s1 + $0x864] ss:$16 sps:$4 sm:$0xff]  }
  0x68   :  { %5450 = vmatpush2.bf16.msra.mxu1 %v8952_v21  ;;  %5408 = vmatprep.subr.bf16.mxu0 %v8957_v24  ;;  %v1098_v21 = vcombine.high %v10794_v10, %v10797_v11  ;;  %v9020_v24 = vld [vmem:[%s13584_s1 + $0xa64] ss:$16 sps:$4 sm:$0xff]  }
  0x69   :  { %5451 = vmatprep.subr.bf16.mxu1 %v8960_v25  ;;  %v1102_v25 = vcombine.high %v10800_v12, %v10809_v15 }
  0x6b   :  { %5409 = vmatpush2.bf16.msra.mxu0 %v8955_v26  ;;  %v1125_v26 = vrot.slane %v1098_v21, %v10420_v54  ;;  %v9194_v21 = vld [vmem:[%s13583_s0 + $0xa2] ss:$25 sps:$4 sm:$0xff]  }
  0x6c   :  { %5452 = vmatpush2.bf16.msra.mxu1 %v8958_v27  ;;  %5410 = vmatprep.subr.bf16.mxu0 %v8963_v28  ;;  %v9015_v27 = vld [vmem:[%s13584_s1 + $0x860] ss:$16 sps:$4 sm:$0xff]  }
  0x6d   :  { %5453 = vmatprep.subr.bf16.mxu1 %v8966_v29  ;;  %v9018_v28 = vld [vmem:[%s13584_s1 + $0xa60] ss:$16 sps:$4 sm:$0xff]   ;;  %v1153_v29 = vrot.slane %v1102_v25, %v10420_v54 }
  0x6f   :  { %5411 = vmatpush2.bf16.msra.mxu0 %v8961_v30  ;;  %v9023_v30 = vld [vmem:[%s13584_s1 + $0x844] ss:$16 sps:$4 sm:$0xff]  }
  0x70   :  { %5454 = vmatpush2.bf16.msra.mxu1 %v8964_v31  ;;  %5412 = vmatprep.subr.bf16.mxu0 %v8969_v32  ;;  %v9026_v31 = vld [vmem:[%s13584_s1 + $0xa44] ss:$16 sps:$4 sm:$0xff]   ;;  %v10835_v32 = vcombine.low %v1125_v26, %v1153_v29 }
  0x71   :  { %5455 = vmatprep.subr.bf16.mxu1 %v8972_v33  ;;  %v10837_v33 = vcombine.high %v1125_v26, %v1153_v29  ;;  %v1101_v29 = vcombine.low %v10800_v12, %v10809_v15  ;;  %v9081_v15 = vld [vmem:[%s13584_s1 + $0x900] ss:$16 sps:$4 sm:$0xff]  }
  0x73   :  { %5413 = vmatpush2.bf16.msra.mxu0 %v8967_v34  ;;  %v9021_v34 = vld [vmem:[%s13584_s1 + $0x840] ss:$16 sps:$4 sm:$0xff]  }
  0x74   :  { %5456 = vmatpush2.bf16.msra.mxu1 %v8970_v35  ;;  %5414 = vmatprep.subr.bf16.mxu0 %v8975_v36  ;;  %v9024_v35 = vld [vmem:[%s13584_s1 + $0xa40] ss:$16 sps:$4 sm:$0xff]   ;;  %v9029_v36 = vld [vmem:[%s13584_s1 + $0x824] ss:$16 sps:$4 sm:$0xff]  }
  0x75   :  { %5457 = vmatprep.subr.bf16.mxu1 %v8978_v37  ;;  %v9032_v37 = vld [vmem:[%s13584_s1 + $0xa24] ss:$16 sps:$4 sm:$0xff]  }
  0x77   :  { %5415 = vmatpush2.bf16.msra.mxu0 %v8973_v40  ;;  %v9027_v40 = vld [vmem:[%s13584_s1 + $0x820] ss:$16 sps:$4 sm:$0xff]  }
  0x78   :  { %5458 = vmatpush2.bf16.msra.mxu1 %v8976_v41  ;;  %5416 = vmatprep.subr.bf16.mxu0 %v8981_v42  ;;  %v9030_v41 = vld [vmem:[%s13584_s1 + $0xa20] ss:$16 sps:$4 sm:$0xff]   ;;  %v9035_v42 = vld [vmem:[%s13584_s1 + $0x804] ss:$16 sps:$4 sm:$0xff]  }
  0x79   :  { %5459 = vmatprep.subr.bf16.mxu1 %v8984_v43  ;;  %v9038_v43 = vld [vmem:[%s13584_s1 + $0xa04] ss:$16 sps:$4 sm:$0xff]  }
  0x7b   :  { %5417 = vmatpush2.bf16.msra.mxu0 %v8979_v46  ;;  %v9033_v46 = vld [vmem:[%s13584_s1 + $0x800] ss:$16 sps:$4 sm:$0xff]  }
  0x7c   :  { %5460 = vmatpush2.bf16.msra.mxu1 %v8982_v48  ;;  %5418 = vmatprep.subr.bf16.mxu0 %v8987_v51  ;;  %v9036_v48 = vld [vmem:[%s13584_s1 + $0xa00] ss:$16 sps:$4 sm:$0xff]  }
  0x7d   :  { %5461 = vmatprep.subr.bf16.mxu1 %v8990_v52  ;;  %v9039_v51 = vld [vmem:[%s13584_s1 + $0x9e0] ss:$16 sps:$4 sm:$0xff]  }
  0x7e   :  { %v9042_v52 = vld [vmem:[%s13584_s1 + $0xbe0] ss:$16 sps:$4 sm:$0xff]  }
  0x7f   :  { %5419 = vmatpush2.bf16.msra.mxu0 %v8985_v53  ;;  %v9047_v53 = vld [vmem:[%s13584_s1 + $0x9c4] ss:$16 sps:$4 sm:$0xff]  }
  0x80   :  { %5462 = vmatpush2.bf16.msra.mxu1 %v8988_v16  ;;  %5474 = vmatprep.subr.bf16.mxu0 %v8993_v19  ;;  %v9050_v16 = vld [vmem:[%s13584_s1 + $0xbc4] ss:$16 sps:$4 sm:$0xff]  }
  0x81   :  { %5517 = vmatprep.subr.bf16.mxu1 %v8996_v55  ;;  %v9053_v19 = vld [vmem:[%s13584_s1 + $0x9a4] ss:$16 sps:$4 sm:$0xff]  }
  0x82   :  { %5421 = vmatmul.mubr.bf16.vlgmr.msra.gmra.mxu0 %v10739_v56  ;;  %v9056_v55 = vld [vmem:[%s13584_s1 + $0xba4] ss:$16 sps:$4 sm:$0xff]  }
  0x83   :  { %5464 = vmatmul.mubr.bf16.vlgmr.msra.gmra.mxu1 %v10741_v57  ;;  %5475 = vmatpush1.bf16.msra.mxu0 %v8991_v58  ;;  %v9051_v58 = vld [vmem:[%s13584_s1 + $0x9a0] ss:$16 sps:$4 sm:$0xff]  }
  0x84   :  { %5518 = vmatpush1.bf16.msra.mxu1 %v8994_v59  ;;  %5476 = vmatprep.subr.bf16.mxu0 %v8999_v60  ;;  %v9054_v59 = vld [vmem:[%s13584_s1 + $0xba0] ss:$16 sps:$4 sm:$0xff]   ;;  %v9059_v60 = vld [vmem:[%s13584_s1 + $0x984] ss:$16 sps:$4 sm:$0xff]  }
  0x85   :  { %5519 = vmatprep.subr.bf16.mxu1 %v9002_v61  ;;  %5506 = vmatprep.mubr.bf16.mxu0 %v10835_v32  ;;  %v9062_v61 = vld [vmem:[%s13584_s1 + $0xb84] ss:$16 sps:$4 sm:$0xff]  }
  0x86   :  { %5549 = vmatprep.mubr.bf16.mxu1 %v10837_v33 }
  0x87   :  { %5477 = vmatpush1.bf16.msra.mxu0 %v8997_v62  ;;  %v9057_v62 = vld [vmem:[%s13584_s1 + $0x980] ss:$16 sps:$4 sm:$0xff]  }
  0x88   :  { %5520 = vmatpush1.bf16.msra.mxu1 %v9000_v63  ;;  %5478 = vmatprep.subr.bf16.mxu0 %v9005_v0  ;;  %v9060_v63 = vld [vmem:[%s13584_s1 + $0xb80] ss:$16 sps:$4 sm:$0xff]   ;;  %v9065_v0 = vld [vmem:[%s13584_s1 + $0x964] ss:$16 sps:$4 sm:$0xff]  }
  0x89   :  { %5521 = vmatprep.subr.bf16.mxu1 %v9008_v1  ;;  %v9068_v1 = vld [vmem:[%s13584_s1 + $0xb64] ss:$16 sps:$4 sm:$0xff]  }
  0x8b   :  { %5479 = vmatpush1.bf16.msra.mxu0 %v9003_v2  ;;  %v9063_v2 = vld [vmem:[%s13584_s1 + $0x960] ss:$16 sps:$4 sm:$0xff]  }
  0x8c   :  { %5522 = vmatpush1.bf16.msra.mxu1 %v9006_v3  ;;  %5480 = vmatprep.subr.bf16.mxu0 %v9011_v4  ;;  %v9066_v3 = vld [vmem:[%s13584_s1 + $0xb60] ss:$16 sps:$4 sm:$0xff]   ;;  %v9071_v4 = vld [vmem:[%s13584_s1 + $0x944] ss:$16 sps:$4 sm:$0xff]  }
  0x8d   :  { %5523 = vmatprep.subr.bf16.mxu1 %v9014_v5  ;;  %v9074_v5 = vld [vmem:[%s13584_s1 + $0xb44] ss:$16 sps:$4 sm:$0xff]  }
  0x8f   :  { %5481 = vmatpush1.bf16.msra.mxu0 %v9009_v13  ;;  %v9192_v13 = vld [vmem:[%s13583_s0 + $0x3e] ss:$25 sps:$4 sm:$0xff]  }
  0x90   :  { %5524 = vmatpush1.bf16.msra.mxu1 %v9012_v14  ;;  %5482 = vmatprep.subr.bf16.mxu0 %v9017_v20  ;;  %v9193_v14 = vld [vmem:[%s13583_s0 + $0x70] ss:$25 sps:$4 sm:$0xff]   ;;  %v9080_v20 = vld [vmem:[%s13584_s1 + $0xb24] ss:$16 sps:$4 sm:$0xff]   ;;  %v10965_v25 = vrot.slane %v9192_v13, %v10420_v54 }
  0x91   :  { %5525 = vmatprep.subr.bf16.mxu1 %v9020_v24  ;;  %v10962_v24 = vrot.slane %v9191_v9, %v10420_v54  ;;  %v10968_v26 = vrot.slane %v9193_v14, %v10420_v54  ;;  %v9136_v9 = vld [vmem:[%s13584_s1 + $0xe24] ss:$16 sps:$4 sm:$0xff]   ;;  %v9131_v13 = vld [vmem:[%s13584_s1 + $0xc20] ss:$16 sps:$4 sm:$0xff]  }
  0x92   :  { %v9134_v14 = vld [vmem:[%s13584_s1 + $0xe20] ss:$16 sps:$4 sm:$0xff]  }
  0x93   :  { %5483 = vmatpush1.bf16.msra.mxu0 %v9015_v27  ;;  %v9075_v27 = vld [vmem:[%s13584_s1 + $0x920] ss:$16 sps:$4 sm:$0xff]  }
  0x94   :  { %5526 = vmatpush1.bf16.msra.mxu1 %v9018_v28  ;;  %5484 = vmatprep.subr.bf16.mxu0 %v9023_v30  ;;  %v1097_v28 = vcombine.low %v10794_v10, %v10797_v11  ;;  %v10978_v30 = vrot.slane %v9194_v21, %v10420_v54  ;;  %v9086_v10 = vld [vmem:[%s13584_s1 + $0xb04] ss:$16 sps:$4 sm:$0xff]   ;;  %v1100_v11 = vcombine.high %v10962_v24, %v10965_v25 }
  0x95   :  { %5527 = vmatprep.subr.bf16.mxu1 %v9026_v31  ;;  %v9078_v31 = vld [vmem:[%s13584_s1 + $0xb20] ss:$16 sps:$4 sm:$0xff]   ;;  %v9142_v21 = vld [vmem:[%s13584_s1 + $0xe04] ss:$16 sps:$4 sm:$0xff]  }
  0x96   :  { %v1104_v12 = vcombine.high %v10968_v26, %v10978_v30 }
  0x97   :  { %5485 = vmatpush1.bf16.msra.mxu0 %v9021_v34  ;;  %v9083_v34 = vld [vmem:[%s13584_s1 + $0x904] ss:$16 sps:$4 sm:$0xff]  }
  0x98   :  { %5528 = vmatpush1.bf16.msra.mxu1 %v9024_v35  ;;  %5486 = vmatprep.subr.bf16.mxu0 %v9029_v36  ;;  %v1111_v35 = vrot.slane %v1097_v28, %v10420_v54  ;;  %v1139_v36 = vrot.slane %v1101_v29, %v10420_v54  ;;  %v9140_v28 = vld [vmem:[%s13584_s1 + $0xe00] ss:$16 sps:$4 sm:$0xff]   ;;  %v9145_v29 = vld [vmem:[%s13584_s1 + $0xde4] ss:$16 sps:$4 sm:$0xff]  }
  0x99   :  { %5529 = vmatprep.subr.bf16.mxu1 %v9032_v37  ;;  %v9084_v37 = vld [vmem:[%s13584_s1 + $0xb00] ss:$16 sps:$4 sm:$0xff]  }
  0x9b   :  { %5487 = vmatpush1.bf16.msra.mxu0 %v9027_v40  ;;  %v9097_v40 = vld [vmem:[%s13584_s1 + $0xce4] ss:$16 sps:$4 sm:$0xff]  }
  0x9c   :  { %5530 = vmatpush1.bf16.msra.mxu1 %v9030_v41  ;;  %5488 = vmatprep.subr.bf16.mxu0 %v9035_v42  ;;  %v9100_v41 = vld [vmem:[%s13584_s1 + $0xee4] ss:$16 sps:$4 sm:$0xff]   ;;  %v1132_v42 = vrot.slane %v1100_v11, %v10420_v54 }
  0x9d   :  { %5531 = vmatprep.subr.bf16.mxu1 %v9038_v43  ;;  %v1160_v43 = vrot.slane %v1104_v12, %v10420_v54  ;;  %v9151_v11 = vld [vmem:[%s13584_s1 + $0xdc4] ss:$16 sps:$4 sm:$0xff]  }
  0x9e   :  { %v9154_v12 = vld [vmem:[%s13584_s1 + $0xfc4] ss:$16 sps:$4 sm:$0xff]  }
  0x9f   :  { %5489 = vmatpush1.bf16.msra.mxu0 %v9033_v46  ;;  %v11009_v46 = vcombine.low %v1111_v35, %v1139_v36 }
  0xa0   :  { %5532 = vmatpush1.bf16.msra.mxu1 %v9036_v48  ;;  %5490 = vmatprep.subr.bf16.mxu0 %v9041_v49  ;;  %v11011_v48 = vcombine.high %v1111_v35, %v1139_v36  ;;  %v9095_v49 = vld [vmem:[%s13584_s1 + $0xce0] ss:$16 sps:$4 sm:$0xff]   ;;  %v9157_v36 = vld [vmem:[%s13584_s1 + $0xda4] ss:$16 sps:$4 sm:$0xff]  }
  0xa1   :  { %5533 = vmatprep.subr.bf16.mxu1 %v9044_v50  ;;  %v9098_v50 = vld [vmem:[%s13584_s1 + $0xee0] ss:$16 sps:$4 sm:$0xff]  }
  0xa2   :  { %v9152_v35 = vld [vmem:[%s13584_s1 + $0xfc0] ss:$16 sps:$4 sm:$0xff]  }
  0xa3   :  { %5491 = vmatpush2.bf16.msra.mxu0 %v9039_v51  ;;  %v9103_v51 = vld [vmem:[%s13584_s1 + $0xcc4] ss:$16 sps:$4 sm:$0xff]  }
  0xa4   :  { %5534 = vmatpush2.bf16.msra.mxu1 %v9042_v52  ;;  %5492 = vmatprep.subr.bf16.mxu0 %v9047_v53  ;;  %v9106_v52 = vld [vmem:[%s13584_s1 + $0xec4] ss:$16 sps:$4 sm:$0xff]   ;;  %v11025_v53 = vcombine.low %v1132_v42, %v1160_v43 }
  0xa5   :  { %5535 = vmatprep.subr.bf16.mxu1 %v9050_v16  ;;  %v11027_v16 = vcombine.high %v1132_v42, %v1160_v43  ;;  %v9163_v42 = vld [vmem:[%s13584_s1 + $0xd84] ss:$16 sps:$4 sm:$0xff]  }
  0xa6   :  { %v9166_v43 = vld [vmem:[%s13584_s1 + $0xf84] ss:$16 sps:$4 sm:$0xff]  }
  0xa7   :  { %5493 = vmatpush2.bf16.msra.mxu0 %v9045_v17  ;;  %v9101_v17 = vld [vmem:[%s13584_s1 + $0xcc0] ss:$16 sps:$4 sm:$0xff]  }
  0xa8   :  { %5536 = vmatpush2.bf16.msra.mxu1 %v9048_v18  ;;  %5494 = vmatprep.subr.bf16.mxu0 %v9053_v19  ;;  %v9104_v18 = vld [vmem:[%s13584_s1 + $0xec0] ss:$16 sps:$4 sm:$0xff]   ;;  %v9109_v19 = vld [vmem:[%s13584_s1 + $0xca4] ss:$16 sps:$4 sm:$0xff]  }
  0xa9   :  { %5537 = vmatprep.subr.bf16.mxu1 %v9056_v55  ;;  %v9112_v55 = vld [vmem:[%s13584_s1 + $0xea4] ss:$16 sps:$4 sm:$0xff]  }
  0xab   :  { %5495 = vmatpush2.bf16.msra.mxu0 %v9051_v58  ;;  %v9107_v58 = vld [vmem:[%s13584_s1 + $0xca0] ss:$16 sps:$4 sm:$0xff]  }
  0xac   :  { %5538 = vmatpush2.bf16.msra.mxu1 %v9054_v59  ;;  %5496 = vmatprep.subr.bf16.mxu0 %v9059_v60  ;;  %v9110_v59 = vld [vmem:[%s13584_s1 + $0xea0] ss:$16 sps:$4 sm:$0xff]   ;;  %v9115_v60 = vld [vmem:[%s13584_s1 + $0xc84] ss:$16 sps:$4 sm:$0xff]  }
  0xad   :  { %5539 = vmatprep.subr.bf16.mxu1 %v9062_v61  ;;  %v9118_v61 = vld [vmem:[%s13584_s1 + $0xe84] ss:$16 sps:$4 sm:$0xff]  }
  0xaf   :  { %5497 = vmatpush2.bf16.msra.mxu0 %v9057_v62  ;;  %v9113_v62 = vld [vmem:[%s13584_s1 + $0xc80] ss:$16 sps:$4 sm:$0xff]  }
  0xb0   :  { %5540 = vmatpush2.bf16.msra.mxu1 %v9060_v63  ;;  %5498 = vmatprep.subr.bf16.mxu0 %v9065_v0  ;;  %v9116_v63 = vld [vmem:[%s13584_s1 + $0xe80] ss:$16 sps:$4 sm:$0xff]   ;;  %v9121_v0 = vld [vmem:[%s13584_s1 + $0xc64] ss:$16 sps:$4 sm:$0xff]  }
  0xb1   :  { %5541 = vmatprep.subr.bf16.mxu1 %v9068_v1  ;;  %v9124_v1 = vld [vmem:[%s13584_s1 + $0xe64] ss:$16 sps:$4 sm:$0xff]  }
  0xb3   :  { %5499 = vmatpush2.bf16.msra.mxu0 %v9063_v2  ;;  %v9119_v2 = vld [vmem:[%s13584_s1 + $0xc60] ss:$16 sps:$4 sm:$0xff]  }
  0xb4   :  { %5542 = vmatpush2.bf16.msra.mxu1 %v9066_v3  ;;  %5500 = vmatprep.subr.bf16.mxu0 %v9071_v4  ;;  %v9122_v3 = vld [vmem:[%s13584_s1 + $0xe60] ss:$16 sps:$4 sm:$0xff]   ;;  %v9127_v4 = vld [vmem:[%s13584_s1 + $0xc44] ss:$16 sps:$4 sm:$0xff]  }
  0xb5   :  { %5543 = vmatprep.subr.bf16.mxu1 %v9074_v5  ;;  %v9130_v5 = vld [vmem:[%s13584_s1 + $0xe44] ss:$16 sps:$4 sm:$0xff]  }
  0xb7   :  { %5501 = vmatpush2.bf16.msra.mxu0 %v9069_v6  ;;  %v9125_v6 = vld [vmem:[%s13584_s1 + $0xc40] ss:$16 sps:$4 sm:$0xff]  }
  0xb8   :  { %5544 = vmatpush2.bf16.msra.mxu1 %v9072_v7  ;;  %5502 = vmatprep.subr.bf16.mxu0 %v9077_v8  ;;  %v9128_v7 = vld [vmem:[%s13584_s1 + $0xe40] ss:$16 sps:$4 sm:$0xff]   ;;  %v9133_v8 = vld [vmem:[%s13584_s1 + $0xc24] ss:$16 sps:$4 sm:$0xff]  }
  0xb9   :  { %5545 = vmatprep.subr.bf16.mxu1 %v9080_v20  ;;  %v9139_v20 = vld [vmem:[%s13584_s1 + $0xc04] ss:$16 sps:$4 sm:$0xff]  }
  0xbb   :  { %5503 = vmatpush2.bf16.msra.mxu0 %v9075_v27  ;;  %v9137_v27 = vld [vmem:[%s13584_s1 + $0xc00] ss:$16 sps:$4 sm:$0xff]  }
  0xbc   :  { %5546 = vmatpush2.bf16.msra.mxu1 %v9078_v31  ;;  %5504 = vmatprep.subr.bf16.mxu0 %v9083_v34  ;;  %v9148_v31 = vld [vmem:[%s13584_s1 + $0xfe4] ss:$16 sps:$4 sm:$0xff]   ;;  %v9143_v34 = vld [vmem:[%s13584_s1 + $0xde0] ss:$16 sps:$4 sm:$0xff]  }
  0xbd   :  { %5547 = vmatprep.subr.bf16.mxu1 %v9086_v10  ;;  %v9146_v10 = vld [vmem:[%s13584_s1 + $0xfe0] ss:$16 sps:$4 sm:$0xff]  }
  0xbf   :  { %5505 = vmatpush2.bf16.msra.mxu0 %v9081_v15  ;;  %v9149_v15 = vld [vmem:[%s13584_s1 + $0xdc0] ss:$16 sps:$4 sm:$0xff]  }
  0xc0   :  { %5548 = vmatpush2.bf16.msra.mxu1 %v9084_v37  ;;  %5560 = vmatprep.subr.bf16.mxu0 %v9097_v40  ;;  %v9160_v37 = vld [vmem:[%s13584_s1 + $0xfa4] ss:$16 sps:$4 sm:$0xff]   ;;  %v9155_v40 = vld [vmem:[%s13584_s1 + $0xda0] ss:$16 sps:$4 sm:$0xff]  }
  0xc1   :  { %5603 = vmatprep.subr.bf16.mxu1 %v9100_v41  ;;  %v9158_v41 = vld [vmem:[%s13584_s1 + $0xfa0] ss:$16 sps:$4 sm:$0xff]  }
  0xc2   :  { %5507 = vmatmul.mubr.bf16.vlgmr.msra.gmra.mxu0 %v11009_v46 }
  0xc3   :  { %5550 = vmatmul.mubr.bf16.vlgmr.msra.gmra.mxu1 %v11011_v48  ;;  %5561 = vmatpush1.bf16.msra.mxu0 %v9095_v49  ;;  %v9161_v49 = vld [vmem:[%s13584_s1 + $0xd80] ss:$16 sps:$4 sm:$0xff]  }
  0xc4   :  { %5604 = vmatpush1.bf16.msra.mxu1 %v9098_v50  ;;  %5562 = vmatprep.subr.bf16.mxu0 %v9103_v51  ;;  %v9164_v50 = vld [vmem:[%s13584_s1 + $0xf80] ss:$16 sps:$4 sm:$0xff]   ;;  %v9169_v51 = vld [vmem:[%s13584_s1 + $0xd64] ss:$16 sps:$4 sm:$0xff]  }
  0xc5   :  { %5605 = vmatprep.subr.bf16.mxu1 %v9106_v52  ;;  %5592 = vmatprep.mubr.bf16.mxu0 %v11025_v53  ;;  %v9172_v52 = vld [vmem:[%s13584_s1 + $0xf64] ss:$16 sps:$4 sm:$0xff]  }
  0xc6   :  { %5635 = vmatprep.mubr.bf16.mxu1 %v11027_v16 }
  0xc7   :  { %5563 = vmatpush1.bf16.msra.mxu0 %v9101_v17  ;;  %v9167_v17 = vld [vmem:[%s13584_s1 + $0xd60] ss:$16 sps:$4 sm:$0xff]  }
  0xc8   :  { %5606 = vmatpush1.bf16.msra.mxu1 %v9104_v18  ;;  %5564 = vmatprep.subr.bf16.mxu0 %v9109_v19  ;;  %v9170_v18 = vld [vmem:[%s13584_s1 + $0xf60] ss:$16 sps:$4 sm:$0xff]   ;;  %v9175_v19 = vld [vmem:[%s13584_s1 + $0xd44] ss:$16 sps:$4 sm:$0xff]  }
  0xc9   :  { %5607 = vmatprep.subr.bf16.mxu1 %v9112_v55  ;;  %v9178_v55 = vld [vmem:[%s13584_s1 + $0xf44] ss:$16 sps:$4 sm:$0xff]  }
  0xcb   :  { %5565 = vmatpush1.bf16.msra.mxu0 %v9107_v58  ;;  %v9291_v58 = vld [vmem:[%s13583_s0 + $0x10] ss:$25 sps:$4 sm:$0xff]  }
  0xcc   :  { %5608 = vmatpush1.bf16.msra.mxu1 %v9110_v59  ;;  %5566 = vmatprep.subr.bf16.mxu0 %v9115_v60  ;;  %v9293_v59 = vld [vmem:[%s13583_s0 + $0x42] ss:$25 sps:$4 sm:$0xff]   ;;  %v9295_v60 = vld [vmem:[%s13583_s0 + $0x74] ss:$25 sps:$4 sm:$0xff]  }
  0xcd   :  { %5609 = vmatprep.subr.bf16.mxu1 %v9118_v61  ;;  %v9297_v61 = vld [vmem:[%s13583_s0 + $0xa6] ss:$25 sps:$4 sm:$0xff]  }
  0xcf   :  { %5567 = vmatpush1.bf16.msra.mxu0 %v9113_v62  ;;  %v9173_v62 = vld [vmem:[%s13584_s1 + $0xd40] ss:$16 sps:$4 sm:$0xff]  }
  0xd0   :  { %5610 = vmatpush1.bf16.msra.mxu1 %v9116_v63  ;;  %5568 = vmatprep.subr.bf16.mxu0 %v9121_v0  ;;  %v9176_v63 = vld [vmem:[%s13584_s1 + $0xf40] ss:$16 sps:$4 sm:$0xff]   ;;  %v9181_v0 = vld [vmem:[%s13584_s1 + $0xd24] ss:$16 sps:$4 sm:$0xff]  }
  0xd1   :  { %5611 = vmatprep.subr.bf16.mxu1 %v9124_v1  ;;  %v9184_v1 = vld [vmem:[%s13584_s1 + $0xf24] ss:$16 sps:$4 sm:$0xff]  }
  0xd3   :  { %5569 = vmatpush1.bf16.msra.mxu0 %v9119_v2  ;;  %v11202_v2 = vrot.slane %v9291_v58, %v10420_v54 }
  0xd4   :  { %5612 = vmatpush1.bf16.msra.mxu1 %v9122_v3  ;;  %5570 = vmatprep.subr.bf16.mxu0 %v9127_v4  ;;  %v11205_v3 = vrot.slane %v9293_v59, %v10420_v54  ;;  %v11208_v4 = vrot.slane %v9295_v60, %v10420_v54  ;;  %v9207_v60 = vld [vmem:[%s13584_s1 + $0x10a0] ss:$16 sps:$4 sm:$0xff]  }
  0xd5   :  { %5613 = vmatprep.subr.bf16.mxu1 %v9130_v5  ;;  %v11211_v5 = vrot.slane %v9297_v61, %v10420_v54 }
  0xd7   :  { %5571 = vmatpush1.bf16.msra.mxu0 %v9125_v6  ;;  %v9179_v6 = vld [vmem:[%s13584_s1 + $0xd20] ss:$16 sps:$4 sm:$0xff]  }
  0xd8   :  { %5614 = vmatpush1.bf16.msra.mxu1 %v9128_v7  ;;  %5572 = vmatprep.subr.bf16.mxu0 %v9133_v8  ;;  %v1099_v7 = vcombine.low %v10962_v24, %v10965_v25  ;;  %v1103_v8 = vcombine.low %v10968_v26, %v10978_v30  ;;  %v9185_v24 = vld [vmem:[%s13584_s1 + $0xd00] ss:$16 sps:$4 sm:$0xff]   ;;  %v1234_v25 = vcombine.high %v11202_v2, %v11205_v3 }
  0xd9   :  { %5615 = vmatprep.subr.bf16.mxu1 %v9136_v9  ;;  %v9182_v9 = vld [vmem:[%s13584_s1 + $0xf20] ss:$16 sps:$4 sm:$0xff]   ;;  %v1238_v26 = vcombine.high %v11208_v4, %v11211_v5 }
  0xda   :  { %v9188_v30 = vld [vmem:[%s13584_s1 + $0xf00] ss:$16 sps:$4 sm:$0xff]  }
  0xdb   :  { %5573 = vmatpush1.bf16.msra.mxu0 %v9131_v13  ;;  %v9187_v13 = vld [vmem:[%s13584_s1 + $0xd04] ss:$16 sps:$4 sm:$0xff]  }
  0xdc   :  { %5616 = vmatpush1.bf16.msra.mxu1 %v9134_v14  ;;  %5574 = vmatprep.subr.bf16.mxu0 %v9139_v20  ;;  %v9190_v14 = vld [vmem:[%s13584_s1 + $0xf04] ss:$16 sps:$4 sm:$0xff]   ;;  %v1118_v20 = vrot.slane %v1099_v7, %v10420_v54  ;;  %v9213_v7 = vld [vmem:[%s13584_s1 + $0x1080] ss:$16 sps:$4 sm:$0xff]  }
  0xdd   :  { %5617 = vmatprep.subr.bf16.mxu1 %v9142_v21  ;;  %v1146_v21 = vrot.slane %v1103_v8, %v10420_v54  ;;  %v9216_v8 = vld [vmem:[%s13584_s1 + $0x1280] ss:$16 sps:$4 sm:$0xff]  }
  0xdf   :  { %5575 = vmatpush1.bf16.msra.mxu0 %v9137_v27  ;;  %v843_v27 = vld [vmem:[%s13585_s2] sm:$0xf] }
  0xe0   :  { %5618 = vmatpush1.bf16.msra.mxu1 %v9140_v28  ;;  %5576 = vmatprep.subr.bf16.mxu0 %v9145_v29  ;;  %v847_v28 = vsub.s32 0, %v10402_v47  ;;  %v9197_v29 = vld [vmem:[%s13584_s1 + $0x10e4] ss:$16 sps:$4 sm:$0xff]  }
  0xe1   :  { %5619 = vmatprep.subr.bf16.mxu1 %v9148_v31  ;;  %v9200_v31 = vld [vmem:[%s13584_s1 + $0x12e4] ss:$16 sps:$4 sm:$0xff]  }
  0xe3   :  { %5577 = vmatpush2.bf16.msra.mxu0 %v9143_v34  ;;  %v1261_v34 = vrot.slane %v1234_v25, %v10420_v54  ;;  %v9227_v25 = vld [vmem:[%s13584_s1 + $0x1044] ss:$16 sps:$4 sm:$0xff]  }
  0xe4   :  { %5620 = vmatpush2.bf16.msra.mxu1 %v9146_v10  ;;  %5578 = vmatprep.subr.bf16.mxu0 %v9151_v11  ;;  %v1289_v10 = vrot.slane %v1238_v26, %v10420_v54  ;;  %v11253_v11 = vcombine.low %v1118_v20, %v1146_v21  ;;  %v9230_v26 = vld [vmem:[%s13584_s1 + $0x1244] ss:$16 sps:$4 sm:$0xff]  }
  0xe5   :  { %5621 = vmatprep.subr.bf16.mxu1 %v9154_v12  ;;  %v11255_v12 = vcombine.high %v1118_v20, %v1146_v21  ;;  %v9228_v20 = vld [vmem:[%s13584_s1 + $0x1240] ss:$16 sps:$4 sm:$0xff]   ;;  %v9233_v21 = vld [vmem:[%s13584_s1 + $0x1024] ss:$16 sps:$4 sm:$0xff]  }
  0xe7   :  { %5579 = vmatpush2.bf16.msra.mxu0 %v9149_v15  ;;  %v9195_v15 = vld [vmem:[%s13584_s1 + $0x10e0] ss:$16 sps:$4 sm:$0xff]  }
  0xe8   :  { %5622 = vmatpush2.bf16.msra.mxu1 %v9152_v35  ;;  %5580 = vmatprep.subr.bf16.mxu0 %v9157_v36  ;;  %v848_v35 = vrot.slane %v843_v27, %v847_v28  ;;  %v9198_v36 = vld [vmem:[%s13584_s1 + $0x12e0] ss:$16 sps:$4 sm:$0xff]   ;;  %v9236_v27 = vld [vmem:[%s13584_s1 + $0x1224] ss:$16 sps:$4 sm:$0xff]  }
  0xe9   :  { %5623 = vmatprep.subr.bf16.mxu1 %v9160_v37  ;;  %v9203_v37 = vld [vmem:[%s13584_s1 + $0x10c4] ss:$16 sps:$4 sm:$0xff]  }
  0xeb   :  { %5581 = vmatpush2.bf16.msra.mxu0 %v9155_v40  ;;  %v9206_v40 = vld [vmem:[%s13584_s1 + $0x12c4] ss:$16 sps:$4 sm:$0xff]  }
  0xec   :  { %5624 = vmatpush2.bf16.msra.mxu1 %v9158_v41  ;;  %5582 = vmatprep.subr.bf16.mxu0 %v9163_v42  ;;  %v11271_v41 = vcombine.low %v1261_v34, %v1289_v10  ;;  %v11273_v42 = vcombine.high %v1261_v34, %v1289_v10  ;;  %v9239_v34 = vld [vmem:[%s13584_s1 + $0x1004] ss:$16 sps:$4 sm:$0xff]  }
  0xed   :  { %5625 = vmatprep.subr.bf16.mxu1 %v9166_v43  ;;  %v9242_v10 = vld [vmem:[%s13584_s1 + $0x1204] ss:$16 sps:$4 sm:$0xff]  }
  0xef   :  { %5583 = vmatpush2.bf16.msra.mxu0 %v9161_v49 }
  0xf0   :  { %5626 = vmatpush2.bf16.msra.mxu1 %v9164_v50  ;;  %5584 = vmatprep.subr.bf16.mxu0 %v9169_v51  ;;  %v9201_v50 = vld [vmem:[%s13584_s1 + $0x10c0] ss:$16 sps:$4 sm:$0xff]  }
  0xf1   :  { %5627 = vmatprep.subr.bf16.mxu1 %v9172_v52  ;;  %v9204_v52 = vld [vmem:[%s13584_s1 + $0x12c0] ss:$16 sps:$4 sm:$0xff]  }
  0xf3   :  { %5585 = vmatpush2.bf16.msra.mxu0 %v9167_v17 }
  0xf4   :  { %5628 = vmatpush2.bf16.msra.mxu1 %v9170_v18  ;;  %5586 = vmatprep.subr.bf16.mxu0 %v9175_v19  ;;  %v9209_v19 = vld [vmem:[%s13584_s1 + $0x10a4] ss:$16 sps:$4 sm:$0xff]  }
  0xf5   :  { %5629 = vmatprep.subr.bf16.mxu1 %v9178_v55  ;;  %v9212_v55 = vld [vmem:[%s13584_s1 + $0x12a4] ss:$16 sps:$4 sm:$0xff]  }
  0xf7   :  { %5587 = vmatpush2.bf16.msra.mxu0 %v9173_v62  ;;  %v9210_v62 = vld [vmem:[%s13584_s1 + $0x12a0] ss:$16 sps:$4 sm:$0xff]  }
  0xf8   :  { %5630 = vmatpush2.bf16.msra.mxu1 %v9176_v63  ;;  %5588 = vmatprep.subr.bf16.mxu0 %v9181_v0  ;;  %v9215_v0 = vld [vmem:[%s13584_s1 + $0x1084] ss:$16 sps:$4 sm:$0xff]  }
  0xf9   :  { %5631 = vmatprep.subr.bf16.mxu1 %v9184_v1  ;;  %v9218_v1 = vld [vmem:[%s13584_s1 + $0x1284] ss:$16 sps:$4 sm:$0xff]  }
  0xfb   :  { %5589 = vmatpush2.bf16.msra.mxu0 %v9179_v6 }
  0xfc   :  { %5632 = vmatpush2.bf16.msra.mxu1 %v9182_v9  ;;  %5590 = vmatprep.subr.bf16.mxu0 %v9187_v13  ;;  %v9221_v9 = vld [vmem:[%s13584_s1 + $0x1064] ss:$16 sps:$4 sm:$0xff]  }
  0xfd   :  { %5633 = vmatprep.subr.bf16.mxu1 %v9190_v14  ;;  %v9224_v13 = vld [vmem:[%s13584_s1 + $0x1264] ss:$16 sps:$4 sm:$0xff]   ;;  %v9219_v14 = vld [vmem:[%s13584_s1 + $0x1060] ss:$16 sps:$4 sm:$0xff]  }
  0xff   :  { %5591 = vmatpush2.bf16.msra.mxu0 %v9185_v24  ;;  %v9222_v24 = vld [vmem:[%s13584_s1 + $0x1260] ss:$16 sps:$4 sm:$0xff]  }
 0x100   :  { %5634 = vmatpush2.bf16.msra.mxu1 %v9188_v30  ;;  %5646 = vmatprep.subr.bf16.mxu0 %v9197_v29  ;;  %v9225_v30 = vld [vmem:[%s13584_s1 + $0x1040] ss:$16 sps:$4 sm:$0xff]  }
 0x101   :  { %5689 = vmatprep.subr.bf16.mxu1 %v9200_v31  ;;  %v9231_v29 = vld [vmem:[%s13584_s1 + $0x1020] ss:$16 sps:$4 sm:$0xff]  }
 0x102   :  { %v5336_v43 = vpop.f32.mrf.mxu0  ;;  %5593 = vmatmul.mubr.bf16.vlgmr.msra.gmra.mxu0 %v11253_v11  ;;  %v9234_v31 = vld [vmem:[%s13584_s1 + $0x1220] ss:$16 sps:$4 sm:$0xff]  }
 0x103   :  { %v5379_v49 = vpop.f32.mrf.mxu1  ;;  %5636 = vmatmul.mubr.bf16.vlgmr.msra.gmra.mxu1 %v11255_v12  ;;  %v5337_v51 = vadd.f32 %v5336_v43, %v848_v35  ;;  %5647 = vmatpush1.bf16.msra.mxu0 %v9195_v15  ;;  %v9237_v15 = vld [vmem:[%s13584_s1 + $0x1000] ss:$16 sps:$4 sm:$0xff]  }
 0x104   :  { %5690 = vmatpush1.bf16.msra.mxu1 %v9198_v36  ;;  %v11283_v17 = vpop.f32.mrf.mxu0  ;;  %5648 = vmatprep.subr.bf16.mxu0 %v9203_v37  ;;  %v9245_v36 = vld [vmem:[%s13584_s1 + $0x11e4] ss:$16 sps:$4 sm:$0xff]   ;;  %v9246_v43 = vld [vmem:[%s13584_s1 + $0x13e0] ss:$16 sps:$4 sm:$0xff]  }
 0x105   :  { %v11285_v18 = vpop.f32.mrf.mxu1  ;;  %5691 = vmatprep.subr.bf16.mxu1 %v9206_v40  ;;  %v11293_v58 = vadd.f32 %v5379_v49, %v5337_v51  ;;  %5678 = vmatprep.mubr.bf16.mxu0 %v11271_v41  ;;  %v9248_v37 = vld [vmem:[%s13584_s1 + $0x13e4] ss:$16 sps:$4 sm:$0xff]   ;;  %v9243_v40 = vld [vmem:[%s13584_s1 + $0x11e0] ss:$16 sps:$4 sm:$0xff]  }
 0x106   :  { %5721 = vmatprep.mubr.bf16.mxu1 %v11273_v42  ;;  %v5340_v59 = vpop.f32.mrf.mxu0  ;;  %v9251_v49 = vld [vmem:[%s13584_s1 + $0x11c4] ss:$16 sps:$4 sm:$0xff]   ;;  %v9249_v51 = vld [vmem:[%s13584_s1 + $0x11c0] ss:$16 sps:$4 sm:$0xff]  }
 0x107   :  { %v5341_v61 = vadd.f32 %v5340_v59, %v848_v35  ;;  %5649 = vmatpush1.bf16.msra.mxu0 %v9201_v50  ;;  %v5383_v63 = vpop.f32.mrf.mxu1  ;;  %v9240_v35 = vld [vmem:[%s13584_s1 + $0x1200] ss:$16 sps:$4 sm:$0xff]   ;;  %v9254_v50 = vld [vmem:[%s13584_s1 + $0x13c4] ss:$16 sps:$4 sm:$0xff]  }
 0x108   :  { %5692 = vmatpush1.bf16.msra.mxu1 %v9204_v52  ;;  %5650 = vmatprep.subr.bf16.mxu0 %v9209_v19  ;;  %v9252_v52 = vld [vmem:[%s13584_s1 + $0x13c0] ss:$16 sps:$4 sm:$0xff]   ;;  %v9257_v19 = vld [vmem:[%s13584_s1 + $0x11a4] ss:$16 sps:$4 sm:$0xff]  }
 0x109   :  { %5693 = vmatprep.subr.bf16.mxu1 %v9212_v55  ;;  %v11309_v6 = vadd.f32 %v5383_v63, %v5341_v61  ;;  %v9260_v55 = vld [vmem:[%s13584_s1 + $0x13a4] ss:$16 sps:$4 sm:$0xff]   ;;  %v9255_v59 = vld [vmem:[%s13584_s1 + $0x11a0] ss:$16 sps:$4 sm:$0xff]  }
 0x10a   :  { %v9263_v61 = vld [vmem:[%s13584_s1 + $0x1184] ss:$16 sps:$4 sm:$0xff]   ;;  %v9261_v63 = vld [vmem:[%s13584_s1 + $0x1180] ss:$16 sps:$4 sm:$0xff]  }
 0x10b   :  { %5651 = vmatpush1.bf16.msra.mxu0 %v9207_v60  ;;  %v9258_v60 = vld [vmem:[%s13584_s1 + $0x13a0] ss:$16 sps:$4 sm:$0xff]  }
 0x10c   :  { %5694 = vmatpush1.bf16.msra.mxu1 %v9210_v62  ;;  %5652 = vmatprep.subr.bf16.mxu0 %v9215_v0  ;;  %v9266_v62 = vld [vmem:[%s13584_s1 + $0x1384] ss:$16 sps:$4 sm:$0xff]   ;;  %v9264_v0 = vld [vmem:[%s13584_s1 + $0x1380] ss:$16 sps:$4 sm:$0xff]  }
 0x10d   :  { %5695 = vmatprep.subr.bf16.mxu1 %v9218_v1  ;;  %v9269_v1 = vld [vmem:[%s13584_s1 + $0x1164] ss:$16 sps:$4 sm:$0xff]  }
 0x10f   :  { %5653 = vmatpush1.bf16.msra.mxu0 %v9213_v7  ;;  %v9272_v7 = vld [vmem:[%s13584_s1 + $0x1364] ss:$16 sps:$4 sm:$0xff]  }
 0x110   :  { %5696 = vmatpush1.bf16.msra.mxu1 %v9216_v8  ;;  %5654 = vmatprep.subr.bf16.mxu0 %v9221_v9  ;;  %v9267_v8 = vld [vmem:[%s13584_s1 + $0x1160] ss:$16 sps:$4 sm:$0xff]  }
 0x111   :  { %5697 = vmatprep.subr.bf16.mxu1 %v9224_v13  ;;  %v9270_v9 = vld [vmem:[%s13584_s1 + $0x1360] ss:$16 sps:$4 sm:$0xff]   ;;  %v9275_v13 = vld [vmem:[%s13584_s1 + $0x1144] ss:$16 sps:$4 sm:$0xff]  }
 0x113   :  { %5655 = vmatpush1.bf16.msra.mxu0 %v9219_v14  ;;  %v9278_v14 = vld [vmem:[%s13584_s1 + $0x1344] ss:$16 sps:$4 sm:$0xff]  }
 0x114   :  { %5698 = vmatpush1.bf16.msra.mxu1 %v9222_v24  ;;  %5656 = vmatprep.subr.bf16.mxu0 %v9227_v25  ;;  %v9395_v24 = vld [vmem:[%s13583_s0 + $0x14] ss:$25 sps:$4 sm:$0xff]   ;;  %v9396_v25 = vld [vmem:[%s13583_s0 + $0x46] ss:$25 sps:$4 sm:$0xff]  }
 0x115   :  { %5699 = vmatprep.subr.bf16.mxu1 %v9230_v26  ;;  %v9397_v26 = vld [vmem:[%s13583_s0 + $0x78] ss:$25 sps:$4 sm:$0xff]  }
 0x117   :  { %5657 = vmatpush1.bf16.msra.mxu0 %v9225_v30  ;;  %v9398_v30 = vld [vmem:[%s13583_s0 + $0xaa] ss:$25 sps:$4 sm:$0xff]  }
 0x118   :  { %5700 = vmatpush1.bf16.msra.mxu1 %v9228_v20  ;;  %5658 = vmatprep.subr.bf16.mxu0 %v9233_v21  ;;  %v9273_v20 = vld [vmem:[%s13584_s1 + $0x1140] ss:$16 sps:$4 sm:$0xff]  }
 0x119   :  { %5701 = vmatprep.subr.bf16.mxu1 %v9236_v27  ;;  %v9276_v21 = vld [vmem:[%s13584_s1 + $0x1340] ss:$16 sps:$4 sm:$0xff]   ;;  %v9281_v27 = vld [vmem:[%s13584_s1 + $0x1124] ss:$16 sps:$4 sm:$0xff]  }
 0x11b   :  { %5659 = vmatpush1.bf16.msra.mxu0 %v9231_v29  ;;  %v9284_v29 = vld [vmem:[%s13584_s1 + $0x1324] ss:$16 sps:$4 sm:$0xff]  }
 0x11c   :  { %5702 = vmatpush1.bf16.msra.mxu1 %v9234_v31  ;;  %5660 = vmatprep.subr.bf16.mxu0 %v9239_v34  ;;  %v11456_v31 = vrot.slane %v9395_v24, %v10420_v54  ;;  %v11459_v34 = vrot.slane %v9396_v25, %v10420_v54 }
 0x11d   :  { %5703 = vmatprep.subr.bf16.mxu1 %v9242_v10  ;;  %v11462_v10 = vrot.slane %v9397_v26, %v10420_v54 }
 0x11f   :  { %5661 = vmatpush1.bf16.msra.mxu0 %v9237_v15  ;;  %v11465_v15 = vrot.slane %v9398_v30, %v10420_v54 }
 0x120   :  { %5704 = vmatpush1.bf16.msra.mxu1 %v9240_v35  ;;  %5662 = vmatprep.subr.bf16.mxu0 %v9245_v36  ;;  %v9279_v35 = vld [vmem:[%s13584_s1 + $0x1120] ss:$16 sps:$4 sm:$0xff]   ;;  %v1233_v36 = vcombine.low %v11202_v2, %v11205_v3  ;;  %v1236_v2 = vcombine.high %v11456_v31, %v11459_v34 }
 0x121   :  { %5705 = vmatprep.subr.bf16.mxu1 %v9248_v37  ;;  %v1237_v37 = vcombine.low %v11208_v4, %v11211_v5  ;;  %v1240_v3 = vcombine.high %v11462_v10, %v11465_v15  ;;  %v9285_v4 = vld [vmem:[%s13584_s1 + $0x1100] ss:$16 sps:$4 sm:$0xff]  }
 0x122   :  { %v1247_v5 = vrot.slane %v1233_v36, %v10420_v54  ;;  %v9314_v36 = vld [vmem:[%s13584_s1 + $0x16a0] ss:$16 sps:$4 sm:$0xff]  }
 0x123   :  { %5663 = vmatpush2.bf16.msra.mxu0 %v9243_v40  ;;  %v9282_v40 = vld [vmem:[%s13584_s1 + $0x1320] ss:$16 sps:$4 sm:$0xff]  }
 0x124   :  { %5706 = vmatpush2.bf16.msra.mxu1 %v9246_v43  ;;  %5664 = vmatprep.subr.bf16.mxu0 %v9251_v49  ;;  %v9287_v43 = vld [vmem:[%s13584_s1 + $0x1104] ss:$16 sps:$4 sm:$0xff]  }
 0x125   :  { %5707 = vmatprep.subr.bf16.mxu1 %v9254_v50  ;;  %v9290_v49 = vld [vmem:[%s13584_s1 + $0x1304] ss:$16 sps:$4 sm:$0xff]   ;;  %v1275_v50 = vrot.slane %v1237_v37, %v10420_v54 }
 0x127   :  { %5665 = vmatpush2.bf16.msra.mxu0 %v9249_v51  ;;  %v9288_v51 = vld [vmem:[%s13584_s1 + $0x1300] ss:$16 sps:$4 sm:$0xff]  }
 0x128   :  { %5708 = vmatpush2.bf16.msra.mxu1 %v9252_v52  ;;  %5666 = vmatprep.subr.bf16.mxu0 %v9257_v19  ;;  %v9301_v52 = vld [vmem:[%s13584_s1 + $0x14e4] ss:$16 sps:$4 sm:$0xff]  }
 0x129   :  { %5709 = vmatprep.subr.bf16.mxu1 %v9260_v55  ;;  %v9304_v19 = vld [vmem:[%s13584_s1 + $0x16e4] ss:$16 sps:$4 sm:$0xff]   ;;  %v1268_v55 = vrot.slane %v1236_v2, %v10420_v54 }
 0x12a   :  { %v9322_v2 = vld [vmem:[%s13584_s1 + $0x1684] ss:$16 sps:$4 sm:$0xff]  }
 0x12b   :  { %5667 = vmatpush2.bf16.msra.mxu0 %v9255_v59  ;;  %v1296_v59 = vrot.slane %v1240_v3, %v10420_v54 }
 0x12c   :  { %5710 = vmatpush2.bf16.msra.mxu1 %v9258_v60  ;;  %5668 = vmatprep.subr.bf16.mxu0 %v9263_v61  ;;  %v11503_v60 = vcombine.low %v1247_v5, %v1275_v50  ;;  %v11505_v61 = vcombine.high %v1247_v5, %v1275_v50  ;;  %v9325_v5 = vld [vmem:[%s13584_s1 + $0x1464] ss:$16 sps:$4 sm:$0xff]  }
 0x12d   :  { %5711 = vmatprep.subr.bf16.mxu1 %v9266_v62  ;;  %v9299_v62 = vld [vmem:[%s13584_s1 + $0x14e0] ss:$16 sps:$4 sm:$0xff]   ;;  %v11531_v24 = vcombine.high %v1268_v55, %v1296_v59  ;;  %v9328_v50 = vld [vmem:[%s13584_s1 + $0x1664] ss:$16 sps:$4 sm:$0xff]  }
 0x12f   :  { %5669 = vmatpush2.bf16.msra.mxu0 %v9261_v63  ;;  %v9302_v63 = vld [vmem:[%s13584_s1 + $0x16e0] ss:$16 sps:$4 sm:$0xff]  }
 0x130   :  { %5712 = vmatpush2.bf16.msra.mxu1 %v9264_v0  ;;  %5670 = vmatprep.subr.bf16.mxu0 %v9269_v1  ;;  %v11513_v0 = vpop.f32.mrf.mxu0  ;;  %v11515_v1 = vpop.f32.mrf.mxu1 }
 0x131   :  { %5713 = vmatprep.subr.bf16.mxu1 %v9272_v7  ;;  %v9307_v7 = vld [vmem:[%s13584_s1 + $0x14c4] ss:$16 sps:$4 sm:$0xff]  }
 0x133   :  { %5671 = vmatpush2.bf16.msra.mxu0 %v9267_v8  ;;  %v9310_v8 = vld [vmem:[%s13584_s1 + $0x16c4] ss:$16 sps:$4 sm:$0xff]  }
 0x134   :  { %5714 = vmatpush2.bf16.msra.mxu1 %v9270_v9  ;;  %5672 = vmatprep.subr.bf16.mxu0 %v9275_v13  ;;  %v9305_v9 = vld [vmem:[%s13584_s1 + $0x14c0] ss:$16 sps:$4 sm:$0xff]  }
 0x135   :  { %5715 = vmatprep.subr.bf16.mxu1 %v9278_v14  ;;  %v9308_v13 = vld [vmem:[%s13584_s1 + $0x16c0] ss:$16 sps:$4 sm:$0xff]   ;;  %v11529_v14 = vcombine.low %v1268_v55, %v1296_v59  ;;  %v9334_v55 = vld [vmem:[%s13584_s1 + $0x1644] ss:$16 sps:$4 sm:$0xff]  }
 0x136   :  { %v9329_v59 = vld [vmem:[%s13584_s1 + $0x1440] ss:$16 sps:$4 sm:$0xff]  }
 0x137   :  { %5673 = vmatpush2.bf16.msra.mxu0 %v9273_v20 }
 0x138   :  { %5716 = vmatpush2.bf16.msra.mxu1 %v9276_v21  ;;  %5674 = vmatprep.subr.bf16.mxu0 %v9281_v27  ;;  %v9313_v27 = vld [vmem:[%s13584_s1 + $0x14a4] ss:$16 sps:$4 sm:$0xff]  }
 0x139   :  { %5717 = vmatprep.subr.bf16.mxu1 %v9284_v29  ;;  %v9316_v29 = vld [vmem:[%s13584_s1 + $0x16a4] ss:$16 sps:$4 sm:$0xff]  }
 0x13b   :  { %5675 = vmatpush2.bf16.msra.mxu0 %v9279_v35 }
 0x13c   :  { %5718 = vmatpush2.bf16.msra.mxu1 %v9282_v40  ;;  %5676 = vmatprep.subr.bf16.mxu0 %v9287_v43 }
 0x13d   :  { %5719 = vmatprep.subr.bf16.mxu1 %v9290_v49  ;;  %v9319_v49 = vld [vmem:[%s13584_s1 + $0x1484] ss:$16 sps:$4 sm:$0xff]  }
 0x13f   :  { %5677 = vmatpush2.bf16.msra.mxu0 %v9285_v4  ;;  %v9320_v4 = vld [vmem:[%s13584_s1 + $0x1680] ss:$16 sps:$4 sm:$0xff]  }
 0x140   :  { %5720 = vmatpush2.bf16.msra.mxu1 %v9288_v51  ;;  %5732 = vmatprep.subr.bf16.mxu0 %v9301_v52  ;;  %v9323_v51 = vld [vmem:[%s13584_s1 + $0x1460] ss:$16 sps:$4 sm:$0xff]  }
 0x141   :  { %5775 = vmatprep.subr.bf16.mxu1 %v9304_v19  ;;  %v9326_v52 = vld [vmem:[%s13584_s1 + $0x1660] ss:$16 sps:$4 sm:$0xff]   ;;  %v9331_v19 = vld [vmem:[%s13584_s1 + $0x1444] ss:$16 sps:$4 sm:$0xff]  }
 0x142   :  { %v5422_v25 = vpop.f32.mrf.mxu0  ;;  %5679 = vmatmul.mubr.bf16.vlgmr.msra.gmra.mxu0 %v11503_v60 }
 0x143   :  { %v5465_v26 = vpop.f32.mrf.mxu1  ;;  %5722 = vmatmul.mubr.bf16.vlgmr.msra.gmra.mxu1 %v11505_v61  ;;  %v5423_v30 = vadd.f32 %v5422_v25, %v11293_v58  ;;  %5733 = vmatpush1.bf16.msra.mxu0 %v9299_v62  ;;  %v9311_v58 = vld [vmem:[%s13584_s1 + $0x14a0] ss:$16 sps:$4 sm:$0xff]   ;;  %v9346_v25 = vld [vmem:[%s13584_s1 + $0x1604] ss:$16 sps:$4 sm:$0xff]  }
 0x144   :  { %5776 = vmatpush1.bf16.msra.mxu1 %v9302_v63  ;;  %v11536_v20 = vpop.f32.mrf.mxu0  ;;  %5734 = vmatprep.subr.bf16.mxu0 %v9307_v7  ;;  %v9332_v62 = vld [vmem:[%s13584_s1 + $0x1640] ss:$16 sps:$4 sm:$0xff]   ;;  %v9337_v63 = vld [vmem:[%s13584_s1 + $0x1424] ss:$16 sps:$4 sm:$0xff]  }
 0x145   :  { %v11538_v21 = vpop.f32.mrf.mxu1  ;;  %5777 = vmatprep.subr.bf16.mxu1 %v9310_v8  ;;  %v11546_v35 = vadd.f32 %v5465_v26, %v5423_v30  ;;  %5764 = vmatprep.mubr.bf16.mxu0 %v11529_v14  ;;  %v9340_v7 = vld [vmem:[%s13584_s1 + $0x1624] ss:$16 sps:$4 sm:$0xff]   ;;  %v9335_v8 = vld [vmem:[%s13584_s1 + $0x1420] ss:$16 sps:$4 sm:$0xff]  }
 0x146   :  { %5807 = vmatprep.mubr.bf16.mxu1 %v11531_v24  ;;  %v5426_v37 = vpop.f32.mrf.mxu0  ;;  %v9341_v26 = vld [vmem:[%s13584_s1 + $0x1400] ss:$16 sps:$4 sm:$0xff]  }
 0x147   :  { %v5427_v40 = vadd.f32 %v5426_v37, %v11309_v6  ;;  %5735 = vmatpush1.bf16.msra.mxu0 %v9305_v9  ;;  %v5469_v43 = vpop.f32.mrf.mxu1  ;;  %v9317_v6 = vld [vmem:[%s13584_s1 + $0x1480] ss:$16 sps:$4 sm:$0xff]   ;;  %v9355_v37 = vld [vmem:[%s13584_s1 + $0x15c4] ss:$16 sps:$4 sm:$0xff]  }
 0x148   :  { %5778 = vmatpush1.bf16.msra.mxu1 %v9308_v13  ;;  %5736 = vmatprep.subr.bf16.mxu0 %v9313_v27  ;;  %v9338_v9 = vld [vmem:[%s13584_s1 + $0x1620] ss:$16 sps:$4 sm:$0xff]   ;;  %v9343_v13 = vld [vmem:[%s13584_s1 + $0x1404] ss:$16 sps:$4 sm:$0xff]  }
 0x149   :  { %5779 = vmatprep.subr.bf16.mxu1 %v9316_v29  ;;  %v11563_v3 = vadd.f32 %v5469_v43, %v5427_v40  ;;  %v9344_v30 = vld [vmem:[%s13584_s1 + $0x1600] ss:$16 sps:$4 sm:$0xff]   ;;  %v9349_v27 = vld [vmem:[%s13584_s1 + $0x15e4] ss:$16 sps:$4 sm:$0xff]  }
 0x14a   :  { %v9352_v29 = vld [vmem:[%s13584_s1 + $0x17e4] ss:$16 sps:$4 sm:$0xff]   ;;  %v9353_v43 = vld [vmem:[%s13584_s1 + $0x15c0] ss:$16 sps:$4 sm:$0xff]  }
 0x14b   :  { %5737 = vmatpush1.bf16.msra.mxu0 %v9311_v58  ;;  %v9347_v58 = vld [vmem:[%s13584_s1 + $0x15e0] ss:$16 sps:$4 sm:$0xff]   ;;  %v9358_v40 = vld [vmem:[%s13584_s1 + $0x17c4] ss:$16 sps:$4 sm:$0xff]  }
 0x14c   :  { %5780 = vmatpush1.bf16.msra.mxu1 %v9314_v36  ;;  %5738 = vmatprep.subr.bf16.mxu0 %v9319_v49  ;;  %v9350_v36 = vld [vmem:[%s13584_s1 + $0x17e0] ss:$16 sps:$4 sm:$0xff]  }
 0x14d   :  { %5781 = vmatprep.subr.bf16.mxu1 %v9322_v2  ;;  %v9356_v49 = vld [vmem:[%s13584_s1 + $0x17c0] ss:$16 sps:$4 sm:$0xff]   ;;  %v9361_v2 = vld [vmem:[%s13584_s1 + $0x15a4] ss:$16 sps:$4 sm:$0xff]  }
 0x14f   :  { %5739 = vmatpush1.bf16.msra.mxu0 %v9317_v6  ;;  %v9364_v6 = vld [vmem:[%s13584_s1 + $0x17a4] ss:$16 sps:$4 sm:$0xff]  }
 0x150   :  { %5782 = vmatpush1.bf16.msra.mxu1 %v9320_v4  ;;  %5740 = vmatprep.subr.bf16.mxu0 %v9325_v5  ;;  %v9359_v4 = vld [vmem:[%s13584_s1 + $0x15a0] ss:$16 sps:$4 sm:$0xff]  }
 0x151   :  { %5783 = vmatprep.subr.bf16.mxu1 %v9328_v50  ;;  %v9362_v5 = vld [vmem:[%s13584_s1 + $0x17a0] ss:$16 sps:$4 sm:$0xff]   ;;  %v9367_v50 = vld [vmem:[%s13584_s1 + $0x1584] ss:$16 sps:$4 sm:$0xff]  }
 0x153   :  { %5741 = vmatpush1.bf16.msra.mxu0 %v9323_v51  ;;  %v9370_v51 = vld [vmem:[%s13584_s1 + $0x1784] ss:$16 sps:$4 sm:$0xff]  }
 0x154   :  { %5784 = vmatpush1.bf16.msra.mxu1 %v9326_v52  ;;  %5742 = vmatprep.subr.bf16.mxu0 %v9331_v19  ;;  %v9365_v52 = vld [vmem:[%s13584_s1 + $0x1580] ss:$16 sps:$4 sm:$0xff]  }
 0x155   :  { %5785 = vmatprep.subr.bf16.mxu1 %v9334_v55  ;;  %v9368_v19 = vld [vmem:[%s13584_s1 + $0x1780] ss:$16 sps:$4 sm:$0xff]   ;;  %v9373_v55 = vld [vmem:[%s13584_s1 + $0x1564] ss:$16 sps:$4 sm:$0xff]  }
 0x157   :  { %5743 = vmatpush1.bf16.msra.mxu0 %v9329_v59  ;;  %v9376_v59 = vld [vmem:[%s13584_s1 + $0x1764] ss:$16 sps:$4 sm:$0xff]  }
 0x158   :  { %5786 = vmatpush1.bf16.msra.mxu1 %v9332_v62  ;;  %5744 = vmatprep.subr.bf16.mxu0 %v9337_v63  ;;  %v9371_v62 = vld [vmem:[%s13584_s1 + $0x1560] ss:$16 sps:$4 sm:$0xff]  }
 0x159   :  { %5787 = vmatprep.subr.bf16.mxu1 %v9340_v7  ;;  %v9374_v63 = vld [vmem:[%s13584_s1 + $0x1760] ss:$16 sps:$4 sm:$0xff]   ;;  %v9379_v7 = vld [vmem:[%s13584_s1 + $0x1544] ss:$16 sps:$4 sm:$0xff]  }
 0x15b   :  { %5745 = vmatpush1.bf16.msra.mxu0 %v9335_v8  ;;  %v9382_v8 = vld [vmem:[%s13584_s1 + $0x1744] ss:$16 sps:$4 sm:$0xff]  }
 0x15c   :  { %5788 = vmatpush1.bf16.msra.mxu1 %v9338_v9  ;;  %5746 = vmatprep.subr.bf16.mxu0 %v9343_v13  ;;  %v9377_v9 = vld [vmem:[%s13584_s1 + $0x1540] ss:$16 sps:$4 sm:$0xff]  }
 0x15d   :  { %5789 = vmatprep.subr.bf16.mxu1 %v9346_v25  ;;  %v9380_v13 = vld [vmem:[%s13584_s1 + $0x1740] ss:$16 sps:$4 sm:$0xff]   ;;  %v9385_v25 = vld [vmem:[%s13584_s1 + $0x1524] ss:$16 sps:$4 sm:$0xff]  }
 0x15f   :  { %5747 = vmatpush1.bf16.msra.mxu0 %v9341_v26  ;;  %v9388_v26 = vld [vmem:[%s13584_s1 + $0x1724] ss:$16 sps:$4 sm:$0xff]  }
 0x160   :  { %5790 = vmatpush1.bf16.msra.mxu1 %v9344_v30  ;;  %5748 = vmatprep.subr.bf16.mxu0 %v9349_v27  ;;  %v1235_v30 = vcombine.low %v11456_v31, %v11459_v34  ;;  %v1239_v27 = vcombine.low %v11462_v10, %v11465_v15  ;;  %v9394_v31 = vld [vmem:[%s13584_s1 + $0x1704] ss:$16 sps:$4 sm:$0xff]   ;;  %v9389_v34 = vld [vmem:[%s13584_s1 + $0x1500] ss:$16 sps:$4 sm:$0xff]  }
 0x161   :  { %5791 = vmatprep.subr.bf16.mxu1 %v9352_v29  ;;  %v9383_v29 = vld [vmem:[%s13584_s1 + $0x1520] ss:$16 sps:$4 sm:$0xff]  }
 0x162   :  { %v9392_v10 = vld [vmem:[%s13584_s1 + $0x1700] ss:$16 sps:$4 sm:$0xff]   ;;  %v1254_v15 = vrot.slane %v1235_v30, %v10420_v54 }
 0x163   :  { %5749 = vmatpush2.bf16.msra.mxu0 %v9347_v58  ;;  %v9386_v58 = vld [vmem:[%s13584_s1 + $0x1720] ss:$16 sps:$4 sm:$0xff]  }
 0x164   :  { %5792 = vmatpush2.bf16.msra.mxu1 %v9350_v36  ;;  %5750 = vmatprep.subr.bf16.mxu0 %v9355_v37  ;;  %v9391_v36 = vld [vmem:[%s13584_s1 + $0x1504] ss:$16 sps:$4 sm:$0xff]   ;;  %v1282_v37 = vrot.slane %v1239_v27, %v10420_v54 }
 0x165   :  { %5793 = vmatprep.subr.bf16.mxu1 %v9358_v40  ;;  %v9401_v40 = vld [vmem:[%s13584_s1 + $0x1864] ss:$16 sps:$4 sm:$0xff]  }
 0x167   :  { %5751 = vmatpush2.bf16.msra.mxu0 %v9353_v43  ;;  %v9423_v43 = vld [vmem:[%s13583_s0 + $0x18] ss:$25 sps:$4 sm:$0x11]  }
 0x168   :  { %5794 = vmatpush2.bf16.msra.mxu1 %v9356_v49  ;;  %5752 = vmatprep.subr.bf16.mxu0 %v9361_v2  ;;  %v9404_v49 = vld [vmem:[%s13584_s1 + $0xec] ss:$16 sps:$4 sm:$0xff]   ;;  %v9424_v2 = vld [vmem:[%s13583_s0 + $0x4a] ss:$25 sps:$4 sm:$0x11]  }
 0x169   :  { %5795 = vmatprep.subr.bf16.mxu1 %v9364_v6  ;;  %v9425_v6 = vld [vmem:[%s13583_s0 + $0x7c] ss:$25 sps:$4 sm:$0x11]  }
 0x16b   :  { %5753 = vmatpush2.bf16.msra.mxu0 %v9359_v4  ;;  %v9426_v4 = vld [vmem:[%s13583_s0 + $0xae] ss:$25 sps:$4 sm:$0x11]  }
 0x16c   :  { %5796 = vmatpush2.bf16.msra.mxu1 %v9362_v5  ;;  %5754 = vmatprep.subr.bf16.mxu0 %v9367_v50  ;;  %v9399_v5 = vld [vmem:[%s13584_s1 + $0x1860] ss:$16 sps:$4 sm:$0xff]   ;;  %v9402_v50 = vld [vmem:[%s13584_s1 + $0xe8] ss:$16 sps:$4 sm:$0xff]   ;;  %v1336_v30 = vrot.slane %v9426_v4, %v10420_v54  ;;  %v9422_v4 = vld [vmem:[%s13584_s1 + $0x8c] ss:$16 sps:$4 sm:$0xff]  }
 0x16d   :  { %5797 = vmatprep.subr.bf16.mxu1 %v9370_v51  ;;  %v11745_v51 = vcombine.low %v1254_v15, %v1282_v37 }
 0x16f   :  { %5755 = vmatpush2.bf16.msra.mxu0 %v9365_v52  ;;  %v11747_v52 = vcombine.high %v1254_v15, %v1282_v37  ;;  %v10229_v15 = vmov 0  }
 0x170   :  { %5798 = vmatpush2.bf16.msra.mxu1 %v9368_v19  ;;  %5756 = vmatprep.subr.bf16.mxu0 %v9373_v55  ;;  %v11749_v19 = vpop.f32.mrf.mxu0  ;;  %v11751_v55 = vpop.f32.mrf.mxu1 }
 0x171   :  { %5799 = vmatprep.subr.bf16.mxu1 %v9376_v59  ;;  %v9407_v59 = vld [vmem:[%s13584_s1 + $0x1844] ss:$16 sps:$4 sm:$0xff]  }
 0x173   :  { %5757 = vmatpush2.bf16.msra.mxu0 %v9371_v62  ;;  %v9410_v62 = vld [vmem:[%s13584_s1 + $0xcc] ss:$16 sps:$4 sm:$0xff]  }
 0x174   :  { %5800 = vmatpush2.bf16.msra.mxu1 %v9374_v63  ;;  %5758 = vmatprep.subr.bf16.mxu0 %v9379_v7  ;;  %v9405_v63 = vld [vmem:[%s13584_s1 + $0x1840] ss:$16 sps:$4 sm:$0xff]   ;;  %v9408_v7 = vld [vmem:[%s13584_s1 + $0xc8] ss:$16 sps:$4 sm:$0xff]  }
 0x175   :  { %5801 = vmatprep.subr.bf16.mxu1 %v9382_v8  ;;  %v1315_v8 = vrot.slane %v9423_v43, %v10420_v54 }
 0x177   :  { %5759 = vmatpush2.bf16.msra.mxu0 %v9377_v9 }
 0x178   :  { %5802 = vmatpush2.bf16.msra.mxu1 %v9380_v13  ;;  %5760 = vmatprep.subr.bf16.mxu0 %v9385_v25  ;;  %v1322_v25 = vrot.slane %v9424_v2, %v10420_v54 }
 0x179   :  { %5803 = vmatprep.subr.bf16.mxu1 %v9388_v26  ;;  %v1329_v26 = vrot.slane %v9425_v6, %v10420_v54  ;;  %v9419_v6 = vld [vmem:[%s13584_s1 + $0x1804] ss:$16 sps:$4 sm:$0xff]  }
 0x17b   :  { %5761 = vmatpush2.bf16.msra.mxu0 %v9383_v29  ;;  %v1338_v43 = vcombine.low %v1329_v26, %v1336_v30  ;;  %v9436_v26 = vld [vmem:[%s13584_s1 + $0x2c8] ss:$16 sps:$4 sm:$0xff]   ;;  %v9441_v30 = vld [vmem:[%s13584_s1 + $0x2c] ss:$16 sps:$4 sm:$0xff]  }
 0x17c   :  { %5804 = vmatpush2.bf16.msra.mxu1 %v9386_v58  ;;  %5762 = vmatprep.subr.bf16.mxu0 %v9391_v36  ;;  %v9413_v36 = vld [vmem:[%s13584_s1 + $0x1824] ss:$16 sps:$4 sm:$0xff]  }
 0x17d   :  { %5805 = vmatprep.subr.bf16.mxu1 %v9394_v31  ;;  %v9416_v31 = vld [vmem:[%s13584_s1 + $0xac] ss:$16 sps:$4 sm:$0xff]  }
 0x17f   :  { %5763 = vmatpush2.bf16.msra.mxu0 %v9389_v34 }
 0x180   :  { %5806 = vmatpush2.bf16.msra.mxu1 %v9392_v10  ;;  %5826 = vmatprep.subr.bf16.mxu0 %v9401_v40  ;;  %v9414_v10 = vld [vmem:[%s13584_s1 + $0xa8] ss:$16 sps:$4 sm:$0xff]   ;;  %v1337_v40 = vcombine.low %v1315_v8, %v1322_v25 }
 0x181   :  { %5861 = vmatprep.subr.bf16.mxu1 %v9404_v49  ;;  %v9433_v25 = vld [vmem:[%s13584_s1 + $0x48] ss:$16 sps:$4 sm:$0xff]  }
 0x182   :  { %v5508_v9 = vpop.f32.mrf.mxu0  ;;  %5765 = vmatmul.mubr.bf16.vlgmr.msra.gmra.mxu0 %v11745_v51 }
 0x183   :  { %v5551_v13 = vpop.f32.mrf.mxu1  ;;  %5808 = vmatmul.mubr.bf16.vlgmr.msra.gmra.mxu1 %v11747_v52  ;;  %v5509_v27 = vadd.f32 %v5508_v9, %v11546_v35  ;;  %5827 = vmatpush1.bf16.msra.mxu0 %v9399_v5  ;;  %v9411_v35 = vld [vmem:[%s13584_s1 + $0x1820] ss:$16 sps:$4 sm:$0xff]   ;;  %v9435_v9 = vld [vmem:[%s13584_s1 + $0x4c] ss:$16 sps:$4 sm:$0xff]  }
 0x184   :  { %5862 = vmatpush1.bf16.msra.mxu1 %v9402_v50  ;;  %v11772_v29 = vpop.f32.mrf.mxu0  ;;  %5828 = vmatprep.subr.bf16.mxu0 %v9407_v59  ;;  %v1352_v50 = vrot.slane %v1338_v43, %v10420_v54  ;;  %v9420_v59 = vld [vmem:[%s13584_s1 + $0x88] ss:$16 sps:$4 sm:$0xff]   ;;  %v9456_v43 = vld [vmem:[%s13584_s1 + $0x26c] ss:$16 sps:$4 sm:$0xff]  }
 0x185   :  { %v11774_v58 = vpop.f32.mrf.mxu1  ;;  %5863 = vmatprep.subr.bf16.mxu1 %v9410_v62  ;;  %v11782_v34 = vadd.f32 %v5551_v13, %v5509_v27  ;;  %5850 = vmatprep.mubr.bf16.mxu0 %v10229_v15  ;;  %v9429_v62 = vld [vmem:[%s13584_s1 + $0x6c] ss:$16 sps:$4 sm:$0xff]  }
 0x186   :  { %5893 = vmatprep.mubr.bf16.mxu1 %v10497_v22  ;;  %v5512_v37 = vpop.f32.mrf.mxu0  ;;  %v1345_v22 = vrot.slane %v1337_v40, %v10420_v54  ;;  %v9432_v54 = vld [vmem:[%s13584_s1 + $0x2ec] ss:$16 sps:$4 sm:$0xff]  }
 0x187   :  { %v5513_v49 = vadd.f32 %v5512_v37, %v11563_v3  ;;  %5829 = vmatpush1.bf16.msra.mxu0 %v9405_v63  ;;  %v5555_v2 = vpop.f32.mrf.mxu1  ;;  %v9417_v3 = vld [vmem:[%s13584_s1 + $0x1800] ss:$16 sps:$4 sm:$0xff]   ;;  %v9427_v63 = vld [vmem:[%s13584_s1 + $0x68] ss:$16 sps:$4 sm:$0xff]   ;;  %v9438_v13 = vld [vmem:[%s13584_s1 + $0x2cc] ss:$16 sps:$4 sm:$0xff]  }
 0x188   :  { %5864 = vmatpush1.bf16.msra.mxu1 %v9408_v7  ;;  %5830 = vmatprep.subr.bf16.mxu0 %v9413_v36  ;;  %v9430_v7 = vld [vmem:[%s13584_s1 + $0x2e8] ss:$16 sps:$4 sm:$0xff]   ;;  %v11821_v8 = vcombine.low %v1345_v22, %v1352_v50  ;;  %v9444_v27 = vld [vmem:[%s13584_s1 + $0x2ac] ss:$16 sps:$4 sm:$0xff]  }
 0x189   :  { %5865 = vmatprep.subr.bf16.mxu1 %v9416_v31  ;;  %v11799_v5 = vadd.f32 %v5555_v2, %v5513_v49  ;;  %v9439_v36 = vld [vmem:[%s13584_s1 + $0x28] ss:$16 sps:$4 sm:$0xff]   ;;  %v9453_v40 = vld [vmem:[%s13584_s1 + $0x1ec] ss:$16 sps:$4 sm:$0xff]  }
 0x18a   :  { %v9442_v31 = vld [vmem:[%s13584_s1 + $0x2a8] ss:$16 sps:$4 sm:$0xff]  }
 0x18b   :  { %5831 = vmatpush1.bf16.msra.mxu0 %v9411_v35  ;;  %v9447_v35 = vld [vmem:[%s13584_s1 + $0xc] ss:$16 sps:$4 sm:$0xff]   ;;  %v9448_v37 = vld [vmem:[%s13584_s1 + $0x288] ss:$16 sps:$4 sm:$0xff]  }
 0x18c   :  { %5866 = vmatpush1.bf16.msra.mxu1 %v9414_v10  ;;  %5832 = vmatprep.subr.bf16.mxu0 %v9419_v6  ;;  %v9445_v10 = vld [vmem:[%s13584_s1 + $0x8] ss:$16 sps:$4 sm:$0xff]   ;;  %v9459_v6 = vld [vmem:[%s13584_s1 + $0x1cc] ss:$16 sps:$4 sm:$0xff]  }
 0x18d   :  { %5867 = vmatprep.subr.bf16.mxu1 %v9422_v4  ;;  %v9451_v49 = vld [vmem:[%s13584_s1 + $0x1e8] ss:$16 sps:$4 sm:$0xff]   ;;  %v9462_v4 = vld [vmem:[%s13584_s1 + $0x24c] ss:$16 sps:$4 sm:$0xff]  }
 0x18e   :  { %v9454_v2 = vld [vmem:[%s13584_s1 + $0x268] ss:$16 sps:$4 sm:$0xff]  }
 0x18f   :  { %5833 = vmatpush1.bf16.msra.mxu0 %v9417_v3  ;;  %v9457_v22 = vld [vmem:[%s13584_s1 + $0x1c8] ss:$16 sps:$4 sm:$0xff]   ;;  %v9465_v3 = vld [vmem:[%s13584_s1 + $0x1ac] ss:$16 sps:$4 sm:$0xff]  }
 0x190   :  { %5868 = vmatpush1.bf16.msra.mxu1 %v9420_v59  ;;  %5904 = vmatprep.subr.bf16.mxu0 %v9432_v54  ;;  %v9460_v50 = vld [vmem:[%s13584_s1 + $0x248] ss:$16 sps:$4 sm:$0xff]   ;;  %v9468_v59 = vld [vmem:[%s13584_s1 + $0x22c] ss:$16 sps:$4 sm:$0xff]  }
 0x191   :  { %5869 = vmatprep.subr.bf16.mxu1 %v9429_v62  ;;  %v9463_v62 = vld [vmem:[%s13584_s1 + $0x1a8] ss:$16 sps:$4 sm:$0xff]  }
 0x192   :  { %8578 = vmatmul.mubr.msk.bf16.vlgmr.msra.gmra.mxu0 %vm5298_vm0, %v11821_v8  ;;  %v9466_v54 = vld [vmem:[%s13584_s1 + $0x228] ss:$16 sps:$4 sm:$0xff]  }
 0x193   :  { %5905 = vmatpush1.bf16.msra.mxu0 %v9430_v7  ;;  %5936 = vmatprep.mubr.bf16.mxu0 %v10499_v23  ;;  %v9450_v23 = vld [vmem:[%s13584_s1 + $0x28c] ss:$16 sps:$4 sm:$0xff]  }
 0x194   :  { %5870 = vmatpush1.bf16.msra.mxu1 %v9427_v63  ;;  %5906 = vmatprep.subr.bf16.mxu0 %v9438_v13  ;;  %v9471_v63 = vld [vmem:[%s13584_s1 + $0x18c] ss:$16 sps:$4 sm:$0xff]   ;;  %v9472_v13 = vld [vmem:[%s13584_s1 + $0x208] ss:$16 sps:$4 sm:$0xff]  }
 0x195   :  { %5871 = vmatprep.subr.bf16.mxu1 %v9435_v9  ;;  %v9474_v7 = vld [vmem:[%s13584_s1 + $0x20c] ss:$16 sps:$4 sm:$0xff]   ;;  %v9469_v9 = vld [vmem:[%s13584_s1 + $0x188] ss:$16 sps:$4 sm:$0xff]  }
 0x197   :  { %5907 = vmatpush1.bf16.msra.mxu0 %v9436_v26  ;;  %v9480_v26 = vld [vmem:[%s13584_s1 + $0x3ec] ss:$16 sps:$4 sm:$0xff]  }
 0x198   :  { %5872 = vmatpush1.bf16.msra.mxu1 %v9433_v25  ;;  %5908 = vmatprep.subr.bf16.mxu0 %v9444_v27  ;;  %v9477_v25 = vld [vmem:[%s13584_s1 + $0x16c] ss:$16 sps:$4 sm:$0xff]   ;;  %v9478_v27 = vld [vmem:[%s13584_s1 + $0x3e8] ss:$16 sps:$4 sm:$0xff]  }
 0x199   :  { %5873 = vmatprep.subr.bf16.mxu1 %v9441_v30  ;;  %v9475_v30 = vld [vmem:[%s13584_s1 + $0x168] ss:$16 sps:$4 sm:$0xff]  }
 0x19b   :  { %5909 = vmatpush1.bf16.msra.mxu0 %v9442_v31  ;;  %v9486_v31 = vld [vmem:[%s13584_s1 + $0x3cc] ss:$16 sps:$4 sm:$0xff]  }
 0x19c   :  { %5874 = vmatpush1.bf16.msra.mxu1 %v9439_v36  ;;  %5910 = vmatprep.subr.bf16.mxu0 %v9450_v23  ;;  %v9483_v36 = vld [vmem:[%s13584_s1 + $0x14c] ss:$16 sps:$4 sm:$0xff]   ;;  %v9484_v23 = vld [vmem:[%s13584_s1 + $0x3c8] ss:$16 sps:$4 sm:$0xff]  }
 0x19d   :  { %5875 = vmatprep.subr.bf16.mxu1 %v9447_v35  ;;  %v9481_v35 = vld [vmem:[%s13584_s1 + $0x148] ss:$16 sps:$4 sm:$0xff]  }
 0x19f   :  { %5911 = vmatpush1.bf16.msra.mxu0 %v9448_v37  ;;  %v9492_v37 = vld [vmem:[%s13584_s1 + $0x3ac] ss:$16 sps:$4 sm:$0xff]  }
 0x1a0   :  { %5876 = vmatpush1.bf16.msra.mxu1 %v9445_v10  ;;  %5912 = vmatprep.subr.bf16.mxu0 %v9456_v43  ;;  %v9489_v10 = vld [vmem:[%s13584_s1 + $0x12c] ss:$16 sps:$4 sm:$0xff]   ;;  %v9490_v43 = vld [vmem:[%s13584_s1 + $0x3a8] ss:$16 sps:$4 sm:$0xff]  }
 0x1a1   :  { %5877 = vmatprep.subr.bf16.mxu1 %v9453_v40  ;;  %v9487_v40 = vld [vmem:[%s13584_s1 + $0x128] ss:$16 sps:$4 sm:$0xff]  }
 0x1a3   :  { %5913 = vmatpush1.bf16.msra.mxu0 %v9454_v2  ;;  %v9498_v2 = vld [vmem:[%s13584_s1 + $0x38c] ss:$16 sps:$4 sm:$0xff]  }
 0x1a4   :  { %5878 = vmatpush2.bf16.msra.mxu1 %v9451_v49  ;;  %5914 = vmatprep.subr.bf16.mxu0 %v9462_v4  ;;  %v9495_v49 = vld [vmem:[%s13584_s1 + $0x10c] ss:$16 sps:$4 sm:$0xff]   ;;  %v9496_v4 = vld [vmem:[%s13584_s1 + $0x388] ss:$16 sps:$4 sm:$0xff]  }
 0x1a5   :  { %5879 = vmatprep.subr.bf16.mxu1 %v9459_v6  ;;  %v9493_v6 = vld [vmem:[%s13584_s1 + $0x108] ss:$16 sps:$4 sm:$0xff]  }
 0x1a7   :  { %5915 = vmatpush1.bf16.msra.mxu0 %v9460_v50  ;;  %v9504_v50 = vld [vmem:[%s13584_s1 + $0x4ec] ss:$16 sps:$4 sm:$0xff]  }
 0x1a8   :  { %5880 = vmatpush2.bf16.msra.mxu1 %v9457_v22  ;;  %5916 = vmatprep.subr.bf16.mxu0 %v9468_v59  ;;  %v9501_v22 = vld [vmem:[%s13584_s1 + $0x36c] ss:$16 sps:$4 sm:$0xff]   ;;  %v9502_v59 = vld [vmem:[%s13584_s1 + $0x4e8] ss:$16 sps:$4 sm:$0xff]  }
 0x1a9   :  { %5881 = vmatprep.subr.bf16.mxu1 %v9465_v3  ;;  %v9499_v3 = vld [vmem:[%s13584_s1 + $0x368] ss:$16 sps:$4 sm:$0xff]  }
 0x1ab   :  { %5917 = vmatpush1.bf16.msra.mxu0 %v9466_v54  ;;  %v11972_v54 = vpop.f32.mrf.mxu1 }
 0x1ac   :  { %5882 = vmatpush2.bf16.msra.mxu1 %v9463_v62  ;;  %5918 = vmatprep.subr.bf16.mxu0 %v9474_v7  ;;  %v11970_v62 = vpop.f32.mrf.mxu0  ;;  %v9510_v7 = vld [vmem:[%s13584_s1 + $0x4cc] ss:$16 sps:$4 sm:$0xff]  }
 0x1ad   :  { %5883 = vmatprep.subr.bf16.mxu1 %v9471_v63  ;;  %v9507_v63 = vld [vmem:[%s13584_s1 + $0x34c] ss:$16 sps:$4 sm:$0xff]  }
 0x1af   :  { %5919 = vmatpush1.bf16.msra.mxu0 %v9472_v13  ;;  %v9508_v13 = vld [vmem:[%s13584_s1 + $0x4c8] ss:$16 sps:$4 sm:$0xff]  }
 0x1b0   :  { %5884 = vmatpush2.bf16.msra.mxu1 %v9469_v9  ;;  %5920 = vmatprep.subr.bf16.mxu0 %v9480_v26  ;;  %v9505_v9 = vld [vmem:[%s13584_s1 + $0x348] ss:$16 sps:$4 sm:$0xff]  }
 0x1b1   :  { %5885 = vmatprep.subr.bf16.mxu1 %v9477_v25 }
 0x1b3   :  { %5921 = vmatpush2.bf16.msra.mxu0 %v9478_v27 }
 0x1b4   :  { %5886 = vmatpush2.bf16.msra.mxu1 %v9475_v30  ;;  %5922 = vmatprep.subr.bf16.mxu0 %v9486_v31  ;;  %v9513_v31 = vld [vmem:[%s13584_s1 + $0x32c] ss:$16 sps:$4 sm:$0xff]  }
 0x1b5   :  { %5887 = vmatprep.subr.bf16.mxu1 %v9483_v36 }
 0x1b7   :  { %5923 = vmatpush2.bf16.msra.mxu0 %v9484_v23 }
 0x1b8   :  { %5888 = vmatpush2.bf16.msra.mxu1 %v9481_v35  ;;  %5924 = vmatprep.subr.bf16.mxu0 %v9492_v37  ;;  %v9516_v35 = vld [vmem:[%s13584_s1 + $0x4ac] ss:$16 sps:$4 sm:$0xff]  }
 0x1b9   :  { %5889 = vmatprep.subr.bf16.mxu1 %v9489_v10 }
 0x1bb   :  { %5925 = vmatpush2.bf16.msra.mxu0 %v9490_v43  ;;  %v9519_v43 = vld [vmem:[%s13584_s1 + $0x30c] ss:$16 sps:$4 sm:$0xff]  }
 0x1bc   :  { %5890 = vmatpush2.bf16.msra.mxu1 %v9487_v40  ;;  %5926 = vmatprep.subr.bf16.mxu0 %v9498_v2 }
 0x1bd   :  { %5891 = vmatprep.subr.bf16.mxu1 %v9495_v49  ;;  %v9522_v49 = vld [vmem:[%s13584_s1 + $0x48c] ss:$16 sps:$4 sm:$0xff]  }
 0x1bf   :  { %5927 = vmatpush2.bf16.msra.mxu0 %v9496_v4  ;;  %v9528_v4 = vld [vmem:[%s13584_s1 + $0x6ec] ss:$16 sps:$4 sm:$0xff]  }
 0x1c0   :  { %5892 = vmatpush2.bf16.msra.mxu1 %v9493_v6  ;;  %5928 = vmatprep.subr.bf16.mxu0 %v9501_v22  ;;  %v9525_v6 = vld [vmem:[%s13584_s1 + $0x46c] ss:$16 sps:$4 sm:$0xff]   ;;  %v9523_v22 = vld [vmem:[%s13584_s1 + $0x468] ss:$16 sps:$4 sm:$0xff]  }
 0x1c1   :  { %5947 = vmatprep.subr.bf16.mxu1 %v9504_v50  ;;  %v9526_v50 = vld [vmem:[%s13584_s1 + $0x6e8] ss:$16 sps:$4 sm:$0xff]  }
 0x1c2   :  { %v5594_v25 = vpop.f32.mrf.mxu0 }
 0x1c3   :  { %v5637_v26 = vpop.f32.mrf.mxu1  ;;  %5894 = vmatmul.mubr.bf16.vlgmr.msra.gmra.mxu1 %v10529_v38  ;;  %v5595_v30 = vadd.f32 %v5594_v25, %v11782_v34  ;;  %5929 = vmatpush2.bf16.msra.mxu0 %v9499_v3  ;;  %v9511_v38 = vld [vmem:[%s13584_s1 + $0x328] ss:$16 sps:$4 sm:$0xff]   ;;  %v9531_v3 = vld [vmem:[%s13584_s1 + $0x44c] ss:$16 sps:$4 sm:$0xff]  }
 0x1c4   :  { %5948 = vmatpush1.bf16.msra.mxu1 %v9502_v59  ;;  %v11988_v27 = vpop.f32.mrf.mxu0  ;;  %5930 = vmatprep.subr.bf16.mxu0 %v9507_v63  ;;  %v9514_v34 = vld [vmem:[%s13584_s1 + $0x4a8] ss:$16 sps:$4 sm:$0xff]   ;;  %v9534_v59 = vld [vmem:[%s13584_s1 + $0x6cc] ss:$16 sps:$4 sm:$0xff]  }
 0x1c5   :  { %v11990_v36 = vpop.f32.mrf.mxu1  ;;  %5949 = vmatprep.subr.bf16.mxu1 %v9510_v7  ;;  %v11998_v23 = vadd.f32 %v5637_v26, %v5595_v30  ;;  %5979 = vmatprep.mubr.bf16.mxu1 %v10545_v44  ;;  %v9517_v44 = vld [vmem:[%s13584_s1 + $0x308] ss:$16 sps:$4 sm:$0xff]   ;;  %v9543_v26 = vld [vmem:[%s13584_s1 + $0x40c] ss:$16 sps:$4 sm:$0xff]  }
 0x1c6   :  { %v5598_v10 = vpop.f32.mrf.mxu0  ;;  %v9529_v63 = vld [vmem:[%s13584_s1 + $0x448] ss:$16 sps:$4 sm:$0xff]   ;;  %v9546_v30 = vld [vmem:[%s13584_s1 + $0x68c] ss:$16 sps:$4 sm:$0xff]  }
 0x1c7   :  { %v5599_v37 = vadd.f32 %v5598_v10, %v11799_v5  ;;  %5931 = vmatpush2.bf16.msra.mxu0 %v9505_v9  ;;  %v5641_v40 = vpop.f32.mrf.mxu1  ;;  %v9520_v5 = vld [vmem:[%s13584_s1 + $0x488] ss:$16 sps:$4 sm:$0xff]   ;;  %v9537_v9 = vld [vmem:[%s13584_s1 + $0x42c] ss:$16 sps:$4 sm:$0xff]  }
 0x1c8   :  { %5950 = vmatpush1.bf16.msra.mxu1 %v9508_v13  ;;  %5932 = vmatprep.subr.bf16.mxu0 %v9513_v31  ;;  %v9532_v7 = vld [vmem:[%s13584_s1 + $0x6c8] ss:$16 sps:$4 sm:$0xff]   ;;  %v9540_v13 = vld [vmem:[%s13584_s1 + $0x6ac] ss:$16 sps:$4 sm:$0xff]  }
 0x1c9   :  { %5951 = vmatprep.subr.bf16.mxu1 %v9516_v35  ;;  %v12014_v2 = vadd.f32 %v5641_v40, %v5599_v37  ;;  %v9535_v25 = vld [vmem:[%s13584_s1 + $0x428] ss:$16 sps:$4 sm:$0xff]   ;;  %v9549_v35 = vld [vmem:[%s13584_s1 + $0x5ec] ss:$16 sps:$4 sm:$0xff]  }
 0x1ca   :  { %v9541_v31 = vld [vmem:[%s13584_s1 + $0x408] ss:$16 sps:$4 sm:$0xff]   ;;  %v9555_v37 = vld [vmem:[%s13584_s1 + $0x5cc] ss:$16 sps:$4 sm:$0xff]  }
 0x1cb   :  { %5933 = vmatpush2.bf16.msra.mxu0 %v9511_v38  ;;  %v9552_v38 = vld [vmem:[%s13584_s1 + $0x66c] ss:$16 sps:$4 sm:$0xff]   ;;  %v9550_v10 = vld [vmem:[%s13584_s1 + $0x668] ss:$16 sps:$4 sm:$0xff]  }
 0x1cc   :  { %5952 = vmatpush1.bf16.msra.mxu1 %v9514_v34  ;;  %5934 = vmatprep.subr.bf16.mxu0 %v9519_v43  ;;  %v9547_v34 = vld [vmem:[%s13584_s1 + $0x5e8] ss:$16 sps:$4 sm:$0xff]   ;;  %v9558_v40 = vld [vmem:[%s13584_s1 + $0x64c] ss:$16 sps:$4 sm:$0xff]  }
 0x1cd   :  { %5953 = vmatprep.subr.bf16.mxu1 %v9522_v49  ;;  %v9553_v43 = vld [vmem:[%s13584_s1 + $0x5c8] ss:$16 sps:$4 sm:$0xff]  }
 0x1ce   :  { %v9556_v49 = vld [vmem:[%s13584_s1 + $0x648] ss:$16 sps:$4 sm:$0xff]  }
 0x1cf   :  { %5935 = vmatpush2.bf16.msra.mxu0 %v9517_v44  ;;  %v9561_v44 = vld [vmem:[%s13584_s1 + $0x5ac] ss:$16 sps:$4 sm:$0xff]  }
 0x1d0   :  { %5954 = vmatpush1.bf16.msra.mxu1 %v9520_v5  ;;  %5990 = vmatprep.subr.bf16.mxu0 %v9528_v4  ;;  %v9564_v5 = vld [vmem:[%s13584_s1 + $0x62c] ss:$16 sps:$4 sm:$0xff]   ;;  %v9562_v4 = vld [vmem:[%s13584_s1 + $0x628] ss:$16 sps:$4 sm:$0xff]  }
 0x1d1   :  { %5955 = vmatprep.subr.bf16.mxu1 %v9525_v6  ;;  %v9559_v6 = vld [vmem:[%s13584_s1 + $0x5a8] ss:$16 sps:$4 sm:$0xff]  }
 0x1d2   :  { %5937 = vmatmul.mubr.bf16.vlgmr.msra.gmra.mxu0 %v10531_v39  ;;  %v9538_v39 = vld [vmem:[%s13584_s1 + $0x6a8] ss:$16 sps:$4 sm:$0xff]  }
 0x1d3   :  { %5991 = vmatpush1.bf16.msra.mxu0 %v9526_v50  ;;  %6022 = vmatprep.mubr.bf16.mxu0 %v10547_v45  ;;  %v9544_v45 = vld [vmem:[%s13584_s1 + $0x688] ss:$16 sps:$4 sm:$0xff]   ;;  %v9570_v50 = vld [vmem:[%s13584_s1 + $0x60c] ss:$16 sps:$4 sm:$0xff]  }
 0x1d4   :  { %5956 = vmatpush1.bf16.msra.mxu1 %v9523_v22  ;;  %5992 = vmatprep.subr.bf16.mxu0 %v9534_v59  ;;  %v9567_v22 = vld [vmem:[%s13584_s1 + $0x58c] ss:$16 sps:$4 sm:$0xff]   ;;  %v9568_v59 = vld [vmem:[%s13584_s1 + $0x608] ss:$16 sps:$4 sm:$0xff]  }
 0x1d5   :  { %5957 = vmatprep.subr.bf16.mxu1 %v9531_v3  ;;  %v9565_v3 = vld [vmem:[%s13584_s1 + $0x588] ss:$16 sps:$4 sm:$0xff]  }
 0x1d7   :  { %5993 = vmatpush1.bf16.msra.mxu0 %v9532_v7  ;;  %v9576_v7 = vld [vmem:[%s13584_s1 + $0x7ec] ss:$16 sps:$4 sm:$0xff]  }
 0x1d8   :  { %5958 = vmatpush1.bf16.msra.mxu1 %v9529_v63  ;;  %5994 = vmatprep.subr.bf16.mxu0 %v9540_v13  ;;  %v9573_v63 = vld [vmem:[%s13584_s1 + $0x56c] ss:$16 sps:$4 sm:$0xff]   ;;  %v9574_v13 = vld [vmem:[%s13584_s1 + $0x7e8] ss:$16 sps:$4 sm:$0xff]  }
 0x1d9   :  { %5959 = vmatprep.subr.bf16.mxu1 %v9537_v9  ;;  %v9571_v9 = vld [vmem:[%s13584_s1 + $0x568] ss:$16 sps:$4 sm:$0xff]  }
 0x1db   :  { %5995 = vmatpush1.bf16.msra.mxu0 %v9538_v39  ;;  %v9582_v39 = vld [vmem:[%s13584_s1 + $0x7cc] ss:$16 sps:$4 sm:$0xff]  }
 0x1dc   :  { %5960 = vmatpush1.bf16.msra.mxu1 %v9535_v25  ;;  %5996 = vmatprep.subr.bf16.mxu0 %v9546_v30  ;;  %v9579_v25 = vld [vmem:[%s13584_s1 + $0x54c] ss:$16 sps:$4 sm:$0xff]   ;;  %v9580_v30 = vld [vmem:[%s13584_s1 + $0x7c8] ss:$16 sps:$4 sm:$0xff]  }
 0x1dd   :  { %5961 = vmatprep.subr.bf16.mxu1 %v9543_v26  ;;  %v9577_v26 = vld [vmem:[%s13584_s1 + $0x548] ss:$16 sps:$4 sm:$0xff]  }
 0x1df   :  { %5997 = vmatpush1.bf16.msra.mxu0 %v9544_v45  ;;  %v9588_v45 = vld [vmem:[%s13584_s1 + $0x7ac] ss:$16 sps:$4 sm:$0xff]  }
 0x1e0   :  { %5962 = vmatpush1.bf16.msra.mxu1 %v9541_v31  ;;  %5998 = vmatprep.subr.bf16.mxu0 %v9552_v38  ;;  %v9585_v31 = vld [vmem:[%s13584_s1 + $0x52c] ss:$16 sps:$4 sm:$0xff]   ;;  %v9586_v38 = vld [vmem:[%s13584_s1 + $0x7a8] ss:$16 sps:$4 sm:$0xff]  }
 0x1e1   :  { %5963 = vmatprep.subr.bf16.mxu1 %v9549_v35  ;;  %v9583_v35 = vld [vmem:[%s13584_s1 + $0x528] ss:$16 sps:$4 sm:$0xff]  }
 0x1e3   :  { %5999 = vmatpush1.bf16.msra.mxu0 %v9550_v10  ;;  %v9594_v10 = vld [vmem:[%s13584_s1 + $0x78c] ss:$16 sps:$4 sm:$0xff]  }
 0x1e4   :  { %5964 = vmatpush2.bf16.msra.mxu1 %v9547_v34  ;;  %6000 = vmatprep.subr.bf16.mxu0 %v9558_v40  ;;  %v9591_v34 = vld [vmem:[%s13584_s1 + $0x50c] ss:$16 sps:$4 sm:$0xff]   ;;  %v9592_v40 = vld [vmem:[%s13584_s1 + $0x788] ss:$16 sps:$4 sm:$0xff]  }
 0x1e5   :  { %5965 = vmatprep.subr.bf16.mxu1 %v9555_v37  ;;  %v9589_v37 = vld [vmem:[%s13584_s1 + $0x508] ss:$16 sps:$4 sm:$0xff]  }
 0x1e7   :  { %6001 = vmatpush1.bf16.msra.mxu0 %v9556_v49  ;;  %v9600_v49 = vld [vmem:[%s13584_s1 + $0x8ec] ss:$16 sps:$4 sm:$0xff]  }
 0x1e8   :  { %5966 = vmatpush2.bf16.msra.mxu1 %v9553_v43  ;;  %6002 = vmatprep.subr.bf16.mxu0 %v9564_v5  ;;  %v9597_v43 = vld [vmem:[%s13584_s1 + $0x76c] ss:$16 sps:$4 sm:$0xff]   ;;  %v9598_v5 = vld [vmem:[%s13584_s1 + $0x8e8] ss:$16 sps:$4 sm:$0xff]  }
 0x1e9   :  { %5967 = vmatprep.subr.bf16.mxu1 %v9561_v44  ;;  %v9595_v44 = vld [vmem:[%s13584_s1 + $0x768] ss:$16 sps:$4 sm:$0xff]  }
 0x1eb   :  { %6003 = vmatpush1.bf16.msra.mxu0 %v9562_v4  ;;  %v12182_v4 = vpop.f32.mrf.mxu1 }
 0x1ec   :  { %5968 = vmatpush2.bf16.msra.mxu1 %v9559_v6  ;;  %6004 = vmatprep.subr.bf16.mxu0 %v9570_v50  ;;  %v12180_v6 = vpop.f32.mrf.mxu0  ;;  %v9606_v50 = vld [vmem:[%s13584_s1 + $0x8cc] ss:$16 sps:$4 sm:$0xff]  }
 0x1ed   :  { %5969 = vmatprep.subr.bf16.mxu1 %v9567_v22  ;;  %v9603_v22 = vld [vmem:[%s13584_s1 + $0x74c] ss:$16 sps:$4 sm:$0xff]  }
 0x1ef   :  { %6005 = vmatpush1.bf16.msra.mxu0 %v9568_v59  ;;  %v9604_v59 = vld [vmem:[%s13584_s1 + $0x8c8] ss:$16 sps:$4 sm:$0xff]  }
 0x1f0   :  { %5970 = vmatpush2.bf16.msra.mxu1 %v9565_v3  ;;  %6006 = vmatprep.subr.bf16.mxu0 %v9576_v7  ;;  %v9601_v3 = vld [vmem:[%s13584_s1 + $0x748] ss:$16 sps:$4 sm:$0xff]  }
 0x1f1   :  { %5971 = vmatprep.subr.bf16.mxu1 %v9573_v63 }
 0x1f3   :  { %6007 = vmatpush2.bf16.msra.mxu0 %v9574_v13 }
 0x1f4   :  { %5972 = vmatpush2.bf16.msra.mxu1 %v9571_v9  ;;  %6008 = vmatprep.subr.bf16.mxu0 %v9582_v39  ;;  %v9609_v39 = vld [vmem:[%s13584_s1 + $0x72c] ss:$16 sps:$4 sm:$0xff]  }
 0x1f5   :  { %5973 = vmatprep.subr.bf16.mxu1 %v9579_v25 }
 0x1f7   :  { %6009 = vmatpush2.bf16.msra.mxu0 %v9580_v30 }
 0x1f8   :  { %5974 = vmatpush2.bf16.msra.mxu1 %v9577_v26  ;;  %6010 = vmatprep.subr.bf16.mxu0 %v9588_v45  ;;  %v9612_v26 = vld [vmem:[%s13584_s1 + $0x8ac] ss:$16 sps:$4 sm:$0xff]  }
 0x1f9   :  { %5975 = vmatprep.subr.bf16.mxu1 %v9585_v31 }
 0x1fb   :  { %6011 = vmatpush2.bf16.msra.mxu0 %v9586_v38  ;;  %v9615_v38 = vld [vmem:[%s13584_s1 + $0x70c] ss:$16 sps:$4 sm:$0xff]  }
 0x1fc   :  { %5976 = vmatpush2.bf16.msra.mxu1 %v9583_v35  ;;  %6012 = vmatprep.subr.bf16.mxu0 %v9594_v10 }
 0x1fd   :  { %5977 = vmatprep.subr.bf16.mxu1 %v9591_v34  ;;  %v9618_v34 = vld [vmem:[%s13584_s1 + $0x88c] ss:$16 sps:$4 sm:$0xff]  }
 0x1ff   :  { %6013 = vmatpush2.bf16.msra.mxu0 %v9592_v40  ;;  %v9624_v40 = vld [vmem:[%s13584_s1 + $0xaec] ss:$16 sps:$4 sm:$0xff]  }
 0x200   :  { %5978 = vmatpush2.bf16.msra.mxu1 %v9589_v37  ;;  %6014 = vmatprep.subr.bf16.mxu0 %v9597_v43  ;;  %v9621_v37 = vld [vmem:[%s13584_s1 + $0x86c] ss:$16 sps:$4 sm:$0xff]   ;;  %v9619_v43 = vld [vmem:[%s13584_s1 + $0x868] ss:$16 sps:$4 sm:$0xff]  }
 0x201   :  { %6033 = vmatprep.subr.bf16.mxu1 %v9600_v49  ;;  %v9622_v49 = vld [vmem:[%s13584_s1 + $0xae8] ss:$16 sps:$4 sm:$0xff]  }
 0x202   :  { %v5680_v63 = vpop.f32.mrf.mxu0 }
 0x203   :  { %v5723_v7 = vpop.f32.mrf.mxu1  ;;  %5980 = vmatmul.mubr.bf16.vlgmr.msra.gmra.mxu1 %v10739_v56  ;;  %v5681_v9 = vadd.f32 %v5680_v63, %v11998_v23  ;;  %6015 = vmatpush2.bf16.msra.mxu0 %v9595_v44  ;;  %v9607_v56 = vld [vmem:[%s13584_s1 + $0x728] ss:$16 sps:$4 sm:$0xff]   ;;  %v9627_v44 = vld [vmem:[%s13584_s1 + $0x84c] ss:$16 sps:$4 sm:$0xff]  }
 0x204   :  { %6034 = vmatpush1.bf16.msra.mxu1 %v9598_v5  ;;  %v12198_v13 = vpop.f32.mrf.mxu0  ;;  %6016 = vmatprep.subr.bf16.mxu0 %v9603_v22  ;;  %v9610_v23 = vld [vmem:[%s13584_s1 + $0x8a8] ss:$16 sps:$4 sm:$0xff]   ;;  %v9630_v5 = vld [vmem:[%s13584_s1 + $0xacc] ss:$16 sps:$4 sm:$0xff]  }
 0x205   :  { %v12200_v25 = vpop.f32.mrf.mxu1  ;;  %6035 = vmatprep.subr.bf16.mxu1 %v9606_v50  ;;  %v12208_v30 = vadd.f32 %v5723_v7, %v5681_v9  ;;  %6065 = vmatprep.mubr.bf16.mxu1 %v10835_v32  ;;  %v9613_v32 = vld [vmem:[%s13584_s1 + $0x708] ss:$16 sps:$4 sm:$0xff]   ;;  %v9639_v7 = vld [vmem:[%s13584_s1 + $0x80c] ss:$16 sps:$4 sm:$0xff]  }
 0x206   :  { %v5684_v31 = vpop.f32.mrf.mxu0  ;;  %v9625_v22 = vld [vmem:[%s13584_s1 + $0x848] ss:$16 sps:$4 sm:$0xff]   ;;  %v9642_v9 = vld [vmem:[%s13584_s1 + $0xa8c] ss:$16 sps:$4 sm:$0xff]  }
 0x207   :  { %v5685_v45 = vadd.f32 %v5684_v31, %v12014_v2  ;;  %6017 = vmatpush2.bf16.msra.mxu0 %v9601_v3  ;;  %v5727_v35 = vpop.f32.mrf.mxu1  ;;  %v9616_v2 = vld [vmem:[%s13584_s1 + $0x888] ss:$16 sps:$4 sm:$0xff]   ;;  %v9633_v3 = vld [vmem:[%s13584_s1 + $0x82c] ss:$16 sps:$4 sm:$0xff]  }
 0x208   :  { %6036 = vmatpush1.bf16.msra.mxu1 %v9604_v59  ;;  %6018 = vmatprep.subr.bf16.mxu0 %v9609_v39  ;;  %v9628_v50 = vld [vmem:[%s13584_s1 + $0xac8] ss:$16 sps:$4 sm:$0xff]   ;;  %v9636_v59 = vld [vmem:[%s13584_s1 + $0xaac] ss:$16 sps:$4 sm:$0xff]  }
 0x209   :  { %6037 = vmatprep.subr.bf16.mxu1 %v9612_v26  ;;  %v12224_v10 = vadd.f32 %v5727_v35, %v5685_v45  ;;  %v9631_v63 = vld [vmem:[%s13584_s1 + $0x828] ss:$16 sps:$4 sm:$0xff]   ;;  %v9645_v26 = vld [vmem:[%s13584_s1 + $0x9ec] ss:$16 sps:$4 sm:$0xff]  }
 0x20a   :  { %v9637_v39 = vld [vmem:[%s13584_s1 + $0x808] ss:$16 sps:$4 sm:$0xff]   ;;  %v9651_v45 = vld [vmem:[%s13584_s1 + $0x9cc] ss:$16 sps:$4 sm:$0xff]  }
 0x20b   :  { %6019 = vmatpush2.bf16.msra.mxu0 %v9607_v56  ;;  %v9648_v56 = vld [vmem:[%s13584_s1 + $0xa6c] ss:$16 sps:$4 sm:$0xff]   ;;  %v9646_v31 = vld [vmem:[%s13584_s1 + $0xa68] ss:$16 sps:$4 sm:$0xff]  }
 0x20c   :  { %6038 = vmatpush1.bf16.msra.mxu1 %v9610_v23  ;;  %6020 = vmatprep.subr.bf16.mxu0 %v9615_v38  ;;  %v9643_v23 = vld [vmem:[%s13584_s1 + $0x9e8] ss:$16 sps:$4 sm:$0xff]   ;;  %v9654_v35 = vld [vmem:[%s13584_s1 + $0xa4c] ss:$16 sps:$4 sm:$0xff]  }
 0x20d   :  { %6039 = vmatprep.subr.bf16.mxu1 %v9618_v34  ;;  %v9649_v38 = vld [vmem:[%s13584_s1 + $0x9c8] ss:$16 sps:$4 sm:$0xff]  }
 0x20e   :  { %v9652_v34 = vld [vmem:[%s13584_s1 + $0xa48] ss:$16 sps:$4 sm:$0xff]  }
 0x20f   :  { %6021 = vmatpush2.bf16.msra.mxu0 %v9613_v32  ;;  %v9657_v32 = vld [vmem:[%s13584_s1 + $0x9ac] ss:$16 sps:$4 sm:$0xff]  }
 0x210   :  { %6040 = vmatpush1.bf16.msra.mxu1 %v9616_v2  ;;  %6076 = vmatprep.subr.bf16.mxu0 %v9624_v40  ;;  %v9660_v2 = vld [vmem:[%s13584_s1 + $0xa2c] ss:$16 sps:$4 sm:$0xff]   ;;  %v9658_v40 = vld [vmem:[%s13584_s1 + $0xa28] ss:$16 sps:$4 sm:$0xff]  }
 0x211   :  { %6041 = vmatprep.subr.bf16.mxu1 %v9621_v37  ;;  %v9655_v37 = vld [vmem:[%s13584_s1 + $0x9a8] ss:$16 sps:$4 sm:$0xff]  }
 0x212   :  { %6023 = vmatmul.mubr.bf16.vlgmr.msra.gmra.mxu0 %v10741_v57  ;;  %v9634_v57 = vld [vmem:[%s13584_s1 + $0xaa8] ss:$16 sps:$4 sm:$0xff]  }
 0x213   :  { %6077 = vmatpush1.bf16.msra.mxu0 %v9622_v49  ;;  %6108 = vmatprep.mubr.bf16.mxu0 %v10837_v33  ;;  %v9640_v33 = vld [vmem:[%s13584_s1 + $0xa88] ss:$16 sps:$4 sm:$0xff]   ;;  %v9666_v49 = vld [vmem:[%s13584_s1 + $0xa0c] ss:$16 sps:$4 sm:$0xff]  }
 0x214   :  { %6042 = vmatpush1.bf16.msra.mxu1 %v9619_v43  ;;  %6078 = vmatprep.subr.bf16.mxu0 %v9630_v5  ;;  %v9663_v43 = vld [vmem:[%s13584_s1 + $0x98c] ss:$16 sps:$4 sm:$0xff]   ;;  %v9664_v5 = vld [vmem:[%s13584_s1 + $0xa08] ss:$16 sps:$4 sm:$0xff]  }
 0x215   :  { %6043 = vmatprep.subr.bf16.mxu1 %v9627_v44  ;;  %v9661_v44 = vld [vmem:[%s13584_s1 + $0x988] ss:$16 sps:$4 sm:$0xff]  }
 0x217   :  { %6079 = vmatpush1.bf16.msra.mxu0 %v9628_v50  ;;  %v9672_v50 = vld [vmem:[%s13584_s1 + $0xbec] ss:$16 sps:$4 sm:$0xff]  }
 0x218   :  { %6044 = vmatpush1.bf16.msra.mxu1 %v9625_v22  ;;  %6080 = vmatprep.subr.bf16.mxu0 %v9636_v59  ;;  %v9669_v22 = vld [vmem:[%s13584_s1 + $0x96c] ss:$16 sps:$4 sm:$0xff]   ;;  %v9670_v59 = vld [vmem:[%s13584_s1 + $0xbe8] ss:$16 sps:$4 sm:$0xff]  }
 0x219   :  { %6045 = vmatprep.subr.bf16.mxu1 %v9633_v3  ;;  %v9667_v3 = vld [vmem:[%s13584_s1 + $0x968] ss:$16 sps:$4 sm:$0xff]  }
 0x21b   :  { %6081 = vmatpush1.bf16.msra.mxu0 %v9634_v57  ;;  %v9678_v57 = vld [vmem:[%s13584_s1 + $0xbcc] ss:$16 sps:$4 sm:$0xff]  }
 0x21c   :  { %6046 = vmatpush1.bf16.msra.mxu1 %v9631_v63  ;;  %6082 = vmatprep.subr.bf16.mxu0 %v9642_v9  ;;  %v9675_v63 = vld [vmem:[%s13584_s1 + $0x94c] ss:$16 sps:$4 sm:$0xff]   ;;  %v9676_v9 = vld [vmem:[%s13584_s1 + $0xbc8] ss:$16 sps:$4 sm:$0xff]  }
 0x21d   :  { %6047 = vmatprep.subr.bf16.mxu1 %v9639_v7  ;;  %v9673_v7 = vld [vmem:[%s13584_s1 + $0x948] ss:$16 sps:$4 sm:$0xff]  }
 0x21f   :  { %6083 = vmatpush1.bf16.msra.mxu0 %v9640_v33  ;;  %v9684_v33 = vld [vmem:[%s13584_s1 + $0xbac] ss:$16 sps:$4 sm:$0xff]  }
 0x220   :  { %6048 = vmatpush1.bf16.msra.mxu1 %v9637_v39  ;;  %6084 = vmatprep.subr.bf16.mxu0 %v9648_v56  ;;  %v9681_v39 = vld [vmem:[%s13584_s1 + $0x92c] ss:$16 sps:$4 sm:$0xff]   ;;  %v9682_v56 = vld [vmem:[%s13584_s1 + $0xba8] ss:$16 sps:$4 sm:$0xff]  }
 0x221   :  { %6049 = vmatprep.subr.bf16.mxu1 %v9645_v26  ;;  %v9679_v26 = vld [vmem:[%s13584_s1 + $0x928] ss:$16 sps:$4 sm:$0xff]  }
 0x223   :  { %6085 = vmatpush1.bf16.msra.mxu0 %v9646_v31  ;;  %v9690_v31 = vld [vmem:[%s13584_s1 + $0xb8c] ss:$16 sps:$4 sm:$0xff]  }
 0x224   :  { %6050 = vmatpush2.bf16.msra.mxu1 %v9643_v23  ;;  %6086 = vmatprep.subr.bf16.mxu0 %v9654_v35  ;;  %v9687_v23 = vld [vmem:[%s13584_s1 + $0x90c] ss:$16 sps:$4 sm:$0xff]   ;;  %v9688_v35 = vld [vmem:[%s13584_s1 + $0xb88] ss:$16 sps:$4 sm:$0xff]  }
 0x225   :  { %6051 = vmatprep.subr.bf16.mxu1 %v9651_v45  ;;  %v9685_v45 = vld [vmem:[%s13584_s1 + $0x908] ss:$16 sps:$4 sm:$0xff]  }
 0x227   :  { %6087 = vmatpush1.bf16.msra.mxu0 %v9652_v34  ;;  %v9696_v34 = vld [vmem:[%s13584_s1 + $0xcec] ss:$16 sps:$4 sm:$0xff]  }
 0x228   :  { %6052 = vmatpush2.bf16.msra.mxu1 %v9649_v38  ;;  %6088 = vmatprep.subr.bf16.mxu0 %v9660_v2  ;;  %v9693_v38 = vld [vmem:[%s13584_s1 + $0xb6c] ss:$16 sps:$4 sm:$0xff]   ;;  %v9694_v2 = vld [vmem:[%s13584_s1 + $0xce8] ss:$16 sps:$4 sm:$0xff]  }
 0x229   :  { %6053 = vmatprep.subr.bf16.mxu1 %v9657_v32  ;;  %v9691_v32 = vld [vmem:[%s13584_s1 + $0xb68] ss:$16 sps:$4 sm:$0xff]  }
 0x22b   :  { %6089 = vmatpush1.bf16.msra.mxu0 %v9658_v40  ;;  %v12392_v40 = vpop.f32.mrf.mxu1 }
 0x22c   :  { %6054 = vmatpush2.bf16.msra.mxu1 %v9655_v37  ;;  %6090 = vmatprep.subr.bf16.mxu0 %v9666_v49  ;;  %v12390_v37 = vpop.f32.mrf.mxu0  ;;  %v9702_v49 = vld [vmem:[%s13584_s1 + $0xccc] ss:$16 sps:$4 sm:$0xff]  }
 0x22d   :  { %6055 = vmatprep.subr.bf16.mxu1 %v9663_v43  ;;  %v9699_v43 = vld [vmem:[%s13584_s1 + $0xb4c] ss:$16 sps:$4 sm:$0xff]  }
 0x22f   :  { %6091 = vmatpush1.bf16.msra.mxu0 %v9664_v5  ;;  %v9700_v5 = vld [vmem:[%s13584_s1 + $0xcc8] ss:$16 sps:$4 sm:$0xff]  }
 0x230   :  { %6056 = vmatpush2.bf16.msra.mxu1 %v9661_v44  ;;  %6092 = vmatprep.subr.bf16.mxu0 %v9672_v50  ;;  %v9697_v44 = vld [vmem:[%s13584_s1 + $0xb48] ss:$16 sps:$4 sm:$0xff]  }
 0x231   :  { %6057 = vmatprep.subr.bf16.mxu1 %v9669_v22 }
 0x233   :  { %6093 = vmatpush2.bf16.msra.mxu0 %v9670_v59 }
 0x234   :  { %6058 = vmatpush2.bf16.msra.mxu1 %v9667_v3  ;;  %6094 = vmatprep.subr.bf16.mxu0 %v9678_v57  ;;  %v9705_v57 = vld [vmem:[%s13584_s1 + $0xb2c] ss:$16 sps:$4 sm:$0xff]  }
 0x235   :  { %6059 = vmatprep.subr.bf16.mxu1 %v9675_v63 }
 0x237   :  { %6095 = vmatpush2.bf16.msra.mxu0 %v9676_v9 }
 0x238   :  { %6060 = vmatpush2.bf16.msra.mxu1 %v9673_v7  ;;  %6096 = vmatprep.subr.bf16.mxu0 %v9684_v33  ;;  %v9708_v7 = vld [vmem:[%s13584_s1 + $0xcac] ss:$16 sps:$4 sm:$0xff]   ;;  %v9706_v33 = vld [vmem:[%s13584_s1 + $0xca8] ss:$16 sps:$4 sm:$0xff]  }
 0x239   :  { %6061 = vmatprep.subr.bf16.mxu1 %v9681_v39  ;;  %v9703_v39 = vld [vmem:[%s13584_s1 + $0xb28] ss:$16 sps:$4 sm:$0xff]  }
 0x23b   :  { %6097 = vmatpush2.bf16.msra.mxu0 %v9682_v56 }
 0x23c   :  { %6062 = vmatpush2.bf16.msra.mxu1 %v9679_v26  ;;  %6098 = vmatprep.subr.bf16.mxu0 %v9690_v31  ;;  %v9712_v31 = vld [vmem:[%s13584_s1 + $0xc88] ss:$16 sps:$4 sm:$0xff]  }
 0x23d   :  { %6063 = vmatprep.subr.bf16.mxu1 %v9687_v23  ;;  %v9709_v23 = vld [vmem:[%s13584_s1 + $0xb08] ss:$16 sps:$4 sm:$0xff]  }
 0x23f   :  { %6099 = vmatpush2.bf16.msra.mxu0 %v9688_v35  ;;  %v9720_v35 = vld [vmem:[%s13584_s1 + $0xeec] ss:$16 sps:$4 sm:$0xff]  }
 0x240   :  { %6064 = vmatpush2.bf16.msra.mxu1 %v9685_v45  ;;  %6100 = vmatprep.subr.bf16.mxu0 %v9693_v38  ;;  %v9717_v45 = vld [vmem:[%s13584_s1 + $0xc6c] ss:$16 sps:$4 sm:$0xff]   ;;  %v9715_v38 = vld [vmem:[%s13584_s1 + $0xc68] ss:$16 sps:$4 sm:$0xff]  }
 0x241   :  { %6119 = vmatprep.subr.bf16.mxu1 %v9696_v34  ;;  %v9718_v34 = vld [vmem:[%s13584_s1 + $0xee8] ss:$16 sps:$4 sm:$0xff]  }
 0x242   :  { %v5766_v22 = vpop.f32.mrf.mxu0 }
 0x243   :  { %v5809_v50 = vpop.f32.mrf.mxu1  ;;  %6066 = vmatmul.mubr.bf16.vlgmr.msra.gmra.mxu1 %v11009_v46  ;;  %v5767_v3 = vadd.f32 %v5766_v22, %v12208_v30  ;;  %6101 = vmatpush2.bf16.msra.mxu0 %v9691_v32  ;;  %v9724_v22 = vld [vmem:[%s13584_s1 + $0xec8] ss:$16 sps:$4 sm:$0xff]  }
 0x244   :  { %6120 = vmatpush1.bf16.msra.mxu1 %v9694_v2  ;;  %v12408_v59 = vpop.f32.mrf.mxu0  ;;  %6102 = vmatprep.subr.bf16.mxu0 %v9699_v43  ;;  %v9723_v2 = vld [vmem:[%s13584_s1 + $0xc4c] ss:$16 sps:$4 sm:$0xff]  }
 0x245   :  { %v12410_v63 = vpop.f32.mrf.mxu1  ;;  %6121 = vmatprep.subr.bf16.mxu1 %v9702_v49  ;;  %v5810_v9 = vadd.f32 %v5809_v50, %v5767_v3  ;;  %6151 = vmatprep.mubr.bf16.mxu1 %v11025_v53  ;;  %v9711_v53 = vld [vmem:[%s13584_s1 + $0xb0c] ss:$16 sps:$4 sm:$0xff]  }
 0x246   :  { %v5770_v46 = vpop.f32.mrf.mxu0  ;;  %v9726_v43 = vld [vmem:[%s13584_s1 + $0xecc] ss:$16 sps:$4 sm:$0xff]  }
 0x247   :  { %v5771_v30 = vadd.f32 %v5770_v46, %v12224_v10  ;;  %6103 = vmatpush2.bf16.msra.mxu0 %v9697_v44  ;;  %v5813_v26 = vpop.f32.mrf.mxu1  ;;  %v9714_v10 = vld [vmem:[%s13584_s1 + $0xc8c] ss:$16 sps:$4 sm:$0xff]   ;;  %v9730_v46 = vld [vmem:[%s13584_s1 + $0xea8] ss:$16 sps:$4 sm:$0xff]  }
 0x248   :  { %6122 = vmatpush1.bf16.msra.mxu1 %v9700_v5  ;;  %6104 = vmatprep.subr.bf16.mxu0 %v9705_v57  ;;  %v12450_v32 = vpop.f32.mrf.mxu0  ;;  %v9721_v5 = vld [vmem:[%s13584_s1 + $0xc48] ss:$16 sps:$4 sm:$0xff]   ;;  %v9729_v3 = vld [vmem:[%s13584_s1 + $0xc2c] ss:$16 sps:$4 sm:$0xff]  }
 0x249   :  { %6123 = vmatprep.subr.bf16.mxu1 %v9708_v7  ;;  %v5814_v56 = vadd.f32 %v5813_v26, %v5771_v30  ;;  %v9735_v30 = vld [vmem:[%s13584_s1 + $0xc0c] ss:$16 sps:$4 sm:$0xff]  }
 0x24b   :  { %6105 = vmatpush2.bf16.msra.mxu0 %v9703_v39 }
 0x24c   :  { %6124 = vmatpush1.bf16.msra.mxu1 %v9706_v33  ;;  %6106 = vmatprep.subr.bf16.mxu0 %v9711_v53  ;;  %v9733_v53 = vld [vmem:[%s13584_s1 + $0xc08] ss:$16 sps:$4 sm:$0xff]  }
 0x24d   :  { %6125 = vmatprep.subr.bf16.mxu1 %v9714_v10  ;;  %v9736_v10 = vld [vmem:[%s13584_s1 + $0xe88] ss:$16 sps:$4 sm:$0xff]  }
 0x24f   :  { %6107 = vmatpush2.bf16.msra.mxu0 %v9709_v23  ;;  %v9744_v23 = vld [vmem:[%s13584_s1 + $0xe6c] ss:$16 sps:$4 sm:$0xff]  }
 0x250   :  { %6126 = vmatpush1.bf16.msra.mxu1 %v9712_v31  ;;  %6162 = vmatprep.subr.bf16.mxu0 %v9720_v35  ;;  %v9739_v31 = vld [vmem:[%s13584_s1 + $0xde8] ss:$16 sps:$4 sm:$0xff]   ;;  %v9747_v35 = vld [vmem:[%s13584_s1 + $0xdcc] ss:$16 sps:$4 sm:$0xff]  }
 0x251   :  { %6127 = vmatprep.subr.bf16.mxu1 %v9717_v45  ;;  %v9742_v45 = vld [vmem:[%s13584_s1 + $0xe68] ss:$16 sps:$4 sm:$0xff]  }
 0x252   :  { %v5852_v49 = vpop.f32.mrf.mxu0  ;;  %6109 = vmatmul.mubr.bf16.vlgmr.msra.gmra.mxu0 %v11011_v48  ;;  %v9732_v48 = vld [vmem:[%s13584_s1 + $0xeac] ss:$16 sps:$4 sm:$0xff]  }
 0x253   :  { %v5853_v44 = vadd.f32 %v5852_v49, %v5810_v9  ;;  %6163 = vmatpush1.bf16.msra.mxu0 %v9718_v34  ;;  %6194 = vmatprep.mubr.bf16.mxu0 %v11027_v16  ;;  %v9727_v9 = vld [vmem:[%s13584_s1 + $0xc28] ss:$16 sps:$4 sm:$0xff]   ;;  %v9738_v16 = vld [vmem:[%s13584_s1 + $0xe8c] ss:$16 sps:$4 sm:$0xff]  }
 0x254   :  { %6128 = vmatpush1.bf16.msra.mxu1 %v9715_v38  ;;  %v12465_v50 = vpop.f32.mrf.mxu0  ;;  %6164 = vmatprep.subr.bf16.mxu0 %v9726_v43  ;;  %v9750_v38 = vld [vmem:[%s13584_s1 + $0xe4c] ss:$16 sps:$4 sm:$0xff]   ;;  %v9745_v34 = vld [vmem:[%s13584_s1 + $0xdc8] ss:$16 sps:$4 sm:$0xff]  }
 0x255   :  { %6129 = vmatprep.subr.bf16.mxu1 %v9723_v2  ;;  %v6420_v39 = vmax.f32 %v5853_v44, 0.0  ;;  %v9748_v2 = vld [vmem:[%s13584_s1 + $0xe48] ss:$16 sps:$4 sm:$0xff]   ;;  %v9753_v43 = vld [vmem:[%s13584_s1 + $0xdac] ss:$16 sps:$4 sm:$0xff]  }
 0x256   :  { %v5856_v57 = vpop.f32.mrf.mxu0  ;;  %v9756_v49 = vld [vmem:[%s13584_s1 + $0xe2c] ss:$16 sps:$4 sm:$0xff]   ;;  %v9751_v44 = vld [vmem:[%s13584_s1 + $0xda8] ss:$16 sps:$4 sm:$0xff]  }
 0x257   :  { %v5857_v7 = vadd.f32 %v5856_v57, %v5814_v56  ;;  %6165 = vmatpush1.bf16.msra.mxu0 %v9724_v22  ;;  %v9741_v56 = vld [vmem:[%s13584_s1 + $0xdec] ss:$16 sps:$4 sm:$0xff]   ;;  %v9760_v57 = vld [vmem:[%s13584_s1 + $0xe08] ss:$16 sps:$4 sm:$0xff]  }
 0x258   :  { %6130 = vmatpush1.bf16.msra.mxu1 %v9721_v5  ;;  %6166 = vmatprep.subr.bf16.mxu0 %v9732_v48  ;;  %v9754_v5 = vld [vmem:[%s13584_s1 + $0xe28] ss:$16 sps:$4 sm:$0xff]   ;;  %v9759_v22 = vld [vmem:[%s13584_s1 + $0xd8c] ss:$16 sps:$4 sm:$0xff]  }
 0x259   :  { %6131 = vmatprep.subr.bf16.mxu1 %v9729_v3  ;;  %v6424_v33 = vmax.f32 %v5857_v7, 0.0  ;;  %v9762_v3 = vld [vmem:[%s13584_s1 + $0xe0c] ss:$16 sps:$4 sm:$0xff]   ;;  %v9757_v48 = vld [vmem:[%s13584_s1 + $0xd88] ss:$16 sps:$4 sm:$0xff]  }
 0x25a   :  { %v9765_v7 = vld [vmem:[%s13584_s1 + $0xd6c] ss:$16 sps:$4 sm:$0xff]  }
 0x25b   :  { %v12486_v26 = vpack.c.bf16 %v6424_v33, %v6420_v39  ;;  %6167 = vmatpush1.bf16.msra.mxu0 %v9730_v46  ;;  %v9763_v46 = vld [vmem:[%s13584_s1 + $0xd68] ss:$16 sps:$4 sm:$0xff]   ;;  %v9774_v39 = vld [vmem:[%s13584_s1 + $0xfcc] ss:$16 sps:$4 sm:$0xff]  }
 0x25c   :  { %6132 = vmatpush1.bf16.msra.mxu1 %v9727_v9  ;;  %6168 = vmatprep.subr.bf16.mxu0 %v9738_v16  ;;  %v9768_v9 = vld [vmem:[%s13584_s1 + $0xfec] ss:$16 sps:$4 sm:$0xff]   ;;  %v9769_v33 = vld [vmem:[%s13584_s1 + $0xd48] ss:$16 sps:$4 sm:$0xff]  }
 0x25d   :  { %6133 = vmatprep.subr.bf16.mxu1 %v9735_v30  ;;  %v9766_v30 = vld [vmem:[%s13584_s1 + $0xfe8] ss:$16 sps:$4 sm:$0xff]   ;;  %v9771_v16 = vld [vmem:[%s13584_s1 + $0xd4c] ss:$16 sps:$4 sm:$0xff]  }
 0x25f   :  { %6169 = vmatpush1.bf16.msra.mxu0 %v9736_v10  ;;  %v9777_v10 = vld [vmem:[%s13584_s1 + $0xd2c] ss:$16 sps:$4 sm:$0xff]  }
 0x260   :  { %6134 = vmatpush1.bf16.msra.mxu1 %v9733_v53  ;;  %6170 = vmatprep.subr.bf16.mxu0 %v9744_v23  ;;  %v9772_v53 = vld [vmem:[%s13584_s1 + $0xfc8] ss:$16 sps:$4 sm:$0xff]  }
 0x261   :  { %6135 = vmatprep.subr.bf16.mxu1 %v9741_v56  ;;  %v9780_v56 = vld [vmem:[%s13584_s1 + $0xfac] ss:$16 sps:$4 sm:$0xff]   ;;  %v9775_v23 = vld [vmem:[%s13584_s1 + $0xd28] ss:$16 sps:$4 sm:$0xff]  }
 0x263   :  { %6171 = vmatpush1.bf16.msra.mxu0 %v9742_v45  ;;  %v9783_v45 = vld [vmem:[%s13584_s1 + $0xd0c] ss:$16 sps:$4 sm:$0xff]  }
 0x264   :  { %6136 = vmatpush2.bf16.msra.mxu1 %v9739_v31  ;;  %6172 = vmatprep.subr.bf16.mxu0 %v9750_v38  ;;  %v9778_v31 = vld [vmem:[%s13584_s1 + $0xfa8] ss:$16 sps:$4 sm:$0xff]  }
 0x265   :  { %6137 = vmatprep.subr.bf16.mxu1 %v9747_v35  ;;  %v9786_v35 = vld [vmem:[%s13584_s1 + $0xf8c] ss:$16 sps:$4 sm:$0xff]   ;;  %v9781_v38 = vld [vmem:[%s13584_s1 + $0xd08] ss:$16 sps:$4 sm:$0xff]  }
 0x267   :  { %6173 = vmatpush1.bf16.msra.mxu0 %v9748_v2  ;;  %v9789_v2 = vld [vmem:[%s13584_s1 + $0xf6c] ss:$16 sps:$4 sm:$0xff]  }
 0x268   :  { %6138 = vmatpush2.bf16.msra.mxu1 %v9745_v34  ;;  %6174 = vmatprep.subr.bf16.mxu0 %v9756_v49  ;;  %v9784_v34 = vld [vmem:[%s13584_s1 + $0xf88] ss:$16 sps:$4 sm:$0xff]  }
 0x269   :  { %6139 = vmatprep.subr.bf16.mxu1 %v9753_v43  ;;  %v9792_v43 = vld [vmem:[%s13584_s1 + $0x10ec] ss:$16 sps:$4 sm:$0xff]   ;;  %v9787_v49 = vld [vmem:[%s13584_s1 + $0xf68] ss:$16 sps:$4 sm:$0xff]  }
 0x26b   :  { %6175 = vmatpush1.bf16.msra.mxu0 %v9754_v5  ;;  %v9795_v5 = vld [vmem:[%s13584_s1 + $0xf4c] ss:$16 sps:$4 sm:$0xff]  }
 0x26c   :  { %6140 = vmatpush2.bf16.msra.mxu1 %v9751_v44  ;;  %6176 = vmatprep.subr.bf16.mxu0 %v9762_v3  ;;  %v9790_v44 = vld [vmem:[%s13584_s1 + $0x10e8] ss:$16 sps:$4 sm:$0xff]  }
 0x26d   :  { %6141 = vmatprep.subr.bf16.mxu1 %v9759_v22  ;;  %v9798_v22 = vld [vmem:[%s13584_s1 + $0x10cc] ss:$16 sps:$4 sm:$0xff]   ;;  %v9793_v3 = vld [vmem:[%s13584_s1 + $0xf48] ss:$16 sps:$4 sm:$0xff]  }
 0x26f   :  { %6177 = vmatpush1.bf16.msra.mxu0 %v9760_v57  ;;  %v9801_v57 = vld [vmem:[%s13584_s1 + $0xf2c] ss:$16 sps:$4 sm:$0xff]  }
 0x270   :  { %6142 = vmatpush2.bf16.msra.mxu1 %v9757_v48  ;;  %6178 = vmatprep.subr.bf16.mxu0 %v9768_v9  ;;  %v9796_v48 = vld [vmem:[%s13584_s1 + $0x10c8] ss:$16 sps:$4 sm:$0xff]  }
 0x271   :  { %6143 = vmatprep.subr.bf16.mxu1 %v9765_v7  ;;  %v9799_v7 = vld [vmem:[%s13584_s1 + $0xf28] ss:$16 sps:$4 sm:$0xff]  }
 0x272   :  { %v9802_v9 = vld [vmem:[%s13584_s1 + $0x10a8] ss:$16 sps:$4 sm:$0xff]  }
 0x273   :  { %6179 = vmatpush2.bf16.msra.mxu0 %v9766_v30  ;;  %v9805_v30 = vld [vmem:[%s13584_s1 + $0xf08] ss:$16 sps:$4 sm:$0xff]  }
 0x274   :  { %6144 = vmatpush2.bf16.msra.mxu1 %v9763_v46  ;;  %6180 = vmatprep.subr.bf16.mxu0 %v9774_v39  ;;  %v9807_v46 = vld [vmem:[%s13584_s1 + $0xf0c] ss:$16 sps:$4 sm:$0xff]  }
 0x275   :  { %6145 = vmatprep.subr.bf16.mxu1 %v9771_v16  ;;  %v9808_v16 = vld [vmem:[%s13584_s1 + $0x1088] ss:$16 sps:$4 sm:$0xff]   ;;  %v9813_v39 = vld [vmem:[%s13584_s1 + $0x106c] ss:$16 sps:$4 sm:$0xff]  }
 0x277   :  { %6181 = vmatpush2.bf16.msra.mxu0 %v9772_v53  ;;  %v9811_v53 = vld [vmem:[%s13584_s1 + $0x1068] ss:$16 sps:$4 sm:$0xff]  }
 0x278   :  { %6146 = vmatpush2.bf16.msra.mxu1 %v9769_v33  ;;  %6182 = vmatprep.subr.bf16.mxu0 %v9780_v56  ;;  %v9816_v33 = vld [vmem:[%s13584_s1 + $0x12ec] ss:$16 sps:$4 sm:$0xff]  }
 0x279   :  { %6147 = vmatprep.subr.bf16.mxu1 %v9777_v10  ;;  %v9814_v10 = vld [vmem:[%s13584_s1 + $0x12e8] ss:$16 sps:$4 sm:$0xff]   ;;  %v9819_v56 = vld [vmem:[%s13584_s1 + $0x104c] ss:$16 sps:$4 sm:$0xff]  }
 0x27b   :  { %6183 = vmatpush2.bf16.msra.mxu0 %v9778_v31  ;;  %v9817_v31 = vld [vmem:[%s13584_s1 + $0x1048] ss:$16 sps:$4 sm:$0xff]  }
 0x27c   :  { %6148 = vmatpush2.bf16.msra.mxu1 %v9775_v23  ;;  %6184 = vmatprep.subr.bf16.mxu0 %v9786_v35  ;;  %v9822_v23 = vld [vmem:[%s13584_s1 + $0x12cc] ss:$16 sps:$4 sm:$0xff]  }
 0x27d   :  { %6149 = vmatprep.subr.bf16.mxu1 %v9783_v45  ;;  %v9820_v45 = vld [vmem:[%s13584_s1 + $0x12c8] ss:$16 sps:$4 sm:$0xff]   ;;  %v9825_v35 = vld [vmem:[%s13584_s1 + $0x102c] ss:$16 sps:$4 sm:$0xff]  }
 0x27f   :  { %6185 = vmatpush2.bf16.msra.mxu0 %v9784_v34  ;;  %v9826_v34 = vld [vmem:[%s13584_s1 + $0x12a8] ss:$16 sps:$4 sm:$0xff]  }
 0x280   :  { %6150 = vmatpush2.bf16.msra.mxu1 %v9781_v38  ;;  %6186 = vmatprep.subr.bf16.mxu0 %v9789_v2  ;;  %v9823_v38 = vld [vmem:[%s13584_s1 + $0x1028] ss:$16 sps:$4 sm:$0xff]   ;;  %v9831_v2 = vld [vmem:[%s13584_s1 + $0x100c] ss:$16 sps:$4 sm:$0xff]  }
 0x281   :  { %6205 = vmatprep.subr.bf16.mxu1 %v9792_v43  ;;  %v9829_v43 = vld [vmem:[%s13584_s1 + $0x1008] ss:$16 sps:$4 sm:$0xff]  }
 0x283   :  { %6152 = vmatmul.mubr.bf16.vlgmr.msra.gmra.mxu1 %v11253_v11  ;;  %6187 = vmatpush2.bf16.msra.mxu0 %v9787_v49  ;;  %v9804_v11 = vld [vmem:[%s13584_s1 + $0x10ac] ss:$16 sps:$4 sm:$0xff]   ;;  %v9832_v49 = vld [vmem:[%s13584_s1 + $0x1288] ss:$16 sps:$4 sm:$0xff]  }
 0x284   :  { %6206 = vmatpush1.bf16.msra.mxu1 %v9790_v44  ;;  %6188 = vmatprep.subr.bf16.mxu0 %v9795_v5  ;;  %v9837_v44 = vld [vmem:[%s13584_s1 + $0x11ec] ss:$16 sps:$4 sm:$0xff]  }
 0x285   :  { %6207 = vmatprep.subr.bf16.mxu1 %v9798_v22  ;;  %6237 = vmatprep.mubr.bf16.mxu1 %v11271_v41  ;;  %v9810_v41 = vld [vmem:[%s13584_s1 + $0x108c] ss:$16 sps:$4 sm:$0xff]   ;;  %v9835_v22 = vld [vmem:[%s13584_s1 + $0x11e8] ss:$16 sps:$4 sm:$0xff]  }
 0x286   :  { %v9840_v5 = vld [vmem:[%s13584_s1 + $0x126c] ss:$16 sps:$4 sm:$0xff]  }
 0x287   :  { %6189 = vmatpush2.bf16.msra.mxu0 %v9793_v3  ;;  %v9838_v3 = vld [vmem:[%s13584_s1 + $0x1268] ss:$16 sps:$4 sm:$0xff]  }
 0x288   :  { %6208 = vmatpush1.bf16.msra.mxu1 %v9796_v48  ;;  %6190 = vmatprep.subr.bf16.mxu0 %v9801_v57  ;;  %v9843_v48 = vld [vmem:[%s13584_s1 + $0x11cc] ss:$16 sps:$4 sm:$0xff]  }
 0x289   :  { %6209 = vmatprep.subr.bf16.mxu1 %v9804_v11  ;;  %v9846_v57 = vld [vmem:[%s13584_s1 + $0x124c] ss:$16 sps:$4 sm:$0xff]   ;;  %v9841_v11 = vld [vmem:[%s13584_s1 + $0x11c8] ss:$16 sps:$4 sm:$0xff]  }
 0x28b   :  { %6191 = vmatpush2.bf16.msra.mxu0 %v9799_v7  ;;  %v9844_v7 = vld [vmem:[%s13584_s1 + $0x1248] ss:$16 sps:$4 sm:$0xff]  }
 0x28c   :  { %6210 = vmatpush1.bf16.msra.mxu1 %v9802_v9  ;;  %6192 = vmatprep.subr.bf16.mxu0 %v9807_v46  ;;  %v9849_v9 = vld [vmem:[%s13584_s1 + $0x11ac] ss:$16 sps:$4 sm:$0xff]  }
 0x28d   :  { %6211 = vmatprep.subr.bf16.mxu1 %v9810_v41  ;;  %v9852_v46 = vld [vmem:[%s13584_s1 + $0x122c] ss:$16 sps:$4 sm:$0xff]   ;;  %v9847_v41 = vld [vmem:[%s13584_s1 + $0x11a8] ss:$16 sps:$4 sm:$0xff]  }
 0x28f   :  { %6193 = vmatpush2.bf16.msra.mxu0 %v9805_v30  ;;  %v9850_v30 = vld [vmem:[%s13584_s1 + $0x1228] ss:$16 sps:$4 sm:$0xff]  }
 0x290   :  { %6212 = vmatpush1.bf16.msra.mxu1 %v9808_v16  ;;  %6248 = vmatprep.subr.bf16.mxu0 %v9816_v33  ;;  %v9855_v16 = vld [vmem:[%s13584_s1 + $0x118c] ss:$16 sps:$4 sm:$0xff]   ;;  %v9853_v33 = vld [vmem:[%s13584_s1 + $0x1188] ss:$16 sps:$4 sm:$0xff]  }
 0x291   :  { %6213 = vmatprep.subr.bf16.mxu1 %v9813_v39  ;;  %v9858_v39 = vld [vmem:[%s13584_s1 + $0x120c] ss:$16 sps:$4 sm:$0xff]  }
 0x292   :  { %6195 = vmatmul.mubr.bf16.vlgmr.msra.gmra.mxu0 %v11255_v12  ;;  %v9828_v12 = vld [vmem:[%s13584_s1 + $0x12ac] ss:$16 sps:$4 sm:$0xff]  }
 0x293   :  { %6249 = vmatpush1.bf16.msra.mxu0 %v9814_v10  ;;  %6280 = vmatprep.mubr.bf16.mxu0 %v11273_v42  ;;  %v9834_v42 = vld [vmem:[%s13584_s1 + $0x128c] ss:$16 sps:$4 sm:$0xff]  }
 0x294   :  { %6214 = vmatpush1.bf16.msra.mxu1 %v9811_v53  ;;  %6250 = vmatprep.subr.bf16.mxu0 %v9822_v23  ;;  %v9856_v53 = vld [vmem:[%s13584_s1 + $0x1208] ss:$16 sps:$4 sm:$0xff]   ;;  %v9861_v10 = vld [vmem:[%s13584_s1 + $0x116c] ss:$16 sps:$4 sm:$0xff]  }
 0x295   :  { %6215 = vmatprep.subr.bf16.mxu1 %v9819_v56  ;;  %v9864_v56 = vld [vmem:[%s13584_s1 + $0x13ec] ss:$16 sps:$4 sm:$0xff]   ;;  %v9859_v23 = vld [vmem:[%s13584_s1 + $0x1168] ss:$16 sps:$4 sm:$0xff]  }
 0x297   :  { %6251 = vmatpush1.bf16.msra.mxu0 %v9820_v45  ;;  %v9867_v45 = vld [vmem:[%s13584_s1 + $0x114c] ss:$16 sps:$4 sm:$0xff]  }
 0x298   :  { %6216 = vmatpush1.bf16.msra.mxu1 %v9817_v31  ;;  %6252 = vmatprep.subr.bf16.mxu0 %v9828_v12  ;;  %v9862_v31 = vld [vmem:[%s13584_s1 + $0x13e8] ss:$16 sps:$4 sm:$0xff]  }
 0x299   :  { %6217 = vmatprep.subr.bf16.mxu1 %v9825_v35  ;;  %v9870_v35 = vld [vmem:[%s13584_s1 + $0x13cc] ss:$16 sps:$4 sm:$0xff]   ;;  %v9865_v12 = vld [vmem:[%s13584_s1 + $0x1148] ss:$16 sps:$4 sm:$0xff]  }
 0x29b   :  { %6253 = vmatpush1.bf16.msra.mxu0 %v9826_v34  ;;  %v9873_v34 = vld [vmem:[%s13584_s1 + $0x112c] ss:$16 sps:$4 sm:$0xff]  }
 0x29c   :  { %6218 = vmatpush1.bf16.msra.mxu1 %v9823_v38  ;;  %6254 = vmatprep.subr.bf16.mxu0 %v9834_v42  ;;  %v9868_v38 = vld [vmem:[%s13584_s1 + $0x13c8] ss:$16 sps:$4 sm:$0xff]  }
 0x29d   :  { %6219 = vmatprep.subr.bf16.mxu1 %v9831_v2  ;;  %v9876_v2 = vld [vmem:[%s13584_s1 + $0x13ac] ss:$16 sps:$4 sm:$0xff]   ;;  %v9871_v42 = vld [vmem:[%s13584_s1 + $0x1128] ss:$16 sps:$4 sm:$0xff]  }
 0x29f   :  { %6255 = vmatpush1.bf16.msra.mxu0 %v9832_v49  ;;  %v9879_v49 = vld [vmem:[%s13584_s1 + $0x110c] ss:$16 sps:$4 sm:$0xff]  }
 0x2a0   :  { %6220 = vmatpush1.bf16.msra.mxu1 %v9829_v43  ;;  %6256 = vmatprep.subr.bf16.mxu0 %v9840_v5  ;;  %v9874_v43 = vld [vmem:[%s13584_s1 + $0x13a8] ss:$16 sps:$4 sm:$0xff]  }
 0x2a1   :  { %6221 = vmatprep.subr.bf16.mxu1 %v9837_v44  ;;  %v9882_v44 = vld [vmem:[%s13584_s1 + $0x138c] ss:$16 sps:$4 sm:$0xff]   ;;  %v9877_v5 = vld [vmem:[%s13584_s1 + $0x1108] ss:$16 sps:$4 sm:$0xff]  }
 0x2a3   :  { %6257 = vmatpush1.bf16.msra.mxu0 %v9838_v3  ;;  %v9885_v3 = vld [vmem:[%s13584_s1 + $0x136c] ss:$16 sps:$4 sm:$0xff]  }
 0x2a4   :  { %6222 = vmatpush2.bf16.msra.mxu1 %v9835_v22  ;;  %6258 = vmatprep.subr.bf16.mxu0 %v9846_v57  ;;  %v9880_v22 = vld [vmem:[%s13584_s1 + $0x1388] ss:$16 sps:$4 sm:$0xff]  }
 0x2a5   :  { %6223 = vmatprep.subr.bf16.mxu1 %v9843_v48  ;;  %v9888_v48 = vld [vmem:[%s13584_s1 + $0x14ec] ss:$16 sps:$4 sm:$0xff]   ;;  %v9883_v57 = vld [vmem:[%s13584_s1 + $0x1368] ss:$16 sps:$4 sm:$0xff]  }
 0x2a7   :  { %6259 = vmatpush1.bf16.msra.mxu0 %v9844_v7  ;;  %v9891_v7 = vld [vmem:[%s13584_s1 + $0x134c] ss:$16 sps:$4 sm:$0xff]  }
 0x2a8   :  { %6224 = vmatpush2.bf16.msra.mxu1 %v9841_v11  ;;  %6260 = vmatprep.subr.bf16.mxu0 %v9852_v46  ;;  %v9886_v11 = vld [vmem:[%s13584_s1 + $0x14e8] ss:$16 sps:$4 sm:$0xff]  }
 0x2a9   :  { %6225 = vmatprep.subr.bf16.mxu1 %v9849_v9  ;;  %v9894_v9 = vld [vmem:[%s13584_s1 + $0x14cc] ss:$16 sps:$4 sm:$0xff]   ;;  %v9889_v46 = vld [vmem:[%s13584_s1 + $0x1348] ss:$16 sps:$4 sm:$0xff]  }
 0x2ab   :  { %6261 = vmatpush1.bf16.msra.mxu0 %v9850_v30  ;;  %v9897_v30 = vld [vmem:[%s13584_s1 + $0x132c] ss:$16 sps:$4 sm:$0xff]  }
 0x2ac   :  { %6226 = vmatpush2.bf16.msra.mxu1 %v9847_v41  ;;  %6262 = vmatprep.subr.bf16.mxu0 %v9858_v39  ;;  %v9892_v41 = vld [vmem:[%s13584_s1 + $0x14c8] ss:$16 sps:$4 sm:$0xff]  }
 0x2ad   :  { %6227 = vmatprep.subr.bf16.mxu1 %v9855_v16  ;;  %v9895_v16 = vld [vmem:[%s13584_s1 + $0x1328] ss:$16 sps:$4 sm:$0xff]  }
 0x2ae   :  { %v9898_v39 = vld [vmem:[%s13584_s1 + $0x14a8] ss:$16 sps:$4 sm:$0xff]  }
 0x2af   :  { %6263 = vmatpush1.bf16.msra.mxu0 %v9856_v53  ;;  %v9901_v53 = vld [vmem:[%s13584_s1 + $0x1308] ss:$16 sps:$4 sm:$0xff]  }
 0x2b0   :  { %6228 = vmatpush2.bf16.msra.mxu1 %v9853_v33  ;;  %6264 = vmatprep.subr.bf16.mxu0 %v9864_v56  ;;  %v9903_v33 = vld [vmem:[%s13584_s1 + $0x130c] ss:$16 sps:$4 sm:$0xff]  }
 0x2b1   :  { %6229 = vmatprep.subr.bf16.mxu1 %v9861_v10  ;;  %v9904_v10 = vld [vmem:[%s13584_s1 + $0x1488] ss:$16 sps:$4 sm:$0xff]   ;;  %v9909_v56 = vld [vmem:[%s13584_s1 + $0x146c] ss:$16 sps:$4 sm:$0xff]  }
 0x2b3   :  { %6265 = vmatpush2.bf16.msra.mxu0 %v9862_v31  ;;  %v9907_v31 = vld [vmem:[%s13584_s1 + $0x1468] ss:$16 sps:$4 sm:$0xff]  }
 0x2b4   :  { %6230 = vmatpush2.bf16.msra.mxu1 %v9859_v23  ;;  %6266 = vmatprep.subr.bf16.mxu0 %v9870_v35  ;;  %v9912_v23 = vld [vmem:[%s13584_s1 + $0x16ec] ss:$16 sps:$4 sm:$0xff]  }
 0x2b5   :  { %6231 = vmatprep.subr.bf16.mxu1 %v9867_v45  ;;  %v9910_v45 = vld [vmem:[%s13584_s1 + $0x16e8] ss:$16 sps:$4 sm:$0xff]   ;;  %v9915_v35 = vld [vmem:[%s13584_s1 + $0x144c] ss:$16 sps:$4 sm:$0xff]  }
 0x2b7   :  { %6267 = vmatpush2.bf16.msra.mxu0 %v9868_v38  ;;  %v9913_v38 = vld [vmem:[%s13584_s1 + $0x1448] ss:$16 sps:$4 sm:$0xff]  }
 0x2b8   :  { %6232 = vmatpush2.bf16.msra.mxu1 %v9865_v12  ;;  %6268 = vmatprep.subr.bf16.mxu0 %v9876_v2  ;;  %v9918_v12 = vld [vmem:[%s13584_s1 + $0x16cc] ss:$16 sps:$4 sm:$0xff]  }
 0x2b9   :  { %6233 = vmatprep.subr.bf16.mxu1 %v9873_v34  ;;  %v9916_v34 = vld [vmem:[%s13584_s1 + $0x16c8] ss:$16 sps:$4 sm:$0xff]   ;;  %v9921_v2 = vld [vmem:[%s13584_s1 + $0x142c] ss:$16 sps:$4 sm:$0xff]  }
 0x2bb   :  { %6269 = vmatpush2.bf16.msra.mxu0 %v9874_v43  ;;  %v9922_v43 = vld [vmem:[%s13584_s1 + $0x16a8] ss:$16 sps:$4 sm:$0xff]  }
 0x2bc   :  { %6234 = vmatpush2.bf16.msra.mxu1 %v9871_v42  ;;  %6270 = vmatprep.subr.bf16.mxu0 %v9882_v44  ;;  %v9919_v42 = vld [vmem:[%s13584_s1 + $0x1428] ss:$16 sps:$4 sm:$0xff]  }
 0x2bd   :  { %6235 = vmatprep.subr.bf16.mxu1 %v9879_v49  ;;  %v9927_v49 = vld [vmem:[%s13584_s1 + $0x140c] ss:$16 sps:$4 sm:$0xff]   ;;  %v9925_v44 = vld [vmem:[%s13584_s1 + $0x1408] ss:$16 sps:$4 sm:$0xff]  }
 0x2bf   :  { %6271 = vmatpush2.bf16.msra.mxu0 %v9880_v22  ;;  %v9933_v22 = vld [vmem:[%s13584_s1 + $0x15ec] ss:$16 sps:$4 sm:$0xff]  }
 0x2c0   :  { %6236 = vmatpush2.bf16.msra.mxu1 %v9877_v5  ;;  %6272 = vmatprep.subr.bf16.mxu0 %v9885_v3  ;;  %v9928_v5 = vld [vmem:[%s13584_s1 + $0x1688] ss:$16 sps:$4 sm:$0xff]   ;;  %v9936_v3 = vld [vmem:[%s13584_s1 + $0x166c] ss:$16 sps:$4 sm:$0xff]  }
 0x2c1   :  { %6291 = vmatprep.subr.bf16.mxu1 %v9888_v48  ;;  %v851_v48 = vsub.s32 1, %v10402_v47 }
 0x2c3   :  { %6238 = vmatmul.mubr.bf16.vlgmr.msra.gmra.mxu1 %v11503_v60  ;;  %6273 = vmatpush2.bf16.msra.mxu0 %v9883_v57  ;;  %v9900_v60 = vld [vmem:[%s13584_s1 + $0x14ac] ss:$16 sps:$4 sm:$0xff]   ;;  %v9931_v57 = vld [vmem:[%s13584_s1 + $0x15e8] ss:$16 sps:$4 sm:$0xff]  }
 0x2c4   :  { %6292 = vmatpush1.bf16.msra.mxu1 %v9886_v11  ;;  %6274 = vmatprep.subr.bf16.mxu0 %v9891_v7  ;;  %v9934_v11 = vld [vmem:[%s13584_s1 + $0x1668] ss:$16 sps:$4 sm:$0xff]   ;;  %v9939_v7 = vld [vmem:[%s13584_s1 + $0x15cc] ss:$16 sps:$4 sm:$0xff]  }
 0x2c5   :  { %6293 = vmatprep.subr.bf16.mxu1 %v9894_v9  ;;  %6323 = vmatprep.mubr.bf16.mxu1 %v11529_v14  ;;  %v9906_v14 = vld [vmem:[%s13584_s1 + $0x148c] ss:$16 sps:$4 sm:$0xff]  }
 0x2c6   :  { %v9942_v9 = vld [vmem:[%s13584_s1 + $0x164c] ss:$16 sps:$4 sm:$0xff]  }
 0x2c7   :  { %6275 = vmatpush2.bf16.msra.mxu0 %v9889_v46  ;;  %v12908_v46 = vld [vmem:[%s13585_s2] sm:$0xf] }
 0x2c8   :  { %6294 = vmatpush1.bf16.msra.mxu1 %v9892_v41  ;;  %6276 = vmatprep.subr.bf16.mxu0 %v9897_v30  ;;  %v852_v41 = vrot.slane %v12908_v46, %v851_v48  ;;  %v9937_v30 = vld [vmem:[%s13584_s1 + $0x15c8] ss:$16 sps:$4 sm:$0xff]  }
 0x2c9   :  { %6295 = vmatprep.subr.bf16.mxu1 %v9900_v60  ;;  %v9940_v60 = vld [vmem:[%s13584_s1 + $0x1648] ss:$16 sps:$4 sm:$0xff]  }
 0x2cb   :  { %6277 = vmatpush2.bf16.msra.mxu0 %v9895_v16  ;;  %v9945_v16 = vld [vmem:[%s13584_s1 + $0x15ac] ss:$16 sps:$4 sm:$0xff]  }
 0x2cc   :  { %6296 = vmatpush1.bf16.msra.mxu1 %v9898_v39  ;;  %6278 = vmatprep.subr.bf16.mxu0 %v9903_v33  ;;  %v9948_v39 = vld [vmem:[%s13584_s1 + $0x162c] ss:$16 sps:$4 sm:$0xff]   ;;  %v5343_v33 = vadd.f32 %v11513_v0, %v852_v41 }
 0x2cd   :  { %6297 = vmatprep.subr.bf16.mxu1 %v9906_v14  ;;  %v5339_v14 = vadd.f32 %v11283_v17, %v852_v41  ;;  %v9954_v17 = vld [vmem:[%s13584_s1 + $0x160c] ss:$16 sps:$4 sm:$0xff]  }
 0x2ce   :  { %v5386_v0 = vadd.f32 %v11515_v1, %v5343_v33  ;;  %v9957_v1 = vld [vmem:[%s13584_s1 + $0x156c] ss:$16 sps:$4 sm:$0xff]   ;;  %v9985_v33 = vld [vmem:[%s13584_s1 + $0x1748] ss:$16 sps:$4 sm:$0xff]  }
 0x2cf   :  { %6279 = vmatpush2.bf16.msra.mxu0 %v9901_v53  ;;  %v9943_v53 = vld [vmem:[%s13584_s1 + $0x15a8] ss:$16 sps:$4 sm:$0xff]  }
 0x2d0   :  { %6298 = vmatpush1.bf16.msra.mxu1 %v9904_v10  ;;  %6334 = vmatprep.subr.bf16.mxu0 %v9912_v23  ;;  %v9946_v10 = vld [vmem:[%s13584_s1 + $0x1628] ss:$16 sps:$4 sm:$0xff]   ;;  %v5382_v23 = vadd.f32 %v11285_v18, %v5339_v14  ;;  %v9960_v18 = vld [vmem:[%s13584_s1 + $0x17ec] ss:$16 sps:$4 sm:$0xff]  }
 0x2d1   :  { %6299 = vmatprep.subr.bf16.mxu1 %v9909_v56  ;;  %v9951_v56 = vld [vmem:[%s13584_s1 + $0x158c] ss:$16 sps:$4 sm:$0xff]   ;;  %v9988_v14 = vld [vmem:[%s13584_s1 + $0x1848] ss:$16 sps:$4 sm:$0xff]  }
 0x2d2   :  { %6281 = vmatmul.mubr.bf16.vlgmr.msra.gmra.mxu0 %v11505_v61  ;;  %v9924_v61 = vld [vmem:[%s13584_s1 + $0x16ac] ss:$16 sps:$4 sm:$0xff]  }
 0x2d3   :  { %6335 = vmatpush1.bf16.msra.mxu0 %v9910_v45  ;;  %6366 = vmatprep.mubr.bf16.mxu0 %v11531_v24  ;;  %v9930_v24 = vld [vmem:[%s13584_s1 + $0x168c] ss:$16 sps:$4 sm:$0xff]   ;;  %v9949_v45 = vld [vmem:[%s13584_s1 + $0x1588] ss:$16 sps:$4 sm:$0xff]  }
 0x2d4   :  { %6300 = vmatpush1.bf16.msra.mxu1 %v9907_v31  ;;  %6336 = vmatprep.subr.bf16.mxu0 %v9918_v12  ;;  %v5429_v31 = vadd.f32 %v11749_v19, %v5386_v0  ;;  %v5425_v19 = vadd.f32 %v11536_v20, %v5382_v23  ;;  %v9966_v20 = vld [vmem:[%s13584_s1 + $0x17cc] ss:$16 sps:$4 sm:$0xff]  }
 0x2d5   :  { %6301 = vmatprep.subr.bf16.mxu1 %v9915_v35  ;;  %v9952_v35 = vld [vmem:[%s13584_s1 + $0x1608] ss:$16 sps:$4 sm:$0xff]  }
 0x2d6   :  { %v5472_v12 = vadd.f32 %v11751_v55, %v5429_v31  ;;  %v5468_v55 = vadd.f32 %v11538_v21, %v5425_v19  ;;  %v9969_v21 = vld [vmem:[%s13584_s1 + $0x152c] ss:$16 sps:$4 sm:$0xff]   ;;  %v10008_v19 = vld [vmem:[%s13586_s3 + $0xc4] ss:$16 sps:$4 sm:$0xff]  }
 0x2d7   :  { %6337 = vmatpush1.bf16.msra.mxu0 %v9916_v34  ;;  %v9958_v34 = vld [vmem:[%s13584_s1 + $0x17e8] ss:$16 sps:$4 sm:$0xff]  }
 0x2d8   :  { %6302 = vmatpush1.bf16.msra.mxu1 %v9913_v38  ;;  %6338 = vmatprep.subr.bf16.mxu0 %v9924_v61  ;;  %v9955_v38 = vld [vmem:[%s13584_s1 + $0x1568] ss:$16 sps:$4 sm:$0xff]   ;;  %v5515_v61 = vadd.f32 %v11970_v62, %v5472_v12 }
 0x2d9   :  { %6303 = vmatprep.subr.bf16.mxu1 %v9921_v2  ;;  %v9963_v2 = vld [vmem:[%s13584_s1 + $0x154c] ss:$16 sps:$4 sm:$0xff]  }
 0x2da   :  { %v5558_v62 = vadd.f32 %v11972_v54, %v5515_v61  ;;  %v9975_v54 = vld [vmem:[%s13584_s1 + $0x150c] ss:$16 sps:$4 sm:$0xff]   ;;  %v10012_v61 = vld [vmem:[%s13586_s3 + $0x80] ss:$16 sps:$4 sm:$0xff]  }
 0x2db   :  { %6339 = vmatpush1.bf16.msra.mxu0 %v9922_v43  ;;  %v9961_v43 = vld [vmem:[%s13584_s1 + $0x1548] ss:$16 sps:$4 sm:$0xff]  }
 0x2dc   :  { %6304 = vmatpush1.bf16.msra.mxu1 %v9919_v42  ;;  %6340 = vmatprep.subr.bf16.mxu0 %v9930_v24  ;;  %v5511_v42 = vadd.f32 %v11772_v29, %v5468_v55  ;;  %v9972_v29 = vld [vmem:[%s13584_s1 + $0x17ac] ss:$16 sps:$4 sm:$0xff]   ;;  %v10104_v55 = vld [vmem:[%s13586_s3 + $0x2c4] ss:$16 sps:$4 sm:$0xff]  }
 0x2dd   :  { %6305 = vmatprep.subr.bf16.mxu1 %v9927_v49  ;;  %v9964_v49 = vld [vmem:[%s13584_s1 + $0x17c8] ss:$16 sps:$4 sm:$0xff]  }
 0x2de   :  { %v5554_v24 = vadd.f32 %v11774_v58, %v5511_v42  ;;  %v9978_v58 = vld [vmem:[%s13584_s1 + $0x178c] ss:$16 sps:$4 sm:$0xff]   ;;  %v10017_v42 = vld [vmem:[%s13586_s3 + $0x64] ss:$16 sps:$4 sm:$0xff]  }
 0x2df   :  { %6341 = vmatpush1.bf16.msra.mxu0 %v9928_v5  ;;  %v9967_v5 = vld [vmem:[%s13584_s1 + $0x1528] ss:$16 sps:$4 sm:$0xff]  }
 0x2e0   :  { %6306 = vmatpush1.bf16.msra.mxu1 %v9925_v44  ;;  %6342 = vmatprep.subr.bf16.mxu0 %v9936_v3  ;;  %v5601_v44 = vadd.f32 %v12180_v6, %v5558_v62  ;;  %v5597_v6 = vadd.f32 %v11988_v27, %v5554_v24  ;;  %v9984_v27 = vld [vmem:[%s13584_s1 + $0x186c] ss:$16 sps:$4 sm:$0xff]   ;;  %v10105_v62 = vld [vmem:[%s13586_s3 + $0x2a0] ss:$16 sps:$4 sm:$0xff]   ;;  %v10110_v24 = vld [vmem:[%s13586_s3 + $0x284] ss:$16 sps:$4 sm:$0xff]  }
 0x2e1   :  { %6307 = vmatprep.subr.bf16.mxu1 %v9933_v22  ;;  %v9970_v22 = vld [vmem:[%s13584_s1 + $0x17a8] ss:$16 sps:$4 sm:$0xff]  }
 0x2e2   :  { %v5644_v3 = vadd.f32 %v12182_v4, %v5601_v44  ;;  %v5640_v4 = vadd.f32 %v11990_v36, %v5597_v6  ;;  %v9987_v36 = vld [vmem:[%s13584_s1 + $0x174c] ss:$16 sps:$4 sm:$0xff]   ;;  %v10018_v44 = vld [vmem:[%s13586_s3 + $0x40] ss:$16 sps:$4 sm:$0xff]   ;;  %v10026_v6 = vld [vmem:[%s13586_s3 + $0x4] ss:$16 sps:$4 sm:$0xff]  }
 0x2e3   :  { %6343 = vmatpush1.bf16.msra.mxu0 %v9934_v11  ;;  %v9976_v11 = vld [vmem:[%s13584_s1 + $0x1788] ss:$16 sps:$4 sm:$0xff]  }
 0x2e4   :  { %6308 = vmatpush2.bf16.msra.mxu1 %v9931_v57  ;;  %6344 = vmatprep.subr.bf16.mxu0 %v9942_v9  ;;  %v9973_v57 = vld [vmem:[%s13584_s1 + $0x1508] ss:$16 sps:$4 sm:$0xff]   ;;  %v5687_v9 = vadd.f32 %v12390_v37, %v5644_v3  ;;  %v5683_v41 = vadd.f32 %v12198_v13, %v5640_v4  ;;  %v9990_v13 = vld [vmem:[%s13584_s1 + $0x184c] ss:$16 sps:$4 sm:$0xff]   ;;  %v10111_v3 = vld [vmem:[%s13586_s3 + $0x260] ss:$16 sps:$4 sm:$0xff]  }
 0x2e5   :  { %6309 = vmatprep.subr.bf16.mxu1 %v9939_v7  ;;  %v9981_v7 = vld [vmem:[%s13584_s1 + $0x176c] ss:$16 sps:$4 sm:$0xff]   ;;  %v10119_v4 = vld [vmem:[%s13586_s3 + $0x224] ss:$16 sps:$4 sm:$0xff]  }
 0x2e6   :  { %v5730_v37 = vadd.f32 %v12392_v40, %v5687_v9  ;;  %v10027_v9 = vld [vmem:[%s13586_s3 + $0x1e0] ss:$16 sps:$4 sm:$0xff]  }
 0x2e7   :  { %6345 = vmatpush1.bf16.msra.mxu0 %v9940_v60  ;;  %v9982_v60 = vld [vmem:[%s13584_s1 + $0x1868] ss:$16 sps:$4 sm:$0xff]  }
 0x2e8   :  { %6310 = vmatpush2.bf16.msra.mxu1 %v9937_v30  ;;  %6346 = vmatprep.subr.bf16.mxu0 %v9948_v39  ;;  %v9979_v30 = vld [vmem:[%s13584_s1 + $0x1768] ss:$16 sps:$4 sm:$0xff]   ;;  %v5773_v39 = vadd.f32 %v12450_v32, %v5730_v37  ;;  %v5815_v32 = vpop.f32.mrf.mxu1  ;;  %v10120_v37 = vld [vmem:[%s13586_s3 + $0x200] ss:$16 sps:$4 sm:$0xff]  }
 0x2e9   :  { %6311 = vmatprep.subr.bf16.mxu1 %v9945_v16  ;;  %v5726_v16 = vadd.f32 %v12200_v25, %v5683_v41  ;;  %v9996_v25 = vld [vmem:[%s13584_s1 + $0x182c] ss:$16 sps:$4 sm:$0xff]   ;;  %v10032_v41 = vld [vmem:[%s13586_s3 + $0x1c4] ss:$16 sps:$4 sm:$0xff]  }
 0x2eb   :  { %6347 = vmatpush1.bf16.msra.mxu0 %v9946_v10  ;;  %v5769_v40 = vadd.f32 %v12408_v59, %v5726_v16  ;;  %v5816_v10 = vadd.f32 %v5815_v32, %v5773_v39  ;;  %v9999_v59 = vld [vmem:[%s13584_s1 + $0x170c] ss:$16 sps:$4 sm:$0xff]   ;;  %v10125_v16 = vld [vmem:[%s13586_s3 + $0x3e4] ss:$16 sps:$4 sm:$0xff]   ;;  %v10033_v39 = vld [vmem:[%s13586_s3 + $0x1a0] ss:$16 sps:$4 sm:$0xff]  }
 0x2ec   :  { %6312 = vmatpush2.bf16.msra.mxu1 %v9943_v53  ;;  %6348 = vmatprep.subr.bf16.mxu0 %v9954_v17  ;;  %v5858_v53 = vpop.f32.mrf.mxu0  ;;  %v9994_v17 = vld [vmem:[%s13584_s1 + $0x1828] ss:$16 sps:$4 sm:$0xff]   ;;  %v10044_v32 = vld [vmem:[%s13586_s3 + $0x144] ss:$16 sps:$4 sm:$0xff]  }
 0x2ed   :  { %6313 = vmatprep.subr.bf16.mxu1 %v9951_v56  ;;  %v9991_v56 = vld [vmem:[%s13584_s1 + $0x1728] ss:$16 sps:$4 sm:$0xff]   ;;  %v5812_v0 = vadd.f32 %v12410_v63, %v5769_v40  ;;  %v5859_v23 = vadd.f32 %v5858_v53, %v5816_v10  ;;  %v10039_v40 = vld [vmem:[%s13586_s3 + $0x160] ss:$16 sps:$4 sm:$0xff]   ;;  %v10128_v10 = vld [vmem:[%s13586_s3 + $0x3c4] ss:$16 sps:$4 sm:$0xff]  }
 0x2ee   :  { %v10042_v53 = vld [vmem:[%s13586_s3 + $0x140] ss:$16 sps:$4 sm:$0xff]  }
 0x2ef   :  { %6349 = vmatpush1.bf16.msra.mxu0 %v9952_v35  ;;  %v5855_v31 = vadd.f32 %v12465_v50, %v5812_v0  ;;  %v10000_v35 = vld [vmem:[%s13584_s1 + $0x1808] ss:$16 sps:$4 sm:$0xff]   ;;  %v6425_v63 = vmax.f32 %v5859_v23, 0.0  ;;  %v10003_v50 = vld [vmem:[%s13586_s3 + $0xe0] ss:$16 sps:$4 sm:$0xff]  }
 0x2f0   :  { %6314 = vmatpush2.bf16.msra.mxu1 %v9949_v45  ;;  %6350 = vmatprep.subr.bf16.mxu0 %v9960_v18  ;;  %v9997_v45 = vld [vmem:[%s13584_s1 + $0x1708] ss:$16 sps:$4 sm:$0xff]   ;;  %v10050_v0 = vld [vmem:[%s13586_s3 + $0x104] ss:$16 sps:$4 sm:$0xff]   ;;  %v10129_v23 = vld [vmem:[%s13586_s3 + $0x3a0] ss:$16 sps:$4 sm:$0xff]  }
 0x2f1   :  { %6315 = vmatprep.subr.bf16.mxu1 %v9957_v1  ;;  %v10005_v1 = vld [vmem:[%s13586_s3 + $0xe4] ss:$16 sps:$4 sm:$0xff]   ;;  %v6421_v18 = vmax.f32 %v5855_v31, 0.0 }
 0x2f2   :  { %v10134_v31 = vld [vmem:[%s13586_s3 + $0x384] ss:$16 sps:$4 sm:$0xff]  }
 0x2f3   :  { %6351 = vmatpush2.bf16.msra.mxu0 %v9958_v34  ;;  %v13074_v12 = vpack.c.bf16 %v6425_v63, %v6421_v18  ;;  %v10011_v34 = vld [vmem:[%s13586_s3 + $0xa4] ss:$16 sps:$4 sm:$0xff]   ;;  %v10053_v63 = vld [vmem:[%s13586_s3 + $0xec] ss:$16 sps:$4 sm:$0xff]   ;;  %v10135_v18 = vld [vmem:[%s13586_s3 + $0x360] ss:$16 sps:$4 sm:$0xff]  }
 0x2f4   :  { %6316 = vmatpush2.bf16.msra.mxu1 %v9955_v38  ;;  %6352 = vmatprep.subr.bf16.mxu0 %v9966_v20  ;;  %v10006_v38 = vld [vmem:[%s13586_s3 + $0xc0] ss:$16 sps:$4 sm:$0xff]   ;;  %v10101_v20 = vld [vmem:[%s13586_s3 + $0x2e4] ss:$16 sps:$4 sm:$0xff]  }
 0x2f5   :  { %6317 = vmatprep.subr.bf16.mxu1 %v9963_v2  ;;  %v10099_v2 = vld [vmem:[%s13586_s3 + $0x2e0] ss:$16 sps:$4 sm:$0xff]  }
 0x2f7   :  { %6353 = vmatpush2.bf16.msra.mxu0 %v9964_v49  ;;  %v10107_v49 = vld [vmem:[%s13586_s3 + $0x2a4] ss:$16 sps:$4 sm:$0xff]  }
 0x2f8   :  { %6318 = vmatpush2.bf16.msra.mxu1 %v9961_v43  ;;  %6354 = vmatprep.subr.bf16.mxu0 %v9972_v29  ;;  %v10102_v43 = vld [vmem:[%s13586_s3 + $0x2c0] ss:$16 sps:$4 sm:$0xff]   ;;  %v10020_v29 = vld [vmem:[%s13586_s3 + $0x44] ss:$16 sps:$4 sm:$0xff]  }
 0x2f9   :  { %6319 = vmatprep.subr.bf16.mxu1 %v9969_v21  ;;  %v10015_v21 = vld [vmem:[%s13586_s3 + $0x60] ss:$16 sps:$4 sm:$0xff]  }
 0x2fb   :  { %6355 = vmatpush2.bf16.msra.mxu0 %v9970_v22  ;;  %v10108_v22 = vld [vmem:[%s13586_s3 + $0x280] ss:$16 sps:$4 sm:$0xff]  }
 0x2fc   :  { %6320 = vmatpush2.bf16.msra.mxu1 %v9967_v5  ;;  %6356 = vmatprep.subr.bf16.mxu0 %v9978_v58  ;;  %v10023_v5 = vld [vmem:[%s13586_s3 + $0x24] ss:$16 sps:$4 sm:$0xff]   ;;  %v10021_v58 = vld [vmem:[%s13586_s3 + $0x20] ss:$16 sps:$4 sm:$0xff]  }
 0x2fd   :  { %6321 = vmatprep.subr.bf16.mxu1 %v9975_v54  ;;  %v10113_v54 = vld [vmem:[%s13586_s3 + $0x264] ss:$16 sps:$4 sm:$0xff]  }
 0x2ff   :  { %6357 = vmatpush2.bf16.msra.mxu0 %v9976_v11  ;;  %v10024_v11 = vld [vmem:[%s13586_s3] ss:$16 sps:$4 sm:$0xff]  }
 0x300   :  { %6322 = vmatpush2.bf16.msra.mxu1 %v9973_v57  ;;  %6358 = vmatprep.subr.bf16.mxu0 %v9981_v7  ;;  %v10116_v57 = vld [vmem:[%s13586_s3 + $0x244] ss:$16 sps:$4 sm:$0xff]  }
 0x301   :  { %6385 = vmatprep.subr.bf16.mxu1 %v9984_v27  ;;  %v10029_v7 = vld [vmem:[%s13586_s3 + $0x1e4] ss:$16 sps:$4 sm:$0xff]   ;;  %v10114_v27 = vld [vmem:[%s13586_s3 + $0x240] ss:$16 sps:$4 sm:$0xff]  }
 0x303   :  { %6324 = vmatmul.mubr.bf16.vlgmr.msra.gmra.mxu1 %v11745_v51  ;;  %6359 = vmatpush2.bf16.msra.mxu0 %v9979_v30  ;;  %v9993_v51 = vld [vmem:[%s13584_s1 + $0x172c] ss:$16 sps:$4 sm:$0xff]   ;;  %v10117_v30 = vld [vmem:[%s13586_s3 + $0x220] ss:$16 sps:$4 sm:$0xff]  }
 0x304   :  { %6386 = vmatpush1.bf16.msra.mxu1 %v9982_v60  ;;  %6360 = vmatprep.subr.bf16.mxu0 %v9987_v36  ;;  %v10122_v60 = vld [vmem:[%s13586_s3 + $0x204] ss:$16 sps:$4 sm:$0xff]   ;;  %v10030_v36 = vld [vmem:[%s13586_s3 + $0x1c0] ss:$16 sps:$4 sm:$0xff]  }
 0x305   :  { %6387 = vmatprep.subr.bf16.mxu1 %v9990_v13  ;;  %6409 = vmatprep.mubr.bf16.mxu1 %v10229_v15  ;;  %v10002_v15 = vld [vmem:[%s13584_s1 + $0x180c] ss:$16 sps:$4 sm:$0xff]   ;;  %v10035_v13 = vld [vmem:[%s13586_s3 + $0x1a4] ss:$16 sps:$4 sm:$0xff]  }
 0x307   :  { %6361 = vmatpush2.bf16.msra.mxu0 %v9985_v33  ;;  %v10038_v33 = vld [vmem:[%s13586_s3 + $0x184] ss:$16 sps:$4 sm:$0xff]  }
 0x308   :  { %6388 = vmatpush1.bf16.msra.mxu1 %v9988_v14  ;;  %6362 = vmatprep.subr.bf16.mxu0 %v9993_v51  ;;  %v10123_v14 = vld [vmem:[%s13586_s3 + $0x3e0] ss:$16 sps:$4 sm:$0xff]  }
 0x309   :  { %6389 = vmatprep.subr.bf16.mxu1 %v9996_v25  ;;  %v10036_v51 = vld [vmem:[%s13586_s3 + $0x180] ss:$16 sps:$4 sm:$0xff]   ;;  %v10041_v25 = vld [vmem:[%s13586_s3 + $0x164] ss:$16 sps:$4 sm:$0xff]  }
 0x30b   :  { %6363 = vmatpush2.bf16.msra.mxu0 %v9991_v56  ;;  %v10047_v56 = vld [vmem:[%s13586_s3 + $0x124] ss:$16 sps:$4 sm:$0xff]  }
 0x30c   :  { %6390 = vmatpush1.bf16.msra.mxu1 %v9994_v17  ;;  %6364 = vmatprep.subr.bf16.mxu0 %v9999_v59  ;;  %v10126_v17 = vld [vmem:[%s13586_s3 + $0x3c0] ss:$16 sps:$4 sm:$0xff]  }
 0x30d   :  { %6391 = vmatprep.subr.bf16.mxu1 %v10002_v15  ;;  %v10045_v59 = vld [vmem:[%s13586_s3 + $0x120] ss:$16 sps:$4 sm:$0xff]   ;;  %v10131_v15 = vld [vmem:[%s13586_s3 + $0x3a4] ss:$16 sps:$4 sm:$0xff]  }
 0x30f   :  { %6365 = vmatpush2.bf16.msra.mxu0 %v9997_v45  ;;  %v10132_v45 = vld [vmem:[%s13586_s3 + $0x380] ss:$16 sps:$4 sm:$0xff]  }
 0x310   :  { %6392 = vmatpush1.bf16.msra.mxu1 %v10000_v35  ;;  %7222 = vmatprep.subr.bf16.mxu0 %v10005_v1  ;;  %v10048_v35 = vld [vmem:[%s13586_s3 + $0x100] ss:$16 sps:$4 sm:$0xff]   ;;  %v10137_v1 = vld [vmem:[%s13586_s3 + $0x364] ss:$16 sps:$4 sm:$0xff]  }
 0x311   :  { %7265 = vmatprep.subr.bf16.mxu1 %v10101_v20  ;;  %v10062_v20 = vld [vmem:[%s13586_s3 + $0x8c] ss:$16 sps:$4 sm:$0xff]  }
 0x312   :  { %6367 = vmatmul.mubr.bf16.vlgmr.msra.gmra.mxu0 %v11747_v52  ;;  %v10009_v52 = vld [vmem:[%s13586_s3 + $0xa0] ss:$16 sps:$4 sm:$0xff]  }
 0x313   :  { %8579 = vmatmul.mubr.msk.bf16.vlgmr.msra.gmra.mxu1 %vm5298_vm0, %v11821_v8  ;;  %7223 = vmatpush1.bf16.msra.mxu0 %v10003_v50  ;;  %v10014_v8 = vld [vmem:[%s13586_s3 + $0x84] ss:$16 sps:$4 sm:$0xff]   ;;  %v10051_v50 = vld [vmem:[%s13586_s3 + $0xe8] ss:$16 sps:$4 sm:$0xff]  }
 0x314   :  { %7254 = vmatprep.mubr.bf16.mxu0 %v13074_v12  ;;  %7224 = vmatprep.subr.bf16.mxu0 %v10008_v19  ;;  %v10056_v19 = vld [vmem:[%s13586_s3 + $0xcc] ss:$16 sps:$4 sm:$0xff]  }
 0x315   :  { %7266 = vmatpush1.bf16.msra.mxu1 %v10099_v2  ;;  %v10143_v2 = vld [vmem:[%s13586_s3 + $0x324] ss:$16 sps:$4 sm:$0xff]  }
 0x316   :  { %7267 = vmatprep.subr.bf16.mxu1 %v10104_v55  ;;  %v10141_v55 = vld [vmem:[%s13586_s3 + $0x320] ss:$16 sps:$4 sm:$0xff]  }
 0x317   :  { %7225 = vmatpush1.bf16.msra.mxu0 %v10006_v38  ;;  %v10054_v38 = vld [vmem:[%s13586_s3 + $0xc8] ss:$16 sps:$4 sm:$0xff]  }
 0x318   :  { %7226 = vmatprep.subr.bf16.mxu0 %v10011_v34  ;;  %v10140_v34 = vld [vmem:[%s13586_s3 + $0x344] ss:$16 sps:$4 sm:$0xff]  }
 0x319   :  { %7268 = vmatpush1.bf16.msra.mxu1 %v10102_v43  ;;  %v10065_v43 = vld [vmem:[%s13586_s3 + $0x6c] ss:$16 sps:$4 sm:$0xff]  }
 0x31a   :  { %7269 = vmatprep.subr.bf16.mxu1 %v10107_v49  ;;  %v10144_v49 = vld [vmem:[%s13586_s3 + $0x300] ss:$16 sps:$4 sm:$0xff]  }
 0x31b   :  { %7227 = vmatpush1.bf16.msra.mxu0 %v10009_v52  ;;  %v10059_v52 = vld [vmem:[%s13586_s3 + $0xac] ss:$16 sps:$4 sm:$0xff]  }
 0x31c   :  { %7228 = vmatprep.subr.bf16.mxu0 %v10014_v8  ;;  %v10138_v8 = vld [vmem:[%s13586_s3 + $0x340] ss:$16 sps:$4 sm:$0xff]  }
 0x31d   :  { %7270 = vmatpush1.bf16.msra.mxu1 %v10105_v62  ;;  %v10068_v62 = vld [vmem:[%s13586_s3 + $0x4c] ss:$16 sps:$4 sm:$0xff]  }
 0x31e   :  { %7271 = vmatprep.subr.bf16.mxu1 %v10110_v24  ;;  %v10066_v24 = vld [vmem:[%s13586_s3 + $0x48] ss:$16 sps:$4 sm:$0xff]  }
 0x31f   :  { %7229 = vmatpush1.bf16.msra.mxu0 %v10012_v61  ;;  %v10060_v61 = vld [vmem:[%s13586_s3 + $0x88] ss:$16 sps:$4 sm:$0xff]  }
 0x320   :  { %7230 = vmatprep.subr.bf16.mxu0 %v10017_v42  ;;  %v10146_v42 = vld [vmem:[%s13586_s3 + $0x304] ss:$16 sps:$4 sm:$0xff]  }
 0x321   :  { %7272 = vmatpush1.bf16.msra.mxu1 %v10108_v22  ;;  %v10074_v22 = vld [vmem:[%s13586_s3 + $0xc] ss:$16 sps:$4 sm:$0xff]  }
 0x322   :  { %7273 = vmatprep.subr.bf16.mxu1 %v10113_v54  ;;  %v10072_v54 = vld [vmem:[%s13586_s3 + $0x8] ss:$16 sps:$4 sm:$0xff]  }
 0x323   :  { %7231 = vmatpush1.bf16.msra.mxu0 %v10015_v21  ;;  %v10063_v21 = vld [vmem:[%s13586_s3 + $0x68] ss:$16 sps:$4 sm:$0xff]  }
 0x324   :  { %7232 = vmatprep.subr.bf16.mxu0 %v10020_v29  ;;  %v10149_v29 = vld [vmem:[%s13586_s3 + $0x2ec] ss:$16 sps:$4 sm:$0xff]  }
 0x325   :  { %7274 = vmatpush1.bf16.msra.mxu1 %v10111_v3  ;;  %v10080_v3 = vld [vmem:[%s13586_s3 + $0x1cc] ss:$16 sps:$4 sm:$0xff]  }
 0x326   :  { %7275 = vmatprep.subr.bf16.mxu1 %v10116_v57  ;;  %v10078_v57 = vld [vmem:[%s13586_s3 + $0x1c8] ss:$16 sps:$4 sm:$0xff]  }
 0x327   :  { %7233 = vmatpush1.bf16.msra.mxu0 %v10018_v44  ;;  %v10071_v44 = vld [vmem:[%s13586_s3 + $0x2c] ss:$16 sps:$4 sm:$0xff]  }
 0x328   :  { %7234 = vmatprep.subr.bf16.mxu0 %v10023_v5  ;;  %v10069_v5 = vld [vmem:[%s13586_s3 + $0x28] ss:$16 sps:$4 sm:$0xff]  }
 0x329   :  { %7276 = vmatpush1.bf16.msra.mxu1 %v10114_v27  ;;  %v10086_v27 = vld [vmem:[%s13586_s3 + $0x18c] ss:$16 sps:$4 sm:$0xff]  }
 0x32a   :  { %7277 = vmatprep.subr.bf16.mxu1 %v10119_v4  ;;  %v10084_v4 = vld [vmem:[%s13586_s3 + $0x188] ss:$16 sps:$4 sm:$0xff]  }
 0x32b   :  { %7235 = vmatpush1.bf16.msra.mxu0 %v10021_v58  ;;  %v10077_v58 = vld [vmem:[%s13586_s3 + $0x1ec] ss:$16 sps:$4 sm:$0xff]  }
 0x32c   :  { %7236 = vmatprep.subr.bf16.mxu0 %v10026_v6  ;;  %v10075_v6 = vld [vmem:[%s13586_s3 + $0x1e8] ss:$16 sps:$4 sm:$0xff]  }
 0x32d   :  { %7278 = vmatpush1.bf16.msra.mxu1 %v10117_v30  ;;  %v10087_v30 = vld [vmem:[%s13586_s3 + $0x168] ss:$16 sps:$4 sm:$0xff]  }
 0x32e   :  { %7279 = vmatprep.subr.bf16.mxu1 %v10122_v60  ;;  %v10092_v60 = vld [vmem:[%s13586_s3 + $0x14c] ss:$16 sps:$4 sm:$0xff]  }
 0x32f   :  { %7237 = vmatpush1.bf16.msra.mxu0 %v10024_v11  ;;  %v10083_v11 = vld [vmem:[%s13586_s3 + $0x1ac] ss:$16 sps:$4 sm:$0xff]  }
 0x330   :  { %7238 = vmatprep.subr.bf16.mxu0 %v10029_v7  ;;  %v10081_v7 = vld [vmem:[%s13586_s3 + $0x1a8] ss:$16 sps:$4 sm:$0xff]  }
 0x331   :  { %7280 = vmatpush1.bf16.msra.mxu1 %v10120_v37  ;;  %v10095_v37 = vld [vmem:[%s13586_s3 + $0x12c] ss:$16 sps:$4 sm:$0xff]  }
 0x332   :  { %7281 = vmatprep.subr.bf16.mxu1 %v10125_v16 }
 0x333   :  { %7239 = vmatpush2.bf16.msra.mxu0 %v10027_v9  ;;  %v10089_v9 = vld [vmem:[%s13586_s3 + $0x16c] ss:$16 sps:$4 sm:$0xff]  }
 0x334   :  { %7240 = vmatprep.subr.bf16.mxu0 %v10032_v41  ;;  %v5895_v41 = vpop.f32.mrf.mxu1 }
 0x335   :  { %7282 = vmatpush2.bf16.msra.mxu1 %v10123_v14 }
 0x336   :  { %7283 = vmatprep.subr.bf16.mxu1 %v10128_v10 }
 0x337   :  { %7241 = vmatpush2.bf16.msra.mxu0 %v10030_v36  ;;  %v5897_v36 = vpop.f32.mrf.mxu1 }
 0x338   :  { %7242 = vmatprep.subr.bf16.mxu0 %v10035_v13  ;;  %v10090_v13 = vld [vmem:[%s13586_s3 + $0x148] ss:$16 sps:$4 sm:$0xff]  }
 0x339   :  { %7284 = vmatpush2.bf16.msra.mxu1 %v10126_v17  ;;  %v5899_v16 = vpop.f32.mrf.mxu1 }
 0x33a   :  { %7285 = vmatprep.subr.bf16.mxu1 %v10131_v15 }
 0x33b   :  { %7243 = vmatpush2.bf16.msra.mxu0 %v10033_v39  ;;  %v10093_v39 = vld [vmem:[%s13586_s3 + $0x128] ss:$16 sps:$4 sm:$0xff]   ;;  %v5901_v14 = vpop.f32.mrf.mxu1 }
 0x33c   :  { %7244 = vmatprep.subr.bf16.mxu0 %v10038_v33  ;;  %v10098_v33 = vld [vmem:[%s13586_s3 + $0x10c] ss:$16 sps:$4 sm:$0xff]  }
 0x33d   :  { %7286 = vmatpush2.bf16.msra.mxu1 %v10129_v23 }
 0x33e   :  { %7287 = vmatprep.subr.bf16.mxu1 %v10134_v31 }
 0x33f   :  { %7245 = vmatpush2.bf16.msra.mxu0 %v10036_v51  ;;  %v10096_v51 = vld [vmem:[%s13586_s3 + $0x108] ss:$16 sps:$4 sm:$0xff]  }
 0x340   :  { %7246 = vmatprep.subr.bf16.mxu0 %v10041_v25  ;;  %v5938_v25 = vpop.f32.mrf.mxu0 }
 0x341   :  { %7288 = vmatpush2.bf16.msra.mxu1 %v10132_v45 }
 0x342   :  { %7289 = vmatprep.subr.bf16.mxu1 %v10137_v1 }
 0x343   :  { %7247 = vmatpush2.bf16.msra.mxu0 %v10039_v40  ;;  %v5981_v40 = vpop.f32.mrf.mxu1 }
 0x344   :  { %7248 = vmatprep.subr.bf16.mxu0 %v10044_v32  ;;  %v5940_v32 = vpop.f32.mrf.mxu0 }
 0x345   :  { %7290 = vmatpush2.bf16.msra.mxu1 %v10135_v18 }
 0x346   :  { %7291 = vmatprep.subr.bf16.mxu1 %v10140_v34  ;;  %v5942_v10 = vpop.f32.mrf.mxu0 }
 0x347   :  { %7249 = vmatpush2.bf16.msra.mxu0 %v10042_v53  ;;  %v5983_v53 = vpop.f32.mrf.mxu1 }
 0x348   :  { %7250 = vmatprep.subr.bf16.mxu0 %v10047_v56  ;;  %v5944_v17 = vpop.f32.mrf.mxu0 }
 0x349   :  { %7292 = vmatpush2.bf16.msra.mxu1 %v10138_v8  ;;  %v5985_v56 = vpop.f32.mrf.mxu1 }
 0x34a   :  { %7293 = vmatprep.subr.bf16.mxu1 %v10143_v2  ;;  %v6024_v15 = vpop.f32.mrf.mxu0 }
 0x34b   :  { %7251 = vmatpush2.bf16.msra.mxu0 %v10045_v59  ;;  %v5987_v59 = vpop.f32.mrf.mxu1 }
 0x34c   :  { %7252 = vmatprep.subr.bf16.mxu0 %v10050_v0  ;;  %v6026_v23 = vpop.f32.mrf.mxu0 }
 0x34d   :  { %7294 = vmatpush2.bf16.msra.mxu1 %v10141_v55  ;;  %v6067_v0 = vpop.f32.mrf.mxu1  ;;  %v855_v55 = vsub.s32 2, %v10402_v47 }
 0x34e   :  { %7295 = vmatprep.subr.bf16.mxu1 %v10146_v42  ;;  %v6028_v45 = vpop.f32.mrf.mxu0 }
 0x34f   :  { %7253 = vmatpush2.bf16.msra.mxu0 %v10048_v35  ;;  %v6069_v31 = vpop.f32.mrf.mxu1 }
 0x350   :  { %7308 = vmatprep.subr.bf16.mxu0 %v10053_v63  ;;  %v6030_v1 = vpop.f32.mrf.mxu0 }
 0x351   :  { %7296 = vmatpush2.bf16.msra.mxu1 %v10144_v49  ;;  %v6071_v35 = vpop.f32.mrf.mxu1  ;;  %v856_v49 = vrot.slane %v12908_v46, %v855_v55 }
 0x352   :  { %7255 = vmatmul.mubr.bf16.vlgmr.msra.gmra.mxu0 %v12486_v26  ;;  %7351 = vmatprep.subr.bf16.mxu1 %v10149_v29  ;;  %v6110_v18 = vpop.f32.mrf.mxu0 }
 0x353   :  { %7309 = vmatpush1.bf16.msra.mxu0 %v10051_v50  ;;  %7340 = vmatprep.mubr.bf16.mxu0 %v13074_v12  ;;  %v10057_v12 = vld [vmem:[%s13586_s3 + $0xa8] ss:$16 sps:$4 sm:$0xff]   ;;  %v6073_v63 = vpop.f32.mrf.mxu1 }
 0x354   :  { %7310 = vmatprep.subr.bf16.mxu0 %v10056_v19  ;;  %v6112_v19 = vpop.f32.mrf.mxu0 }
 0x355   :  { %v6153_v50 = vpop.f32.mrf.mxu1 }
 0x356   :  { %v6114_v34 = vpop.f32.mrf.mxu0 }
 0x357   :  { %7311 = vmatpush1.bf16.msra.mxu0 %v10054_v38  ;;  %v6155_v38 = vpop.f32.mrf.mxu1 }
 0x358   :  { %7312 = vmatprep.subr.bf16.mxu0 %v10059_v52  ;;  %v6116_v8 = vpop.f32.mrf.mxu0 }
 0x359   :  { %v6157_v52 = vpop.f32.mrf.mxu1 }
 0x35b   :  { %7313 = vmatpush1.bf16.msra.mxu0 %v10057_v12  ;;  %v6196_v12 = vpop.f32.mrf.mxu0 }
 0x35c   :  { %7314 = vmatprep.subr.bf16.mxu0 %v10062_v20  ;;  %v859_v20 = vsub.s32 3, %v10402_v47 }
 0x35f   :  { %7315 = vmatpush1.bf16.msra.mxu0 %v10060_v61  ;;  %v6198_v61 = vpop.f32.mrf.mxu0 }
 0x360   :  { %7316 = vmatprep.subr.bf16.mxu0 %v10065_v43  ;;  %v860_v43 = vrot.slane %v12908_v46, %v859_v20 }
 0x363   :  { %7317 = vmatpush1.bf16.msra.mxu0 %v10063_v21  ;;  %v6200_v21 = vpop.f32.mrf.mxu0 }
 0x364   :  { %7318 = vmatprep.subr.bf16.mxu0 %v10068_v62  ;;  %v5898_v62 = vadd.f32 %v5897_v36, %v860_v43 }
 0x367   :  { %7319 = vmatpush1.bf16.msra.mxu0 %v10066_v24  ;;  %v5896_v24 = vadd.f32 %v5895_v41, %v856_v49 }
 0x368   :  { %7320 = vmatprep.subr.bf16.mxu0 %v10071_v44  ;;  %v5900_v44 = vadd.f32 %v5899_v16, %v856_v49 }
 0x36b   :  { %7321 = vmatpush1.bf16.msra.mxu0 %v10069_v5  ;;  %v5941_v5 = vadd.f32 %v5940_v32, %v5898_v62 }
 0x36c   :  { %7322 = vmatprep.subr.bf16.mxu0 %v10074_v22  ;;  %v5939_v22 = vadd.f32 %v5938_v25, %v5896_v24 }
 0x36f   :  { %7323 = vmatpush1.bf16.msra.mxu0 %v10072_v54  ;;  %v6202_v54 = vpop.f32.mrf.mxu0 }
 0x370   :  { %7324 = vmatprep.subr.bf16.mxu0 %v10077_v58 }
 0x373   :  { %7325 = vmatpush2.bf16.msra.mxu0 %v10075_v6  ;;  %v5902_v6 = vadd.f32 %v5901_v14, %v860_v43 }
 0x374   :  { %7326 = vmatprep.subr.bf16.mxu0 %v10080_v3  ;;  %v5943_v3 = vadd.f32 %v5942_v10, %v5900_v44 }
 0x377   :  { %7327 = vmatpush2.bf16.msra.mxu0 %v10078_v57  ;;  %v5984_v57 = vadd.f32 %v5983_v53, %v5941_v5 }
 0x378   :  { %7328 = vmatprep.subr.bf16.mxu0 %v10083_v11  ;;  %v5982_v11 = vadd.f32 %v5981_v40, %v5939_v22 }
 0x37b   :  { %7329 = vmatpush2.bf16.msra.mxu0 %v10081_v7 }
 0x37c   :  { %7330 = vmatprep.subr.bf16.mxu0 %v10086_v27 }
 0x37f   :  { %7331 = vmatpush2.bf16.msra.mxu0 %v10084_v4  ;;  %v5945_v4 = vadd.f32 %v5944_v17, %v5902_v6 }
 0x380   :  { %7332 = vmatprep.subr.bf16.mxu0 %v10089_v9  ;;  %v5986_v9 = vadd.f32 %v5985_v56, %v5943_v3 }
 0x381   :  { %v5988_v46 = vadd.f32 %v5987_v59, %v5945_v4 }
 0x383   :  { %7333 = vmatpush2.bf16.msra.mxu0 %v10087_v30  ;;  %v6027_v30 = vadd.f32 %v6026_v23, %v5984_v57  ;;  %v10196_v57 = vld [vmem:[%s13588_s5 + $0x38] sm:$0xff]  }
 0x384   :  { %7334 = vmatprep.subr.bf16.mxu0 %v10092_v60  ;;  %v6025_v60 = vadd.f32 %v6024_v15, %v5982_v11  ;;  %v10197_v11 = vld [vmem:[%s13588_s5 + $0x70] sm:$0xff]  }
 0x386   :  { %v6068_v36 = vadd.f32 %v6067_v0, %v6025_v60 }
 0x387   :  { %7335 = vmatpush2.bf16.msra.mxu0 %v10090_v13  ;;  %v6029_v13 = vadd.f32 %v6028_v45, %v5986_v9 }
 0x388   :  { %7336 = vmatprep.subr.bf16.mxu0 %v10095_v37  ;;  %v6070_v37 = vadd.f32 %v6069_v31, %v6027_v30  ;;  %v6111_v25 = vadd.f32 %v6110_v18, %v6068_v36  ;;  %v10198_v30 = vld [vmem:[%s13588_s5 + $0x30] sm:$0xff]  }
 0x38a   :  { %v6154_v40 = vadd.f32 %v6153_v50, %v6111_v25  ;;  %v10150_v25 = vld [vmem:[%s13586_s3 + $0x2c8] ss:$16 sps:$4 sm:$0xff]  }
 0x38b   :  { %7337 = vmatpush2.bf16.msra.mxu0 %v10093_v39  ;;  %v6031_v39 = vadd.f32 %v6030_v1, %v5988_v46 }
 0x38c   :  { %7338 = vmatprep.subr.bf16.mxu0 %v10098_v33  ;;  %v6072_v33 = vadd.f32 %v6071_v35, %v6029_v13  ;;  %v6197_v15 = vadd.f32 %v6196_v12, %v6154_v40  ;;  %v10199_v13 = vld [vmem:[%s13588_s5 + $0x68] sm:$0xff]  }
 0x38d   :  { %v6074_v14 = vadd.f32 %v6073_v63, %v6031_v39  ;;  %v10152_v39 = vld [vmem:[%s13586_s3 + $0x2cc] ss:$16 sps:$4 sm:$0xff]   ;;  %v10153_v40 = vld [vmem:[%s13586_s3 + $0x2a8] ss:$16 sps:$4 sm:$0xff]  }
 0x38e   :  { %v6115_v32 = vadd.f32 %v6114_v34, %v6072_v33  ;;  %v10200_v33 = vld [vmem:[%s13588_s5 + $0x28] sm:$0xff]  }
 0x38f   :  { %7339 = vmatpush2.bf16.msra.mxu0 %v10096_v51  ;;  %v6113_v51 = vadd.f32 %v6112_v19, %v6070_v37  ;;  %v6117_v17 = vadd.f32 %v6116_v8, %v6074_v14  ;;  %v10155_v14 = vld [vmem:[%s13586_s3 + $0x2ac] ss:$16 sps:$4 sm:$0xff]  }
 0x390   :  { %v6158_v56 = vadd.f32 %v6157_v52, %v6115_v32  ;;  %v10202_v32 = vld [vmem:[%s13588_s5 + $0x20] sm:$0xff]  }
 0x391   :  { %v6156_v53 = vadd.f32 %v6155_v38, %v6113_v51  ;;  %v10201_v51 = vld [vmem:[%s13588_s5 + $0x60] sm:$0xff]  }
 0x392   :  { %7341 = vmatmul.mubr.bf16.vlgmr.msra.gmra.mxu0 %v12486_v26  ;;  %v6159_v26 = vpop.f32.mrf.mxu1  ;;  %v6282_v7 = vpop.f32.mrf.mxu0  ;;  %v6201_v45 = vadd.f32 %v6200_v21, %v6158_v56  ;;  %v10161_v56 = vld [vmem:[%s13586_s3 + $0x26c] ss:$16 sps:$4 sm:$0xff]  }
 0x393   :  { %v6199_v23 = vadd.f32 %v6198_v61, %v6156_v53  ;;  %v6160_v59 = vadd.f32 %v6159_v26, %v6117_v17  ;;  %v10203_v53 = vld [vmem:[%s13588_s5 + $0x58] sm:$0xff]  }
 0x394   :  { %v6239_v2 = vpop.f32.mrf.mxu1  ;;  %v6284_v41 = vpop.f32.mrf.mxu0  ;;  %v10156_v17 = vld [vmem:[%s13586_s3 + $0x288] ss:$16 sps:$4 sm:$0xff]  }
 0x395   :  { %v6240_v0 = vadd.f32 %v6239_v2, %v6197_v15  ;;  %v6203_v1 = vadd.f32 %v6202_v54, %v6160_v59  ;;  %v10164_v15 = vld [vmem:[%s13586_s3 + $0x24c] ss:$16 sps:$4 sm:$0xff]   ;;  %v10162_v59 = vld [vmem:[%s13586_s3 + $0x248] ss:$16 sps:$4 sm:$0xff]  }
 0x396   :  { %v6241_v42 = vpop.f32.mrf.mxu1  ;;  %v6286_v10 = vpop.f32.mrf.mxu0 }
 0x397   :  { %v6242_v31 = vadd.f32 %v6241_v42, %v6199_v23  ;;  %v6283_v18 = vadd.f32 %v6282_v7, %v6240_v0  ;;  %v10159_v23 = vld [vmem:[%s13586_s3 + $0x268] ss:$16 sps:$4 sm:$0xff]   ;;  %v10170_v0 = vld [vmem:[%s13586_s3 + $0x20c] ss:$16 sps:$4 sm:$0xff]  }
 0x398   :  { %v6243_v29 = vpop.f32.mrf.mxu1  ;;  %v6288_v49 = vpop.f32.mrf.mxu0 }
 0x399   :  { %v6244_v35 = vadd.f32 %v6243_v29, %v6201_v45  ;;  %v6285_v19 = vadd.f32 %v6284_v41, %v6242_v31  ;;  %v10147_v41 = vld [vmem:[%s13586_s3 + $0x2e8] ss:$16 sps:$4 sm:$0xff]   ;;  %v10167_v45 = vld [vmem:[%s13586_s3 + $0x22c] ss:$16 sps:$4 sm:$0xff]  }
 0x39a   :  { %v6245_v58 = vpop.f32.mrf.mxu1  ;;  %v10165_v31 = vld [vmem:[%s13586_s3 + $0x228] ss:$16 sps:$4 sm:$0xff]  }
 0x39b   :  { %v6246_v38 = vadd.f32 %v6245_v58, %v6203_v1  ;;  %v6287_v50 = vadd.f32 %v6286_v10, %v6244_v35  ;;  %v10195_v58 = vld [vmem:[%s13588_s5 + $0x78] sm:$0xff]  }
 0x39c   :  { %8741 = vmatprep.subr.bf16.mxu0 %v10195_v58  ;;  %v10158_v10 = vld [vmem:[%s13586_s3 + $0x28c] ss:$16 sps:$4 sm:$0xff]   ;;  %v10171_v1 = vld [vmem:[%s13586_s3 + $0x3e8] ss:$16 sps:$4 sm:$0xff]   ;;  %v10214_v58 = vld [vmem:[%s13588_s5 + $0xb0] sm:$0xff]  }
 0x39d   :  { %v6289_v61 = vadd.f32 %v6288_v49, %v6246_v38  ;;  %8742 = vmatpush3.bf16.msra.mxu0 %v10196_v57  ;;  %v10168_v49 = vld [vmem:[%s13586_s3 + $0x208] ss:$16 sps:$4 sm:$0xff]   ;;  %v10176_v35 = vld [vmem:[%s13586_s3 + $0x3cc] ss:$16 sps:$4 sm:$0xff]  }
 0x39e   :  { %8743 = vmatprep.subr.bf16.mxu0 %v10197_v11  ;;  %v10180_v38 = vld [vmem:[%s13586_s3 + $0x388] ss:$16 sps:$4 sm:$0xff]  }
 0x39f   :  { %v10215_v57 = vld [vmem:[%s13588_s5 + $0xe8] sm:$0xff]  }
 0x3a0   :  { %v10216_v11 = vld [vmem:[%s13588_s5 + $0xa8] sm:$0xff]  }
 0x3a1   :  { %8744 = vmatpush3.bf16.msra.mxu0 %v10198_v30  ;;  %v10221_v30 = vld [vmem:[%s13588_s5 + $0xd0] sm:$0xff]  }
 0x3a2   :  { %8745 = vmatprep.subr.bf16.mxu0 %v10199_v13  ;;  %v10224_v13 = vld [vmem:[%s13588_s5 + $0x88] sm:$0xff]  }
 0x3a5   :  { %8746 = vmatpush3.bf16.msra.mxu0 %v10200_v33 }
 0x3a6   :  { %8747 = vmatprep.subr.bf16.mxu0 %v10201_v51 }
 0x3a9   :  { %8748 = vmatpush3.bf16.msra.mxu0 %v10202_v32 }
 0x3aa   :  { %8749 = vmatprep.subr.bf16.mxu0 %v10203_v53 }
 0x3c3   :  { %v6325_v27 = vpop.f32.mrf.mxu1 }
 0x3c4   :  { %v6326_v44 = vadd.f32 %v6325_v27, %v6283_v18  ;;  %v10179_v18 = vld [vmem:[%s13586_s3 + $0x3ac] ss:$16 sps:$4 sm:$0xff]  }
 0x3c5   :  { %v6327_v16 = vpop.f32.mrf.mxu1 }
 0x3c6   :  { %v6328_v24 = vadd.f32 %v6327_v16, %v6285_v19  ;;  %v10174_v19 = vld [vmem:[%s13586_s3 + $0x3c8] ss:$16 sps:$4 sm:$0xff]  }
 0x3c7   :  { %v6329_v43 = vpop.f32.mrf.mxu1 }
 0x3c8   :  { %v6330_v12 = vadd.f32 %v6329_v43, %v6287_v50  ;;  %v10204_v43 = vld [vmem:[%s13588_s5 + $0x18] sm:$0xff]  }
 0x3c9   :  { %v6331_v62 = vpop.f32.mrf.mxu1  ;;  %8750 = vmatpush3.bf16.msra.mxu0 %v10204_v43  ;;  %v10185_v50 = vld [vmem:[%s13586_s3 + $0x36c] ss:$16 sps:$4 sm:$0xff]  }
 0x3ca   :  { %v6332_v5 = vadd.f32 %v6331_v62, %v6289_v61  ;;  %v10173_v62 = vld [vmem:[%s13586_s3 + $0x3ec] ss:$16 sps:$4 sm:$0xff]   ;;  %v10189_v61 = vld [vmem:[%s13586_s3 + $0x328] ss:$16 sps:$4 sm:$0xff]  }
 0x3d2   :  { %v6368_v63 = vpop.f32.mrf.mxu0 }
 0x3d3   :  { %v6411_v34 = vpop.f32.mrf.mxu1  ;;  %v6369_v21 = vadd.f32 %v6368_v63, %v6326_v44  ;;  %v10177_v63 = vld [vmem:[%s13586_s3 + $0x3a8] ss:$16 sps:$4 sm:$0xff]   ;;  %v10188_v44 = vld [vmem:[%s13586_s3 + $0x34c] ss:$16 sps:$4 sm:$0xff]  }
 0x3d4   :  { %v6370_v8 = vpop.f32.mrf.mxu0 }
 0x3d5   :  { %v6413_v52 = vpop.f32.mrf.mxu1  ;;  %v6371_v26 = vadd.f32 %v6370_v8, %v6328_v24  ;;  %v6412_v7 = vadd.f32 %v6411_v34, %v6369_v21  ;;  %v10182_v34 = vld [vmem:[%s13586_s3 + $0x38c] ss:$16 sps:$4 sm:$0xff]   ;;  %v10183_v24 = vld [vmem:[%s13586_s3 + $0x368] ss:$16 sps:$4 sm:$0xff]   ;;  %v10205_v21 = vld [vmem:[%s13588_s5 + $0x50] sm:$0xff]  }
 0x3d6   :  { %v6372_v42 = vpop.f32.mrf.mxu0  ;;  %v10186_v8 = vld [vmem:[%s13586_s3 + $0x348] ss:$16 sps:$4 sm:$0xff]   ;;  %8751 = vmatprep.subr.bf16.mxu0 %v10205_v21 }
 0x3d7   :  { %v6415_v2 = vpop.f32.mrf.mxu1  ;;  %v6373_v22 = vadd.f32 %v6372_v42, %v6330_v12  ;;  %v6414_v29 = vadd.f32 %v6413_v52, %v6371_v26  ;;  %v6422_v37 = vmax.f32 %v6412_v7, 0.0  ;;  %v10191_v52 = vld [vmem:[%s13586_s3 + $0x32c] ss:$16 sps:$4 sm:$0xff]   ;;  %v10192_v26 = vld [vmem:[%s13586_s3 + $0x308] ss:$16 sps:$4 sm:$0xff]   ;;  %v10206_v42 = vld [vmem:[%s13588_s5 + $0x10] sm:$0xff]  }
 0x3d8   :  { %v6374_v54 = vpop.f32.mrf.mxu0  ;;  %v10194_v12 = vld [vmem:[%s13586_s3 + $0x30c] ss:$16 sps:$4 sm:$0xff]   ;;  %8752 = vmatpush3.bf16.msra.mxu0 %v10206_v42  ;;  %v10217_v7 = vld [vmem:[%s13588_s5 + $0xe0] sm:$0xff]  }
 0x3d9   :  { %v6416_v6 = vadd.f32 %v6415_v2, %v6373_v22  ;;  %v6375_v3 = vadd.f32 %v6374_v54, %v6332_v5  ;;  %v6417_v27 = vpop.f32.mrf.mxu1  ;;  %v6423_v60 = vmax.f32 %v6414_v29, 0.0  ;;  %v10207_v2 = vld [vmem:[%s13588_s5 + $0x48] sm:$0xff]   ;;  %v10209_v22 = vld [vmem:[%s13588_s5 + $0x40] sm:$0xff]   ;;  %v10211_v29 = vld [vmem:[%s13588_s5 + $0xf8] sm:$0xff]  }
 0x3da   :  { %v10208_v5 = vld [vmem:[%s13588_s5 + $0x8] sm:$0xff]   ;;  %8753 = vmatprep.subr.bf16.mxu0 %v10207_v2  ;;  %v10210_v54 = vld [vmem:[%s13588_s5] sm:$0xff]  }
 0x3db   :  { %v6418_v4 = vadd.f32 %v6417_v27, %v6375_v3  ;;  %v6426_v9 = vmax.f32 %v6416_v6, 0.0  ;;  %v10212_v6 = vld [vmem:[%s13588_s5 + $0xb8] sm:$0xff]   ;;  %v10213_v3 = vld [vmem:[%s13588_s5 + $0xf0] sm:$0xff]   ;;  %v10218_v27 = vld [vmem:[%s13588_s5 + $0xa0] sm:$0xff]  }
 0x3dc   :  { %8754 = vmatpush3.bf16.msra.mxu0 %v10208_v5 }
 0x3dd   :  { %v6427_v46 = vmax.f32 %v6418_v4, 0.0  ;;  %v13391_v16 = vpack.c.bf16 %v6426_v9, %v6422_v37  ;;  %8755 = vmatprep.subr.bf16.mxu0 %v10209_v22  ;;  %v10219_v4 = vld [vmem:[%s13588_s5 + $0xd8] sm:$0xff]   ;;  %v10225_v37 = vld [vmem:[%s13588_s5 + $0xc0] sm:$0xff]  }
 0x3de   :  { %v10220_v9 = vld [vmem:[%s13588_s5 + $0x98] sm:$0xff]  }
 0x3df   :  { %v6431_v36 = vpack.c.bf16 %v6427_v46, %v6423_v60  ;;  %v10222_v60 = vld [vmem:[%s13588_s5 + $0x90] sm:$0xff]   ;;  %v10223_v46 = vld [vmem:[%s13588_s5 + $0xc8] sm:$0xff]  }
 0x3e0   :  { %8756 = vmatpush3.bf16.msra.mxu0 %v10210_v54 }
 0x3e1   :  { %7297 = vmatprep.mubr.bf16.mxu1 %v6431_v36 }
 0x3e2   :  { %7298 = vmatmul.mubr.bf16.vlgmr.msra.gmra.mxu1 %v13391_v16 }
 0x3e3   :  { %7352 = vmatpush1.bf16.msra.mxu1 %v10147_v41  ;;  %7383 = vmatprep.mubr.bf16.mxu1 %v6431_v36  ;;  %v10226_v36 = vld [vmem:[%s13588_s5 + $0x80] sm:$0xff]  }
 0x3e4   :  { %7353 = vmatprep.subr.bf16.mxu1 %v10152_v39  ;;  %v6560_v39 = vld [vmem:[%s13587_s4] sm:$0xf] }
 0x3e5   :  { %v6569_v51 = vrot.slane %v6560_v39, %v851_v48 }
 0x3e7   :  { %7354 = vmatpush1.bf16.msra.mxu1 %v10150_v25  ;;  %v6565_v25 = vrot.slane %v6560_v39, %v847_v28 }
 0x3e8   :  { %7355 = vmatprep.subr.bf16.mxu1 %v10155_v14 }
 0x3eb   :  { %7356 = vmatpush1.bf16.msra.mxu1 %v10153_v40 }
 0x3ec   :  { %7357 = vmatprep.subr.bf16.mxu1 %v10158_v10 }
 0x3ef   :  { %7358 = vmatpush1.bf16.msra.mxu1 %v10156_v17 }
 0x3f0   :  { %7359 = vmatprep.subr.bf16.mxu1 %v10161_v56 }
 0x3f3   :  { %7360 = vmatpush1.bf16.msra.mxu1 %v10159_v23 }
 0x3f4   :  { %7361 = vmatprep.subr.bf16.mxu1 %v10164_v15 }
 0x3f7   :  { %7362 = vmatpush1.bf16.msra.mxu1 %v10162_v59 }
 0x3f8   :  { %7363 = vmatprep.subr.bf16.mxu1 %v10167_v45 }
 0x3fb   :  { %7364 = vmatpush1.bf16.msra.mxu1 %v10165_v31 }
 0x3fc   :  { %7365 = vmatprep.subr.bf16.mxu1 %v10170_v0 }
 0x3ff   :  { %7366 = vmatpush1.bf16.msra.mxu1 %v10168_v49 }
 0x400   :  { %7367 = vmatprep.subr.bf16.mxu1 %v10173_v62 }
 0x403   :  { %7368 = vmatpush2.bf16.msra.mxu1 %v10171_v1 }
 0x404   :  { %7369 = vmatprep.subr.bf16.mxu1 %v10176_v35 }
 0x407   :  { %7370 = vmatpush2.bf16.msra.mxu1 %v10174_v19 }
 0x408   :  { %7371 = vmatprep.subr.bf16.mxu1 %v10179_v18 }
 0x40b   :  { %7372 = vmatpush2.bf16.msra.mxu1 %v10177_v63  ;;  %v6577_v63 = vrot.slane %v6560_v39, %v859_v20 }
 0x40c   :  { %7373 = vmatprep.subr.bf16.mxu1 %v10182_v34  ;;  %v6573_v34 = vrot.slane %v6560_v39, %v855_v55 }
 0x40f   :  { %7374 = vmatpush2.bf16.msra.mxu1 %v10180_v38 }
 0x410   :  { %7375 = vmatprep.subr.bf16.mxu1 %v10185_v50 }
 0x412   :  { %v7256_v41 = vpop.f32.mrf.mxu0 }
 0x413   :  { %7376 = vmatpush2.bf16.msra.mxu1 %v10183_v24  ;;  %v7257_v43 = vadd.f32 %v7256_v41, %v6565_v25 }
 0x414   :  { %7377 = vmatprep.subr.bf16.mxu1 %v10188_v44 }
 0x417   :  { %7378 = vmatpush2.bf16.msra.mxu1 %v10186_v8 }
 0x418   :  { %7379 = vmatprep.subr.bf16.mxu1 %v10191_v52 }
 0x41b   :  { %7380 = vmatpush2.bf16.msra.mxu1 %v10189_v61 }
 0x41c   :  { %7381 = vmatprep.subr.bf16.mxu1 %v10194_v12 }
 0x41f   :  { %7382 = vmatpush2.bf16.msra.mxu1 %v10192_v26 }
 0x420   :  { %8763 = vmatprep.subr.bf16.mxu1 %v10211_v29 }
 0x422   :  { %7384 = vmatmul.mubr.bf16.vlgmr.msra.gmra.mxu1 %v13391_v16  ;;  %v7258_v16 = vpop.f32.mrf.mxu0 }
 0x423   :  { %8764 = vmatpush3.bf16.msra.mxu1 %v10212_v6  ;;  %v7259_v40 = vadd.f32 %v7258_v16, %v6569_v51 }
 0x424   :  { %8765 = vmatprep.subr.bf16.mxu1 %v10213_v3  ;;  %v7260_v33 = vpop.f32.mrf.mxu0 }
 0x425   :  { %v7261_v10 = vadd.f32 %v7260_v33, %v6565_v25 }
 0x426   :  { %v7262_v32 = vpop.f32.mrf.mxu0 }
 0x427   :  { %8766 = vmatpush3.bf16.msra.mxu1 %v10214_v58  ;;  %v7263_v56 = vadd.f32 %v7262_v32, %v6569_v51 }
 0x428   :  { %8767 = vmatprep.subr.bf16.mxu1 %v10215_v57 }
 0x42b   :  { %8768 = vmatpush3.bf16.msra.mxu1 %v10216_v11  ;;  %v8708_v11 = vld [vmem:[%s13589_s6] ss:$0 sm:$0xff] }
 0x42c   :  { %8769 = vmatprep.subr.bf16.mxu1 %v10217_v7 }
 0x42f   :  { %8770 = vmatpush3.bf16.msra.mxu1 %v10218_v27 }
 0x430   :  { %8771 = vmatprep.subr.bf16.mxu1 %v10219_v4 }
 0x433   :  { %8772 = vmatpush3.bf16.msra.mxu1 %v10220_v9 }
 0x434   :  { %8773 = vmatprep.subr.bf16.mxu1 %v10221_v30 }
 0x437   :  { %8774 = vmatpush3.bf16.msra.mxu1 %v10222_v60 }
 0x438   :  { %8775 = vmatprep.subr.bf16.mxu1 %v10223_v46 }
 0x43b   :  { %8776 = vmatpush3.bf16.msra.mxu1 %v10224_v13 }
 0x43c   :  { %8777 = vmatprep.subr.bf16.mxu1 %v10225_v37 }
 0x43f   :  { %8778 = vmatpush3.bf16.msra.mxu1 %v10226_v36 }
 0x452   :  { %v7342_v28 = vpop.f32.mrf.mxu0 }
 0x453   :  { %v7343_v52 = vadd.f32 %v7342_v28, %v6573_v34 }
 0x454   :  { %v7344_v19 = vpop.f32.mrf.mxu0 }
 0x455   :  { %v7345_v44 = vadd.f32 %v7344_v19, %v6577_v63 }
 0x456   :  { %v7346_v18 = vpop.f32.mrf.mxu0 }
 0x457   :  { %v7347_v8 = vadd.f32 %v7346_v18, %v6573_v34 }
 0x458   :  { %v7348_v50 = vpop.f32.mrf.mxu0 }
 0x459   :  { %v7349_v12 = vadd.f32 %v7348_v50, %v6577_v63 }
 0x4a2   :  { %v7299_v14 = vpop.f32.mrf.mxu1 }
 0x4a3   :  { %v7300_v59 = vadd.f32 %v7299_v14, %v7257_v43 }
 0x4a4   :  { %v7301_v53 = vpop.f32.mrf.mxu1 }
 0x4a5   :  { %v7302_v23 = vadd.f32 %v7301_v53, %v7259_v40  ;;  %v7394_v48 = vmax.f32 %v7300_v59, 0.0 }
 0x4a6   :  { %v7303_v17 = vpop.f32.mrf.mxu1 }
 0x4a7   :  { %v7304_v15 = vadd.f32 %v7303_v17, %v7261_v10  ;;  %v7395_v49 = vmax.f32 %v7302_v23, 0.0 }
 0x4a8   :  { %v7305_v45 = vpop.f32.mrf.mxu1 }
 0x4a9   :  { %v7306_v31 = vadd.f32 %v7305_v45, %v7263_v56  ;;  %v7398_v0 = vmax.f32 %v7304_v15, 0.0 }
 0x4ab   :  { %v7399_v62 = vmax.f32 %v7306_v31, 0.0  ;;  %v7402_v35 = vpack.c.bf16 %v7398_v0, %v7394_v48 }
 0x4ad   :  { %v7403_v1 = vpack.c.bf16 %v7399_v62, %v7395_v49 }
 0x4af   :  { %7701 = vmatprep.mubr.bf16.mxu0 %v7403_v1 }
 0x4b0   :  { %7702 = vmatmul.mubr.bf16.vlgmr.msra.gmra.mxu0 %v7402_v35 }
 0x4e2   :  { %v7385_v38 = vpop.f32.mrf.mxu1 }
 0x4e3   :  { %v7386_v42 = vadd.f32 %v7385_v38, %v7343_v52 }
 0x4e4   :  { %v7387_v24 = vpop.f32.mrf.mxu1 }
 0x4e5   :  { %v7388_v26 = vadd.f32 %v7387_v24, %v7345_v44  ;;  %v7396_v20 = vmax.f32 %v7386_v42, 0.0 }
 0x4e6   :  { %v7389_v61 = vpop.f32.mrf.mxu1 }
 0x4e7   :  { %v7390_v21 = vadd.f32 %v7389_v61, %v7347_v8  ;;  %v7397_v54 = vmax.f32 %v7388_v26, 0.0 }
 0x4e8   :  { %v7391_v2 = vpop.f32.mrf.mxu1 }
 0x4e9   :  { %v7392_v5 = vadd.f32 %v7391_v2, %v7349_v12  ;;  %v7400_v22 = vmax.f32 %v7390_v21, 0.0 }
 0x4eb   :  { %v7401_v29 = vmax.f32 %v7392_v5, 0.0  ;;  %v7404_v47 = vpack.c.bf16 %v7400_v22, %v7396_v20 }
 0x4ed   :  { %v7405_v6 = vpack.c.bf16 %v7401_v29, %v7397_v54 }
 0x4ef   :  { %7742 = vmatprep.mubr.bf16.mxu1 %v7405_v6 }
 0x4f0   :  { %7743 = vmatmul.mubr.bf16.vlgmr.msra.gmra.mxu1 %v7404_v47 }
 0x570   :  { %v8757_v55 = vpop.f32.mrf.mxu0 }
 0x572   :  { %v8758_v3 = vpop.f32.mrf.mxu0 }
 0x573   :  { %v8759_v57 = vadd.f32 %v8758_v3, %v8757_v55 }
 0x574   :  { %v8760_v58 = vpop.f32.mrf.mxu0 }
 0x575   :  { %v7704_v9 = vadd.f32 %v8759_v57, %v8708_v11 }
 0x576   :  { %v8761_v7 = vpop.f32.mrf.mxu0 }
 0x5b0   :  { %v8779_v27 = vpop.f32.mrf.mxu1 }
 0x5b2   :  { %v8780_v4 = vpop.f32.mrf.mxu1 }
 0x5b3   :  { %v8781_v30 = vadd.f32 %v8780_v4, %v8779_v27 }
 0x5b4   :  { %v8782_v60 = vpop.f32.mrf.mxu1 }
 0x5b5   :  { %v7745_v46 = vadd.f32 %v8781_v30, %v7704_v9 }
 0x5b6   :  { %v8783_v13 = vpop.f32.mrf.mxu1 }
 0x5b7   :  { %7751 = vst [vmem:[#allocation2] sm:$0xff] %v7745_v46 }
 0x5be   :  { %v7771_v37 = vld [vmem:[#allocation2] sm:$0x3] }
 0x5bf   :  { %7772 = vst [vmem:[%s13590_s7] sm:$0x3] %v7771_v37 }

</bundles_post_ra>
